<compile_context>
chip_gen: v6e
topology: v6e:2x2x1
jax: 0.10.0
libtpu: 0.0.40
codegen_flags: <defaults>
</compile_context>

<pallas_src>
import jax
import jax.numpy as jnp
from jax.experimental import pallas as pl
from jax.experimental.pallas import tpu as pltpu


# Fixed TDNN frame-level architecture: (kernel_size, dilation) of td_layer1..5.
_CONV_CFG = ((5, 1), (3, 2), (3, 3), (1, 1), (1, 1))
_LANE = 128
_NEG_INF = -1e9          # bias for padded class logits -> exp() == 0

# Packed-vector row layout (see _prep_params):
#   rows 0..11 : (b, s, t) for layers 1..4          (width hidden_p)
#   row  12    : b5                                  (channels_p)
#   row  13    : ba1                                 (bottleneck_p)
#   row  14    : ba2                                 (channels_p)
#   rows 15,16 : s5, t5  ([mean | std] halves padded separately, 2*channels_p)
#   rows 17-19 : bl, s6, t6                          (embd_p)
#   row  20    : bf  (padding filled with _NEG_INF)  (num_class_p)


# ----------------------------------------------------------------------------
# Pallas kernel
# ----------------------------------------------------------------------------

def tdnn_kernel(x_ref, w1_ref, w2_ref, w3_ref, w4_ref, w5_ref,
                wa1_ref, wa2_ref, wl_ref, wf_ref, vecs_ref, out_ref):
    bt = x_ref.shape[0]
    hid_p = w1_ref.shape[1]
    ch_p = w5_ref.shape[1]
    bot_p = wa1_ref.shape[1]
    emb_p = wl_ref.shape[1]
    nc_p = wf_ref.shape[1]

    vecs = vecs_ref[...]                                   # (rows, Wmax) f32

    def vrow(row, width):                                  # static slices, cheap
        return vecs[row:row + 1, :width]

    def mm(a_f32, w_ref, bias):                            # bf16 MXU, f32 accum
        return jnp.dot(a_f32.astype(jnp.bfloat16), w_ref[...],
                       preferred_element_type=jnp.float32) + bias

    def im2col(h3, ksize, dil):
        """(bt, T, C) f32 -> ((bt*T_out, K*C) f32, T_out); batch folded into M."""
        t_in, c = h3.shape[1], h3.shape[2]
        t_out = t_in - dil * (ksize - 1)
        if ksize == 1:
            cols = h3
        else:
            cols = jnp.concatenate(                        # lane-aligned 128-wide pieces
                [h3[:, k * dil:k * dil + t_out, :] for k in range(ksize)],
                axis=2)
        return cols.reshape(bt * t_out, ksize * c), t_out

    b1, s1, t1 = vrow(0, hid_p), vrow(1, hid_p), vrow(2, hid_p)
    b2, s2, t2 = vrow(3, hid_p), vrow(4, hid_p), vrow(5, hid_p)
    b3, s3, t3 = vrow(6, hid_p), vrow(7, hid_p), vrow(8, hid_p)
    b4, s4, t4 = vrow(9, hid_p), vrow(10, hid_p), vrow(11, hid_p)
    b5 = vrow(12, ch_p)
    ba1, ba2 = vrow(13, bot_p), vrow(14, ch_p)
    s5, t5 = vrow(15, 2 * ch_p), vrow(16, 2 * ch_p)
    bl, s6, t6 = vrow(17, emb_p), vrow(18, emb_p), vrow(19, emb_p)
    bf = vrow(20, nc_p)

    # ---- frame-level TDNN: one big matmul per layer -------------------------
    # layer 1 (k=5, d=1): im2col straight from the f32 input, cast once at dot.
    cols, t_len = im2col(x_ref[...], *_CONV_CFG[0])
    h = jnp.maximum(mm(cols, w1_ref, b1), 0.0) * s1 + t1         # (bt*T1, hid_p)

    cols, t_len = im2col(h.reshape(bt, t_len, hid_p), *_CONV_CFG[1])
    h = jnp.maximum(mm(cols, w2_ref, b2), 0.0) * s2 + t2         # (bt*T2, hid_p)

    cols, t_len = im2col(h.reshape(bt, t_len, hid_p), *_CONV_CFG[2])
    h = jnp.maximum(mm(cols, w3_ref, b3), 0.0) * s3 + t3         # (bt*T3, hid_p)

    # layers 4 & 5 are pointwise (k=1): stay 2-D, no im2col needed.
    h = jnp.maximum(mm(h, w4_ref, b4), 0.0) * s4 + t4
    h = jnp.maximum(mm(h, w5_ref, b5), 0.0)                      # (bt*T5, ch_p)

    # ---- attentive statistics pooling (softmax over time, per channel) ------
    a = jnp.tanh(mm(h, wa1_ref, ba1))                            # (bt*T5, bot_p) f32
    logits = mm(a, wa2_ref, ba2)                                 # (bt*T5, ch_p)  f32

    h3 = h.reshape(bt, t_len, ch_p)
    lg3 = logits.reshape(bt, t_len, ch_p)
    lg3 = lg3 - jnp.max(lg3, axis=1, keepdims=True)
    e = jnp.exp(lg3)
    # alpha is never materialized: mean = S1/S0, E[h^2] = S2/S0.
    s0 = jnp.sum(e, axis=1)                                      # (bt, ch_p)
    sh = jnp.sum(e * h3, axis=1)
    shh = jnp.sum(e * h3 * h3, axis=1)
    inv0 = 1.0 / s0                                              # exact divide (tiny)
    mean = sh * inv0
    resid = shh * inv0 - mean * mean
    std = jnp.sqrt(jnp.maximum(resid, 1e-9))
    pooled = jnp.concatenate([mean, std], axis=1)                # (bt, 2*ch_p)

    # ---- bn5 -> linear -> bn6 -> fc -> softmax over classes -----------------
    z = pooled * s5 + t5
    emb = mm(z, wl_ref, bl) * s6 + t6                            # (bt, emb_p)
    cls = mm(emb, wf_ref, bf)                                    # (bt, nc_p)
    cls = cls - jnp.max(cls, axis=1, keepdims=True)
    ce = jnp.exp(cls)                                            # padded classes -> 0
    out_ref[...] = ce / jnp.sum(ce, axis=1, keepdims=True)       # one dense store


# ----------------------------------------------------------------------------
# Parameter prep (lane padding + packing) and wrapper
# ----------------------------------------------------------------------------

def _round_up(v, m=_LANE):
    return ((v + m - 1) // m) * m


def _prep_params(params):
    """Pad channel dims to 128-lane multiples, fold conv weights to
    (K*Cin_p, Cout_p) bf16, and pack the small bias / folded-BN vectors into a
    single f32 array (one DMA instead of ~20)."""
    cin = params["w1"].shape[1]
    hid = params["w1"].shape[2]
    ch = params["w5"].shape[2]
    bot = params["wa1"].shape[1]
    emb = params["wl"].shape[1]
    nc = params["wf"].shape[1]
    cin_p, hid_p, ch_p = _round_up(cin), _round_up(hid), _round_up(ch)
    bot_p, emb_p, nc_p = _round_up(bot), _round_up(emb), _round_up(nc)

    def conv_w(w, ci_p, co_p):
        k, ci, co = w.shape
        w = jnp.pad(w, ((0, 0), (0, ci_p - ci), (0, co_p - co)))
        return w.reshape(k * ci_p, co_p).astype(jnp.bfloat16)    # tap-major, ch-minor

    def mat_w(w, r_p, c_p):
        r, c = w.shape
        return jnp.pad(w, ((0, r_p - r), (0, c_p - c))).astype(jnp.bfloat16)

    def vec(v, w_p, fill=0.0):
        v = jnp.asarray(v, jnp.float32).reshape(1, -1)
        return jnp.pad(v, ((0, 0), (0, w_p - v.shape[1])), constant_values=fill)

    def vec_split(v, half_p):        # (1, 2*ch) -> (1, 2*ch_p); halves padded separately
        v = jnp.asarray(v, jnp.float32).reshape(-1)
        return jnp.concatenate([jnp.pad(v[:ch], (0, half_p - ch)),
                                jnp.pad(v[ch:], (0, half_p - ch))]).reshape(1, -1)

    weights = [
        conv_w(params["w1"], cin_p, hid_p),
        conv_w(params["w2"], hid_p, hid_p),
        conv_w(params["w3"], hid_p, hid_p),
        conv_w(params["w4"], hid_p, hid_p),
        conv_w(params["w5"], hid_p, ch_p),
        mat_w(params["wa1"], ch_p, bot_p),
        mat_w(params["wa2"], bot_p, ch_p),
        # wl rows follow the pooled [mean | std] layout -> pad each half separately.
        jnp.concatenate(
            [jnp.pad(params["wl"][:ch], ((0, ch_p - ch), (0, emb_p - emb))),
             jnp.pad(params["wl"][ch:], ((0, ch_p - ch), (0, emb_p - emb)))],
            axis=0).astype(jnp.bfloat16),
        mat_w(params["wf"], emb_p, nc_p),
    ]

    rows = [
        vec(params["b1"], hid_p), vec(params["s1"], hid_p), vec(params["t1"], hid_p),
        vec(params["b2"], hid_p), vec(params["s2"], hid_p), vec(params["t2"], hid_p),
        vec(params["b3"], hid_p), vec(params["s3"], hid_p), vec(params["t3"], hid_p),
        vec(params["b4"], hid_p), vec(params["s4"], hid_p), vec(params["t4"], hid_p),
        vec(params["b5"], ch_p),
        vec(params["ba1"], bot_p), vec(params["ba2"], ch_p),
        vec_split(params["s5"], ch_p), vec_split(params["t5"], ch_p),
        vec(params["bl"], emb_p), vec(params["s6"], emb_p), vec(params["t6"], emb_p),
        vec(params["bf"], nc_p, fill=_NEG_INF),   # padded class logits -> -1e9
    ]
    w_max = max(r.shape[1] for r in rows)
    vecs = jnp.concatenate(
        [jnp.pad(r, ((0, 0), (0, w_max - r.shape[1]))) for r in rows], axis=0)
    vecs = jnp.pad(vecs, ((0, (-vecs.shape[0]) % 8), (0, 0)))    # sublane-dense rows

    dims = dict(cin=cin, cin_p=cin_p, hid_p=hid_p, ch_p=ch_p,
                bot_p=bot_p, emb_p=emb_p, nc=nc, nc_p=nc_p)
    return weights, vecs, dims


def _vmem_capacity_bytes(default=64 << 20):
    """Physical VMEM per core.  Narrow query-only guard: a failure here only
    picks the conservative default cap; the pallas_call itself is never
    wrapped, so real kernel compile/runtime errors are not masked."""
    if not hasattr(pltpu, "get_tpu_info"):
        return default
    try:
        return int(getattr(pltpu.get_tpu_info(), "vmem_capacity_bytes", default))
    except Exception:
        return default


def tdnn_forward(x, params, *, block_batch=8):
    """x: (N, T, Cin) float32 -> (N, num_class) softmax probabilities."""
    n, t, cin = x.shape
    if n % block_batch:
        raise ValueError(f"batch {n} must be divisible by block_batch {block_batch}")
    min_t = 1 + sum(d * (k - 1) for k, d in _CONV_CFG)
    if t < min_t:
        raise ValueError(f"need at least {min_t} frames, got {t}")

    weights, vecs, dims = _prep_params(params)
    cin_p, nc_p = dims["cin_p"], dims["nc_p"]
    x_pad = jnp.pad(x.astype(jnp.float32), ((0, 0), (0, 0), (0, cin_p - cin)))

    # VMEM budget: resident weights (default double-buffered; <1 MiB here),
    # blocked I/O and a generous per-step activation bound; clamp to physical
    # VMEM minus >=24 MiB headroom (v7x 64 MiB -> <=40 MiB; v5e/v6e -> <=96 MiB).
    weight_bytes = sum(int(w.size) * w.dtype.itemsize for w in weights)
    weight_bytes += int(vecs.size) * vecs.dtype.itemsize
    io_bytes = block_batch * (t * cin_p + nc_p) * 4
    act_bytes = 3 * block_batch * t * (
        5 * cin_p + 2 * dims["hid_p"] + 2 * dims["ch_p"]) * 4
    est = 2 * (weight_bytes + io_bytes) + act_bytes + (8 << 20)
    cap = max(min(_vmem_capacity_bytes() - (24 << 20), 96 << 20), 32 << 20)
    vmem_limit = int(min(max(est, 32 << 20), cap))

    in_specs = [pl.BlockSpec((block_batch, t, cin_p), lambda b: (b, 0, 0))]
    for w in weights:                               # resident, constant index map
        in_specs.append(pl.BlockSpec(w.shape, lambda b: (0, 0)))
    in_specs.append(pl.BlockSpec(vecs.shape, lambda b: (0, 0)))

    out = pl.pallas_call(
        tdnn_kernel,
        out_shape=jax.ShapeDtypeStruct((n, nc_p), jnp.float32),
        grid=(n // block_batch,),
        in_specs=in_specs,
        out_specs=pl.BlockSpec((block_batch, nc_p), lambda b: (b, 0)),
        compiler_params=pltpu.CompilerParams(
            dimension_semantics=("parallel",),
            vmem_limit_bytes=vmem_limit),
    )(x_pad, *weights, vecs)
    return out[:, :dims["nc"]]


# ----------------------------------------------------------------------------
# Parameter construction (deterministic, synthetic)
# ----------------------------------------------------------------------------

def init_params(key, *, input_size, hidden, channels, bottleneck, embd, num_class):
    keys = iter(jax.random.split(key, 64))

    def nrm(shape, scale=0.1):
        return (scale * jax.random.normal(next(keys), shape)).astype(jnp.float32)

    def bn_fold(dim):
        eps = 1e-5
        gamma = 1.0 + 0.1 * jax.random.normal(next(keys), (1, dim))
        beta = 0.1 * jax.random.normal(next(keys), (1, dim))
        rmean = 0.05 * jax.random.normal(next(keys), (1, dim))
        rvar = jnp.abs(1.0 + 0.1 * jax.random.normal(next(keys), (1, dim)))
        scale = gamma / jnp.sqrt(rvar + eps)
        shift = beta - rmean * scale
        return scale.astype(jnp.float32), shift.astype(jnp.float32)

    p = {}
    # td_layer1..5  (weights stored as (K, Cin, Cout))
    p["w1"], p["b1"] = nrm((5, input_size, hidden)), nrm((1, hidden))
    p["s1"], p["t1"] = bn_fold(hidden)
    p["w2"], p["b2"] = nrm((3, hidden, hidden)), nrm((1, hidden))
    p["s2"], p["t2"] = bn_fold(hidden)
    p["w3"], p["b3"] = nrm((3, hidden, hidden)), nrm((1, hidden))
    p["s3"], p["t3"] = bn_fold(hidden)
    p["w4"], p["b4"] = nrm((1, hidden, hidden)), nrm((1, hidden))
    p["s4"], p["t4"] = bn_fold(hidden)
    p["w5"], p["b5"] = nrm((1, hidden, channels)), nrm((1, channels))
    # ASP pooling (Conv1d kernel_size=1 == matmul over channels)
    p["wa1"], p["ba1"] = nrm((channels, bottleneck)), nrm((1, bottleneck))
    p["wa2"], p["ba2"] = nrm((bottleneck, channels)), nrm((1, channels))
    # bn5 / linear / bn6 / fc
    p["s5"], p["t5"] = bn_fold(2 * channels)
    p["wl"], p["bl"] = nrm((2 * channels, embd)), nrm((1, embd))
    p["s6"], p["t6"] = bn_fold(embd)
    p["wf"], p["bf"] = nrm((embd, num_class)), nrm((1, num_class))
    return p


# ----------------------------------------------------------------------------
# Plain-JAX reference (f32, for correctness check)
# ----------------------------------------------------------------------------

def ref_forward(x, p):
    def conv(x, w, b, dil):
        k = w.shape[0]
        t_out = x.shape[1] - dil * (k - 1)
        acc = jnp.zeros((x.shape[0], t_out, w.shape[2]), jnp.float32) + b
        for i in range(k):
            acc = acc + jnp.einsum("ntc,co->nto",
                                   x[:, i * dil:i * dil + t_out, :], w[i])
        return acc

    def bnrelu(h, s, t):
        return jnp.maximum(h, 0.0) * s + t

    h = bnrelu(conv(x, p["w1"], p["b1"], 1), p["s1"], p["t1"])
    h = bnrelu(conv(h, p["w2"], p["b2"], 2), p["s2"], p["t2"])
    h = bnrelu(conv(h, p["w3"], p["b3"], 3), p["s3"], p["t3"])
    h = bnrelu(conv(h, p["w4"], p["b4"], 1), p["s4"], p["t4"])
    h = jnp.maximum(conv(h, p["w5"], p["b5"], 1), 0.0)

    a = jnp.tanh(jnp.einsum("ntc,cb->ntb", h, p["wa1"]) + p["ba1"])
    logits = jnp.einsum("ntb,bc->ntc", a, p["wa2"]) + p["ba2"]
    alpha = jax.nn.softmax(logits, axis=1)
    mean = jnp.sum(alpha * h, axis=1)
    resid = jnp.sum(alpha * h * h, axis=1) - mean ** 2
    std = jnp.sqrt(jnp.clip(resid, 1e-9))
    pooled = jnp.concatenate([mean, std], axis=1)

    z = pooled * p["s5"][0] + p["t5"][0]
    emb = z @ p["wl"] + p["bl"][0]
    emb = emb * p["s6"][0] + p["t6"][0]
    cls = emb @ p["wf"] + p["bf"][0]
    return jax.nn.softmax(cls, axis=1)


# ----------------------------------------------------------------------------
# Demo
# ----------------------------------------------------------------------------

if __name__ == "__main__":
    # Small, TDNN-consistent stand-ins for (80 / 512 / 512 / 128 / 192 / ...).
    N, T, CIN = 16, 40, 24          # batch, frames, input feature dim
    HIDDEN, CHANNELS = 64, 32       # td_layer1-4 width, td_layer5 width
    BOTTLENECK, EMBD, NUM_CLASS = 16, 16, 10
    BLOCK_BATCH = 8                 # multiple of 8; grid=(2,) even for v7x's 2 TCs

    key = jax.random.PRNGKey(0)
    kx, kp = jax.random.split(key)
    # (PyTorch uses (N, C, T); the kernel uses channels-last (N, T, C).)
    x = jax.random.normal(kx, (N, T, CIN), dtype=jnp.float32)
    params = init_params(kp, input_size=CIN, hidden=HIDDEN, channels=CHANNELS,
                         bottleneck=BOTTLENECK, embd=EMBD, num_class=NUM_CLASS)

    out = jax.block_until_ready(tdnn_forward(x, params, block_batch=BLOCK_BATCH))
    ref = jax.block_until_ready(ref_forward(x, params))

    assert out.shape == (N, NUM_CLASS)
    assert bool(jnp.allclose(jnp.sum(out, axis=1), 1.0, atol=1e-4)), jnp.sum(out, axis=1)
    # bf16 matmuls (f32 accumulation) vs f32 reference -> loosened tolerance.
    assert bool(jnp.allclose(out, ref, atol=2e-2, rtol=2e-2)), (out, ref)

    print("KERNEL_OK")
</pallas_src>

<mosaic_0001>
module attributes {stable_mosaic.version = 11 : i64} {
  func.func @tdnn_kernel(%arg0: i32, %arg1: memref<8x40x128xf32, #tpu.memory_space<vmem>>, %arg2: memref<640x128xbf16, #tpu.memory_space<vmem>>, %arg3: memref<384x128xbf16, #tpu.memory_space<vmem>>, %arg4: memref<384x128xbf16, #tpu.memory_space<vmem>>, %arg5: memref<128x128xbf16, #tpu.memory_space<vmem>>, %arg6: memref<128x128xbf16, #tpu.memory_space<vmem>>, %arg7: memref<128x128xbf16, #tpu.memory_space<vmem>>, %arg8: memref<128x128xbf16, #tpu.memory_space<vmem>>, %arg9: memref<256x128xbf16, #tpu.memory_space<vmem>>, %arg10: memref<128x128xbf16, #tpu.memory_space<vmem>>, %arg11: memref<24x256xf32, #tpu.memory_space<vmem>>, %arg12: memref<8x128xf32, #tpu.memory_space<vmem>>) attributes {dimension_semantics = [#tpu.dimension_semantics<parallel>], iteration_bounds = array<i64: 2>, scalar_prefetch = 0 : i64, scratch_operands = 0 : i64, tpu.core_type = #tpu.core_type<tc>, window_params = [{transform_indices = @transform_0, window_bounds = array<i64: 8, 40, 128>}, {pipeline_mode = #tpu.pipeline_mode<synchronous>, transform_indices = @transform_1, window_bounds = array<i64: 640, 128>}, {pipeline_mode = #tpu.pipeline_mode<synchronous>, transform_indices = @transform_2, window_bounds = array<i64: 384, 128>}, {pipeline_mode = #tpu.pipeline_mode<synchronous>, transform_indices = @transform_3, window_bounds = array<i64: 384, 128>}, {pipeline_mode = #tpu.pipeline_mode<synchronous>, transform_indices = @transform_4, window_bounds = array<i64: 128, 128>}, {pipeline_mode = #tpu.pipeline_mode<synchronous>, transform_indices = @transform_5, window_bounds = array<i64: 128, 128>}, {pipeline_mode = #tpu.pipeline_mode<synchronous>, transform_indices = @transform_6, window_bounds = array<i64: 128, 128>}, {pipeline_mode = #tpu.pipeline_mode<synchronous>, transform_indices = @transform_7, window_bounds = array<i64: 128, 128>}, {pipeline_mode = #tpu.pipeline_mode<synchronous>, transform_indices = @transform_8, window_bounds = array<i64: 256, 128>}, {pipeline_mode = #tpu.pipeline_mode<synchronous>, transform_indices = @transform_9, window_bounds = array<i64: 128, 128>}, {pipeline_mode = #tpu.pipeline_mode<synchronous>, transform_indices = @transform_10, window_bounds = array<i64: 24, 256>}, {transform_indices = @transform_11, window_bounds = array<i64: 8, 128>}]} {
    %c0 = arith.constant 0 : index
    %c0_0 = arith.constant 0 : index
    %0 = vector.load %arg11[%c0, %c0_0] : memref<24x256xf32, #tpu.memory_space<vmem>>, vector<24x256xf32>
    %1 = vector.extract_strided_slice %0 {offsets = [0, 0], sizes = [1, 128], strides = [1, 1]} : vector<24x256xf32> to vector<1x128xf32>
    %2 = vector.extract_strided_slice %0 {offsets = [1, 0], sizes = [1, 128], strides = [1, 1]} : vector<24x256xf32> to vector<1x128xf32>
    %3 = vector.extract_strided_slice %0 {offsets = [2, 0], sizes = [1, 128], strides = [1, 1]} : vector<24x256xf32> to vector<1x128xf32>
    %4 = vector.extract_strided_slice %0 {offsets = [3, 0], sizes = [1, 128], strides = [1, 1]} : vector<24x256xf32> to vector<1x128xf32>
    %5 = vector.extract_strided_slice %0 {offsets = [4, 0], sizes = [1, 128], strides = [1, 1]} : vector<24x256xf32> to vector<1x128xf32>
    %6 = vector.extract_strided_slice %0 {offsets = [5, 0], sizes = [1, 128], strides = [1, 1]} : vector<24x256xf32> to vector<1x128xf32>
    %7 = vector.extract_strided_slice %0 {offsets = [6, 0], sizes = [1, 128], strides = [1, 1]} : vector<24x256xf32> to vector<1x128xf32>
    %8 = vector.extract_strided_slice %0 {offsets = [7, 0], sizes = [1, 128], strides = [1, 1]} : vector<24x256xf32> to vector<1x128xf32>
    %9 = vector.extract_strided_slice %0 {offsets = [8, 0], sizes = [1, 128], strides = [1, 1]} : vector<24x256xf32> to vector<1x128xf32>
    %10 = vector.extract_strided_slice %0 {offsets = [9, 0], sizes = [1, 128], strides = [1, 1]} : vector<24x256xf32> to vector<1x128xf32>
    %11 = vector.extract_strided_slice %0 {offsets = [10, 0], sizes = [1, 128], strides = [1, 1]} : vector<24x256xf32> to vector<1x128xf32>
    %12 = vector.extract_strided_slice %0 {offsets = [11, 0], sizes = [1, 128], strides = [1, 1]} : vector<24x256xf32> to vector<1x128xf32>
    %13 = vector.extract_strided_slice %0 {offsets = [12, 0], sizes = [1, 128], strides = [1, 1]} : vector<24x256xf32> to vector<1x128xf32>
    %14 = vector.extract_strided_slice %0 {offsets = [13, 0], sizes = [1, 128], strides = [1, 1]} : vector<24x256xf32> to vector<1x128xf32>
    %15 = vector.extract_strided_slice %0 {offsets = [14, 0], sizes = [1, 128], strides = [1, 1]} : vector<24x256xf32> to vector<1x128xf32>
    %16 = vector.extract_strided_slice %0 {offsets = [15, 0], sizes = [1, 256], strides = [1, 1]} : vector<24x256xf32> to vector<1x256xf32>
    %17 = vector.extract_strided_slice %0 {offsets = [16, 0], sizes = [1, 256], strides = [1, 1]} : vector<24x256xf32> to vector<1x256xf32>
    %18 = vector.extract_strided_slice %0 {offsets = [17, 0], sizes = [1, 128], strides = [1, 1]} : vector<24x256xf32> to vector<1x128xf32>
    %19 = vector.extract_strided_slice %0 {offsets = [18, 0], sizes = [1, 128], strides = [1, 1]} : vector<24x256xf32> to vector<1x128xf32>
    %20 = vector.extract_strided_slice %0 {offsets = [19, 0], sizes = [1, 128], strides = [1, 1]} : vector<24x256xf32> to vector<1x128xf32>
    %21 = vector.extract_strided_slice %0 {offsets = [20, 0], sizes = [1, 128], strides = [1, 1]} : vector<24x256xf32> to vector<1x128xf32>
    %c0_1 = arith.constant 0 : index
    %c0_2 = arith.constant 0 : index
    %c0_3 = arith.constant 0 : index
    %22 = vector.load %arg1[%c0_1, %c0_2, %c0_3] : memref<8x40x128xf32, #tpu.memory_space<vmem>>, vector<8x40x128xf32>
    %23 = vector.extract_strided_slice %22 {offsets = [0, 0, 0], sizes = [8, 36, 128], strides = [1, 1, 1]} : vector<8x40x128xf32> to vector<8x36x128xf32>
    %24 = vector.extract_strided_slice %22 {offsets = [0, 1, 0], sizes = [8, 36, 128], strides = [1, 1, 1]} : vector<8x40x128xf32> to vector<8x36x128xf32>
    %25 = vector.extract_strided_slice %22 {offsets = [0, 2, 0], sizes = [8, 36, 128], strides = [1, 1, 1]} : vector<8x40x128xf32> to vector<8x36x128xf32>
    %26 = vector.extract_strided_slice %22 {offsets = [0, 3, 0], sizes = [8, 36, 128], strides = [1, 1, 1]} : vector<8x40x128xf32> to vector<8x36x128xf32>
    %27 = vector.extract_strided_slice %22 {offsets = [0, 4, 0], sizes = [8, 36, 128], strides = [1, 1, 1]} : vector<8x40x128xf32> to vector<8x36x128xf32>
    %28 = tpu.concatenate %23, %24, %25, %26, %27 in 2 : vector<8x36x128xf32>, vector<8x36x128xf32>, vector<8x36x128xf32>, vector<8x36x128xf32>, vector<8x36x128xf32> -> vector<8x36x640xf32>
    %29 = vector.shape_cast %28 : vector<8x36x640xf32> to vector<288x640xf32>
    %30 = arith.truncf %29 : vector<288x640xf32> to vector<288x640xbf16>
    %c0_4 = arith.constant 0 : index
    %c0_5 = arith.constant 0 : index
    %31 = vector.load %arg2[%c0_4, %c0_5] : memref<640x128xbf16, #tpu.memory_space<vmem>>, vector<640x128xbf16>
    %cst = arith.constant dense<0.000000e+00> : vector<288x128xf32>
    %32 = tpu.matmul %30, %31, %cst {dimension_numbers = #tpu.dot_dimension_numbers<[1], [0], [0], [1], [0, 0, 1, 1], [], []>} : vector<288x640xbf16>, vector<640x128xbf16>, vector<288x128xf32> -> vector<288x128xf32>
    %33 = vector.broadcast %1 : vector<1x128xf32> to vector<288x128xf32>
    %34 = arith.addf %32, %33 : vector<288x128xf32>
    %cst_6 = arith.constant 0.000000e+00 : f32
    %35 = vector.broadcast %cst_6 : f32 to vector<288x128xf32>
    %36 = arith.maximumf %34, %35 : vector<288x128xf32>
    %37 = vector.broadcast %2 : vector<1x128xf32> to vector<288x128xf32>
    %38 = arith.mulf %36, %37 : vector<288x128xf32>
    %39 = vector.broadcast %3 : vector<1x128xf32> to vector<288x128xf32>
    %40 = arith.addf %38, %39 : vector<288x128xf32>
    %41 = vector.shape_cast %40 : vector<288x128xf32> to vector<8x36x128xf32>
    %42 = vector.extract_strided_slice %41 {offsets = [0, 0, 0], sizes = [8, 32, 128], strides = [1, 1, 1]} : vector<8x36x128xf32> to vector<8x32x128xf32>
    %43 = vector.extract_strided_slice %41 {offsets = [0, 2, 0], sizes = [8, 32, 128], strides = [1, 1, 1]} : vector<8x36x128xf32> to vector<8x32x128xf32>
    %44 = vector.extract_strided_slice %41 {offsets = [0, 4, 0], sizes = [8, 32, 128], strides = [1, 1, 1]} : vector<8x36x128xf32> to vector<8x32x128xf32>
    %45 = tpu.concatenate %42, %43, %44 in 2 : vector<8x32x128xf32>, vector<8x32x128xf32>, vector<8x32x128xf32> -> vector<8x32x384xf32>
    %46 = vector.shape_cast %45 : vector<8x32x384xf32> to vector<256x384xf32>
    %47 = arith.truncf %46 : vector<256x384xf32> to vector<256x384xbf16>
    %c0_7 = arith.constant 0 : index
    %c0_8 = arith.constant 0 : index
    %48 = vector.load %arg3[%c0_7, %c0_8] : memref<384x128xbf16, #tpu.memory_space<vmem>>, vector<384x128xbf16>
    %cst_9 = arith.constant dense<0.000000e+00> : vector<256x128xf32>
    %49 = tpu.matmul %47, %48, %cst_9 {dimension_numbers = #tpu.dot_dimension_numbers<[1], [0], [0], [1], [0, 0, 1, 1], [], []>} : vector<256x384xbf16>, vector<384x128xbf16>, vector<256x128xf32> -> vector<256x128xf32>
    %50 = vector.broadcast %4 : vector<1x128xf32> to vector<256x128xf32>
    %51 = arith.addf %49, %50 : vector<256x128xf32>
    %cst_10 = arith.constant 0.000000e+00 : f32
    %52 = vector.broadcast %cst_10 : f32 to vector<256x128xf32>
    %53 = arith.maximumf %51, %52 : vector<256x128xf32>
    %54 = vector.broadcast %5 : vector<1x128xf32> to vector<256x128xf32>
    %55 = arith.mulf %53, %54 : vector<256x128xf32>
    %56 = vector.broadcast %6 : vector<1x128xf32> to vector<256x128xf32>
    %57 = arith.addf %55, %56 : vector<256x128xf32>
    %58 = vector.shape_cast %57 : vector<256x128xf32> to vector<8x32x128xf32>
    %59 = vector.extract_strided_slice %58 {offsets = [0, 0, 0], sizes = [8, 26, 128], strides = [1, 1, 1]} : vector<8x32x128xf32> to vector<8x26x128xf32>
    %60 = vector.extract_strided_slice %58 {offsets = [0, 3, 0], sizes = [8, 26, 128], strides = [1, 1, 1]} : vector<8x32x128xf32> to vector<8x26x128xf32>
    %61 = vector.extract_strided_slice %58 {offsets = [0, 6, 0], sizes = [8, 26, 128], strides = [1, 1, 1]} : vector<8x32x128xf32> to vector<8x26x128xf32>
    %62 = tpu.concatenate %59, %60, %61 in 2 : vector<8x26x128xf32>, vector<8x26x128xf32>, vector<8x26x128xf32> -> vector<8x26x384xf32>
    %63 = vector.shape_cast %62 : vector<8x26x384xf32> to vector<208x384xf32>
    %64 = arith.truncf %63 : vector<208x384xf32> to vector<208x384xbf16>
    %c0_11 = arith.constant 0 : index
    %c0_12 = arith.constant 0 : index
    %65 = vector.load %arg4[%c0_11, %c0_12] : memref<384x128xbf16, #tpu.memory_space<vmem>>, vector<384x128xbf16>
    %cst_13 = arith.constant dense<0.000000e+00> : vector<208x128xf32>
    %66 = tpu.matmul %64, %65, %cst_13 {dimension_numbers = #tpu.dot_dimension_numbers<[1], [0], [0], [1], [0, 0, 1, 1], [], []>} : vector<208x384xbf16>, vector<384x128xbf16>, vector<208x128xf32> -> vector<208x128xf32>
    %67 = vector.broadcast %7 : vector<1x128xf32> to vector<208x128xf32>
    %68 = arith.addf %66, %67 : vector<208x128xf32>
    %cst_14 = arith.constant 0.000000e+00 : f32
    %69 = vector.broadcast %cst_14 : f32 to vector<208x128xf32>
    %70 = arith.maximumf %68, %69 : vector<208x128xf32>
    %71 = vector.broadcast %8 : vector<1x128xf32> to vector<208x128xf32>
    %72 = arith.mulf %70, %71 : vector<208x128xf32>
    %73 = vector.broadcast %9 : vector<1x128xf32> to vector<208x128xf32>
    %74 = arith.addf %72, %73 : vector<208x128xf32>
    %75 = arith.truncf %74 : vector<208x128xf32> to vector<208x128xbf16>
    %c0_15 = arith.constant 0 : index
    %c0_16 = arith.constant 0 : index
    %76 = vector.load %arg5[%c0_15, %c0_16] : memref<128x128xbf16, #tpu.memory_space<vmem>>, vector<128x128xbf16>
    %cst_17 = arith.constant dense<0.000000e+00> : vector<208x128xf32>
    %77 = tpu.matmul %75, %76, %cst_17 {dimension_numbers = #tpu.dot_dimension_numbers<[1], [0], [0], [1], [0, 0, 1, 1], [], []>} : vector<208x128xbf16>, vector<128x128xbf16>, vector<208x128xf32> -> vector<208x128xf32>
    %78 = vector.broadcast %10 : vector<1x128xf32> to vector<208x128xf32>
    %79 = arith.addf %77, %78 : vector<208x128xf32>
    %cst_18 = arith.constant 0.000000e+00 : f32
    %80 = vector.broadcast %cst_18 : f32 to vector<208x128xf32>
    %81 = arith.maximumf %79, %80 : vector<208x128xf32>
    %82 = vector.broadcast %11 : vector<1x128xf32> to vector<208x128xf32>
    %83 = arith.mulf %81, %82 : vector<208x128xf32>
    %84 = vector.broadcast %12 : vector<1x128xf32> to vector<208x128xf32>
    %85 = arith.addf %83, %84 : vector<208x128xf32>
    %86 = arith.truncf %85 : vector<208x128xf32> to vector<208x128xbf16>
    %c0_19 = arith.constant 0 : index
    %c0_20 = arith.constant 0 : index
    %87 = vector.load %arg6[%c0_19, %c0_20] : memref<128x128xbf16, #tpu.memory_space<vmem>>, vector<128x128xbf16>
    %cst_21 = arith.constant dense<0.000000e+00> : vector<208x128xf32>
    %88 = tpu.matmul %86, %87, %cst_21 {dimension_numbers = #tpu.dot_dimension_numbers<[1], [0], [0], [1], [0, 0, 1, 1], [], []>} : vector<208x128xbf16>, vector<128x128xbf16>, vector<208x128xf32> -> vector<208x128xf32>
    %89 = vector.broadcast %13 : vector<1x128xf32> to vector<208x128xf32>
    %90 = arith.addf %88, %89 : vector<208x128xf32>
    %cst_22 = arith.constant 0.000000e+00 : f32
    %91 = vector.broadcast %cst_22 : f32 to vector<208x128xf32>
    %92 = arith.maximumf %90, %91 : vector<208x128xf32>
    %93 = arith.truncf %92 : vector<208x128xf32> to vector<208x128xbf16>
    %c0_23 = arith.constant 0 : index
    %c0_24 = arith.constant 0 : index
    %94 = vector.load %arg7[%c0_23, %c0_24] : memref<128x128xbf16, #tpu.memory_space<vmem>>, vector<128x128xbf16>
    %cst_25 = arith.constant dense<0.000000e+00> : vector<208x128xf32>
    %95 = tpu.matmul %93, %94, %cst_25 {dimension_numbers = #tpu.dot_dimension_numbers<[1], [0], [0], [1], [0, 0, 1, 1], [], []>} : vector<208x128xbf16>, vector<128x128xbf16>, vector<208x128xf32> -> vector<208x128xf32>
    %96 = vector.broadcast %14 : vector<1x128xf32> to vector<208x128xf32>
    %97 = arith.addf %95, %96 : vector<208x128xf32>
    %98 = math.tanh %97 : vector<208x128xf32>
    %99 = arith.truncf %98 : vector<208x128xf32> to vector<208x128xbf16>
    %c0_26 = arith.constant 0 : index
    %c0_27 = arith.constant 0 : index
    %100 = vector.load %arg8[%c0_26, %c0_27] : memref<128x128xbf16, #tpu.memory_space<vmem>>, vector<128x128xbf16>
    %cst_28 = arith.constant dense<0.000000e+00> : vector<208x128xf32>
    %101 = tpu.matmul %99, %100, %cst_28 {dimension_numbers = #tpu.dot_dimension_numbers<[1], [0], [0], [1], [0, 0, 1, 1], [], []>} : vector<208x128xbf16>, vector<128x128xbf16>, vector<208x128xf32> -> vector<208x128xf32>
    %102 = vector.broadcast %15 : vector<1x128xf32> to vector<208x128xf32>
    %103 = arith.addf %101, %102 : vector<208x128xf32>
    %104 = vector.shape_cast %92 : vector<208x128xf32> to vector<8x26x128xf32>
    %105 = vector.shape_cast %103 : vector<208x128xf32> to vector<8x26x128xf32>
    %cst_29 = arith.constant dense<0xFF800000> : vector<8x128xf32>
    %106 = vector.multi_reduction <maximumf>, %105, %cst_29 [1] : vector<8x26x128xf32> to vector<8x128xf32>
    %107 = vector.shape_cast %106 : vector<8x128xf32> to vector<8x1x128xf32>
    %108 = vector.broadcast %107 : vector<8x1x128xf32> to vector<8x26x128xf32>
    %109 = arith.subf %105, %108 : vector<8x26x128xf32>
    %110 = math.exp %109 : vector<8x26x128xf32>
    %cst_30 = arith.constant dense<0.000000e+00> : vector<8x128xf32>
    %111 = vector.multi_reduction <add>, %110, %cst_30 [1] : vector<8x26x128xf32> to vector<8x128xf32>
    %112 = arith.mulf %110, %104 : vector<8x26x128xf32>
    %cst_31 = arith.constant dense<0.000000e+00> : vector<8x128xf32>
    %113 = vector.multi_reduction <add>, %112, %cst_31 [1] : vector<8x26x128xf32> to vector<8x128xf32>
    %114 = arith.mulf %110, %104 : vector<8x26x128xf32>
    %115 = arith.mulf %114, %104 : vector<8x26x128xf32>
    %cst_32 = arith.constant dense<0.000000e+00> : vector<8x128xf32>
    %116 = vector.multi_reduction <add>, %115, %cst_32 [1] : vector<8x26x128xf32> to vector<8x128xf32>
    %cst_33 = arith.constant 1.000000e+00 : f32
    %117 = vector.broadcast %cst_33 : f32 to vector<8x128xf32>
    %118 = arith.divf %117, %111 : vector<8x128xf32>
    %119 = arith.mulf %113, %118 : vector<8x128xf32>
    %120 = arith.mulf %116, %118 : vector<8x128xf32>
    %121 = arith.mulf %119, %119 : vector<8x128xf32>
    %122 = arith.subf %120, %121 : vector<8x128xf32>
    %cst_34 = arith.constant 9.99999971E-10 : f32
    %123 = vector.broadcast %cst_34 : f32 to vector<8x128xf32>
    %124 = arith.maximumf %122, %123 : vector<8x128xf32>
    %125 = math.sqrt %124 : vector<8x128xf32>
    %126 = tpu.concatenate %119, %125 in 1 : vector<8x128xf32>, vector<8x128xf32> -> vector<8x256xf32>
    %127 = vector.broadcast %16 : vector<1x256xf32> to vector<8x256xf32>
    %128 = arith.mulf %126, %127 : vector<8x256xf32>
    %129 = vector.broadcast %17 : vector<1x256xf32> to vector<8x256xf32>
    %130 = arith.addf %128, %129 : vector<8x256xf32>
    %131 = arith.truncf %130 : vector<8x256xf32> to vector<8x256xbf16>
    %c0_35 = arith.constant 0 : index
    %c0_36 = arith.constant 0 : index
    %132 = vector.load %arg9[%c0_35, %c0_36] : memref<256x128xbf16, #tpu.memory_space<vmem>>, vector<256x128xbf16>
    %cst_37 = arith.constant dense<0.000000e+00> : vector<8x128xf32>
    %133 = tpu.matmul %131, %132, %cst_37 {dimension_numbers = #tpu.dot_dimension_numbers<[1], [0], [0], [1], [0, 0, 1, 1], [], []>} : vector<8x256xbf16>, vector<256x128xbf16>, vector<8x128xf32> -> vector<8x128xf32>
    %134 = vector.broadcast %18 : vector<1x128xf32> to vector<8x128xf32>
    %135 = arith.addf %133, %134 : vector<8x128xf32>
    %136 = vector.broadcast %19 : vector<1x128xf32> to vector<8x128xf32>
    %137 = arith.mulf %135, %136 : vector<8x128xf32>
    %138 = vector.broadcast %20 : vector<1x128xf32> to vector<8x128xf32>
    %139 = arith.addf %137, %138 : vector<8x128xf32>
    %140 = arith.truncf %139 : vector<8x128xf32> to vector<8x128xbf16>
    %c0_38 = arith.constant 0 : index
    %c0_39 = arith.constant 0 : index
    %141 = vector.load %arg10[%c0_38, %c0_39] : memref<128x128xbf16, #tpu.memory_space<vmem>>, vector<128x128xbf16>
    %cst_40 = arith.constant dense<0.000000e+00> : vector<8x128xf32>
    %142 = tpu.matmul %140, %141, %cst_40 {dimension_numbers = #tpu.dot_dimension_numbers<[1], [0], [0], [1], [0, 0, 1, 1], [], []>} : vector<8x128xbf16>, vector<128x128xbf16>, vector<8x128xf32> -> vector<8x128xf32>
    %143 = vector.broadcast %21 : vector<1x128xf32> to vector<8x128xf32>
    %144 = arith.addf %142, %143 : vector<8x128xf32>
    %cst_41 = arith.constant dense<0xFF800000> : vector<8xf32>
    %145 = vector.multi_reduction <maximumf>, %144, %cst_41 [1] : vector<8x128xf32> to vector<8xf32>
    %146 = vector.shape_cast %145 : vector<8xf32> to vector<8x1xf32>
    %147 = vector.broadcast %146 : vector<8x1xf32> to vector<8x128xf32>
    %148 = arith.subf %144, %147 : vector<8x128xf32>
    %149 = math.exp %148 : vector<8x128xf32>
    %cst_42 = arith.constant dense<0.000000e+00> : vector<8xf32>
    %150 = vector.multi_reduction <add>, %149, %cst_42 [1] : vector<8x128xf32> to vector<8xf32>
    %151 = vector.shape_cast %150 : vector<8xf32> to vector<8x1xf32>
    %152 = vector.broadcast %151 : vector<8x1xf32> to vector<8x128xf32>
    %153 = arith.divf %149, %152 : vector<8x128xf32>
    %c0_43 = arith.constant 0 : index
    %c0_44 = arith.constant 0 : index
    %154 = vector.load %arg12[%c0_43, %c0_44] : memref<8x128xf32, #tpu.memory_space<vmem>>, vector<8x128xf32>
    tpu.vector_store %arg12[%c0_43, %c0_44], %153 {strides = array<i32>} : memref<8x128xf32, #tpu.memory_space<vmem>>, vector<8x128xf32>,
    return
  }
  func.func @transform_0(%arg0: i32) -> (i32, i32, i32) {
    %c0_i32 = arith.constant 0 : i32
    %c0_i32_0 = arith.constant 0 : i32
    %c0_i32_1 = arith.constant 0 : i32
    return %arg0, %c0_i32, %c0_i32_0 : i32, i32, i32
  }
  func.func @transform_1(%arg0: i32) -> (i32, i32) {
    %c0_i32 = arith.constant 0 : i32
    %c0_i32_0 = arith.constant 0 : i32
    %c0_i32_1 = arith.constant 0 : i32
    return %c0_i32, %c0_i32_0 : i32, i32
  }
  func.func @transform_2(%arg0: i32) -> (i32, i32) {
    %c0_i32 = arith.constant 0 : i32
    %c0_i32_0 = arith.constant 0 : i32
    %c0_i32_1 = arith.constant 0 : i32
    return %c0_i32, %c0_i32_0 : i32, i32
  }
  func.func @transform_3(%arg0: i32) -> (i32, i32) {
    %c0_i32 = arith.constant 0 : i32
    %c0_i32_0 = arith.constant 0 : i32
    %c0_i32_1 = arith.constant 0 : i32
    return %c0_i32, %c0_i32_0 : i32, i32
  }
  func.func @transform_4(%arg0: i32) -> (i32, i32) {
    %c0_i32 = arith.constant 0 : i32
    %c0_i32_0 = arith.constant 0 : i32
    %c0_i32_1 = arith.constant 0 : i32
    return %c0_i32, %c0_i32_0 : i32, i32
  }
  func.func @transform_5(%arg0: i32) -> (i32, i32) {
    %c0_i32 = arith.constant 0 : i32
    %c0_i32_0 = arith.constant 0 : i32
    %c0_i32_1 = arith.constant 0 : i32
    return %c0_i32, %c0_i32_0 : i32, i32
  }
  func.func @transform_6(%arg0: i32) -> (i32, i32) {
    %c0_i32 = arith.constant 0 : i32
    %c0_i32_0 = arith.constant 0 : i32
    %c0_i32_1 = arith.constant 0 : i32
    return %c0_i32, %c0_i32_0 : i32, i32
  }
  func.func @transform_7(%arg0: i32) -> (i32, i32) {
    %c0_i32 = arith.constant 0 : i32
    %c0_i32_0 = arith.constant 0 : i32
    %c0_i32_1 = arith.constant 0 : i32
    return %c0_i32, %c0_i32_0 : i32, i32
  }
  func.func @transform_8(%arg0: i32) -> (i32, i32) {
    %c0_i32 = arith.constant 0 : i32
    %c0_i32_0 = arith.constant 0 : i32
    %c0_i32_1 = arith.constant 0 : i32
    return %c0_i32, %c0_i32_0 : i32, i32
  }
  func.func @transform_9(%arg0: i32) -> (i32, i32) {
    %c0_i32 = arith.constant 0 : i32
    %c0_i32_0 = arith.constant 0 : i32
    %c0_i32_1 = arith.constant 0 : i32
    return %c0_i32, %c0_i32_0 : i32, i32
  }
  func.func @transform_10(%arg0: i32) -> (i32, i32) {
    %c0_i32 = arith.constant 0 : i32
    %c0_i32_0 = arith.constant 0 : i32
    %c0_i32_1 = arith.constant 0 : i32
    return %c0_i32, %c0_i32_0 : i32, i32
  }
  func.func @transform_11(%arg0: i32) -> (i32, i32) {
    %c0_i32 = arith.constant 0 : i32
    %c0_i32_0 = arith.constant 0 : i32
    return %arg0, %c0_i32 : i32, i32
  }
}

</mosaic_0001>

<bundles_post_ra>
// kernel: tpu_custom_call.1
= control target key start
LH: loop header
LB: loop body
LE: loop exit
PB: predicated region body
PF: predicated region fallthrough
CT: control target
= control target key end

     0   :  { %s19970_s0 = inlined_call_operand.hbm [shape: f32[16,40,128], index: 0, kind: input, shape index: {}]   ;;  %s19971_s1 = inlined_call_operand.hbm [shape: bf16[640,128], index: 1, kind: input, shape index: {}]   ;;  %s19972_s2 = inlined_call_operand.hbm [shape: bf16[384,128], index: 2, kind: input, shape index: {}]   ;;  %s19973_s3 = inlined_call_operand.hbm [shape: bf16[384,128], index: 3, kind: input, shape index: {}]   ;;  %s19974_s4 = inlined_call_operand.hbm [shape: bf16[128,128], index: 4, kind: input, shape index: {}]   ;;  %s19975_s5 = inlined_call_operand.hbm [shape: bf16[128,128], index: 5, kind: input, shape index: {}]   ;;  %s19976_s6 = inlined_call_operand.hbm [shape: bf16[128,128], index: 6, kind: input, shape index: {}]   ;;  %s19977_s7 = inlined_call_operand.hbm [shape: bf16[128,128], index: 7, kind: input, shape index: {}]   ;;  %s19978_s8 = inlined_call_operand.hbm [shape: bf16[256,128], index: 8, kind: input, shape index: {}]   ;;  %s19979_s9 = inlined_call_operand.hbm [shape: bf16[128,128], index: 9, kind: input, shape index: {}]   ;;  %s19980_s10 = inlined_call_operand.hbm [shape: f32[24,256], index: 10, kind: input, shape index: {}]   ;;  %s19981_s11 = inlined_call_operand.hbm [shape: f32[16,128], index: 11, kind: output, shape index: {}]  }
   0x1   :  { %20190 = sst [smem:[#allocation140_spill]] %s19971_s1 }
   0x2   :  { %20191 = sst [smem:[#allocation141_spill]] %s19972_s2 }
   0x3   :  { %20192 = sst [smem:[#allocation142_spill]] %s19973_s3 }
   0x4   :  { %20193 = sst [smem:[#allocation143_spill]] %s19974_s4 }
   0x5   :  { %20194 = sst [smem:[#allocation144_spill]] %s19975_s5 }
   0x6   :  { %16 = vsyncpa [#allocation3], 0 }
   0x7   :  { %18 = vsyncpa [#allocation3 + $0x1], 0 }
   0x8   :  { %19 = vsyncpa [#allocation6], 0 }
   0x9   :  { %20 = vsyncpa [#allocation9], 0 }
   0xa   :  { %21 = vsyncpa [#allocation12], 0 }
   0xb   :  { %22 = vsyncpa [#allocation15], 0 }
   0xc   :  { %23 = vsyncpa [#allocation18], 0 }
   0xd   :  { %24 = vsyncpa [#allocation4], 0 }
   0xe   :  { %26 = vsyncpa [#allocation4 + $0x1], 0  ;;  %s14566_s17 = smov 0   ;;  %s14568_s18 = smov 0  }
   0xf   :  { %s14570_s19 = smov 0   ;;  %s14572_s20 = smov 0  }
  0x10 LB: > { %s14484_s21 = smov [#allocation5]   ;;  %s14587_s23 = sadd.s32 4294967295, %s14482_s20   ;;  %s14482_s20 = sphi %s14572_s20, %s20579_s20   ;;  %s14478_s19 = sphi %s14570_s19, %s20578_s19   ;;  %s14474_s18 = sphi %s14568_s18, %s20577_s18   ;;  %s14470_s17 = sphi %s14566_s17, %s20576_s17  }
  0x11   : > { %s311_s22 = sshll.u32 %s14484_s21, 4  ;;  %p12317_p0 = scmp.ge.s32.totalorder %s14482_s20, 1  ;;  %s312_s22 = int_to_ptr.vmem [resolvable:$true] %s311_s22 }
  0x12   : > { %p19982_p1 = scmp.eq.s32.totalorder %s14587_s23, 0  ;;  %p299_p2 = scmp.lt.s32.totalorder %s14482_s20, 3 }
  0x13   : > { %s14485_s25 = smov [#allocation8]   ;;  %s14486_s28 = smov [#allocation11]  }
  0x14   : > { %p14592_p3 = pnand %p12317_p0, %p299_p2  ;;  %s337_s26 = sshll.u32 %s14485_s25, 4  ;;  %s14605_s26 = int_to_ptr.vmem [resolvable:$true] %s337_s26 }
  0x15   : > { %s363_s29 = sshll.u32 %s14486_s28, 4  ;;  %s14121_s12 = scalar_lea.vmem %s312_s22, 5120  ;;  %s14607_s29 = int_to_ptr.vmem [resolvable:$true] %s363_s29 }
  0x16   : > { %s20195_s24 = scalar_select %p14592_p3, 1, 0 }
  0x17   : > { %p13527_p5 = pneg %p14592_p3  ;;  %p14122_p8 = scmp.ne.s32.totalorder %s312_s22, %s14121_s12 }
  0x18   : > { %p14129_p11 = scmp.lt.s32.totalorder %s312_s22, %s312_s22  ;;  %p14130_p12 = scmp.lt.s32.totalorder %s14121_s12, %s14121_s12 }
  0x19   : > { %p14601_p6 = pnand %p13527_p5, %p19982_p1 }
  0x1a   : > { %p14131_p13 = por %p14130_p12, %p14129_p11 }
  0x1b   : > { %p14611_p7 = pneg %p14601_p6 }
  0x1d   : > { %p14124_p9 = pnand %p14122_p8, %p14611_p7 }
  0x1f   : > { %p14125_p10 = pneg %p14124_p9 }
  0x21   : > { %p14132_p0 = pnand %p14131_p13, %p14125_p10 }
  0x23   : > { %14135 = shalt.err (!%p14132_p0)
}
  0x24   : > { %s14487_s13 = smov 64   ;;  %s14488_s14 = smov 4  }
  0x25   : > { %s20198_s1 = sld [smem:[#allocation140_spill]]  ;;  %s14147_s21 = scalar_lea.vmem %s14605_s26, 3072 }
  0x26   : > { %p14148_p2 = scmp.ne.s32.totalorder %s14605_s26, %s14147_s21  ;;  %p14155_p9 = scmp.lt.s32.totalorder %s14605_s26, %s14605_s26 }
  0x27   : > { %p14156_p10 = scmp.lt.s32.totalorder %s14147_s21, %s14147_s21 }
  0x28   : > { %p14150_p5 = pnand %p14148_p2, %p14611_p7 }
  0x29   : > { %p14157_p11 = por %p14156_p10, %p14155_p9 }
  0x2a   : > { %p14151_p8 = pneg %p14150_p5 }
  0x2b   : > { %13530 = dma.hbm_to_vmem [thread:$0]  (!%p14601_p6), %s20198_s1, 5120, %s312_s22, [#allocation6], %s14487_s13, %s14487_s13, %s14488_s14  }
  0x2c   : > { %p14158_p12 = pnand %p14157_p11, %p14151_p8 }
  0x2e   : > { %14161 = shalt.err (!%p14158_p12)
}
  0x2f   : > { %s20199_s3 = sld [smem:[#allocation142_spill]]  ;;  %s14173_s22 = scalar_lea.vmem %s14607_s29, 1024 }
  0x30   : > { %p14174_p13 = scmp.ne.s32.totalorder %s14607_s29, %s14173_s22  ;;  %p14181_p5 = scmp.lt.s32.totalorder %s14607_s29, %s14607_s29 }
  0x31   : > { %p14182_p8 = scmp.lt.s32.totalorder %s14173_s22, %s14173_s22 }
  0x32   : > { %p14176_p0 = pnand %p14174_p13, %p14611_p7 }
  0x33   : > { %p14183_p9 = por %p14182_p8, %p14181_p5 }
  0x34   : > { %p14177_p2 = pneg %p14176_p0 }
  0x35   : > { %13536 = dma.hbm_to_vmem [thread:$0]  (!%p14601_p6), %s20199_s3, 3072, %s14605_s26, [#allocation9], %s14487_s13, %s14487_s13, %s14488_s14  }
  0x36   : > { %p14184_p10 = pnand %p14183_p9, %p14177_p2 }
  0x38   : > { %14187 = shalt.err (!%p14184_p10)
}
  0x39   : > { %s20200_s5 = sld [smem:[#allocation144_spill]]  ;;  %s14489_s26 = smov [#allocation14]  }
  0x3a   : > { %s389_s16 = sshll.u32 %s14489_s26, 4  ;;  %s14490_s21 = smov [#allocation17]   ;;  %s390_s16 = int_to_ptr.vmem [resolvable:$true] %s389_s16 }
  0x3b   : > { %s415_s25 = sshll.u32 %s14490_s21, 4  ;;  %s14199_s28 = scalar_lea.vmem %s390_s16, 1024  ;;  %s416_s25 = int_to_ptr.vmem [resolvable:$true] %s415_s25 }
  0x3c   : > { %p14200_p11 = scmp.ne.s32.totalorder %s390_s16, %s14199_s28  ;;  %p14207_p0 = scmp.lt.s32.totalorder %s390_s16, %s390_s16 }
  0x3d   : > { %p14208_p2 = scmp.lt.s32.totalorder %s14199_s28, %s14199_s28 }
  0x3e   : > { %p14202_p12 = pnand %p14200_p11, %p14611_p7 }
  0x3f   : > { %13542 = dma.hbm_to_vmem [thread:$0]  (!%p14601_p6), %s20200_s5, 1024, %s14607_s29, [#allocation12], %s14487_s13, %s14487_s13, %s14488_s14  }
  0x40   : > { %p14203_p13 = pneg %p14202_p12  ;;  %p14209_p5 = por %p14208_p2, %p14207_p0 }
  0x42   : > { %p14210_p8 = pnand %p14209_p5, %p14203_p13 }
  0x44   : > { %14213 = shalt.err (!%p14210_p8)
}
  0x45   : > { %13548 = dma.hbm_to_vmem [thread:$0]  (!%p14601_p6), %s19977_s7, 1024, %s390_s16, [#allocation15], %s14487_s13, %s14487_s13, %s14488_s14  }
  0x46   : > { %s14225_s12 = scalar_lea.vmem %s416_s25, 1024  ;;  %p14233_p12 = scmp.lt.s32.totalorder %s416_s25, %s416_s25 }
  0x47   : > { %p14226_p9 = scmp.ne.s32.totalorder %s416_s25, %s14225_s12  ;;  %p14234_p0 = scmp.lt.s32.totalorder %s14225_s12, %s14225_s12 }
  0x49   : > { %p14228_p10 = pnand %p14226_p9, %p14611_p7  ;;  %p14235_p13 = por %p14234_p0, %p14233_p12 }
  0x4b   : > { %p14229_p11 = pneg %p14228_p10 }
  0x4d   : > { %p14236_p2 = pnand %p14235_p13, %p14229_p11 }
  0x4f   : > { %14239 = shalt.err (!%p14236_p2)
}
  0x50   : > { %13554 = dma.hbm_to_vmem [thread:$0]  (!%p14601_p6), %s19979_s9, 1024, %s416_s25, [#allocation18], %s14487_s13, %s14487_s13, %s14488_s14  }
  0x51   : > { %s14491_s16 = smov [#allocation7]   ;;  %s14492_s28 = smov [#allocation10]  }
  0x52   : > { %s324_s21 = sshll.u32 %s14491_s16, 4  ;;  %s350_s29 = sshll.u32 %s14492_s28, 4  ;;  %s325_s21 = int_to_ptr.vmem [resolvable:$true] %s324_s21  ;;  %s351_s29 = int_to_ptr.vmem [resolvable:$true] %s350_s29 }
  0x53   : > { %s14251_s22 = scalar_lea.vmem %s325_s21, 3072  ;;  %p14259_p10 = scmp.lt.s32.totalorder %s325_s21, %s325_s21 }
  0x54   : > { %p14252_p5 = scmp.ne.s32.totalorder %s325_s21, %s14251_s22  ;;  %p14260_p11 = scmp.lt.s32.totalorder %s14251_s22, %s14251_s22 }
  0x56   : > { %p14254_p8 = pnand %p14252_p5, %p14611_p7  ;;  %p14261_p12 = por %p14260_p11, %p14259_p10 }
  0x58   : > { %p14255_p9 = pneg %p14254_p8 }
  0x5a   : > { %p14262_p0 = pnand %p14261_p12, %p14255_p9 }
  0x5c   : > { %14265 = shalt.err (!%p14262_p0)
}
  0x5d   : > { %s20201_s2 = sld [smem:[#allocation141_spill]]  ;;  %s14277_s15 = scalar_lea.vmem %s351_s29, 1024 }
  0x5e   : > { %p14278_p13 = scmp.ne.s32.totalorder %s351_s29, %s14277_s15  ;;  %p14285_p8 = scmp.lt.s32.totalorder %s351_s29, %s351_s29 }
  0x5f   : > { %p14286_p10 = scmp.lt.s32.totalorder %s14277_s15, %s14277_s15 }
  0x60   : > { %p14280_p2 = pnand %p14278_p13, %p14611_p7 }
  0x61   : > { %p14287_p9 = por %p14286_p10, %p14285_p8 }
  0x62   : > { %p14281_p5 = pneg %p14280_p2 }
  0x63   : > { %13533 = dma.hbm_to_vmem [thread:$0]  (!%p14601_p6), %s20201_s2, 3072, %s325_s21, [#allocation6], %s14487_s13, %s14487_s13, %s14488_s14  }
  0x64   : > { %p14288_p11 = pnand %p14287_p9, %p14281_p5 }
  0x66   : > { %14291 = shalt.err (!%p14288_p11)
}
  0x67   : > { %s20202_s4 = sld [smem:[#allocation143_spill]]  ;;  %s14493_s21 = smov [#allocation13]  }
  0x68   : > { %s376_s28 = sshll.u32 %s14493_s21, 4  ;;  %s14494_s22 = smov [#allocation16]   ;;  %s377_s28 = int_to_ptr.vmem [resolvable:$true] %s376_s28 }
  0x69   : > { %s402_s25 = sshll.u32 %s14494_s22, 4  ;;  %s14303_s12 = scalar_lea.vmem %s377_s28, 1024  ;;  %s403_s25 = int_to_ptr.vmem [resolvable:$true] %s402_s25 }
  0x6a   : > { %p14304_p12 = scmp.ne.s32.totalorder %s377_s28, %s14303_s12  ;;  %p14311_p2 = scmp.lt.s32.totalorder %s377_s28, %s377_s28 }
  0x6b   : > { %p14312_p5 = scmp.lt.s32.totalorder %s14303_s12, %s14303_s12 }
  0x6c   : > { %p14306_p0 = pnand %p14304_p12, %p14611_p7 }
  0x6d   : > { %13539 = dma.hbm_to_vmem [thread:$0]  (!%p14601_p6), %s20202_s4, 1024, %s351_s29, [#allocation9], %s14487_s13, %s14487_s13, %s14488_s14  }
  0x6e   : > { %p14307_p13 = pneg %p14306_p0  ;;  %p14313_p8 = por %p14312_p5, %p14311_p2 }
  0x70   : > { %p14314_p10 = pnand %p14313_p8, %p14307_p13 }
  0x72   : > { %14317 = shalt.err (!%p14314_p10)
}
  0x73   : > { %13545 = dma.hbm_to_vmem [thread:$0]  (!%p14601_p6), %s19976_s6, 1024, %s377_s28, [#allocation12], %s14487_s13, %s14487_s13, %s14488_s14  }
  0x74   : > { %s14329_s26 = scalar_lea.vmem %s403_s25, 2048  ;;  %p14337_p0 = scmp.lt.s32.totalorder %s403_s25, %s403_s25 }
  0x75   : > { %p14330_p9 = scmp.ne.s32.totalorder %s403_s25, %s14329_s26  ;;  %p14338_p2 = scmp.lt.s32.totalorder %s14329_s26, %s14329_s26 }
  0x77   : > { %p14332_p11 = pnand %p14330_p9, %p14611_p7  ;;  %p14339_p13 = por %p14338_p2, %p14337_p0 }
  0x79   : > { %p14333_p12 = pneg %p14332_p11 }
  0x7b   : > { %p14340_p5 = pnand %p14339_p13, %p14333_p12 }
  0x7d   : > { %14343 = shalt.err (!%p14340_p5)
}
  0x7e   : > { %13551 = dma.hbm_to_vmem [thread:$0]  (!%p14601_p6), %s19978_s8, 2048, %s403_s25, [#allocation15], %s14487_s13, %s14487_s13, %s14488_s14  }
  0x7f   : > { %s14495_s28 = smov [#allocation19]  }
  0x80   : > { %s428_s22 = sshll.u32 %s14495_s28, 4  ;;  %s429_s22 = int_to_ptr.vmem [resolvable:$true] %s428_s22 }
  0x81   : > { %s14355_s12 = scalar_lea.vmem %s429_s22, 768  ;;  %p14363_p11 = scmp.lt.s32.totalorder %s429_s22, %s429_s22 }
  0x82   : > { %p14356_p8 = scmp.ne.s32.totalorder %s429_s22, %s14355_s12  ;;  %p14364_p12 = scmp.lt.s32.totalorder %s14355_s12, %s14355_s12 }
  0x84   : > { %p14358_p10 = pnand %p14356_p8, %p14611_p7  ;;  %p14365_p0 = por %p14364_p12, %p14363_p11 }
  0x86   : > { %p14359_p9 = pneg %p14358_p10 }
  0x88   : > { %p14366_p2 = pnand %p14365_p0, %p14359_p9 }
  0x8a   : > { %14369 = shalt.err (!%p14366_p2)
}
  0x8b   : > { %s14496_s29 = smov 256   ;;  %s14497_s30 = smov 16  }
  0x8c   : > { %13557 = dma.hbm_to_vmem [thread:$0]  (!%p14601_p6), %s19980_s10, 768, %s429_s22, [#allocation18], %s14496_s29, %s14496_s29, %s14497_s30  }
  0x8d   : > { %s12316_s25 = sadd.s32 4294967294, %s14482_s20   ;;  %s14724_s15 = sadd.s32 1, %s14482_s20  }
  0x8e   : > { %s36_s26 = ssub.s32 %s14482_s20, %s14724_s15  ;;  %s39_s16 = sadd.s32 1, %s14478_s19 }
  0x8f   : > { %p37_p7 = scmp.eq.s32.totalorder %s36_s26, 0  ;;  %p46_p13 = scmp.ne.s32.totalorder %s14478_s19, %s14474_s18 }
  0x90   : > { %p47_p5 = scmp.eq.s32.totalorder %s14482_s20, 0  ;;  %p52_p8 = scmp.ne.s32.totalorder %s14474_s18, %s14470_s17 }
  0x91   : > { %s14735_s21 = scalar_select %p37_p7, %s14478_s19, %s39_s16  }
  0x92   : > { %p48_p10 = por %p47_p5, %p46_p13  ;;  %p14739_p9 = por %p19982_p1, %p52_p8 }
  0x93   : > { %p286_p6 = scmp.eq.s32.totalorder %s14587_s23, 1  ;;  %p292_p11 = scmp.eq.s32.totalorder %s12316_s25, 1 }
  0x94   : > { %s20203_s27 = scalar_select %p14739_p9, 1, 0 }
  0x95   : > { %p13576_p12 = scmp.lt.s32.totalorder %s14482_s20, 2  ;;  %s442_s28 = sand.u32 1, %s14478_s19  }
  0x96   : > { %p14746_p0 = por %p286_p6, %p46_p13  ;;  %p14750_p2 = por %p292_p11, %p52_p8 }
  0x97   : > { %s13480_s29 = smul.u32 320, %s442_s28  ;;  %p14755_p7 = pnand %p13576_p12, %p48_p10 }
  0x98   : > { %s20204_s22 = scalar_select %p14746_p0, 1, 0 }
  0x99   : > { %s20205_s12 = scalar_select %p14750_p2, 1, 0 }
  0x9a   : > { %s13481_s30 = smul.u32 5120, %s14482_s20  ;;  %s446_s16 = scalar_lea.vmem [#allocation2], %s13480_s29 }
  0x9b   : > { %s454_s1 = sshll.u32 %s446_s16, 4  ;;  %s14766_s2 = scalar_lea.sflag [#allocation3], %s442_s28  ;;  %s14764_s1 = int_to_ptr.vmem [resolvable:$true] %s454_s1 }
  0x9c   : > { %s14762_s25 = scalar_lea.hbm %s19970_s0, %s13481_s30  ;;  %p14372_p5 = pneg %p14755_p7 }
  0x9d   : > { %s14370_s3 = scalar_lea.hbm %s14762_s25, 5120  ;;  %s14375_s30 = scalar_lea.hbm %s19970_s0, 10240 }
  0x9e   : > { %p14371_p13 = scmp.ne.s32.totalorder %s14762_s25, %s14370_s3  ;;  %p14376_p6 = scmp.lt.s32.totalorder %s14762_s25, %s19970_s0 }
  0x9f   : > { %p14377_p11 = scmp.lt.s32.totalorder %s14375_s30, %s14370_s3 }
  0xa0   : > { %p14373_p8 = pnand %p14372_p5, %p14371_p13 }
  0xa1   : > { %p14378_p12 = por %p14377_p11, %p14376_p6 }
  0xa2   : > { %p14374_p10 = pneg %p14373_p8 }
  0xa4   : > { %p14379_p4 = pnand %p14378_p12, %p14374_p10 }
  0xa6   : > { %14382 = shalt.err (!%p14379_p4)
}
  0xa7   : > { %s14383_s28 = scalar_lea.vmem %s14764_s1, 5120  ;;  %s14498_s29 = smov [#allocation2]  }
  0xa8   : > { %p14384_p1 = scmp.ne.s32.totalorder %s14764_s1, %s14383_s28  ;;  %s14388_s16 = sshll.u32 %s14498_s29, 4  ;;  %s14389_s16 = int_to_ptr.vmem [resolvable:$false] %s14388_s16 }
  0xa9   : > { %s14390_s4 = scalar_lea.vmem %s14389_s16, 10240  ;;  %p14391_p8 = scmp.lt.s32.totalorder %s14764_s1, %s14389_s16 }
  0xaa   : > { %p14386_p2 = pnand %p14384_p1, %p14372_p5  ;;  %p14392_p0 = scmp.lt.s32.totalorder %s14390_s4, %s14383_s28 }
  0xac   : > { %p14387_p13 = pneg %p14386_p2  ;;  %p14393_p9 = por %p14392_p0, %p14391_p8 }
  0xae   : > { %p14394_p3 = pnand %p14393_p9, %p14387_p13 }
  0xb0   : > { %14397 = shalt.err (!%p14394_p3)
}
  0xb1   : > { %s14499_s3 = smov 128   ;;  %s14500_s5 = smov 8  }
  0xb2   : > { %13561 = dma.hbm_to_vmem [thread:$0]  (!%p14755_p7), %s14762_s25, 5120, %s14764_s1, %s14766_s2, %s14499_s3, %s14499_s3, %s14500_s5  }
  0xb3   : > { %p20207_p1 = scmp.ne.s32.totalorder %s20195_s24, 0 }
  0xb5   : > { %466 = sbr.rel (%p20207_p1) target bundleno = 3109 (0xc25), region = 64 }
  0xba   : > { %s14790_s14 = sand.u32 1, %s14474_s18   ;;  %p20208_p3 = scmp.ne.s32.totalorder %s20203_s27, 0 }
  0xbb   : > { %s13482_s30 = smul.u32 320, %s14790_s14  ;;  %s469_s26 = scalar_lea.sflag [#allocation3], %s14790_s14 }
  0xbd   : > { %s14794_s28 = scalar_lea.vmem [#allocation2], %s13482_s30 }
  0xbe   : > { %14441 = dma.done.wait (%p20208_p3), %s469_s26, 5120  }
  0xbf   : > { %14443 = vsyncadd (%p20208_p3), %s469_s26, 4294962176  ;;  %p20209_p4 = scmp.eq.s32.totalorder %s14587_s23, 0 }
  0xc1   : > { %14445 = dma.done.wait (%p20209_p4), [#allocation6], 8192   ;;  %p20210_p9 = pmov %p20209_p4 }
  0xc2   : > { %p20211_p0 = pmov %p20209_p4 }
  0xc3   : > { %14447 = vsyncadd (%p20210_p9), [#allocation6], 4294959104 }
  0xc4   : > { %14449 = dma.done.wait (%p20211_p0), [#allocation9], 4096   ;;  %p20212_p2 = pmov %p20211_p0 }
  0xc5   : > { %p20213_p7 = pmov %p20211_p0 }
  0xc6   : > { %14451 = vsyncadd (%p20212_p2), [#allocation9], 4294963200 }
  0xc7   : > { %14453 = dma.done.wait (%p20213_p7), [#allocation12], 2048   ;;  %p20214_p5 = pmov %p20211_p0 }
  0xc8   : > { %p20215_p10 = pmov %p20211_p0 }
  0xc9   : > { %14455 = vsyncadd (%p20214_p5), [#allocation12], 4294965248 }
  0xca   : > { %14457 = dma.done.wait (%p20215_p10), [#allocation15], 3072   ;;  %p20216_p6 = pmov %p20211_p0 }
  0xcb   : > { %p20217_p11 = pmov %p20211_p0 }
  0xcc   : > { %14459 = vsyncadd (%p20216_p6), [#allocation15], 4294964224 }
  0xcd   : > { %14461 = dma.done.wait (%p20217_p11), [#allocation18], 1792   ;;  %p20218_p12 = pmov %p20211_p0 }
  0xce   : > { %v14501_v0 = vmov 0   ;;  %v13640_v1 = vld [vmem:[#allocation5 + $0x38] sm:$0xff]   ;;  %v13642_v3 = vld [vmem:[#allocation5 + $0x30] sm:$0xff]   ;;  %v13644_v5 = vld [vmem:[#allocation5 + $0x28] sm:$0xff]   ;;  %vm638_vm0 = vcmask 1046528   ;;  %vm784_vm1 = vcmask 1044480  }
  0xcf   : > { %14463 = vsyncadd (%p20218_p12), [#allocation18], 4294965504  ;;  %1880 = vmatprep.subr.bf16.mxu0 %v14501_v0  ;;  %2057 = vmatprep.subr.bf16.mxu1 %v14501_v0  ;;  %v13641_v2 = vld [vmem:[#allocation5 + $0xb8] sm:$0xff]   ;;  %v13643_v4 = vld [vmem:[#allocation5 + $0xb0] sm:$0xff]   ;;  %vm711_vm2 = vcmask 1045504   ;;  %vm857_vm3 = vcmask 1043456  }
  0xd0   : > { %1881 = vmatpush1.bf16.msra.mxu0 %v13640_v1  ;;  %2058 = vmatpush1.bf16.msra.mxu1 %v13641_v2  ;;  %v13645_v6 = vld [vmem:[#allocation5 + $0xa8] sm:$0xff]   ;;  %v13646_v7 = vld [vmem:[#allocation5 + $0x20] sm:$0xff]   ;;  %v13648_v9 = vld [vmem:[#allocation5 + $0x18] sm:$0xff]   ;;  %vm14503_vm4 = vmmov 0   ;;  %vm3589_vm5 = vcmask 1041408   ;;  %vm11783_vm12 = vcmask 1041409  }
  0xd1   : > { %1882 = vmatprep.subr.bf16.mxu0 %v14501_v0  ;;  %2059 = vmatprep.subr.bf16.mxu1 %v14501_v0  ;;  %v13647_v8 = vld [vmem:[#allocation5 + $0xa0] sm:$0xff]   ;;  %v13649_v10 = vld [vmem:[#allocation5 + $0x98] sm:$0xff]   ;;  %v13650_v11 = vld [vmem:[#allocation5 + $0x10] sm:$0xff]   ;;  %vm11785_vm13 = vcmask 1042434   ;;  %vm11787_vm14 = vcmask 1043459   ;;  %vm11789_vm15 = vcmask 1044484  }
  0xd2   : > { %v13651_v12 = vld [vmem:[#allocation5 + $0x90] sm:$0xff]   ;;  %v13652_v13 = vld [vmem:[#allocation5 + $0x8] sm:$0xff]   ;;  %v13654_v15 = vld [vmem:[#allocation5] sm:$0xff]   ;;  %s12343_s1 = sshll.u32 %s14790_s14, 3  ;;  %s12625_s2 = sshll.u32 %s14587_s23, 7 }
  0xd3   : > { %v13653_v14 = vld [vmem:[#allocation5 + $0x88] sm:$0xff]   ;;  %v13655_v16 = vld [vmem:[#allocation5 + $0x80] sm:$0xff]   ;;  %v13656_v17 = vld [vmem:[#allocation5 + $0x78] sm:$0xff]   ;;  %s550_s24 = scalar_lea.vmem [#allocation20], %s12343_s1  ;;  %s12149_s29 = scalar_lea.hbm %s19981_s11, %s12625_s2 }
  0xd4   : > { %1883 = vmatpush1.bf16.msra.mxu0 %v13642_v3  ;;  %2060 = vmatpush1.bf16.msra.mxu1 %v13643_v4  ;;  %v13657_v18 = vld [vmem:[#allocation5 + $0xf8] sm:$0xff]   ;;  %v14838_v19 = vld [vmem:[%s14794_s28] sm:$0xff]  ;;  %v14841_v20 = vld [vmem:[%s14794_s28 + $0x8] sm:$0xff]  ;;  %s12151_s27 = sshll.u32 %s550_s24, 4  ;;  %s12138_s16 = scalar_lea.sflag [#allocation4], %s14790_s14  ;;  %s12152_s27 = int_to_ptr.vmem [resolvable:$true] %s12151_s27 }
  0xd5   : > { %1884 = vmatprep.subr.bf16.mxu0 %v14501_v0  ;;  %2061 = vmatprep.subr.bf16.mxu1 %v14501_v0  ;;  %v14844_v21 = vld [vmem:[%s14794_s28 + $0x10] sm:$0xff]  ;;  %v639_v22 = vrot.slane %v14838_v19, 1  ;;  %v640_v23 = vrot.slane %v14841_v20, 1  ;;  %v785_v28 = vrot.slane %v14838_v19, 3  ;;  %v786_v29 = vrot.slane %v14841_v20, 3  ;;  %v13660_v35 = vld [vmem:[#allocation5 + $0x68] sm:$0xff]  }
  0xd6   : > { %v642_v24 = vrot.slane %v14844_v21, 1  ;;  %v13658_v25 = vld [vmem:[#allocation5 + $0x70] sm:$0xff]   ;;  %v788_v32 = vrot.slane %v14844_v21, 3  ;;  %v13661_v37 = vld [vmem:[#allocation5 + $0xe8] sm:$0xff]   ;;  %v13662_v38 = vld [vmem:[#allocation5 + $0x60] sm:$0xff]   ;;  %v712_v46 = vrot.slane %v14838_v19, 2  ;;  %v1466_v3 = vpack.c.bf16 %v14841_v20, %v14838_v19 }
  0xd7   : > { %v641_v26 = vsel %vm638_vm0, %v639_v22, %v640_v23  ;;  %v13659_v30 = vld [vmem:[#allocation5 + $0xf0] sm:$0xff]   ;;  %v787_v33 = vsel %vm784_vm1, %v785_v28, %v786_v29  ;;  %v13663_v39 = vld [vmem:[#allocation5 + $0xe0] sm:$0xff]   ;;  %v13664_v40 = vld [vmem:[#allocation5 + $0x58] sm:$0xff]   ;;  %v713_v50 = vrot.slane %v14841_v20, 2  ;;  %v715_v51 = vrot.slane %v14844_v21, 2  ;;  %s14398_s4 = scalar_lea.vmem %s12152_s27, 128 }
  0xd8   : > { %1885 = vmatpush1.bf16.msra.mxu0 %v13644_v5  ;;  %2062 = vmatpush1.bf16.msra.mxu1 %v13645_v6  ;;  %v643_v27 = vsel %vm638_vm0, %v640_v23, %v642_v24  ;;  %v789_v34 = vsel %vm784_vm1, %v786_v29, %v788_v32  ;;  %v13665_v41 = vld [vmem:[#allocation5 + $0xd8] sm:$0xff]   ;;  %v14873_v43 = vld [vmem:[%s14794_s28 + $0x20] sm:$0xff]  ;;  %v13666_v44 = vld [vmem:[#allocation5 + $0x50] sm:$0xff]   ;;  %p14399_p13 = scmp.ne.s32.totalorder %s12152_s27, %s14398_s4  ;;  %p20573_p8 = scmp.ne.s32.totalorder %s20204_s22, 0 }
  0xd9   : > { %1886 = vmatprep.subr.bf16.mxu0 %v14501_v0  ;;  %2063 = vmatprep.subr.bf16.mxu1 %v14501_v0  ;;  %v1467_v31 = vpack.c.bf16 %v643_v27, %v641_v26  ;;  %v1469_v36 = vpack.c.bf16 %v789_v34, %v787_v33  ;;  %v14870_v42 = vld [vmem:[%s14794_s28 + $0x18] sm:$0xff]  ;;  %v13667_v45 = vld [vmem:[#allocation5 + $0xd0] sm:$0xff]   ;;  %v13668_v49 = vld [vmem:[#allocation5 + $0x48] sm:$0xff]   ;;  %v646_v53 = vrot.slane %v14873_v43, 1  ;;  %v792_v56 = vrot.slane %v14873_v43, 3  ;;  %s14505_s3 = smov [#allocation20]  }
  0xda   : > { %v14878_v47 = vld [vmem:[%s14794_s28 + $0x30] sm:$0xff]  ;;  %v14881_v48 = vld [vmem:[%s14794_s28 + $0x38] sm:$0xff]  ;;  %v644_v52 = vrot.slane %v14870_v42, 1  ;;  %v13669_v54 = vld [vmem:[#allocation5 + $0xc8] sm:$0xff]   ;;  %v790_v55 = vrot.slane %v14870_v42, 3  ;;  %v714_v5 = vsel %vm711_vm2, %v712_v46, %v713_v50  ;;  %v716_v6 = vsel %vm711_vm2, %v713_v50, %v715_v51  ;;  %p14400_p1 = pnand %p14399_p13, %p20573_p8  ;;  %s14402_s5 = sshll.u32 %s14505_s3, 4  ;;  %s14403_s5 = int_to_ptr.vmem [resolvable:$false] %s14402_s5 }
  0xdb   : > { %1912 = vmatprep.mubr.bf16.mxu0 %v1467_v31  ;;  %2089 = vmatprep.mubr.bf16.mxu1 %v1469_v36  ;;  %v14891_v57 = vld [vmem:[%s14794_s28 + $0x28] sm:$0xff]  ;;  %v649_v58 = vrot.slane %v14878_v47, 1  ;;  %v651_v59 = vrot.slane %v14881_v48, 1  ;;  %v722_v60 = vrot.slane %v14878_v47, 2  ;;  %v724_v61 = vrot.slane %v14881_v48, 2  ;;  %v13670_v1 = vld [vmem:[#allocation5 + $0x40] sm:$0xff]   ;;  %p14405_p4 = scmp.lt.s32.totalorder %s12152_s27, %s14403_s5 }
  0xdc   : > { %1887 = vmatpush1.bf16.msra.mxu0 %v13646_v7  ;;  %2064 = vmatpush1.bf16.msra.mxu1 %v13647_v8  ;;  %v795_v62 = vrot.slane %v14878_v47, 3  ;;  %v797_v63 = vrot.slane %v14881_v48, 3  ;;  %v13671_v2 = vld [vmem:[#allocation5 + $0xc0] sm:$0xff]   ;;  %v13672_v4 = vld [vmem:[#allocation5 + $0x138] sm:$0xff]   ;;  %v648_v7 = vrot.slane %v14891_v57, 1  ;;  %v1468_v19 = vpack.c.bf16 %v716_v6, %v714_v5  ;;  %p14401_p3 = pneg %p14400_p1  ;;  %s14404_s23 = scalar_lea.vmem %s14403_s5, 256 }
  0xdd   : > { %1888 = vmatprep.subr.bf16.mxu0 %v14501_v0  ;;  %2065 = vmatprep.subr.bf16.mxu1 %v14501_v0  ;;  %v14907_v8 = vsel %vm638_vm0, %v649_v58, %v651_v59  ;;  %v719_v20 = vrot.slane %v14873_v43, 2  ;;  %v721_v22 = vrot.slane %v14891_v57, 2  ;;  %p14406_p9 = scmp.lt.s32.totalorder %s14404_s23, %s14398_s4 }
  0xdf   : > { %p14407_p0 = por %p14406_p9, %p14405_p4 }
  0xe0   : > { %1889 = vmatpush1.bf16.msra.mxu0 %v13648_v9  ;;  %2066 = vmatpush1.bf16.msra.mxu1 %v13649_v10  ;;  %v14910_v9 = vld [vmem:[%s14794_s28 + $0x40] sm:$0xff]  ;;  %v645_v10 = vsel %vm638_vm0, %v642_v24, %v644_v52  ;;  %v650_v24 = vsel %vm638_vm0, %v648_v7, %v649_v58 }
  0xe1   : > { %1890 = vmatprep.subr.bf16.mxu0 %v14501_v0  ;;  %2067 = vmatprep.subr.bf16.mxu1 %v14501_v0  ;;  %v726_v31 = vrot.slane %v14910_v9, 2  ;;  %v799_v33 = vrot.slane %v14910_v9, 3  ;;  %p14408_p2 = pnand %p14407_p0, %p14401_p3 }
  0xe3   : > { %v727_v50 = vsel %vm711_vm2, %v724_v61, %v726_v31 }
  0xe4   : > { %1891 = vmatpush1.bf16.msra.mxu0 %v13650_v11  ;;  %2068 = vmatpush1.bf16.msra.mxu1 %v13651_v12  ;;  %v647_v11 = vsel %vm638_vm0, %v644_v52, %v646_v53  ;;  %v791_v12 = vsel %vm784_vm1, %v788_v32, %v790_v55  ;;  %v800_v52 = vsel %vm784_vm1, %v797_v63, %v799_v33 }
  0xe5   : > { %1892 = vmatprep.subr.bf16.mxu0 %v14501_v0  ;;  %2069 = vmatprep.subr.bf16.mxu1 %v14501_v0  ;;  %v1472_v23 = vpack.c.bf16 %v647_v11, %v645_v10  ;;  %v13678_v10 = vld [vmem:[#allocation5 + $0x118] sm:$0xff]  }
  0xe8   : > { %1893 = vmatpush1.bf16.msra.mxu0 %v13652_v13  ;;  %2070 = vmatpush1.bf16.msra.mxu1 %v13653_v14  ;;  %v794_v13 = vrot.slane %v14891_v57, 3  ;;  %v14922_v14 = vld [vmem:[%s14794_s28 + $0x48] sm:$0xff] }
  0xe9   : > { %1894 = vmatprep.subr.bf16.mxu0 %v14501_v0  ;;  %2071 = vmatprep.subr.bf16.mxu1 %v14501_v0  ;;  %v655_v26 = vrot.slane %v14922_v14, 1  ;;  %v14951_v32 = vrot.slane %v14922_v14, 2  ;;  %v801_v34 = vrot.slane %v14922_v14, 3 }
  0xea   : > { %v796_v28 = vsel %vm784_vm1, %v794_v13, %v795_v62 }
  0xec   : > { %1895 = vmatpush1.bf16.msra.mxu0 %v13654_v15  ;;  %2072 = vmatpush1.bf16.msra.mxu1 %v13655_v16  ;;  %v793_v15 = vsel %vm784_vm1, %v790_v55, %v792_v56  ;;  %v717_v16 = vrot.slane %v14870_v42, 2 }
  0xed   : > { %1896 = vmatprep.subr.bf16.mxu0 %v14501_v0  ;;  %2073 = vmatprep.subr.bf16.mxu1 %v14501_v0  ;;  %v1474_v27 = vpack.c.bf16 %v793_v15, %v791_v12  ;;  %v958_v15 = vcombine.high %v14878_v47, %v14907_v8 }
  0xee   : > { %v720_v36 = vsel %vm711_vm2, %v717_v16, %v719_v20 }
  0xf0   : > { %1897 = vmatpush2.bf16.msra.mxu0 %v13656_v17  ;;  %2074 = vmatpush2.bf16.msra.mxu1 %v13657_v18  ;;  %v14932_v17 = vsel %vm711_vm2, %v722_v60, %v724_v61  ;;  %v14937_v18 = vsel %vm784_vm1, %v795_v62, %v797_v63  ;;  %v14988_v61 = vld [vmem:[%s14794_s28 + $0x50] sm:$0xff]  ;;  %v964_v63 = vcombine.low %v727_v50, %v800_v52 }
  0xf1   : > { %1898 = vmatprep.subr.bf16.mxu0 %v14501_v0  ;;  %2075 = vmatprep.subr.bf16.mxu1 %v14501_v0  ;;  %v959_v29 = vcombine.low %v14932_v17, %v14937_v18  ;;  %v657_v13 = vrot.slane %v14988_v61, 1 }
  0xf2   : > { %v12355_v11 = vcombine.high %v14937_v18, %v964_v63 }
  0xf3   : > { %v12351_v46 = vcombine.high %v796_v28, %v959_v29 }
  0xf4   : > { %1899 = vmatpush2.bf16.msra.mxu0 %v13658_v25  ;;  %2076 = vmatpush2.bf16.msra.mxu1 %v13659_v30  ;;  %v653_v25 = vrot.slane %v14910_v9, 1  ;;  %v13674_v30 = vld [vmem:[#allocation5 + $0x130] sm:$0xff]  }
  0xf5   : > { %1900 = vmatprep.subr.bf16.mxu0 %v14501_v0  ;;  %2077 = vmatprep.subr.bf16.mxu1 %v14501_v0 }
  0xf8   : > { %1901 = vmatpush2.bf16.msra.mxu0 %v13660_v35  ;;  %2078 = vmatpush2.bf16.msra.mxu1 %v13661_v37  ;;  %v718_v35 = vsel %vm711_vm2, %v715_v51, %v717_v16  ;;  %v12345_v37 = vcombine.low %v646_v53, %v650_v24  ;;  %v14972_v51 = vsel %vm711_vm2, %v726_v31, %v14951_v32  ;;  %v15024_v31 = vld [vmem:[%s14794_s28 + $0x68] sm:$0xff] }
  0xf9   : > { %1902 = vmatprep.subr.bf16.mxu0 %v14501_v0  ;;  %2079 = vmatprep.subr.bf16.mxu1 %v14501_v0  ;;  %v14980_v53 = vsel %vm784_vm1, %v799_v33, %v801_v34  ;;  %v735_v63 = vrot.slane %v15024_v31, 2 }
  0xfc   : > { %1903 = vmatpush2.bf16.msra.mxu0 %v13662_v38  ;;  %2080 = vmatpush2.bf16.msra.mxu1 %v13663_v39  ;;  %v723_v39 = vsel %vm711_vm2, %v721_v22, %v722_v60  ;;  %v965_v22 = vcombine.high %v727_v50, %v800_v52 }
  0xfd   : > { %1904 = vmatprep.subr.bf16.mxu0 %v14501_v0  ;;  %2081 = vmatprep.subr.bf16.mxu1 %v14501_v0  ;;  %v955_v55 = vcombine.high %v723_v39, %v796_v28 }
  0xff   : > { %v12350_v5 = vcombine.low %v955_v55, %v14932_v17  ;;  %v15048_v55 = vld [vmem:[%s14794_s28 + $0x80] sm:$0xff] }
 0x100   : > { %1905 = vmatpush2.bf16.msra.mxu0 %v13664_v40  ;;  %2082 = vmatpush2.bf16.msra.mxu1 %v13665_v41  ;;  %v654_v40 = vsel %vm638_vm0, %v651_v59, %v653_v25  ;;  %v14962_v41 = vsel %vm638_vm0, %v653_v25, %v655_v26  ;;  %v1473_v59 = vpack.c.bf16 %v720_v36, %v718_v35  ;;  %v730_v35 = vrot.slane %v14988_v61, 2  ;;  %v13681_v36 = vld [vmem:[#allocation5 + $0x108] sm:$0xff]  }
 0x101   : > { %1906 = vmatprep.subr.bf16.mxu0 %v14501_v0  ;;  %2083 = vmatprep.subr.bf16.mxu1 %v14501_v0  ;;  %v967_v58 = vcombine.low %v14910_v9, %v14962_v41 }
 0x103   : > { %v12357_v7 = vcombine.high %v654_v40, %v967_v58  ;;  %v13683_v58 = vld [vmem:[#allocation5 + $0x100] sm:$0xff]  }
 0x104   : > { %1907 = vmatpush2.bf16.msra.mxu0 %v13666_v44  ;;  %2084 = vmatpush2.bf16.msra.mxu1 %v13667_v45  ;;  %v953_v44 = vcombine.high %v14891_v57, %v650_v24  ;;  %v12347_v45 = vcombine.low %v792_v56, %v796_v28  ;;  %v962_v56 = vcombine.low %v14881_v48, %v654_v40 }
 0x105   : > { %1908 = vmatprep.subr.bf16.mxu0 %v14501_v0  ;;  %2085 = vmatprep.subr.bf16.mxu1 %v14501_v0  ;;  %v12358_v28 = vcombine.low %v965_v22, %v14972_v51 }
 0x106   : > { %v1479_v62 = vpack.c.bf16 %v12351_v46, %v12347_v45  ;;  %v12353_v6 = vcombine.high %v14907_v8, %v962_v56  ;;  %v970_v45 = vcombine.high %v14972_v51, %v14980_v53 }
 0x108   : > { %1909 = vmatpush2.bf16.msra.mxu0 %v13668_v49  ;;  %2086 = vmatpush2.bf16.msra.mxu1 %v13669_v54  ;;  %v13675_v49 = vld [vmem:[#allocation5 + $0x128] sm:$0xff]   ;;  %v1471_v54 = vpack.c.bf16 %v14870_v42, %v14844_v21  ;;  %v12344_v21 = vcombine.low %v14873_v43, %v14891_v57  ;;  %v12348_v42 = vcombine.low %v953_v44, %v14878_v47 }
 0x109   : > { %1910 = vmatprep.subr.bf16.mxu0 %v14501_v0  ;;  %2087 = vmatprep.subr.bf16.mxu1 %v14501_v0  ;;  %v957_v0 = vcombine.low %v14878_v47, %v14907_v8  ;;  %v973_v8 = vcombine.low %v14951_v32, %v801_v34 }
 0x10a   : > { %v1476_v57 = vpack.c.bf16 %v12348_v42, %v12344_v21  ;;  %v667_v42 = vrot.slane %v15048_v55, 1 }
 0x10b   : > { %v12349_v38 = vcombine.high %v650_v24, %v957_v0  ;;  %v960_v0 = vcombine.high %v14932_v17, %v14937_v18  ;;  %v803_v24 = vrot.slane %v14988_v61, 3  ;;  %v12352_v17 = vcombine.low %v958_v15, %v14881_v48 }
 0x10c   : > { %1911 = vmatpush2.bf16.msra.mxu0 %v13670_v1  ;;  %2088 = vmatpush2.bf16.msra.mxu1 %v13671_v2  ;;  %v969_v1 = vcombine.low %v14972_v51, %v14980_v53  ;;  %v14993_v2 = vld [vmem:[%s14794_s28 + $0x58] sm:$0xff]  ;;  %v15052_v51 = vld [vmem:[%s14794_s28 + $0x88] sm:$0xff] }
 0x10d   : > { %13020 = vmatprep.subr.bf16.mxu0 %v13672_v4  ;;  %v1477_v60 = vpack.c.bf16 %v12349_v38, %v12345_v37  ;;  %v658_v43 = vrot.slane %v14993_v2, 1  ;;  %v804_v25 = vrot.slane %v14993_v2, 3  ;;  %v968_v38 = vcombine.high %v14910_v9, %v14962_v41 }
 0x10e   : > { %v12359_v12 = vcombine.high %v800_v52, %v969_v1  ;;  %v731_v44 = vrot.slane %v14993_v2, 2 }
 0x10f   : > { %1913 = vmatmul.mubr.bf16.vlgmr.msra.gmra.mxu0 %v1466_v3  ;;  %2090 = vmatmul.mubr.bf16.vlgmr.msra.gmra.mxu1 %v1468_v19  ;;  %v13677_v3 = vld [vmem:[#allocation5 + $0x120] sm:$0xff]   ;;  %v1482_v19 = vpack.c.bf16 %v12357_v7, %v12353_v6  ;;  %v659_v33 = vsel %vm638_vm0, %v657_v13, %v658_v43  ;;  %v805_v34 = vsel %vm784_vm1, %v803_v24, %v804_v25  ;;  %v669_v13 = vrot.slane %v15052_v51, 1 }
 0x110   : > { %13021 = vmatpush3.bf16.msra.mxu0 %v13672_v4  ;;  %1920 = vmatprep.mubr.bf16.mxu0 %v1472_v23  ;;  %v12346_v4 = vcombine.low %v719_v20, %v723_v39  ;;  %v963_v20 = vcombine.high %v14881_v48, %v654_v40  ;;  %v972_v23 = vcombine.low %v14922_v14, %v655_v26 }
 0x111   : > { %2097 = vmatprep.mubr.bf16.mxu1 %v1474_v27  ;;  %13022 = vmatprep.subr.bf16.mxu0 %v13674_v30  ;;  %v1484_v47 = vpack.c.bf16 %v12359_v12, %v12355_v11  ;;  %v13680_v27 = vld [vmem:[#allocation5 + $0x110] sm:$0xff]   ;;  %v12354_v26 = vcombine.low %v960_v0, %v727_v50  ;;  %v12363_v48 = vcombine.high %v14980_v53, %v973_v8  ;;  %v662_v50 = vrot.slane %v15024_v31, 1 }
 0x112   : > { %v1478_v16 = vpack.c.bf16 %v12350_v5, %v12346_v4  ;;  %v12356_v18 = vcombine.low %v963_v20, %v14910_v9  ;;  %v12361_v29 = vcombine.high %v14962_v41, %v972_v23  ;;  %v15042_v9 = vld [vmem:[%s14794_s28 + $0x70] sm:$0xff]  ;;  %v15045_v41 = vld [vmem:[%s14794_s28 + $0x78] sm:$0xff]  ;;  %v12360_v56 = vcombine.low %v968_v38, %v14922_v14 }
 0x113   : > { %v1483_v39 = vpack.c.bf16 %v12358_v28, %v12354_v26  ;;  %v1489_v46 = vpack.c.bf16 %v805_v34, %v12363_v48  ;;  %v15055_v53 = vld [vmem:[%s14794_s28 + $0x90] sm:$0xff]  ;;  %v666_v21 = vrot.slane %v15045_v41, 1  ;;  %v813_v5 = vrot.slane %v15048_v55, 3 }
 0x114   : > { %13023 = vmatpush3.bf16.msra.mxu0 %v13674_v30  ;;  %v15021_v30 = vld [vmem:[%s14794_s28 + $0x60] sm:$0xff]  ;;  %v1481_v37 = vpack.c.bf16 %v12356_v18, %v12352_v17  ;;  %v1487_v40 = vpack.c.bf16 %v659_v33, %v12361_v29  ;;  %v1486_v6 = vpack.c.bf16 %v14988_v61, %v12360_v56  ;;  %v664_v7 = vrot.slane %v15042_v9, 1 }
 0x115   : > { %13024 = vmatprep.subr.bf16.mxu0 %v13675_v49  ;;  %v806_v52 = vrot.slane %v15021_v30, 3  ;;  %v15077_v15 = vsel %vm638_vm0, %v666_v21, %v667_v42  ;;  %v744_v61 = vrot.slane %v15055_v53, 2  ;;  %v815_v20 = vrot.slane %v15052_v51, 3 }
 0x116   : > { %v817_v0 = vrot.slane %v15055_v53, 3  ;;  %v665_v24 = vsel %vm638_vm0, %v662_v50, %v664_v7  ;;  %v12365_v8 = vcombine.low %v664_v7, %v15077_v15  ;;  %v737_v18 = vrot.slane %v15042_v9, 2 }
 0x117   : > { %1921 = vmatmul.mubr.bf16.gmra.mxu0 %v1471_v54  ;;  %2098 = vmatmul.mubr.bf16.gmra.mxu1 %v1473_v59  ;;  %v808_v54 = vrot.slane %v15024_v31, 3  ;;  %v732_v59 = vsel %vm711_vm2, %v730_v35, %v731_v44  ;;  %v670_v28 = vsel %vm638_vm0, %v667_v42, %v669_v13  ;;  %v816_v34 = vsel %vm784_vm1, %v813_v5, %v815_v20 }
 0x118   : > { %1928 = vmatprep.mubr.bf16.mxu0 %v1477_v60  ;;  %2105 = vmatprep.mubr.bf16.mxu1 %v1479_v62  ;;  %v12362_v60 = vcombine.low %v970_v45, %v14951_v32  ;;  %v733_v62 = vrot.slane %v15021_v30, 2  ;;  %v812_v32 = vrot.slane %v15045_v41, 3  ;;  %v15110_v35 = vsel %vm784_vm1, %v815_v20, %v817_v0  ;;  %v15156_v20 = vld [vmem:[%s14794_s28 + $0xb0] sm:$0xff] }
 0x119   : > { %13025 = vmatpush3.bf16.msra.mxu0 %v13675_v49  ;;  %v660_v49 = vrot.slane %v15021_v30, 1  ;;  %v809_v4 = vsel %vm784_vm1, %v806_v52, %v808_v54  ;;  %v738_v56 = vsel %vm711_vm2, %v735_v63, %v737_v18 }
 0x11a   : > { %13026 = vmatprep.subr.bf16.mxu0 %v13677_v3  ;;  %v1488_v11 = vpack.c.bf16 %v732_v59, %v12362_v60  ;;  %v734_v22 = vsel %vm711_vm2, %v731_v44, %v733_v62  ;;  %v736_v23 = vsel %vm711_vm2, %v733_v62, %v735_v63  ;;  %v1497_v44 = vpack.c.bf16 %v12365_v8, %v665_v24  ;;  %v15162_v24 = vld [vmem:[%s14794_s28 + $0xb8] sm:$0xff] }
 0x11b   : > { %v661_v14 = vsel %vm638_vm0, %v658_v43, %v660_v49  ;;  %v663_v1 = vsel %vm638_vm0, %v660_v49, %v662_v50  ;;  %v671_v43 = vrot.slane %v15055_v53, 1  ;;  %v1493_v38 = vpack.c.bf16 %v736_v23, %v734_v22 }
 0x11c   : > { %v1492_v12 = vpack.c.bf16 %v663_v1, %v661_v14  ;;  %v997_v1 = vcombine.high %v15045_v41, %v15077_v15 }
 0x11d   : > { %13027 = vmatpush3.bf16.msra.mxu0 %v13677_v3  ;;  %v807_v3 = vsel %vm784_vm1, %v804_v25, %v806_v52  ;;  %v740_v25 = vrot.slane %v15048_v55, 2  ;;  %v15102_v29 = vsel %vm638_vm0, %v669_v13, %v671_v43 }
 0x11e   : > { %13028 = vmatprep.subr.bf16.mxu0 %v13678_v10  ;;  %v1006_v49 = vcombine.low %v15052_v51, %v15102_v29  ;;  %v1007_v22 = vcombine.high %v15052_v51, %v15102_v29 }
 0x11f   : > { %1929 = vmatmul.mubr.bf16.gmra.mxu0 %v1476_v57  ;;  %2106 = vmatmul.mubr.bf16.gmra.mxu1 %v1478_v16  ;;  %v1494_v57 = vpack.c.bf16 %v809_v4, %v807_v3  ;;  %v742_v16 = vrot.slane %v15052_v51, 2 }
 0x120   : > { %1936 = vmatprep.mubr.bf16.mxu0 %v1482_v19  ;;  %2113 = vmatprep.mubr.bf16.mxu1 %v1484_v47  ;;  %v15082_v19 = vsel %vm784_vm1, %v812_v32, %v813_v5  ;;  %v15093_v47 = vld [vmem:[%s14794_s28 + $0x98] sm:$0xff]  ;;  %v12373_v59 = vcombine.high %v670_v28, %v1006_v49  ;;  %v680_v49 = vrot.slane %v15162_v24, 1 }
 0x121   : > { %13029 = vmatpush3.bf16.msra.mxu0 %v13678_v10  ;;  %v810_v10 = vrot.slane %v15042_v9, 3  ;;  %v743_v33 = vsel %vm711_vm2, %v740_v25, %v742_v16  ;;  %v15106_v48 = vsel %vm711_vm2, %v742_v16, %v744_v61 }
 0x122   : > { %13030 = vmatprep.subr.bf16.mxu0 %v13680_v27  ;;  %v1003_v52 = vcombine.low %v743_v33, %v816_v34  ;;  %v1004_v5 = vcombine.high %v743_v33, %v816_v34 }
 0x123   : > { %v811_v17 = vsel %vm784_vm1, %v808_v54, %v810_v10  ;;  %v12367_v26 = vcombine.low %v810_v10, %v15082_v19  ;;  %v1008_v54 = vcombine.low %v15106_v48, %v15110_v35 }
 0x124   : > { %v12371_v60 = vcombine.high %v15082_v19, %v1003_v52  ;;  %v753_v52 = vrot.slane %v15162_v24, 2 }
 0x125   : > { %13031 = vmatpush3.bf16.msra.mxu0 %v13680_v27  ;;  %v739_v27 = vrot.slane %v15045_v41, 2  ;;  %v1499_v50 = vpack.c.bf16 %v12367_v26, %v811_v17  ;;  %v12375_v62 = vcombine.high %v816_v34, %v1008_v54  ;;  %v15190_v54 = vld [vmem:[%s14794_s28 + $0xd0] sm:$0xff] }
 0x126   : > { %13032 = vmatprep.subr.bf16.mxu0 %v13681_v36 }
 0x127   : > { %1937 = vmatmul.mubr.bf16.gmra.mxu0 %v1481_v37  ;;  %2114 = vmatmul.mubr.bf16.gmra.mxu1 %v1483_v39  ;;  %v1491_v37 = vpack.c.bf16 %v15021_v30, %v14993_v2  ;;  %v15116_v39 = vrot.slane %v15093_v47, 2  ;;  %v741_v45 = vsel %vm711_vm2, %v739_v27, %v740_v25  ;;  %v12364_v2 = vcombine.low %v15042_v9, %v15045_v41  ;;  %v15169_v27 = vld [vmem:[%s14794_s28 + $0xc0] sm:$0xff] }
 0x128   : > { %1944 = vmatprep.mubr.bf16.mxu0 %v1487_v40  ;;  %2121 = vmatprep.mubr.bf16.mxu1 %v1489_v46  ;;  %v819_v40 = vrot.slane %v15093_v47, 3  ;;  %v1001_v46 = vcombine.low %v15048_v55, %v670_v28  ;;  %v12366_v30 = vcombine.low %v737_v18, %v741_v45  ;;  %v1002_v9 = vcombine.high %v15048_v55, %v670_v28 }
 0x129   : > { %13033 = vmatpush3.bf16.msra.mxu0 %v13681_v36  ;;  %v673_v36 = vrot.slane %v15093_v47, 1  ;;  %v747_v21 = vsel %vm711_vm2, %v744_v61, %v15116_v39  ;;  %v1496_v42 = vpack.c.bf16 %v12364_v2, %v15024_v31  ;;  %v999_v4 = vcombine.high %v741_v45, %v15082_v19  ;;  %v15152_v61 = vld [vmem:[%s14794_s28 + $0xa8] sm:$0xff]  ;;  %v15193_v2 = vld [vmem:[%s14794_s28 + $0xd8] sm:$0xff] }
 0x12a   : > { %13034 = vmatprep.subr.bf16.mxu0 %v13683_v58  ;;  %v820_v63 = vsel %vm784_vm1, %v817_v0, %v819_v40  ;;  %v1498_v3 = vpack.c.bf16 %v12366_v30, %v738_v56  ;;  %v1504_v7 = vpack.c.bf16 %v12375_v62, %v12371_v60  ;;  %v12372_v13 = vcombine.low %v1002_v9, %v15052_v51  ;;  %v15204_v9 = vld [vmem:[%s14794_s28 + $0xe0] sm:$0xff] }
 0x12b   : > { %v674_v14 = vsel %vm638_vm0, %v671_v43, %v673_v36  ;;  %v1016_v41 = vcombine.low %v15093_v47, %v673_v36  ;;  %v1013_v10 = vcombine.low %v747_v21, %v820_v63  ;;  %v12370_v31 = vcombine.low %v999_v4, %v743_v33  ;;  %v15147_v43 = vld [vmem:[%s14794_s28 + $0xa0] sm:$0xff] }
 0x12c   : > { %v1012_v23 = vcombine.high %v15055_v53, %v674_v14  ;;  %v1009_v25 = vcombine.high %v15106_v48, %v15110_v35  ;;  %v1014_v8 = vcombine.high %v747_v21, %v820_v63  ;;  %v675_v17 = vrot.slane %v15147_v43, 1 }
 0x12d   : > { %13035 = vmatpush3.bf16.msra.mxu0 %v13683_v58  ;;  %v12369_v58 = vcombine.high %v15077_v15, %v1001_v46  ;;  %v12381_v16 = vcombine.high %v674_v14, %v1016_v41  ;;  %v676_v18 = vrot.slane %v15152_v61, 1  ;;  %v678_v33 = vrot.slane %v15156_v20, 1 }
 0x12e   : > { %v821_v51 = vrot.slane %v15147_v43, 3  ;;  %v822_v36 = vrot.slane %v15152_v61, 3  ;;  %v12382_v45 = vcombine.low %v1014_v8, %v15116_v39  ;;  %v751_v46 = vrot.slane %v15156_v20, 2 }
 0x12f   : > { %1945 = vmatmul.mubr.bf16.gmra.mxu0 %v1486_v6  ;;  %2122 = vmatmul.mubr.bf16.gmra.mxu1 %v1488_v11  ;;  %v1502_v32 = vpack.c.bf16 %v12373_v59, %v12369_v58  ;;  %v1011_v6 = vcombine.low %v15055_v53, %v674_v14  ;;  %v1017_v11 = vcombine.low %v15116_v39, %v819_v40  ;;  %v749_v40 = vrot.slane %v15152_v61, 2 }
 0x130   : > { %1952 = vmatprep.mubr.bf16.mxu0 %v1492_v12  ;;  %2129 = vmatprep.mubr.bf16.mxu1 %v1494_v57  ;;  %v12368_v12 = vcombine.low %v997_v1, %v15048_v55  ;;  %v12374_v57 = vcombine.low %v1004_v5, %v15106_v48  ;;  %v12379_v55 = vcombine.high %v15110_v35, %v1013_v10  ;;  %v824_v48 = vrot.slane %v15156_v20, 3 }
 0x131   : > { %v12377_v15 = vcombine.high %v15102_v29, %v1011_v6  ;;  %v12383_v19 = vcombine.high %v820_v63, %v1017_v11  ;;  %v15174_v29 = vld [vmem:[%s14794_s28 + $0xc8] sm:$0xff]  ;;  %v12376_v35 = vcombine.low %v1007_v22, %v15055_v53  ;;  %v826_v53 = vrot.slane %v15162_v24, 3 }
 0x132   : > { %v1501_v0 = vpack.c.bf16 %v12372_v13, %v12368_v12  ;;  %v1503_v26 = vpack.c.bf16 %v12374_v57, %v12370_v31  ;;  %v677_v39 = vsel %vm638_vm0, %v675_v17, %v676_v18  ;;  %v679_v30 = vsel %vm638_vm0, %v676_v18, %v678_v33 }
 0x133   : > { %v1507_v28 = vpack.c.bf16 %v12381_v16, %v12377_v15  ;;  %v1509_v34 = vpack.c.bf16 %v12383_v19, %v12379_v55  ;;  %v755_v56 = vrot.slane %v15169_v27, 2  ;;  %v684_v58 = vrot.slane %v15174_v29, 1 }
 0x134   : > { %v823_v59 = vsel %vm784_vm1, %v821_v51, %v822_v36  ;;  %v825_v60 = vsel %vm784_vm1, %v822_v36, %v824_v48  ;;  %v685_v14 = vrot.slane %v15190_v54, 1  ;;  %v687_v1 = vrot.slane %v15193_v2, 1 }
 0x135   : > { %v760_v4 = vrot.slane %v15193_v2, 2  ;;  %v831_v5 = vrot.slane %v15190_v54, 3  ;;  %v833_v6 = vrot.slane %v15193_v2, 3  ;;  %v681_v10 = vsel %vm638_vm0, %v678_v33, %v680_v49 }
 0x136   : > { %v830_v11 = vrot.slane %v15174_v29, 3  ;;  %v757_v12 = vrot.slane %v15174_v29, 2  ;;  %v688_v31 = vsel %vm638_vm0, %v685_v14, %v687_v1  ;;  %v689_v57 = vrot.slane %v15204_v9, 1 }
 0x137   : > { %1953 = vmatmul.mubr.bf16.gmra.mxu0 %v1491_v37  ;;  %2130 = vmatmul.mubr.bf16.gmra.mxu1 %v1493_v38  ;;  %v12380_v37 = vcombine.low %v1012_v23, %v15093_v47  ;;  %v748_v38 = vrot.slane %v15147_v43, 2  ;;  %v828_v47 = vrot.slane %v15169_v27, 3  ;;  %v827_v16 = vsel %vm784_vm1, %v824_v48, %v826_v53 }
 0x138   : > { %1960 = vmatprep.mubr.bf16.mxu0 %v1497_v44  ;;  %2137 = vmatprep.mubr.bf16.mxu1 %v1499_v50  ;;  %v12378_v44 = vcombine.low %v1009_v25, %v747_v21  ;;  %v682_v50 = vrot.slane %v15169_v27, 1  ;;  %v15207_v21 = vld [vmem:[%s14794_s28 + $0xe8] sm:$0xff]  ;;  %v762_v19 = vrot.slane %v15204_v9, 2  ;;  %v1511_v22 = vpack.c.bf16 %v15152_v61, %v15147_v43 }
 0x139   : > { %v1506_v62 = vpack.c.bf16 %v12380_v37, %v12376_v35  ;;  %v750_v41 = vsel %vm711_vm2, %v748_v38, %v749_v40  ;;  %v691_v15 = vrot.slane %v15207_v21, 1  ;;  %v829_v55 = vsel %vm784_vm1, %v826_v53, %v828_v47 }
 0x13a   : > { %v1508_v63 = vpack.c.bf16 %v12382_v45, %v12378_v44  ;;  %v683_v13 = vsel %vm638_vm0, %v680_v49, %v682_v50  ;;  %v834_v25 = vsel %vm784_vm1, %v831_v5, %v833_v6  ;;  %v754_v8 = vsel %vm711_vm2, %v751_v46, %v753_v52 }
 0x13b   : > { %v756_v17 = vsel %vm711_vm2, %v753_v52, %v755_v56  ;;  %v686_v18 = vsel %vm638_vm0, %v684_v58, %v685_v14  ;;  %v1517_v33 = vpack.c.bf16 %v683_v13, %v681_v10  ;;  %v1519_v51 = vpack.c.bf16 %v829_v55, %v827_v16 }
 0x13c   : > { %v15239_v36 = vrot.slane %v15207_v21, 2  ;;  %v837_v48 = vrot.slane %v15207_v21, 3  ;;  %v1516_v35 = vpack.c.bf16 %v15162_v24, %v15156_v20  ;;  %v1518_v37 = vpack.c.bf16 %v756_v17, %v754_v8 }
 0x13d   : > { %v1041_v38 = vcombine.high %v15174_v29, %v686_v18  ;;  %v12385_v44 = vcombine.low %v682_v50, %v686_v18  ;;  %v692_v49 = vsel %vm638_vm0, %v689_v57, %v691_v15  ;;  %v763_v52 = vsel %vm711_vm2, %v760_v4, %v762_v19 }
 0x13e   : > { %v15252_v50 = vsel %vm711_vm2, %v762_v19, %v15239_v36  ;;  %v1046_v14 = vcombine.high %v15190_v54, %v688_v31  ;;  %v1056_v13 = vcombine.high %v15204_v9, %v692_v49 }
 0x13f   : > { %1961 = vmatmul.mubr.bf16.gmra.mxu0 %v1496_v42  ;;  %2138 = vmatmul.mubr.bf16.gmra.mxu1 %v1498_v3  ;;  %v1512_v42 = vpack.c.bf16 %v679_v30, %v677_v39  ;;  %v758_v3 = vrot.slane %v15190_v54, 2 }
 0x140   : > { %1968 = vmatprep.mubr.bf16.mxu0 %v1502_v32  ;;  %2145 = vmatprep.mubr.bf16.mxu1 %v1504_v7  ;;  %v1514_v32 = vpack.c.bf16 %v825_v60, %v823_v59  ;;  %v752_v7 = vsel %vm711_vm2, %v749_v40, %v751_v46  ;;  %v690_v40 = vsel %vm638_vm0, %v687_v1, %v689_v57  ;;  %v15263_v1 = vld [vmem:[%s14794_s28 + $0xf0] sm:$0xff] }
 0x141   : > { %v761_v23 = vsel %vm711_vm2, %v758_v3, %v760_v4  ;;  %v759_v61 = vsel %vm711_vm2, %v757_v12, %v758_v3  ;;  %v1050_v58 = vcombine.low %v15193_v2, %v690_v40  ;;  %v12384_v59 = vcombine.low %v15169_v27, %v15174_v29 }
 0x142   : > { %v1047_v43 = vcombine.low %v761_v23, %v834_v25  ;;  %v12388_v60 = vcombine.low %v1041_v38, %v15190_v54  ;;  %v1048_v4 = vcombine.high %v761_v23, %v834_v25  ;;  %v1060_v12 = vcombine.low %v15207_v21, %v691_v15 }
 0x143   : > { %v15276_v57 = vcombine.low %v1046_v14, %v15193_v2  ;;  %v693_v16 = vrot.slane %v15263_v1, 1  ;;  %v839_v8 = vrot.slane %v15263_v1, 3 }
 0x147   : > { %1969 = vmatmul.mubr.bf16.gmra.mxu0 %v1501_v0  ;;  %2146 = vmatmul.mubr.bf16.gmra.mxu1 %v1503_v26  ;;  %v835_v0 = vrot.slane %v15204_v9, 3  ;;  %v1045_v26 = vcombine.low %v15190_v54, %v688_v31 }
 0x148   : > { %1976 = vmatprep.mubr.bf16.mxu0 %v1507_v28  ;;  %2153 = vmatprep.mubr.bf16.mxu1 %v1509_v34  ;;  %v1513_v28 = vpack.c.bf16 %v752_v7, %v750_v41  ;;  %v832_v34 = vsel %vm784_vm1, %v830_v11, %v831_v5  ;;  %v12393_v11 = vcombine.high %v688_v31, %v1050_v58 }
 0x149   : > { %v12389_v45 = vcombine.high %v686_v18, %v1045_v26  ;;  %v12387_v46 = vcombine.low %v828_v47, %v832_v34  ;;  %v1043_v53 = vcombine.high %v759_v61, %v832_v34  ;;  %v836_v39 = vsel %vm784_vm1, %v833_v6, %v835_v0  ;;  %v15292_v18 = vld [vmem:[%s14794_s28 + $0x100] sm:$0xff] }
 0x14a   : > { %v12391_v30 = vcombine.high %v832_v34, %v1047_v43  ;;  %v15255_v47 = vsel %vm784_vm1, %v835_v0, %v837_v48  ;;  %v1052_v3 = vcombine.low %v763_v52, %v836_v39  ;;  %v1053_v7 = vcombine.high %v763_v52, %v836_v39 }
 0x14b   : > { %v1522_v5 = vpack.c.bf16 %v12389_v45, %v12385_v44  ;;  %v12390_v6 = vcombine.low %v1043_v53, %v761_v23  ;;  %v1057_v41 = vcombine.low %v15252_v50, %v15255_v47  ;;  %v1061_v31 = vcombine.low %v15239_v36, %v837_v48 }
 0x14c   : > { %v1524_v10 = vpack.c.bf16 %v12391_v30, %v12387_v46  ;;  %v12395_v0 = vcombine.high %v834_v25, %v1052_v3  ;;  %v15287_v23 = vcombine.low %v1053_v7, %v15252_v50  ;;  %v12401_v26 = vcombine.high %v692_v49, %v1060_v12  ;;  %v15337_v3 = vld [vmem:[%s14794_s28 + $0x110] sm:$0xff]  ;;  %v13684_v7 = vld [vmem:[#allocation7 + $0x78] sm:$0xff]  }
 0x14d   : > { %v12399_v15 = vcombine.high %v836_v39, %v1057_v41  ;;  %v15295_v25 = vcombine.low %v1056_v13, %v15207_v21  ;;  %v1521_v34 = vpack.c.bf16 %v12388_v60, %v12384_v59  ;;  %v12403_v48 = vcombine.high %v15255_v47, %v1061_v31  ;;  %v15318_v39 = vld [vmem:[%s14794_s28 + $0x120] sm:$0xff]  ;;  %12654 = vmatprep.subr.bf16.mxu1 %v13684_v7  ;;  %v15434_v7 = vld [vmem:[%s14794_s28 + $0x138] sm:$0xff] }
 0x14e   : > { %v696_v53 = vrot.slane %v15292_v18, 1  ;;  %v842_v60 = vrot.slane %v15292_v18, 3  ;;  %v849_v41 = vrot.slane %v15318_v39, 3 }
 0x14f   : > { %1977 = vmatmul.mubr.bf16.gmra.mxu0 %v1506_v62  ;;  %2154 = vmatmul.mubr.bf16.gmra.mxu1 %v1508_v63  ;;  %v1055_v62 = vcombine.low %v15204_v9, %v692_v49  ;;  %v12386_v63 = vcombine.low %v755_v56, %v759_v61  ;;  %v1529_v38 = vpack.c.bf16 %v12399_v15, %v12395_v0  ;;  %v13685_v0 = vld [vmem:[#allocation7 + $0x38] sm:$0xff]  }
 0x150   : > { %1984 = vmatprep.mubr.bf16.mxu0 %v1512_v42  ;;  %2161 = vmatprep.mubr.bf16.mxu1 %v1514_v32  ;;  %v1051_v42 = vcombine.high %v15193_v2, %v690_v40  ;;  %v15269_v32 = vld [vmem:[%s14794_s28 + $0xf8] sm:$0xff]  ;;  %v1531_v46 = vpack.c.bf16 %v15263_v1, %v15295_v25  ;;  %v1058_v49 = vcombine.high %v15252_v50, %v15255_v47  ;;  %v15331_v50 = vld [vmem:[%s14794_s28 + $0x130] sm:$0xff] }
 0x151   : > { %v12397_v56 = vcombine.high %v690_v40, %v1055_v62  ;;  %v694_v55 = vrot.slane %v15269_v32, 1  ;;  %v840_v17 = vrot.slane %v15269_v32, 3  ;;  %v1523_v43 = vpack.c.bf16 %v12390_v6, %v12386_v63  ;;  %v15328_v62 = vld [vmem:[%s14794_s28 + $0x128] sm:$0xff]  ;;  %12655 = vmatpush3.bf16.msra.mxu1 %v13685_v0 }
 0x152   : > { %v15281_v19 = vcombine.low %v1051_v42, %v15204_v9  ;;  %v1536_v59 = vpack.c.bf16 %v15292_v18, %v15269_v32  ;;  %v769_v63 = vrot.slane %v15292_v18, 2  ;;  %v705_v12 = vrot.slane %v15328_v62, 1 }
 0x153   : > { %v1527_v61 = vpack.c.bf16 %v12397_v56, %v12393_v11  ;;  %v841_v44 = vsel %vm784_vm1, %v839_v8, %v840_v17  ;;  %v776_v11 = vrot.slane %v15318_v39, 2  ;;  %v707_v13 = vrot.slane %v15331_v50, 1 }
 0x154   : > { %v1534_v47 = vpack.c.bf16 %v841_v44, %v12403_v48  ;;  %v15348_v56 = vcombine.low %v1058_v49, %v15239_v36  ;;  %v846_v8 = vrot.slane %v15337_v3, 3  ;;  %v853_v48 = vrot.slane %v15331_v50, 3 }
 0x157   : > { %1985 = vmatmul.mubr.bf16.gmra.mxu0 %v1511_v22  ;;  %2162 = vmatmul.mubr.bf16.gmra.mxu1 %v1513_v28  ;;  %v15283_v22 = vcombine.low %v1048_v4, %v763_v52  ;;  %v695_v28 = vsel %vm638_vm0, %v693_v16, %v694_v55  ;;  %v15315_v52 = vld [vmem:[%s14794_s28 + $0x118] sm:$0xff] }
 0x158   : > { %1992 = vmatprep.mubr.bf16.mxu0 %v1517_v33  ;;  %2169 = vmatprep.mubr.bf16.mxu1 %v1519_v51  ;;  %v766_v33 = vrot.slane %v15263_v1, 2  ;;  %v767_v51 = vrot.slane %v15269_v32, 2  ;;  %v1532_v45 = vpack.c.bf16 %v695_v28, %v12401_v26  ;;  %v702_v4 = vrot.slane %v15315_v52, 1 }
 0x159   : > { %v1528_v40 = vpack.c.bf16 %v15287_v23, %v15283_v22  ;;  %v848_v6 = vrot.slane %v15315_v52, 3  ;;  %v12404_v23 = vcombine.low %v15337_v3, %v15315_v52 }
 0x15a   : > { %v15321_v30 = vsel %vm711_vm2, %v766_v33, %v767_v51  ;;  %v15363_v31 = vsel %vm711_vm2, %v767_v51, %v769_v63  ;;  %v15388_v51 = vsel %vm638_vm0, %v705_v12, %v707_v13 }
 0x15b   : > { %v15377_v26 = vsel %vm784_vm1, %v848_v6, %v849_v41 }
 0x15f   : > { %1993 = vmatmul.mubr.bf16.gmra.mxu0 %v1516_v35  ;;  %2170 = vmatmul.mubr.bf16.gmra.mxu1 %v1518_v37  ;;  %v15302_v35 = vld [vmem:[%s14794_s28 + $0x108] sm:$0xff]  ;;  %v1526_v37 = vpack.c.bf16 %v15281_v19, %v15276_v57  ;;  %v15351_v57 = vsel %vm638_vm0, %v694_v55, %v696_v53  ;;  %v15357_v19 = vsel %vm784_vm1, %v840_v17, %v842_v60  ;;  %v700_v55 = vrot.slane %v15337_v3, 1 }
 0x160   : > { %2000 = vmatprep.mubr.bf16.mxu0 %v1522_v5  ;;  %2177 = vmatprep.mubr.bf16.mxu1 %v1524_v10  ;;  %v698_v58 = vrot.slane %v15302_v35, 1  ;;  %v844_v14 = vrot.slane %v15302_v35, 3  ;;  %v771_v42 = vrot.slane %v15302_v35, 2  ;;  %v703_v5 = vrot.slane %v15318_v39, 1 }
 0x161   : > { %v775_v10 = vrot.slane %v15315_v52, 2  ;;  %v773_v17 = vrot.slane %v15337_v3, 2 }
 0x162   : > { %v15354_v16 = vsel %vm638_vm0, %v696_v53, %v698_v58  ;;  %v15360_v22 = vsel %vm784_vm1, %v842_v60, %v844_v14  ;;  %v15366_v36 = vsel %vm711_vm2, %v769_v63, %v771_v42  ;;  %v15370_v15 = vsel %vm638_vm0, %v702_v4, %v703_v5 }
 0x163   : > { %v15380_v28 = vsel %vm711_vm2, %v775_v10, %v776_v11  ;;  %v15383_v33 = vsel %vm638_vm0, %v703_v5, %v705_v12  ;;  %v1537_v44 = vpack.c.bf16 %v15354_v16, %v15351_v57  ;;  %v1539_v49 = vpack.c.bf16 %v15360_v22, %v15357_v19 }
 0x164   : > { %v1538_v53 = vpack.c.bf16 %v15366_v36, %v15363_v31  ;;  %v15403_v60 = vcombine.low %v700_v55, %v15370_v15  ;;  %v15410_v63 = vsel %vm638_vm0, %v698_v58, %v700_v55  ;;  %v15413_v4 = vpack.c.bf16 %v12404_v23, %v15302_v35 }
 0x165   : > { %v15416_v5 = vcombine.low %v846_v8, %v15377_v26  ;;  %v15437_v10 = vsel %vm784_vm1, %v844_v14, %v846_v8  ;;  %v15440_v12 = vsel %vm711_vm2, %v771_v42, %v773_v17  ;;  %v15464_v55 = vrot.slane %v15434_v7, 2 }
 0x166   : > { %v1542_v57 = vpack.c.bf16 %v15403_v60, %v15410_v63 }
 0x167   : > { %2001 = vmatmul.mubr.bf16.gmra.mxu0 %v1521_v34  ;;  %2178 = vmatmul.mubr.bf16.gmra.mxu1 %v1523_v43  ;;  %v778_v34 = vrot.slane %v15328_v62, 2  ;;  %v780_v43 = vrot.slane %v15331_v50, 2  ;;  %v1544_v0 = vpack.c.bf16 %v15416_v5, %v15437_v10  ;;  %v919_v10 = vrot.slane %v15337_v3, 4 }
 0x168   : > { %2008 = vmatprep.mubr.bf16.mxu0 %v1527_v61  ;;  %2185 = vmatprep.mubr.bf16.mxu1 %v1529_v38  ;;  %v851_v61 = vrot.slane %v15328_v62, 3  ;;  %v1533_v38 = vpack.c.bf16 %v15321_v30, %v15348_v56  ;;  %v1094_v30 = vcombine.low %v15328_v62, %v15388_v51  ;;  %v910_v56 = vrot.slane %v15207_v21, 4 }
 0x169   : > { %v15425_v6 = vsel %vm711_vm2, %v778_v34, %v780_v43  ;;  %v709_v21 = vrot.slane %v15434_v7, 1  ;;  %v922_v3 = vrot.slane %v15318_v39, 4 }
 0x16a   : > { %v15431_v58 = vsel %vm784_vm1, %v851_v61, %v853_v48  ;;  %v15450_v16 = vcombine.high %v15383_v33, %v1094_v30 }
 0x16b   : > { %v1096_v19 = vcombine.low %v15425_v6, %v15431_v58 }
 0x16f   : > { %2009 = vmatmul.mubr.bf16.gmra.mxu0 %v1526_v37  ;;  %2186 = vmatmul.mubr.bf16.gmra.mxu1 %v1528_v40  ;;  %v1089_v37 = vcombine.low %v15318_v39, %v15383_v33  ;;  %v15419_v40 = vcombine.low %v773_v17, %v15380_v28  ;;  %v921_v17 = vrot.slane %v15315_v52, 4 }
 0x170   : > { %2016 = vmatprep.mubr.bf16.mxu0 %v1532_v45  ;;  %2193 = vmatprep.mubr.bf16.mxu1 %v1534_v47  ;;  %v15422_v45 = vsel %vm711_vm2, %v776_v11, %v778_v34  ;;  %v15428_v47 = vsel %vm784_vm1, %v849_v41, %v851_v61  ;;  %v19986_v11 = vrot.slane %v15204_v9, 4  ;;  %v855_v34 = vrot.slane %v15434_v7, 3 }
 0x171   : > { %v15447_v41 = vcombine.high %v15370_v15, %v1089_v37  ;;  %v1091_v42 = vcombine.low %v15422_v45, %v15428_v47  ;;  %v912_v61 = vrot.slane %v15263_v1, 4  ;;  %v913_v37 = vrot.slane %v15269_v32, 4 }
 0x172   : > { %v15469_v23 = vsel %vm857_vm3, %v19986_v11, %v910_v56  ;;  %v15490_v63 = vcombine.high %v15428_v47, %v1096_v19  ;;  %v15497_v1 = vsel %vm638_vm0, %v707_v13, %v709_v21  ;;  %v15508_v19 = vsel %vm784_vm1, %v853_v48, %v855_v34 }
 0x173   : > { %v1059_v25 = vcombine.high %v15469_v23, %v15469_v23  ;;  %v15487_v30 = vcombine.high %v15377_v26, %v1091_v42  ;;  %v13686_v42 = vld [vmem:[#allocation7 + $0x70] sm:$0xff]   ;;  %v924_v48 = vrot.slane %v15328_v62, 4  ;;  %v1092_v31 = vcombine.high %v15422_v45, %v15428_v47 }
 0x174   : > { %12656 = vmatprep.subr.bf16.mxu1 %v13686_v42  ;;  %v1099_v36 = vcombine.low %v15331_v50, %v15497_v1 }
 0x175   : > { %v15510_v60 = vcombine.low %v1059_v25, %v910_v56  ;;  %v926_v25 = vrot.slane %v15331_v50, 4  ;;  %v1549_v47 = vpack.c.bf16 %v15490_v63, %v15487_v30  ;;  %v20219_v30 = vcombine.high %v15315_v52, %v15370_v15 }
 0x176   : > { %v20222_v52 = vpack.c.bf16 %v15419_v40, %v15440_v12  ;;  %v12417_v15 = vcombine.high %v15388_v51, %v1099_v36  ;;  %v1095_v12 = vcombine.high %v15328_v62, %v15388_v51  ;;  %v14087_v36 = vld [vmem:[%s14794_s28 + $0x18] sm:$0xff]  ;;  %v14089_v51 = vld [vmem:[%s14794_s28 + $0x28] sm:$0xff] }
 0x177   : > { %2017 = vmatmul.mubr.bf16.gmra.mxu0 %v1531_v46  ;;  %2194 = vmatmul.mubr.bf16.gmra.mxu1 %v1533_v38  ;;  %v915_v46 = vrot.slane %v15292_v18, 4  ;;  %v917_v38 = vrot.slane %v15302_v35, 4  ;;  %v927_v32 = vsel %vm857_vm3, %v924_v48, %v926_v25  ;;  %v12408_v63 = vcombine.low %v20219_v30, %v15318_v39  ;;  %v14090_v30 = vld [vmem:[%s14794_s28 + $0x30] sm:$0xff] }
 0x178   : > { %2024 = vmatprep.mubr.bf16.mxu0 %v1537_v44  ;;  %2201 = vmatprep.mubr.bf16.mxu1 %v1539_v49  ;;  %v15502_v44 = vsel %vm711_vm2, %v780_v43, %v15464_v55  ;;  %v914_v49 = vsel %vm857_vm3, %v912_v61, %v913_v37  ;;  %v13687_v61 = vld [vmem:[#allocation7 + $0x30] sm:$0xff]  }
 0x179   : > { %v916_v5 = vsel %vm857_vm3, %v913_v37, %v915_v46  ;;  %v1066_v11 = vcombine.high %v914_v49, %v914_v49  ;;  %v918_v13 = vsel %vm857_vm3, %v915_v46, %v917_v38  ;;  %v920_v43 = vsel %vm857_vm3, %v917_v38, %v919_v10  ;;  %12657 = vmatpush3.bf16.msra.mxu1 %v13687_v61 }
 0x17a   : > { %v1071_v35 = vcombine.high %v916_v5, %v916_v5  ;;  %v1076_v22 = vcombine.high %v918_v13, %v918_v13  ;;  %v1081_v8 = vcombine.high %v920_v43, %v920_v43  ;;  %v928_v46 = vrot.slane %v15434_v7, 4 }
 0x17b   : > { %v15515_v37 = vcombine.low %v914_v49, %v1066_v11  ;;  %v923_v38 = vsel %vm857_vm3, %v921_v17, %v922_v3  ;;  %v1098_v17 = vcombine.high %v927_v32, %v927_v32  ;;  %v1105_v61 = vcombine.low %v15464_v55, %v855_v34 }
 0x17c   : > { %v15519_v14 = vcombine.low %v916_v5, %v1071_v35  ;;  %v15521_v56 = vcombine.low %v918_v13, %v1076_v22  ;;  %v15531_v49 = vcombine.low %v920_v43, %v1081_v8  ;;  %v925_v5 = vsel %vm857_vm3, %v922_v3, %v924_v48  ;;  %v14084_v48 = vld [vmem:[%s14794_s28] sm:$0xff] }
 0x17d   : > { %v1535_v11 = vpack.c.bf16 %v15515_v37, %v15510_v60  ;;  %v15539_v42 = vcombine.low %v919_v10, %v923_v38  ;;  %v1088_v18 = vcombine.high %v923_v38, %v923_v38  ;;  %v929_v8 = vsel %vm857_vm3, %v926_v25, %v928_v46  ;;  %v14085_v38 = vld [vmem:[%s14794_s28 + $0x8] sm:$0xff] }
 0x17e   : > { %v1540_v22 = vpack.c.bf16 %v15521_v56, %v15519_v14  ;;  %v15556_v35 = vcombine.low %v1098_v17, %v929_v8  ;;  %v1101_v43 = vcombine.low %v15502_v44, %v15508_v19  ;;  %v858_v25 = vrot.slane %v14084_v48, 4 }
 0x17f   : > { %2025 = vmatmul.mubr.bf16.gmra.mxu0 %v1536_v59  ;;  %2202 = vmatmul.mubr.bf16.gmra.mxu1 %v1538_v53  ;;  %v1093_v59 = vcombine.high %v925_v5, %v925_v5  ;;  %v1545_v53 = vpack.c.bf16 %v15539_v42, %v15531_v49  ;;  %v15552_v10 = vcombine.low %v1088_v18, %v925_v5  ;;  %v14086_v5 = vld [vmem:[%s14794_s28 + $0x10] sm:$0xff]  ;;  %v13700_v42 = vld [vmem:[#allocation7 + $0xa8] sm:$0xff]  }
 0x180   : > { %2032 = vmatprep.mubr.bf16.mxu0 %v1542_v57  ;;  %2209 = vmatprep.mubr.bf16.mxu1 %v1544_v0  ;;  %v1103_v57 = vcombine.high %v929_v8, %v929_v8  ;;  %v1104_v0 = vcombine.low %v15434_v7, %v709_v21  ;;  %v859_v21 = vrot.slane %v14085_v38, 4  ;;  %v861_v18 = vrot.slane %v14086_v5, 4 }
 0x181   : > { %v15554_v13 = vcombine.low %v1093_v59, %v927_v32  ;;  %v20220_v34 = vcombine.high %v15318_v39, %v15383_v33  ;;  %v20221_v8 = vcombine.high %v15380_v28, %v15377_v26  ;;  %v20223_v39 = vpack.c.bf16 %v15450_v16, %v15447_v41 }
 0x182   : > { %v15563_v3 = vcombine.low %v1103_v57, %v928_v46  ;;  %v12414_v57 = vcombine.low %v1092_v31, %v15425_v6  ;;  %v12421_v33 = vcombine.high %v15497_v1, %v1104_v0  ;;  %v12419_v26 = vcombine.high %v15431_v58, %v1101_v43 }
 0x183   : > { %v1550_v32 = vpack.c.bf16 %v15554_v13, %v15552_v10  ;;  %v12412_v46 = vcombine.low %v20220_v34, %v15328_v62  ;;  %v12410_v17 = vcombine.low %v20221_v8, %v15422_v45  ;;  %v12423_v28 = vcombine.high %v15508_v19, %v1105_v61 }
 0x184   : > { %v1555_v59 = vpack.c.bf16 %v15563_v3, %v15556_v35  ;;  %v862_v45 = vsel %vm857_vm3, %v859_v21, %v861_v18  ;;  %v1100_v41 = vcombine.high %v15331_v50, %v15497_v1  ;;  %v1097_v31 = vcombine.high %v15425_v6, %v15431_v58  ;;  %v13689_v6 = vld [vmem:[#allocation7 + $0x28] sm:$0xff]  }
 0x185   : > { %v1546_v40 = vpack.c.bf16 %v12412_v46, %v12408_v63  ;;  %v1548_v16 = vpack.c.bf16 %v12414_v57, %v12410_v17  ;;  %v863_v0 = vrot.slane %v14087_v36, 4  ;;  %v1552_v61 = vpack.c.bf16 %v12421_v33, %v12417_v15  ;;  %v14095_v36 = vld [vmem:[%s14794_s28 + $0x48] sm:$0xff] }
 0x186   : > { %v1102_v48 = vcombine.high %v15502_v44, %v15508_v19  ;;  %v939_v38 = vcombine.high %v862_v45, %v862_v45  ;;  %v1554_v62 = vpack.c.bf16 %v12423_v28, %v12419_v26  ;;  %v867_v5 = vrot.slane %v14089_v51, 4  ;;  %v14092_v28 = vld [vmem:[%s14794_s28 + $0x40] sm:$0xff] }
 0x187   : > { %2033 = vmatmul.mubr.bf16.gmra.mxu0 %v15413_v4  ;;  %2210 = vmatmul.mubr.bf16.gmra.mxu1 %v20222_v52  ;;  %v860_v4 = vsel %vm857_vm3, %v858_v25, %v859_v21  ;;  %v13688_v21 = vld [vmem:[#allocation7 + $0x68] sm:$0xff]   ;;  %v868_v1 = vrot.slane %v14090_v30, 4  ;;  %v12416_v63 = vcombine.low %v1095_v12, %v15331_v50  ;;  %v12420_v58 = vcombine.low %v1100_v41, %v15434_v7  ;;  %v14091_v52 = vld [vmem:[%s14794_s28 + $0x38] sm:$0xff]  ;;  %v14096_v30 = vld [vmem:[%s14794_s28 + $0x60] sm:$0xff] }
 0x188   : > { %2040 = vmatprep.mubr.bf16.mxu0 %v20223_v39  ;;  %2217 = vmatprep.mubr.bf16.mxu1 %v1549_v47  ;;  %v14088_v47 = vld [vmem:[%s14794_s28 + $0x20] sm:$0xff]  ;;  %v934_v25 = vcombine.high %v860_v4, %v860_v4  ;;  %v12418_v34 = vcombine.low %v1097_v31, %v15502_v44  ;;  %v864_v19 = vsel %vm857_vm3, %v861_v18, %v863_v0  ;;  %v870_v7 = vrot.slane %v14091_v52, 4  ;;  %v14094_v12 = vld [vmem:[%s14794_s28 + $0x58] sm:$0xff] }
 0x189   : > { %v865_v43 = vrot.slane %v14088_v47, 4  ;;  %12658 = vmatprep.subr.bf16.mxu1 %v13688_v21  ;;  %v12422_v8 = vcombine.low %v1102_v48, %v15464_v55  ;;  %v1115_v57 = vcombine.low %v862_v45, %v939_v38  ;;  %v869_v50 = vsel %vm857_vm3, %v867_v5, %v868_v1 }
 0x18a   : > { %v1110_v17 = vcombine.low %v860_v4, %v934_v25  ;;  %12659 = vmatpush3.bf16.msra.mxu1 %v13689_v6  ;;  %v944_v44 = vcombine.high %v864_v19, %v864_v19  ;;  %v1551_v39 = vpack.c.bf16 %v12420_v58, %v12416_v63  ;;  %v956_v26 = vcombine.high %v869_v50, %v869_v50  ;;  %v14093_v4 = vld [vmem:[%s14794_s28 + $0x50] sm:$0xff]  ;;  %v14097_v63 = vld [vmem:[%s14794_s28 + $0x68] sm:$0xff] }
 0x18b   : > { %v866_v46 = vsel %vm857_vm3, %v863_v0, %v865_v43  ;;  %v1553_v15 = vpack.c.bf16 %v12422_v8, %v12418_v34  ;;  %v871_v55 = vsel %vm857_vm3, %v868_v1, %v870_v7  ;;  %v876_v45 = vrot.slane %v14093_v4, 4  ;;  %v13690_v8 = vld [vmem:[#allocation7 + $0x60] sm:$0xff]  }
 0x18c   : > { %v949_v18 = vcombine.high %v866_v46, %v866_v46  ;;  %v1470_v33 = vpack.c.bf16 %v1115_v57, %v1110_v17  ;;  %v877_v41 = vrot.slane %v14094_v12, 4  ;;  %v874_v0 = vrot.slane %v14095_v36, 4  ;;  %12660 = vmatprep.subr.bf16.mxu1 %v13690_v8 }
 0x18d   : > { %v1130_v47 = vcombine.low %v865_v43, %v869_v50  ;;  %v879_v1 = vrot.slane %v14096_v30, 4  ;;  %v881_v6 = vrot.slane %v14097_v63, 4  ;;  %v14098_v43 = vld [vmem:[%s14794_s28 + $0x70] sm:$0xff] }
 0x18e   : > { %v1125_v31 = vcombine.low %v866_v46, %v949_v18  ;;  %v878_v25 = vsel %vm857_vm3, %v876_v45, %v877_v41  ;;  %v14099_v18 = vld [vmem:[%s14794_s28 + $0x78] sm:$0xff] }
 0x18f   : > { %2041 = vmatmul.mubr.bf16.gmra.mxu0 %v1546_v40  ;;  %2218 = vmatmul.mubr.bf16.gmra.mxu1 %v1548_v16  ;;  %v872_v40 = vrot.slane %v14092_v28, 4  ;;  %v1120_v16 = vcombine.low %v864_v19, %v944_v44  ;;  %v978_v34 = vcombine.high %v878_v25, %v878_v25  ;;  %v883_v19 = vrot.slane %v14098_v43, 4 }
 0x190   : > { %2048 = vmatprep.mubr.bf16.mxu0 %v1552_v61  ;;  %2225 = vmatprep.mubr.bf16.mxu1 %v1554_v62  ;;  %v1135_v61 = vcombine.low %v956_v26, %v871_v55  ;;  %v961_v62 = vcombine.high %v871_v55, %v871_v55  ;;  %v880_v50 = vsel %vm857_vm3, %v877_v41, %v879_v1  ;;  %v13691_v26 = vld [vmem:[#allocation7 + $0x20] sm:$0xff]   ;;  %v14101_v41 = vld [vmem:[%s14794_s28 + $0x88] sm:$0xff] }
 0x191   : > { %v873_v48 = vsel %vm857_vm3, %v870_v7, %v872_v40  ;;  %v1475_v38 = vpack.c.bf16 %v1125_v31, %v1120_v16  ;;  %v875_v21 = vsel %vm857_vm3, %v872_v40, %v874_v0  ;;  %v882_v52 = vsel %vm857_vm3, %v879_v1, %v881_v6  ;;  %12661 = vmatpush3.bf16.msra.mxu1 %v13691_v26  ;;  %v14102_v31 = vld [vmem:[%s14794_s28 + $0x98] sm:$0xff] }
 0x192   : > { %v966_v51 = vcombine.high %v873_v48, %v873_v48  ;;  %v971_v5 = vcombine.high %v875_v21, %v875_v21  ;;  %v1480_v58 = vpack.c.bf16 %v1135_v61, %v1130_v47  ;;  %v1140_v46 = vcombine.low %v961_v62, %v873_v48  ;;  %v14103_v61 = vld [vmem:[%s14794_s28 + $0x90] sm:$0xff] }
 0x193   : > { %v1155_v7 = vcombine.low %v878_v25, %v978_v34  ;;  %v884_v44 = vsel %vm857_vm3, %v881_v6, %v883_v19  ;;  %v983_v28 = vcombine.high %v880_v50, %v880_v50  ;;  %v988_v40 = vcombine.high %v882_v52, %v882_v52  ;;  %v14104_v34 = vld [vmem:[%s14794_s28 + $0xa0] sm:$0xff] }
 0x194   : > { %v1145_v17 = vcombine.low %v966_v51, %v875_v21  ;;  %v1150_v57 = vcombine.low %v971_v5, %v874_v0  ;;  %v993_v4 = vcombine.high %v884_v44, %v884_v44  ;;  %v888_v16 = vrot.slane %v14101_v41, 4 }
 0x195   : > { %v892_v36 = vrot.slane %v14102_v31, 4  ;;  %v1160_v0 = vcombine.low %v880_v50, %v983_v28  ;;  %v1165_v47 = vcombine.low %v882_v52, %v988_v40  ;;  %v890_v48 = vrot.slane %v14103_v61, 4 }
 0x196   : > { %v1485_v55 = vpack.c.bf16 %v1145_v17, %v1140_v46  ;;  %v1490_v45 = vpack.c.bf16 %v1155_v7, %v1150_v57  ;;  %v1170_v25 = vcombine.low %v884_v44, %v993_v4  ;;  %v894_v43 = vrot.slane %v14104_v34, 4  ;;  %v14105_v46 = vld [vmem:[%s14794_s28 + $0xa8] sm:$0xff]  ;;  %v13695_v34 = vld [vmem:[#allocation7 + $0x10] sm:$0xff]  }
 0x197   : > { %2049 = vmatmul.mubr.bf16.gmra.mxu0 %v1551_v39  ;;  %2226 = vmatmul.mubr.bf16.gmra.mxu1 %v1553_v15  ;;  %v885_v39 = vrot.slane %v14099_v18, 4  ;;  %v14100_v15 = vld [vmem:[%s14794_s28 + $0x80] sm:$0xff]  ;;  %v893_v62 = vsel %vm857_vm3, %v890_v48, %v892_v36  ;;  %v1495_v51 = vpack.c.bf16 %v1165_v47, %v1160_v0  ;;  %v891_v5 = vsel %vm857_vm3, %v888_v16, %v890_v48 }
 0x198   : > { %13036 = vmatprep.mubr.bf16.mxu0 %v1470_v33  ;;  %v886_v33 = vrot.slane %v14100_v15, 4  ;;  %v1010_v6 = vcombine.high %v891_v5, %v891_v5  ;;  %v895_v8 = vrot.slane %v14105_v46, 4  ;;  %v897_v17 = vrot.slane %v15156_v20, 4  ;;  %v13692_v15 = vld [vmem:[#allocation7 + $0x58] sm:$0xff]   ;;  %v15664_v46 = vld [vmem:[#allocation19] sm:$0xff] }
 0x199   : > { %v901_v57 = vrot.slane %v15169_v27, 4  ;;  %12662 = vmatprep.subr.bf16.mxu1 %v13692_v15  ;;  %v13693_v20 = vld [vmem:[#allocation7 + $0x18] sm:$0xff]   ;;  %v903_v40 = vrot.slane %v15174_v29, 4  ;;  %v906_v31 = vrot.slane %v15193_v2, 4  ;;  %v20224_v61 = vrot.slane %v15204_v9, 4  ;;  %v13697_v15 = vld [vmem:[#allocation7 + $0x48] sm:$0xff]  }
 0x19a   : > { %v887_v12 = vsel %vm857_vm3, %v885_v39, %v886_v33  ;;  %v889_v21 = vsel %vm857_vm3, %v886_v33, %v888_v16  ;;  %v1190_v7 = vcombine.low %v1010_v6, %v893_v62  ;;  %v896_v18 = vsel %vm857_vm3, %v894_v43, %v895_v8  ;;  %12663 = vmatpush3.bf16.msra.mxu1 %v13693_v20 }
 0x19b   : > { %v1000_v1 = vcombine.high %v887_v12, %v887_v12  ;;  %v1005_v63 = vcombine.high %v889_v21, %v889_v21  ;;  %v898_v39 = vsel %vm857_vm3, %v895_v8, %v897_v17  ;;  %v1022_v28 = vcombine.high %v896_v18, %v896_v18 }
 0x19c   : > { %v1027_v27 = vcombine.high %v898_v39, %v898_v39  ;;  %v909_v29 = vsel %vm857_vm3, %v906_v31, %v20224_v61 }
 0x19d   : > { %v1180_v50 = vcombine.low %v1000_v1, %v889_v21  ;;  %v1185_v52 = vcombine.low %v1005_v63, %v891_v5  ;;  %v1200_v41 = vcombine.low %v896_v18, %v1022_v28  ;;  %v1636_v1 = vlaneseq  ;;  %v13694_v63 = vld [vmem:[#allocation7 + $0x50] sm:$0xff]  }
 0x19e   : > { %v1205_v16 = vcombine.low %v898_v39, %v1027_v27  ;;  %12664 = vmatprep.subr.bf16.mxu1 %v13694_v63 }
 0x19f   : > { %13037 = vmatmul.mubr.bf16.vlgmr.msra.gmra.mxu0 %v1475_v38  ;;  %v1175_v38 = vcombine.low %v883_v19, %v887_v12  ;;  %v899_v19 = vrot.slane %v15162_v24, 4  ;;  %v1505_v24 = vpack.c.bf16 %v1185_v52, %v1180_v50  ;;  %v904_v12 = vrot.slane %v15190_v54, 4  ;;  %12665 = vmatpush3.bf16.msra.mxu1 %v13695_v34  ;;  %v13704_v34 = vld [vmem:[#allocation7] sm:$0xff]  }
 0x1a0   : > { %13040 = vmatprep.mubr.bf16.mxu0 %v1480_v58  ;;  %v1015_v58 = vcombine.high %v893_v62, %v893_v62  ;;  %v1515_v48 = vpack.c.bf16 %v1205_v16, %v1200_v41  ;;  %v1054_v62 = vcombine.high %v909_v29, %v909_v29  ;;  %12666 = vmatprep.subr.bf16.mxu1 %v13697_v15 }
 0x1a1   : > { %v1500_v30 = vpack.c.bf16 %v1175_v38, %v1170_v25  ;;  %v900_v33 = vsel %vm857_vm3, %v897_v17, %v899_v19  ;;  %v902_v26 = vsel %vm857_vm3, %v899_v19, %v901_v57  ;;  %v905_v47 = vsel %vm857_vm3, %v903_v40, %v904_v12 }
 0x1a2   : > { %v1195_v44 = vcombine.low %v1015_v58, %v892_v36  ;;  %v1032_v4 = vcombine.high %v900_v33, %v900_v33  ;;  %v907_v25 = vsel %vm857_vm3, %v904_v12, %v906_v31  ;;  %v1044_v38 = vcombine.high %v905_v47, %v905_v47 }
 0x1a3   : > { %v1049_v21 = vcombine.high %v907_v25, %v907_v25  ;;  %v15659_v58 = vshrl.u32 %v1636_v1, 7  ;;  %vm11793_vm3 = vcmask 1046534  }
 0x1a4   : > { %v1210_v36 = vcombine.low %v900_v33, %v1032_v4  ;;  %v1225_v5 = vcombine.low %v1044_v38, %v907_v25  ;;  %v13698_v33 = vld [vmem:[#allocation7 + $0x8] sm:$0xff]   ;;  %v13705_v38 = vld [vmem:[#allocation7 + $0x90] sm:$0xff]  }
 0x1a5   : > { %v1230_v2 = vcombine.low %v1049_v21, %v909_v29  ;;  %v15662_v43 = vsub.s32 0, %v15659_v58  ;;  %12667 = vmatpush3.bf16.msra.mxu1 %v13698_v33 }
 0x1a7   : > { %13041 = vmatmul.mubr.bf16.gmra.mxu0 %v1485_v55  ;;  %v1510_v55 = vpack.c.bf16 %v1195_v44, %v1190_v7  ;;  %20225 = vst [vmem:[#allocation28_spill] sm:$0xff] %v15662_v43  ;;  %v15668_v8 = vrot.slane %v15664_v46, %v15662_v43 }
 0x1a8   : > { %13044 = vmatprep.mubr.bf16.mxu0 %v1490_v45  ;;  %v1037_v45 = vcombine.high %v902_v26, %v902_v26 }
 0x1aa   : > { %v1215_v0 = vcombine.low %v902_v26, %v1037_v45  ;;  %v13701_v45 = vld [vmem:[#allocation7 + $0xa0] sm:$0xff]  }
 0x1ac   : > { %v1520_v54 = vpack.c.bf16 %v1215_v0, %v1210_v36 }
 0x1af   : > { %13045 = vmatmul.mubr.bf16.gmra.mxu0 %v1495_v51  ;;  %v1220_v51 = vcombine.low %v901_v57, %v905_v47  ;;  %v13703_v47 = vld [vmem:[#allocation7 + $0x98] sm:$0xff]  }
 0x1b0   : > { %13048 = vmatprep.mubr.bf16.mxu0 %v1500_v30  ;;  %v1235_v30 = vcombine.low %v1054_v62, %v15469_v23  ;;  %v13696_v23 = vld [vmem:[#allocation7 + $0xb8] sm:$0xff]  }
 0x1b1   : > { %v1525_v6 = vpack.c.bf16 %v1225_v5, %v1220_v51  ;;  %13072 = vmatprep.subr.bf16.mxu0 %v13696_v23 }
 0x1b2   : > { %v1530_v9 = vpack.c.bf16 %v1235_v30, %v1230_v2  ;;  %13073 = vmatpush3.bf16.msra.mxu0 %v13696_v23  ;;  %v13706_v30 = vld [vmem:[#allocation7 + $0x88] sm:$0xff]  }
 0x1b7   : > { %13049 = vmatmul.mubr.bf16.gmra.mxu0 %v1505_v24 }
 0x1b8   : > { %13052 = vmatprep.mubr.bf16.mxu0 %v1510_v55 }
 0x1bf   : > { %13053 = vmatmul.mubr.bf16.gmra.mxu0 %v1515_v48 }
 0x1c0   : > { %13056 = vmatprep.mubr.bf16.mxu0 %v1520_v54 }
 0x1c7   : > { %13057 = vmatmul.mubr.bf16.gmra.mxu0 %v1525_v6  ;;  %v13702_v6 = vld [vmem:[#allocation7 + $0x40] sm:$0xff]  }
 0x1c8   : > { %13060 = vmatprep.mubr.bf16.mxu0 %v1530_v9  ;;  %12668 = vmatprep.subr.bf16.mxu1 %v13702_v6 }
 0x1c9   : > { %12669 = vmatpush3.bf16.msra.mxu1 %v13704_v34 }
 0x1cf   : > { %v1914_v17 = vpop.f32.mrf.mxu0  ;;  %13061 = vmatmul.mubr.bf16.gmra.mxu0 %v1535_v11  ;;  %v2091_v57 = vpop.f32.mrf.mxu1 }
 0x1d0   : > { %v1915_v19 = vadd.f32 %v1914_v17, %v15668_v8  ;;  %13064 = vmatprep.mubr.bf16.mxu0 %v1540_v22  ;;  %v13699_v22 = vld [vmem:[#allocation7 + $0xb0] sm:$0xff]  }
 0x1d1   : > { %v1916_v50 = vpop.f32.mrf.mxu0  ;;  %v2093_v7 = vpop.f32.mrf.mxu1  ;;  %13074 = vmatprep.subr.bf16.mxu0 %v13699_v22 }
 0x1d2   : > { %v15677_v52 = vadd.f32 %v2091_v57, %v1915_v19  ;;  %13075 = vmatpush3.bf16.msra.mxu0 %v13699_v22  ;;  %v13707_v57 = vld [vmem:[#allocation7 + $0x80] sm:$0xff]  }
 0x1d3   : > { %v1917_v44 = vpop.f32.mrf.mxu0  ;;  %v2094_v39 = vpop.f32.mrf.mxu1  ;;  %13076 = vmatprep.subr.bf16.mxu0 %v13700_v42 }
 0x1d4   : > { %v1918_v18 = vadd.f32 %v1917_v44, %v15668_v8 }
 0x1d5   : > { %v1919_v60 = vpop.f32.mrf.mxu0  ;;  %v2096_v11 = vpop.f32.mrf.mxu1 }
 0x1d6   : > { %v15680_v37 = vadd.f32 %v2094_v39, %v1918_v18  ;;  %13077 = vmatpush3.bf16.msra.mxu0 %v13700_v42 }
 0x1d7   : > { %v1922_v26 = vpop.f32.mrf.mxu0  ;;  %13065 = vmatmul.mubr.bf16.gmra.mxu0 %v1545_v53  ;;  %v2099_v56 = vpop.f32.mrf.mxu1  ;;  %13078 = vmatprep.subr.bf16.mxu0 %v13701_v45 }
 0x1d8   : > { %v1923_v14 = vadd.f32 %v1922_v26, %v15668_v8  ;;  %13068 = vmatprep.mubr.bf16.mxu0 %v1550_v32 }
 0x1d9   : > { %v1924_v20 = vpop.f32.mrf.mxu0  ;;  %v2101_v28 = vpop.f32.mrf.mxu1 }
 0x1da   : > { %v15689_v24 = vadd.f32 %v2099_v56, %v1923_v14  ;;  %13079 = vmatpush3.bf16.msra.mxu0 %v13701_v45 }
 0x1db   : > { %v1925_v27 = vpop.f32.mrf.mxu0  ;;  %v2102_v49 = vpop.f32.mrf.mxu1  ;;  %13080 = vmatprep.subr.bf16.mxu0 %v13703_v47 }
 0x1dc   : > { %v1926_v40 = vadd.f32 %v1925_v27, %v15668_v8 }
 0x1dd   : > { %v1927_v53 = vpop.f32.mrf.mxu0  ;;  %v2104_v4 = vpop.f32.mrf.mxu1 }
 0x1de   : > { %v15692_v55 = vadd.f32 %v2102_v49, %v1926_v40  ;;  %13081 = vmatpush3.bf16.msra.mxu0 %v13703_v47 }
 0x1df   : > { %v1930_v10 = vpop.f32.mrf.mxu0  ;;  %13069 = vmatmul.mubr.bf16.gmra.mxu0 %v1555_v59  ;;  %v2107_v32 = vpop.f32.mrf.mxu1  ;;  %13082 = vmatprep.subr.bf16.mxu0 %v13705_v38 }
 0x1e0   : > { %v1931_v13 = vadd.f32 %v1930_v10, %v15668_v8 }
 0x1e1   : > { %v1932_v12 = vpop.f32.mrf.mxu0  ;;  %v2109_v16 = vpop.f32.mrf.mxu1 }
 0x1e2   : > { %v15698_v41 = vadd.f32 %v2107_v32, %v1931_v13  ;;  %13083 = vmatpush3.bf16.msra.mxu0 %v13705_v38 }
 0x1e3   : > { %v1933_v31 = vpop.f32.mrf.mxu0  ;;  %v2110_v0 = vpop.f32.mrf.mxu1  ;;  %13084 = vmatprep.subr.bf16.mxu0 %v13706_v30 }
 0x1e4   : > { %v1934_v36 = vadd.f32 %v1933_v31, %v15668_v8 }
 0x1e5   : > { %v1935_v61 = vpop.f32.mrf.mxu0  ;;  %v2112_v35 = vpop.f32.mrf.mxu1 }
 0x1e6   : > { %v15701_v29 = vadd.f32 %v2110_v0, %v1934_v36  ;;  %13085 = vmatpush3.bf16.msra.mxu0 %v13706_v30 }
 0x1e7   : > { %v1938_v3 = vpop.f32.mrf.mxu0  ;;  %v2115_v48 = vpop.f32.mrf.mxu1  ;;  %13086 = vmatprep.subr.bf16.mxu0 %v13707_v57 }
 0x1e8   : > { %v1939_v59 = vadd.f32 %v1938_v3, %v15668_v8 }
 0x1e9   : > { %v1940_v25 = vpop.f32.mrf.mxu0  ;;  %v2117_v21 = vpop.f32.mrf.mxu1 }
 0x1ea   : > { %v15704_v54 = vadd.f32 %v2115_v48, %v1939_v59  ;;  %13087 = vmatpush3.bf16.msra.mxu0 %v13707_v57 }
 0x1eb   : > { %v1941_v62 = vpop.f32.mrf.mxu0  ;;  %v2118_v5 = vpop.f32.mrf.mxu1 }
 0x1ec   : > { %v1942_v51 = vadd.f32 %v1941_v62, %v15668_v8 }
 0x1ed   : > { %v1943_v2 = vpop.f32.mrf.mxu0  ;;  %v2120_v63 = vpop.f32.mrf.mxu1 }
 0x1ee   : > { %v15707_v1 = vadd.f32 %v2118_v5, %v1942_v51 }
 0x1ef   : > { %v1946_v9 = vpop.f32.mrf.mxu0  ;;  %v2123_v17 = vpop.f32.mrf.mxu1 }
 0x1f0   : > { %v1947_v23 = vadd.f32 %v1946_v9, %v15668_v8 }
 0x1f1   : > { %v1948_v19 = vpop.f32.mrf.mxu0  ;;  %v2125_v7 = vpop.f32.mrf.mxu1 }
 0x1f2   : > { %v15710_v50 = vadd.f32 %v2123_v17, %v1947_v23 }
 0x1f3   : > { %v1949_v44 = vpop.f32.mrf.mxu0  ;;  %v2126_v39 = vpop.f32.mrf.mxu1 }
 0x1f4   : > { %v1950_v18 = vadd.f32 %v1949_v44, %v15668_v8 }
 0x1f5   : > { %v1951_v15 = vpop.f32.mrf.mxu0  ;;  %v2128_v11 = vpop.f32.mrf.mxu1 }
 0x1f6   : > { %v15713_v60 = vadd.f32 %v2126_v39, %v1950_v18 }
 0x1f7   : > { %v1954_v33 = vpop.f32.mrf.mxu0  ;;  %v2131_v14 = vpop.f32.mrf.mxu1 }
 0x1f8   : > { %v1955_v26 = vadd.f32 %v1954_v33, %v15668_v8 }
 0x1f9   : > { %v1956_v56 = vpop.f32.mrf.mxu0  ;;  %v2133_v20 = vpop.f32.mrf.mxu1 }
 0x1fa   : > { %v15716_v22 = vadd.f32 %v2131_v14, %v1955_v26 }
 0x1fb   : > { %v1957_v28 = vpop.f32.mrf.mxu0  ;;  %v2134_v40 = vpop.f32.mrf.mxu1 }
 0x1fc   : > { %v1958_v27 = vadd.f32 %v1957_v28, %v15668_v8 }
 0x1fd   : > { %v1959_v49 = vpop.f32.mrf.mxu0  ;;  %v2136_v53 = vpop.f32.mrf.mxu1 }
 0x1fe   : > { %v15719_v42 = vadd.f32 %v2134_v40, %v1958_v27 }
 0x1ff   : > { %v1962_v4 = vpop.f32.mrf.mxu0  ;;  %v2139_v13 = vpop.f32.mrf.mxu1 }
 0x200   : > { %v1963_v10 = vadd.f32 %v1962_v4, %v15668_v8 }
 0x201   : > { %v1964_v32 = vpop.f32.mrf.mxu0  ;;  %v2141_v12 = vpop.f32.mrf.mxu1 }
 0x202   : > { %v15722_v45 = vadd.f32 %v2139_v13, %v1963_v10 }
 0x203   : > { %v1965_v16 = vpop.f32.mrf.mxu0  ;;  %v2142_v36 = vpop.f32.mrf.mxu1 }
 0x204   : > { %v1966_v31 = vadd.f32 %v1965_v16, %v15668_v8 }
 0x205   : > { %v1967_v0 = vpop.f32.mrf.mxu0  ;;  %v2144_v61 = vpop.f32.mrf.mxu1 }
 0x206   : > { %v15725_v47 = vadd.f32 %v2142_v36, %v1966_v31 }
 0x207   : > { %v1970_v35 = vpop.f32.mrf.mxu0  ;;  %v2147_v59 = vpop.f32.mrf.mxu1 }
 0x208   : > { %v1971_v3 = vadd.f32 %v1970_v35, %v15668_v8 }
 0x209   : > { %v1972_v48 = vpop.f32.mrf.mxu0  ;;  %v2149_v38 = vpop.f32.mrf.mxu1 }
 0x20a   : > { %v15728_v25 = vadd.f32 %v2147_v59, %v1971_v3 }
 0x20b   : > { %v1973_v21 = vpop.f32.mrf.mxu0  ;;  %v2150_v51 = vpop.f32.mrf.mxu1 }
 0x20c   : > { %v1974_v62 = vadd.f32 %v1973_v21, %v15668_v8 }
 0x20d   : > { %v1975_v5 = vpop.f32.mrf.mxu0  ;;  %v2152_v30 = vpop.f32.mrf.mxu1 }
 0x20e   : > { %v15731_v2 = vadd.f32 %v2150_v51, %v1974_v62 }
 0x20f   : > { %v1978_v63 = vpop.f32.mrf.mxu0  ;;  %v2155_v9 = vpop.f32.mrf.mxu1 }
 0x210   : > { %v1979_v6 = vadd.f32 %v1978_v63, %v15668_v8 }
 0x211   : > { %v1980_v34 = vpop.f32.mrf.mxu0  ;;  %v2157_v17 = vpop.f32.mrf.mxu1 }
 0x212   : > { %v15734_v23 = vadd.f32 %v2155_v9, %v1979_v6 }
 0x213   : > { %v1981_v19 = vpop.f32.mrf.mxu0  ;;  %v2158_v7 = vpop.f32.mrf.mxu1 }
 0x214   : > { %v1982_v57 = vadd.f32 %v1981_v19, %v15668_v8 }
 0x215   : > { %v1983_v44 = vpop.f32.mrf.mxu0  ;;  %v2160_v39 = vpop.f32.mrf.mxu1 }
 0x216   : > { %v15737_v18 = vadd.f32 %v2158_v7, %v1982_v57 }
 0x217   : > { %v1986_v15 = vpop.f32.mrf.mxu0  ;;  %v2163_v33 = vpop.f32.mrf.mxu1 }
 0x218   : > { %v1987_v11 = vadd.f32 %v1986_v15, %v15668_v8 }
 0x219   : > { %v1988_v26 = vpop.f32.mrf.mxu0  ;;  %v2165_v56 = vpop.f32.mrf.mxu1 }
 0x21a   : > { %v15740_v14 = vadd.f32 %v2163_v33, %v1987_v11 }
 0x21b   : > { %v1989_v20 = vpop.f32.mrf.mxu0  ;;  %v2166_v27 = vpop.f32.mrf.mxu1 }
 0x21c   : > { %v1990_v28 = vadd.f32 %v1989_v20, %v15668_v8 }
 0x21d   : > { %v1991_v40 = vpop.f32.mrf.mxu0  ;;  %v2168_v53 = vpop.f32.mrf.mxu1 }
 0x21e   : > { %v15743_v49 = vadd.f32 %v2166_v27, %v1990_v28 }
 0x21f   : > { %v1994_v4 = vpop.f32.mrf.mxu0  ;;  %v2171_v13 = vpop.f32.mrf.mxu1 }
 0x220   : > { %v1995_v10 = vadd.f32 %v1994_v4, %v15668_v8 }
 0x221   : > { %v1996_v32 = vpop.f32.mrf.mxu0  ;;  %v2173_v16 = vpop.f32.mrf.mxu1 }
 0x222   : > { %v15746_v12 = vadd.f32 %v2171_v13, %v1995_v10 }
 0x223   : > { %v1997_v31 = vpop.f32.mrf.mxu0  ;;  %v2174_v0 = vpop.f32.mrf.mxu1 }
 0x224   : > { %v1998_v36 = vadd.f32 %v1997_v31, %v15668_v8 }
 0x225   : > { %v1999_v61 = vpop.f32.mrf.mxu0  ;;  %v2176_v3 = vpop.f32.mrf.mxu1 }
 0x226   : > { %v15749_v35 = vadd.f32 %v2174_v0, %v1998_v36 }
 0x227   : > { %v2002_v59 = vpop.f32.mrf.mxu0  ;;  %v2179_v38 = vpop.f32.mrf.mxu1 }
 0x228   : > { %v2003_v48 = vadd.f32 %v2002_v59, %v15668_v8 }
 0x229   : > { %v2004_v21 = vpop.f32.mrf.mxu0  ;;  %v2181_v51 = vpop.f32.mrf.mxu1 }
 0x22a   : > { %v15752_v62 = vadd.f32 %v2179_v38, %v2003_v48 }
 0x22b   : > { %v2005_v5 = vpop.f32.mrf.mxu0  ;;  %v2182_v63 = vpop.f32.mrf.mxu1 }
 0x22c   : > { %v2006_v30 = vadd.f32 %v2005_v5, %v15668_v8 }
 0x22d   : > { %v2007_v6 = vpop.f32.mrf.mxu0  ;;  %v2184_v34 = vpop.f32.mrf.mxu1 }
 0x22e   : > { %v15755_v9 = vadd.f32 %v2182_v63, %v2006_v30 }
 0x22f   : > { %v2010_v17 = vpop.f32.mrf.mxu0  ;;  %v2187_v57 = vpop.f32.mrf.mxu1 }
 0x230   : > { %v2011_v19 = vadd.f32 %v2010_v17, %v15668_v8 }
 0x231   : > { %v2012_v7 = vpop.f32.mrf.mxu0  ;;  %v2189_v39 = vpop.f32.mrf.mxu1 }
 0x232   : > { %v15758_v44 = vadd.f32 %v2187_v57, %v2011_v19 }
 0x233   : > { %v2013_v15 = vpop.f32.mrf.mxu0  ;;  %v2190_v33 = vpop.f32.mrf.mxu1 }
 0x234   : > { %v2014_v11 = vadd.f32 %v2013_v15, %v15668_v8 }
 0x235   : > { %v2015_v26 = vpop.f32.mrf.mxu0  ;;  %v2192_v20 = vpop.f32.mrf.mxu1 }
 0x236   : > { %v15761_v56 = vadd.f32 %v2190_v33, %v2014_v11 }
 0x237   : > { %v2018_v28 = vpop.f32.mrf.mxu0  ;;  %v2195_v40 = vpop.f32.mrf.mxu1 }
 0x238   : > { %v2019_v27 = vadd.f32 %v2018_v28, %v15668_v8 }
 0x239   : > { %v2020_v53 = vpop.f32.mrf.mxu0  ;;  %v2197_v10 = vpop.f32.mrf.mxu1 }
 0x23a   : > { %v15764_v4 = vadd.f32 %v2195_v40, %v2019_v27 }
 0x23b   : > { %v2021_v13 = vpop.f32.mrf.mxu0  ;;  %v2198_v16 = vpop.f32.mrf.mxu1 }
 0x23c   : > { %v2022_v32 = vadd.f32 %v2021_v13, %v15668_v8 }
 0x23d   : > { %v2023_v31 = vpop.f32.mrf.mxu0  ;;  %v2200_v0 = vpop.f32.mrf.mxu1 }
 0x23e   : > { %v15767_v36 = vadd.f32 %v2198_v16, %v2022_v32 }
 0x23f   : > { %v2026_v61 = vpop.f32.mrf.mxu0  ;;  %v2203_v59 = vpop.f32.mrf.mxu1 }
 0x240   : > { %v2027_v3 = vadd.f32 %v2026_v61, %v15668_v8 }
 0x241   : > { %v2028_v48 = vpop.f32.mrf.mxu0  ;;  %v2205_v21 = vpop.f32.mrf.mxu1 }
 0x242   : > { %v15770_v38 = vadd.f32 %v2203_v59, %v2027_v3 }
 0x243   : > { %v2029_v51 = vpop.f32.mrf.mxu0  ;;  %v2206_v30 = vpop.f32.mrf.mxu1 }
 0x244   : > { %v2030_v5 = vadd.f32 %v2029_v51, %v15668_v8 }
 0x245   : > { %v2031_v63 = vpop.f32.mrf.mxu0  ;;  %v2208_v34 = vpop.f32.mrf.mxu1 }
 0x246   : > { %v15773_v6 = vadd.f32 %v2206_v30, %v2030_v5 }
 0x247   : > { %v2034_v17 = vpop.f32.mrf.mxu0  ;;  %v2211_v57 = vpop.f32.mrf.mxu1 }
 0x248   : > { %v2035_v19 = vadd.f32 %v2034_v17, %v15668_v8 }
 0x249   : > { %v2036_v7 = vpop.f32.mrf.mxu0  ;;  %v2213_v15 = vpop.f32.mrf.mxu1 }
 0x24a   : > { %v15776_v39 = vadd.f32 %v2211_v57, %v2035_v19  ;;  %v15792_v7 = vsub.s32 1, %v15659_v58 }
 0x24b   : > { %v2037_v11 = vpop.f32.mrf.mxu0  ;;  %v2214_v26 = vpop.f32.mrf.mxu1 }
 0x24c   : > { %v2038_v33 = vadd.f32 %v2037_v11, %v15668_v8  ;;  %20226 = vst [vmem:[#allocation29_spill] sm:$0xff] %v15792_v7 }
 0x24d   : > { %v2039_v20 = vpop.f32.mrf.mxu0  ;;  %v2216_v27 = vpop.f32.mrf.mxu1 }
 0x24e   : > { %v15779_v28 = vadd.f32 %v2214_v26, %v2038_v33  ;;  %v15797_v33 = vsub.s32 2, %v15659_v58 }
 0x24f   : > { %v2042_v40 = vpop.f32.mrf.mxu0  ;;  %v2219_v10 = vpop.f32.mrf.mxu1 }
 0x250   : > { %v2043_v53 = vadd.f32 %v2042_v40, %v15668_v8  ;;  %20227 = vst [vmem:[#allocation30_spill] sm:$0xff] %v15797_v33  ;;  %v15802_v40 = vrot.slane %v15664_v46, %v15792_v7 }
 0x251   : > { %v2044_v13 = vpop.f32.mrf.mxu0  ;;  %v2221_v16 = vpop.f32.mrf.mxu1 }
 0x252   : > { %v15782_v32 = vadd.f32 %v2219_v10, %v2043_v53  ;;  %v15806_v10 = vrot.slane %v15664_v46, %v15797_v33 }
 0x253   : > { %v2045_v31 = vpop.f32.mrf.mxu0  ;;  %v2222_v61 = vpop.f32.mrf.mxu1 }
 0x254   : > { %v2046_v0 = vadd.f32 %v2045_v31, %v15668_v8 }
 0x255   : > { %v2047_v3 = vpop.f32.mrf.mxu0  ;;  %v2224_v48 = vpop.f32.mrf.mxu1 }
 0x256   : > { %v15785_v59 = vadd.f32 %v2222_v61, %v2046_v0 }
 0x257   : > { %v2050_v21 = vpop.f32.mrf.mxu0  ;;  %v2227_v5 = vpop.f32.mrf.mxu1 }
 0x258   : > { %v2051_v51 = vadd.f32 %v2050_v21, %v15668_v8 }
 0x259   : > { %v2052_v30 = vpop.f32.mrf.mxu0  ;;  %v2229_v34 = vpop.f32.mrf.mxu1 }
 0x25a   : > { %v15788_v63 = vadd.f32 %v2227_v5, %v2051_v51 }
 0x25b   : > { %v2053_v17 = vpop.f32.mrf.mxu0  ;;  %v2230_v57 = vpop.f32.mrf.mxu1 }
 0x25c   : > { %v2054_v19 = vadd.f32 %v2053_v17, %v15668_v8 }
 0x25d   : > { %v2055_v15 = vpop.f32.mrf.mxu0  ;;  %v2232_v26 = vpop.f32.mrf.mxu1 }
 0x25e   : > { %v15794_v11 = vadd.f32 %v2230_v57, %v2054_v19 }
 0x25f   : > { %v13038_v20 = vpop.f32.mrf.mxu0 }
 0x260   : > { %v2277_v27 = vadd.f32 %v13038_v20, %v15689_v24 }
 0x261   : > { %v2268_v53 = vpop.f32.mrf.mxu0 }
 0x262   : > { %v2413_v8 = vmax.f32 %v2277_v27, 0.0  ;;  %v2269_v13 = vadd.f32 %v2268_v53, %v15677_v52 }
 0x263   : > { %v13039_v16 = vpop.f32.mrf.mxu0 }
 0x264   : > { %v2453_v31 = vmul.f32 %v15802_v40, %v2413_v8  ;;  %v2411_v0 = vmax.f32 %v2269_v13, 0.0  ;;  %v2280_v61 = vadd.f32 %v13039_v16, %v15692_v55 }
 0x265   : > { %v2271_v3 = vpop.f32.mrf.mxu0 }
 0x266   : > { %v2493_v24 = vadd.f32 %v15806_v10, %v2453_v31  ;;  %v2451_v48 = vmul.f32 %v15802_v40, %v2411_v0  ;;  %v2414_v21 = vmax.f32 %v2280_v61, 0.0  ;;  %v2272_v51 = vadd.f32 %v2271_v3, %v15680_v37 }
 0x267   : > { %v13042_v5 = vpop.f32.mrf.mxu0 }
 0x268   : > { %v2565_v30 = vcombine.high %v2493_v24, %v2493_v24  ;;  %v2491_v46 = vadd.f32 %v15806_v10, %v2451_v48  ;;  %v2454_v52 = vmul.f32 %v15802_v40, %v2414_v21  ;;  %v2412_v34 = vmax.f32 %v2272_v51, 0.0 }
 0x269   : > { %v2293_v17 = vadd.f32 %v13042_v5, %v15704_v54  ;;  %v2284_v19 = vpop.f32.mrf.mxu0 }
 0x26a   : > { %v15817_v57 = vcombine.low %v2493_v24, %v2565_v30  ;;  %v2563_v55 = vcombine.high %v2491_v46, %v2491_v46  ;;  %v2494_v15 = vadd.f32 %v15806_v10, %v2454_v52  ;;  %v2452_v26 = vmul.f32 %v15802_v40, %v2412_v34 }
 0x26b   : > { %v2417_v20 = vmax.f32 %v2293_v17, 0.0  ;;  %v2285_v37 = vadd.f32 %v2284_v19, %v15698_v41  ;;  %v13043_v27 = vpop.f32.mrf.mxu0 }
 0x26c   : > { %v15822_v53 = vcombine.low %v2491_v46, %v2563_v55  ;;  %v2566_v8 = vcombine.high %v2494_v15, %v2494_v15  ;;  %v2769_v13 = vcombine.low %v2565_v30, %v2494_v15  ;;  %v2492_v16 = vadd.f32 %v15806_v10, %v2452_v26 }
 0x26d   : > { %v2457_v54 = vmul.f32 %v15802_v40, %v2417_v20  ;;  %v2415_v31 = vmax.f32 %v2285_v37, 0.0  ;;  %v2296_v0 = vadd.f32 %v13043_v27, %v15707_v1  ;;  %v2287_v61 = vpop.f32.mrf.mxu0  ;;  %v2666_v3 = vrot.slane %v15817_v57, 2 }
 0x26e   : > { %v2663_v48 = vrot.slane %v15822_v53, 2  ;;  %v15829_v21 = vcombine.low %v2494_v15, %v2566_v8  ;;  %v2288_v41 = vadd.f32 %v2287_v61, %v15701_v29  ;;  %v2564_v51 = vcombine.high %v2492_v16, %v2492_v16 }
 0x26f   : > { %v15833_v5 = vadd.f32 %v15806_v10, %v2457_v54  ;;  %v2455_v30 = vmul.f32 %v15802_v40, %v2415_v31  ;;  %v2418_v46 = vmax.f32 %v2296_v0, 0.0  ;;  %v13046_v52 = vpop.f32.mrf.mxu0  ;;  %v2767_v34 = vcombine.low %v2563_v55, %v2492_v16 }
 0x270   : > { %v2416_v17 = vmax.f32 %v2288_v41, 0.0  ;;  %v2309_v1 = vadd.f32 %v13046_v52, %v15716_v22  ;;  %v2600_v19 = vcombine.low %v2492_v16, %v2564_v51  ;;  %v2768_v26 = vcombine.low %v2564_v51, %v2493_v24 }
 0x271   : > { %v2495_v20 = vadd.f32 %v15806_v10, %v2455_v30  ;;  %v2458_v15 = vmul.f32 %v15802_v40, %v2418_v46  ;;  %v2300_v37 = vpop.f32.mrf.mxu0  ;;  %v2668_v29 = vrot.slane %v15829_v21, 2  ;;  %v15842_v27 = vcombine.high %v15833_v5, %v15833_v5 }
 0x272   : > { %v2456_v54 = vmul.f32 %v15802_v40, %v2416_v17  ;;  %v2421_v31 = vmax.f32 %v2309_v1, 0.0  ;;  %v2301_v55 = vadd.f32 %v2300_v37, %v15710_v50  ;;  %v2833_v0 = vpack.c.bf16 %v2768_v26, %v2767_v34 }
 0x273   : > { %v2567_v22 = vcombine.high %v2495_v20, %v2495_v20  ;;  %v2770_v16 = vcombine.low %v2566_v8, %v2495_v20  ;;  %v15847_v24 = vadd.f32 %v15806_v10, %v2458_v15  ;;  %v13047_v61 = vpop.f32.mrf.mxu0  ;;  %v2664_v41 = vrot.slane %v2600_v19, 2 }
 0x274   : > { %v15850_v51 = vadd.f32 %v15806_v10, %v2456_v54  ;;  %v2461_v30 = vmul.f32 %v15802_v40, %v2421_v31  ;;  %v2419_v46 = vmax.f32 %v2301_v55, 0.0  ;;  %v2312_v52 = vadd.f32 %v13047_v61, %v15719_v42  ;;  %13088 = vmatprep.mubr.bf16.mxu0 %v2833_v0  ;;  %v13708_v54 = vld [vmem:[#allocation8 + $0x78] sm:$0xff]  }
 0x275   : > { %v2836_v17 = vpack.c.bf16 %v2770_v16, %v2769_v13  ;;  %v15856_v50 = vcombine.high %v15847_v24, %v15847_v24  ;;  %v2303_v8 = vpop.f32.mrf.mxu0  ;;  %v2665_v34 = vsel %vm711_vm2, %v2663_v48, %v2664_v41  ;;  %v2667_v1 = vsel %vm711_vm2, %v2664_v41, %v2666_v3  ;;  %v13709_v16 = vld [vmem:[#allocation8 + $0x38] sm:$0xff]   ;;  %12790 = vmatprep.subr.bf16.mxu1 %v13708_v54 }
 0x276   : > { %v15861_v26 = vcombine.low %v2567_v22, %v15850_v51  ;;  %v15864_v15 = vadd.f32 %v15806_v10, %v2461_v30  ;;  %v2459_v37 = vmul.f32 %v15802_v40, %v2419_v46  ;;  %v2422_v42 = vmax.f32 %v2312_v52, 0.0  ;;  %v13710_v46 = vld [vmem:[#allocation8 + $0x70] sm:$0xff]  }
 0x277   : > { %v2304_v13 = vadd.f32 %v2303_v8, %v15713_v60  ;;  %13089 = vmatmul.mubr.bf16.vlgmr.msra.gmra.mxu0 %v2836_v17  ;;  %v13050_v31 = vpop.f32.mrf.mxu0  ;;  %v2832_v55 = vpack.c.bf16 %v2667_v1, %v2665_v34  ;;  %v2831_v0 = vpack.c.bf16 %v2600_v19, %v15822_v53  ;;  %v2669_v48 = vsel %vm711_vm2, %v2666_v3, %v2668_v29 }
 0x278   : > { %v2499_v22 = vadd.f32 %v15806_v10, %v2459_v37  ;;  %v2462_v61 = vmul.f32 %v15802_v40, %v2422_v42  ;;  %v2325_v41 = vadd.f32 %v13050_v31, %v15728_v25  ;;  %v2670_v30 = vrot.slane %v2495_v20, 2 }
 0x279   : > { %v2420_v52 = vmax.f32 %v2304_v13, 0.0  ;;  %3107 = vmatprep.mubr.bf16.mxu1 %v2832_v55  ;;  %v2316_v60 = vpop.f32.mrf.mxu0  ;;  %v2568_v17 = vcombine.high %v15850_v51, %v15850_v51  ;;  %v15877_v53 = vcombine.low %v15842_v27, %v15847_v24  ;;  %v2772_v3 = vcombine.low %v15833_v5, %v15842_v27  ;;  %v13711_v27 = vld [vmem:[#allocation8 + $0x30] sm:$0xff]  }
 0x27a   : > { %v15881_v19 = vcombine.high %v2499_v22, %v2499_v22  ;;  %v15884_v25 = vcombine.low %v15856_v50, %v2499_v22  ;;  %v15887_v20 = vadd.f32 %v15806_v10, %v2462_v61  ;;  %v2425_v8 = vmax.f32 %v2325_v41, 0.0  ;;  %3108 = vmatmul.mubr.bf16.vlgmr.msra.gmra.mxu1 %v2831_v0  ;;  %v13712_v61 = vld [vmem:[#allocation8 + $0x68] sm:$0xff]  }
 0x27b   : > { %v2460_v34 = vmul.f32 %v15802_v40, %v2420_v52  ;;  %v2317_v1 = vadd.f32 %v2316_v60, %v15722_v45  ;;  %v2671_v37 = vsel %vm711_vm2, %v2668_v29, %v2670_v30  ;;  %v13051_v42 = vpop.f32.mrf.mxu0  ;;  %v15893_v54 = vcombine.low %v2568_v17, %v15833_v5  ;;  %12791 = vmatpush3.bf16.msra.mxu1 %v13709_v16 }
 0x27c   : > { %v15897_v13 = vcombine.high %v15887_v20, %v15887_v20  ;;  %v2465_v31 = vmul.f32 %v15802_v40, %v2425_v8  ;;  %v2835_v55 = vpack.c.bf16 %v2671_v37, %v2669_v48  ;;  %v2328_v0 = vadd.f32 %v13051_v42, %v15731_v2  ;;  %12792 = vmatprep.subr.bf16.mxu1 %v13710_v46  ;;  %v13713_v37 = vld [vmem:[#allocation8 + $0x28] sm:$0xff]  }
 0x27d   : > { %v2500_v45 = vadd.f32 %v15806_v10, %v2460_v34  ;;  %v2423_v29 = vmax.f32 %v2317_v1, 0.0  ;;  %v2771_v41 = vcombine.low %v15850_v51, %v2568_v17  ;;  %v2319_v5 = vpop.f32.mrf.mxu0  ;;  %v2834_v16 = vpack.c.bf16 %v15829_v21, %v15817_v57 }
 0x27e   : > { %v15907_v30 = vcombine.low %v15887_v20, %v15897_v13  ;;  %v15910_v52 = vadd.f32 %v15806_v10, %v2465_v31  ;;  %3115 = vmatprep.mubr.bf16.mxu1 %v2835_v55  ;;  %v2426_v2 = vmax.f32 %v2328_v0, 0.0  ;;  %v2320_v48 = vadd.f32 %v2319_v5, %v15725_v47 }
 0x27f   : > { %v2463_v46 = vmul.f32 %v15802_v40, %v2423_v29  ;;  %v2839_v60 = vpack.c.bf16 %v2772_v3, %v2771_v41  ;;  %v13054_v8 = vpop.f32.mrf.mxu0  ;;  %v2773_v51 = vcombine.low %v15847_v24, %v15856_v50  ;;  %v2774_v57 = vcombine.low %v2499_v22, %v15881_v19  ;;  %12793 = vmatpush3.bf16.msra.mxu1 %v13711_v27  ;;  %v13714_v22 = vld [vmem:[#allocation8 + $0x60] sm:$0xff]  }
 0x280   : > { %v2466_v21 = vmul.f32 %v15802_v40, %v2426_v2  ;;  %v2424_v17 = vmax.f32 %v2320_v48, 0.0  ;;  %v2341_v34 = vadd.f32 %v13054_v8, %v15740_v14  ;;  %v2672_v1 = vrot.slane %v15861_v26, 2  ;;  %12794 = vmatprep.subr.bf16.mxu1 %v13712_v61 }
 0x281   : > { %v15921_v47 = vadd.f32 %v15806_v10, %v2463_v46  ;;  %13092 = vmatprep.mubr.bf16.mxu0 %v2839_v60  ;;  %v2842_v3 = vpack.c.bf16 %v2774_v57, %v2773_v51  ;;  %v2332_v42 = vpop.f32.mrf.mxu0  ;;  %v2673_v24 = vrot.slane %v15893_v54, 2  ;;  %v2675_v50 = vrot.slane %v15877_v53, 2 }
 0x282   : > { %v15926_v27 = vadd.f32 %v15806_v10, %v2466_v21  ;;  %v2464_v14 = vmul.f32 %v15802_v40, %v2424_v17  ;;  %v2429_v31 = vmax.f32 %v2341_v34, 0.0  ;;  %3116 = vmatmul.mubr.bf16.gmra.mxu1 %v2834_v16  ;;  %v2333_v55 = vadd.f32 %v2332_v42, %v15734_v23  ;;  %v13715_v23 = vld [vmem:[#allocation8 + $0x20] sm:$0xff]  }
 0x283   : > { %v15932_v0 = vcombine.high %v15921_v47, %v15921_v47  ;;  %13093 = vmatmul.mubr.bf16.gmra.mxu0 %v2842_v3  ;;  %v2674_v61 = vsel %vm711_vm2, %v2672_v1, %v2673_v24  ;;  %v2676_v29 = vsel %vm711_vm2, %v2673_v24, %v2675_v50  ;;  %v13055_v41 = vpop.f32.mrf.mxu0  ;;  %v2572_v5 = vcombine.high %v2500_v45, %v2500_v45 }
 0x284   : > { %v15937_v2 = vadd.f32 %v15806_v10, %v2464_v14  ;;  %v2469_v48 = vmul.f32 %v15802_v40, %v2429_v31  ;;  %v2427_v46 = vmax.f32 %v2333_v55, 0.0  ;;  %v2838_v16 = vpack.c.bf16 %v2676_v29, %v2674_v61  ;;  %12795 = vmatpush3.bf16.msra.mxu1 %v13713_v37 }
 0x285   : > { %v15942_v60 = vcombine.low %v15921_v47, %v15932_v0  ;;  %v2344_v8 = vadd.f32 %v13055_v41, %v15743_v49  ;;  %v2573_v51 = vcombine.high %v15864_v15, %v15864_v15  ;;  %v15947_v57 = vcombine.low %v2500_v45, %v2572_v5  ;;  %v2335_v21 = vpop.f32.mrf.mxu0  ;;  %12796 = vmatprep.subr.bf16.mxu1 %v13714_v22 }
 0x286   : > { %v2576_v17 = vcombine.high %v15937_v2, %v15937_v2  ;;  %v2509_v34 = vadd.f32 %v15806_v10, %v2469_v48  ;;  %v2467_v1 = vmul.f32 %v15802_v40, %v2427_v46  ;;  %3123 = vmatprep.mubr.bf16.mxu1 %v2838_v16  ;;  %v2775_v37 = vcombine.low %v2572_v5, %v15864_v15 }
 0x287   : > { %v2430_v3 = vmax.f32 %v2344_v8, 0.0  ;;  %v15955_v49 = vcombine.low %v15864_v15, %v2573_v51  ;;  %v2776_v42 = vcombine.low %v2573_v51, %v15887_v20  ;;  %v2336_v45 = vadd.f32 %v2335_v21, %v15737_v18  ;;  %v13058_v24 = vpop.f32.mrf.mxu0 }
 0x288   : > { %v15959_v22 = vcombine.high %v2509_v34, %v2509_v34  ;;  %v15962_v14 = vadd.f32 %v15806_v10, %v2467_v1  ;;  %v2357_v31 = vadd.f32 %v13058_v24, %v15752_v62  ;;  %v2837_v55 = vpack.c.bf16 %v15893_v54, %v15861_v26  ;;  %12797 = vmatpush3.bf16.msra.mxu1 %v13715_v23 }
 0x289   : > { %v2470_v61 = vmul.f32 %v15802_v40, %v2430_v3  ;;  %v2845_v15 = vpack.c.bf16 %v2776_v42, %v2775_v37  ;;  %v2428_v29 = vmax.f32 %v2336_v45, 0.0  ;;  %v2348_v41 = vpop.f32.mrf.mxu0  ;;  %v2677_v20 = vrot.slane %v15884_v25, 2 }
 0x28a   : > { %v15970_v18 = vcombine.low %v2509_v34, %v15959_v22  ;;  %v15974_v5 = vcombine.high %v15962_v14, %v15962_v14  ;;  %v2433_v48 = vmax.f32 %v2357_v31, 0.0  ;;  %3124 = vmatmul.mubr.bf16.gmra.mxu1 %v2837_v55  ;;  %v2349_v62 = vadd.f32 %v2348_v41, %v15746_v12 }
 0x28b   : > { %v15978_v26 = vadd.f32 %v15806_v10, %v2470_v61  ;;  %13096 = vmatprep.mubr.bf16.mxu0 %v2845_v15  ;;  %v2468_v54 = vmul.f32 %v15802_v40, %v2428_v29  ;;  %v2678_v46 = vsel %vm711_vm2, %v2675_v50, %v2677_v20  ;;  %v2679_v16 = vrot.slane %v15881_v19, 2  ;;  %v13059_v23 = vpop.f32.mrf.mxu0 }
 0x28c   : > { %v2699_v8 = vrot.slane %v15970_v18, 2  ;;  %v2473_v51 = vmul.f32 %v15802_v40, %v2433_v48  ;;  %v2431_v21 = vmax.f32 %v2349_v62, 0.0  ;;  %v2777_v34 = vcombine.low %v15897_v13, %v15921_v47 }
 0x28d   : > { %v15988_v12 = vadd.f32 %v15806_v10, %v2468_v54  ;;  %v2680_v1 = vsel %vm711_vm2, %v2677_v20, %v2679_v16  ;;  %v2778_v37 = vcombine.low %v15932_v0, %v15937_v2  ;;  %v2360_v50 = vadd.f32 %v13059_v23, %v15755_v9  ;;  %v2351_v19 = vpop.f32.mrf.mxu0 }
 0x28e   : > { %v15995_v3 = vadd.f32 %v15806_v10, %v2473_v51  ;;  %v2471_v42 = vmul.f32 %v15802_v40, %v2431_v21  ;;  %v2841_v45 = vpack.c.bf16 %v2680_v1, %v2678_v46  ;;  %v2577_v13 = vcombine.high %v15910_v52, %v15910_v52 }
 0x28f   : > { %v16002_v47 = vcombine.high %v15988_v12, %v15988_v12  ;;  %v16006_v24 = vcombine.low %v15974_v5, %v15988_v12  ;;  %v2848_v0 = vpack.c.bf16 %v2778_v37, %v2777_v34  ;;  %v2434_v9 = vmax.f32 %v2360_v50, 0.0  ;;  %v13062_v31 = vpop.f32.mrf.mxu0 }
 0x290   : > { %v2585_v55 = vcombine.high %v15995_v3, %v15995_v3  ;;  %v16011_v61 = vadd.f32 %v15806_v10, %v2471_v42  ;;  %3131 = vmatprep.mubr.bf16.mxu1 %v2841_v45  ;;  %v2578_v15 = vcombine.high %v15926_v27, %v15926_v27  ;;  %v16016_v29 = vcombine.low %v2577_v13, %v15926_v27 }
 0x291   : > { %13097 = vmatmul.mubr.bf16.gmra.mxu0 %v2848_v0  ;;  %v2474_v41 = vmul.f32 %v15802_v40, %v2434_v9  ;;  %v2779_v20 = vcombine.low %v15910_v52, %v2577_v13  ;;  %v2352_v48 = vadd.f32 %v2351_v19, %v15749_v35  ;;  %v2373_v62 = vadd.f32 %v13062_v31, %v15764_v4  ;;  %v2364_v54 = vpop.f32.mrf.mxu0 }
 0x292   : > { %v16024_v46 = vcombine.high %v16011_v61, %v16011_v61  ;;  %v16027_v16 = vcombine.low %v2578_v15, %v15962_v14  ;;  %v2780_v23 = vcombine.low %v15926_v27, %v2578_v15  ;;  %v2840_v51 = vpack.c.bf16 %v15884_v25, %v15877_v53 }
 0x293   : > { %v16033_v21 = vadd.f32 %v15806_v10, %v2474_v41  ;;  %v2432_v34 = vmax.f32 %v2352_v48, 0.0  ;;  %v2437_v35 = vmax.f32 %v2373_v62, 0.0  ;;  %v2365_v4 = vadd.f32 %v2364_v54, %v15758_v44  ;;  %v13063_v1 = vpop.f32.mrf.mxu0 }
 0x294   : > { %v16038_v37 = vcombine.low %v16011_v61, %v16024_v46  ;;  %v2851_v50 = vpack.c.bf16 %v2780_v23, %v2779_v20  ;;  %3132 = vmatmul.mubr.bf16.gmra.mxu1 %v2840_v51  ;;  %v2681_v19 = vrot.slane %v15947_v57, 2  ;;  %v2682_v27 = vrot.slane %v15955_v49, 2 }
 0x295   : > { %v16043_v53 = vcombine.low %v2585_v55, %v16033_v21  ;;  %v2472_v25 = vmul.f32 %v15802_v40, %v2432_v34  ;;  %v2477_v42 = vmul.f32 %v15802_v40, %v2437_v35  ;;  %v2435_v45 = vmax.f32 %v2365_v4, 0.0  ;;  %v2367_v44 = vpop.f32.mrf.mxu0 }
 0x296   : > { %13100 = vmatprep.mubr.bf16.mxu0 %v2851_v50  ;;  %v2683_v13 = vsel %vm711_vm2, %v2681_v19, %v2682_v27  ;;  %v2684_v0 = vrot.slane %v15907_v30, 2  ;;  %v2376_v9 = vadd.f32 %v13063_v1, %v15767_v36  ;;  %v2781_v31 = vcombine.low %v15962_v14, %v15974_v5 }
 0x297   : > { %v2512_v15 = vadd.f32 %v15806_v10, %v2472_v25  ;;  %v16054_v55 = vadd.f32 %v15806_v10, %v2477_v42  ;;  %v2475_v41 = vmul.f32 %v15802_v40, %v2435_v45  ;;  %v2782_v20 = vcombine.low %v15988_v12, %v16002_v47  ;;  %v13066_v48 = vpop.f32.mrf.mxu0 }
 0x298   : > { %v2685_v62 = vsel %vm711_vm2, %v2682_v27, %v2684_v0  ;;  %v2438_v54 = vmax.f32 %v2376_v9, 0.0  ;;  %v2368_v23 = vadd.f32 %v2367_v44, %v15761_v56  ;;  %v2582_v36 = vcombine.high %v15978_v26, %v15978_v26 }
 0x299   : > { %v2584_v14 = vcombine.high %v2512_v15, %v2512_v15  ;;  %v16065_v5 = vcombine.high %v16054_v55, %v16054_v55  ;;  %v16068_v51 = vadd.f32 %v15806_v10, %v2475_v41  ;;  %v2844_v34 = vpack.c.bf16 %v2685_v62, %v2683_v13  ;;  %v2380_v35 = vpop.f32.mrf.mxu0 }
 0x29a   : > { %v2478_v12 = vmul.f32 %v15802_v40, %v2438_v54  ;;  %v2854_v4 = vpack.c.bf16 %v2782_v20, %v2781_v31  ;;  %v2436_v1 = vmax.f32 %v2368_v23, 0.0  ;;  %v16072_v50 = vcombine.low %v15978_v26, %v2582_v36 }
 0x29b   : > { %v16074_v56 = vcombine.low %v2512_v15, %v2584_v14  ;;  %3139 = vmatprep.mubr.bf16.mxu1 %v2844_v34  ;;  %v2783_v19 = vcombine.low %v15959_v22, %v15978_v26  ;;  %v2784_v27 = vcombine.low %v2582_v36, %v16011_v61  ;;  %v2389_v25 = vadd.f32 %v13066_v48, %v15776_v39  ;;  %v13067_v42 = vpop.f32.mrf.mxu0 }
 0x29c   : > { %v2518_v45 = vadd.f32 %v15806_v10, %v2478_v12  ;;  %13101 = vmatmul.mubr.bf16.gmra.mxu0 %v2854_v4  ;;  %v2476_v44 = vmul.f32 %v15802_v40, %v2436_v1  ;;  %v2843_v13 = vpack.c.bf16 %v15955_v49, %v15947_v57  ;;  %v2381_v9 = vadd.f32 %v2380_v35, %v15770_v38 }
 0x29d   : > { %v2857_v31 = vpack.c.bf16 %v2784_v27, %v2783_v19  ;;  %v2441_v41 = vmax.f32 %v2389_v25, 0.0  ;;  %v2686_v20 = vrot.slane %v15942_v60, 2  ;;  %v2688_v22 = vrot.slane %v15937_v2, 2  ;;  %v2383_v26 = vpop.f32.mrf.mxu0 }
 0x29e   : > { %v16087_v61 = vcombine.high %v2518_v45, %v2518_v45  ;;  %v16090_v39 = vadd.f32 %v15806_v10, %v2476_v44  ;;  %3140 = vmatmul.mubr.bf16.gmra.mxu1 %v2843_v13  ;;  %v2439_v48 = vmax.f32 %v2381_v9, 0.0  ;;  %v2392_v62 = vadd.f32 %v13067_v42, %v15779_v28 }
 0x29f   : > { %13104 = vmatprep.mubr.bf16.mxu0 %v2857_v31  ;;  %v2481_v57 = vmul.f32 %v15802_v40, %v2441_v41  ;;  %v2687_v38 = vsel %vm711_vm2, %v2684_v0, %v2686_v20  ;;  %v2689_v49 = vsel %vm711_vm2, %v2686_v20, %v2688_v22  ;;  %v2785_v54 = vcombine.low %v16024_v46, %v2512_v15  ;;  %v13070_v23 = vpop.f32.mrf.mxu0 }
 0x2a0   : > { %v16098_v36 = vcombine.low %v2518_v45, %v16087_v61  ;;  %v16102_v34 = vcombine.high %v16090_v39, %v16090_v39  ;;  %v2479_v35 = vmul.f32 %v15802_v40, %v2439_v48  ;;  %v2847_v28 = vpack.c.bf16 %v2689_v49, %v2687_v38 }
 0x2a1   : > { %v16106_v12 = vadd.f32 %v15806_v10, %v2481_v57  ;;  %v2442_v4 = vmax.f32 %v2392_v62, 0.0  ;;  %v2786_v0 = vcombine.low %v2584_v14, %v15995_v3  ;;  %v2384_v1 = vadd.f32 %v2383_v26, %v15773_v6  ;;  %v2396_v46 = vpop.f32.mrf.mxu0 }
 0x2a2   : > { %v2717_v15 = vrot.slane %v16098_v36, 2  ;;  %v16112_v19 = vadd.f32 %v15806_v10, %v2479_v35  ;;  %3147 = vmatprep.mubr.bf16.mxu1 %v2847_v28  ;;  %v2405_v27 = vadd.f32 %v13070_v23, %v15788_v63  ;;  %v2846_v25 = vpack.c.bf16 %v15942_v60, %v15907_v30 }
 0x2a3   : > { %v16119_v42 = vcombine.high %v16106_v12, %v16106_v12  ;;  %v2482_v14 = vmul.f32 %v15802_v40, %v2442_v4  ;;  %v2860_v45 = vpack.c.bf16 %v2786_v0, %v2785_v54  ;;  %v2440_v6 = vmax.f32 %v2384_v1, 0.0  ;;  %v13071_v20 = vpop.f32.mrf.mxu0 }
 0x2a4   : > { %v2445_v44 = vmax.f32 %v2405_v27, 0.0  ;;  %v2586_v13 = vcombine.high %v16033_v21, %v16033_v21  ;;  %v2587_v9 = vcombine.high %v16068_v51, %v16068_v51  ;;  %v2397_v63 = vadd.f32 %v2396_v46, %v15782_v32 }
 0x2a5   : > { %v16129_v30 = vcombine.low %v16106_v12, %v16119_v42  ;;  %v16132_v60 = vadd.f32 %v15806_v10, %v2482_v14  ;;  %13105 = vmatmul.mubr.bf16.gmra.mxu0 %v2860_v45  ;;  %v2480_v31 = vmul.f32 %v15802_v40, %v2440_v6  ;;  %v2611_v41 = vcombine.low %v2576_v17, %v15910_v52  ;;  %v2399_v4 = vpop.f32.mrf.mxu0 }
 0x2a6   : > { %v2485_v22 = vmul.f32 %v15802_v40, %v2445_v44  ;;  %3148 = vmatmul.mubr.bf16.gmra.mxu1 %v2846_v25  ;;  %v16141_v32 = vcombine.low %v2586_v13, %v16068_v51  ;;  %v16144_v26 = vcombine.low %v2587_v9, %v16090_v39  ;;  %v2787_v48 = vcombine.low %v16033_v21, %v2586_v13 }
 0x2a7   : > { %v2594_v62 = vcombine.high %v16132_v60, %v16132_v60  ;;  %v2520_v57 = vadd.f32 %v15806_v10, %v2480_v31  ;;  %v2788_v2 = vcombine.low %v16068_v51, %v2587_v9  ;;  %v2443_v52 = vmax.f32 %v2397_v63, 0.0 }
 0x2a8   : > { %v16152_v17 = vadd.f32 %v15806_v10, %v2485_v22  ;;  %v2690_v38 = vrot.slane %v2611_v41, 2  ;;  %v2691_v49 = vrot.slane %v16016_v29, 2  ;;  %v2693_v54 = vrot.slane %v16027_v16, 2 }
 0x2a9   : > { %v2592_v23 = vcombine.high %v2520_v57, %v2520_v57  ;;  %v2863_v35 = vpack.c.bf16 %v2788_v2, %v2787_v48  ;;  %v2483_v21 = vmul.f32 %v15802_v40, %v2443_v52  ;;  %v2408_v28 = vadd.f32 %v13071_v20, %v15794_v11 }
 0x2aa   : > { %v2597_v0 = vcombine.high %v16152_v17, %v16152_v17  ;;  %v2692_v51 = vsel %vm711_vm2, %v2690_v38, %v2691_v49  ;;  %v2694_v1 = vsel %vm711_vm2, %v2691_v49, %v2693_v54  ;;  %v2789_v46 = vcombine.low %v16090_v39, %v16102_v34 }
 0x2ab   : > { %v16164_v27 = vcombine.low %v2520_v57, %v2592_v23  ;;  %13108 = vmatprep.mubr.bf16.mxu0 %v2863_v35  ;;  %v2523_v25 = vadd.f32 %v15806_v10, %v2483_v21  ;;  %v2850_v14 = vpack.c.bf16 %v2694_v1, %v2692_v51  ;;  %v2446_v45 = vmax.f32 %v2408_v28, 0.0 }
 0x2ac   : > { %v2790_v11 = vcombine.low %v16054_v55, %v16065_v5  ;;  %v2400_v6 = vadd.f32 %v2399_v4, %v15785_v59  ;;  %v2849_v44 = vpack.c.bf16 %v16016_v29, %v2611_v41  ;;  %v2695_v13 = vrot.slane %v16006_v24, 2 }
 0x2ad   : > { %v16172_v9 = vcombine.low %v2594_v62, %v2523_v25  ;;  %3155 = vmatprep.mubr.bf16.mxu1 %v2850_v14  ;;  %v2486_v39 = vmul.f32 %v15802_v40, %v2446_v45  ;;  %v2697_v63 = vrot.slane %v16002_v47, 2  ;;  %v2591_v31 = vcombine.high %v16112_v19, %v16112_v19 }
 0x2ae   : > { %v2866_v20 = vpack.c.bf16 %v2790_v11, %v2789_v46  ;;  %v2444_v22 = vmax.f32 %v2400_v6, 0.0  ;;  %3156 = vmatmul.mubr.bf16.gmra.mxu1 %v2849_v44  ;;  %v2696_v48 = vsel %vm711_vm2, %v2693_v54, %v2695_v13  ;;  %v2791_v59 = vcombine.low %v16087_v61, %v16112_v19 }
 0x2af   : > { %v2526_v29 = vadd.f32 %v15806_v10, %v2486_v39  ;;  %v2698_v41 = vsel %vm711_vm2, %v2695_v13, %v2697_v63  ;;  %v16184_v62 = vcombine.low %v16112_v19, %v2591_v31  ;;  %v2792_v2 = vcombine.low %v2591_v31, %v2520_v57  ;;  %v13716_v13 = vld [vmem:[#allocation8 + $0x58] sm:$0xff]  }
 0x2b0   : > { %13109 = vmatmul.mubr.bf16.gmra.mxu0 %v2866_v20  ;;  %v2484_v47 = vmul.f32 %v15802_v40, %v2444_v22  ;;  %v2853_v52 = vpack.c.bf16 %v2698_v41, %v2696_v48  ;;  %v2793_v38 = vcombine.low %v2592_v23, %v16106_v12  ;;  %v2794_v49 = vcombine.low %v16119_v42, %v16132_v60  ;;  %v13717_v41 = vld [vmem:[#allocation8 + $0x18] sm:$0xff]  }
 0x2b1   : > { %v16190_v54 = vcombine.high %v2526_v29, %v2526_v29  ;;  %v16192_v61 = vcombine.low %v2597_v0, %v2526_v29  ;;  %v2869_v35 = vpack.c.bf16 %v2792_v2, %v2791_v59  ;;  %v2852_v21 = vpack.c.bf16 %v16006_v24, %v16027_v16  ;;  %12798 = vmatprep.subr.bf16.mxu1 %v13716_v13 }
 0x2b2   : > { %v2524_v19 = vadd.f32 %v15806_v10, %v2484_v47  ;;  %3163 = vmatprep.mubr.bf16.mxu1 %v2853_v52  ;;  %v2872_v57 = vpack.c.bf16 %v2794_v49, %v2793_v38  ;;  %v2700_v40 = vrot.slane %v16072_v50, 2  ;;  %v2702_v28 = vrot.slane %v16038_v37, 2  ;;  %12799 = vmatpush3.bf16.msra.mxu1 %v13717_v41 }
 0x2b3   : > { %13112 = vmatprep.mubr.bf16.mxu0 %v2869_v35  ;;  %v2595_v12 = vcombine.high %v2523_v25, %v2523_v25  ;;  %v2797_v42 = vcombine.low %v16152_v17, %v2597_v0  ;;  %v2798_v23 = vcombine.low %v2526_v29, %v16190_v54  ;;  %v2855_v4 = vpack.c.bf16 %v16072_v50, %v15970_v18 }
 0x2b4   : > { %v2701_v24 = vsel %vm711_vm2, %v2699_v8, %v2700_v40  ;;  %v2703_v10 = vsel %vm711_vm2, %v2700_v40, %v2702_v28  ;;  %v2596_v16 = vcombine.high %v2524_v19, %v2524_v19  ;;  %v2704_v51 = vrot.slane %v16074_v56, 2 }
 0x2b5   : > { %v2856_v1 = vpack.c.bf16 %v2703_v10, %v2701_v24  ;;  %v16208_v46 = vcombine.low %v2595_v12, %v2524_v19  ;;  %v2795_v14 = vcombine.low %v2523_v25, %v2595_v12  ;;  %v2878_v45 = vpack.c.bf16 %v2798_v23, %v2797_v42  ;;  %v13721_v10 = vld [vmem:[#allocation8 + $0x50] sm:$0xff]  }
 0x2b6   : > { %3164 = vmatmul.mubr.bf16.gmra.mxu1 %v2852_v21  ;;  %v16211_v0 = vcombine.low %v2596_v16, %v16152_v17  ;;  %v2796_v11 = vcombine.low %v2524_v19, %v2596_v16  ;;  %v2705_v50 = vsel %vm711_vm2, %v2702_v28, %v2704_v51  ;;  %v2706_v18 = vrot.slane %v15995_v3, 2  ;;  %v13722_v16 = vld [vmem:[#allocation8 + $0x10] sm:$0xff]   ;;  %12800 = vmatprep.subr.bf16.mxu1 %v13721_v10 }
 0x2b7   : > { %3171 = vmatprep.mubr.bf16.mxu1 %v2856_v1  ;;  %v2858_v8 = vpack.c.bf16 %v16074_v56, %v16038_v37  ;;  %v2708_v6 = vrot.slane %v16043_v53, 2  ;;  %v2709_v44 = vrot.slane %v16141_v32, 2  ;;  %v2711_v25 = vrot.slane %v16144_v26, 2  ;;  %12801 = vmatpush3.bf16.msra.mxu1 %v13722_v16  ;;  %v13724_v1 = vld [vmem:[#allocation8 + $0x98] sm:$0xff]  }
 0x2b8   : > { %13113 = vmatmul.mubr.bf16.gmra.mxu0 %v2872_v57  ;;  %v2875_v39 = vpack.c.bf16 %v2796_v11, %v2795_v14  ;;  %v2707_v17 = vsel %vm711_vm2, %v2704_v51, %v2706_v18  ;;  %v2861_v63 = vpack.c.bf16 %v16141_v32, %v16043_v53  ;;  %v2622_v3 = vcombine.low %v16102_v34, %v16054_v55  ;;  %v13723_v51 = vld [vmem:[#allocation8 + $0xa0] sm:$0xff]   ;;  %v13726_v14 = vld [vmem:[#allocation8 + $0x48] sm:$0xff]  }
 0x2b9   : > { %v2859_v31 = vpack.c.bf16 %v2707_v17, %v2705_v50  ;;  %v2710_v37 = vsel %vm711_vm2, %v2708_v6, %v2709_v44  ;;  %v2712_v56 = vsel %vm711_vm2, %v2709_v44, %v2711_v25  ;;  %v2715_v20 = vrot.slane %v16065_v5, 2  ;;  %12802 = vmatprep.subr.bf16.mxu1 %v13726_v14  ;;  %v13729_v11 = vld [vmem:[#allocation8 + $0x40] sm:$0xff]  }
 0x2ba   : > { %13116 = vmatprep.mubr.bf16.mxu0 %v2875_v39  ;;  %v2862_v22 = vpack.c.bf16 %v2712_v56, %v2710_v37  ;;  %v2713_v48 = vrot.slane %v2622_v3, 2  ;;  %v2864_v59 = vpack.c.bf16 %v2622_v3, %v16144_v26  ;;  %v2718_v29 = vrot.slane %v16184_v62, 2  ;;  %v13730_v50 = vld [vmem:[#allocation8 + $0x80] sm:$0xff]  }
 0x2bb   : > { %v2720_v53 = vrot.slane %v16164_v27, 2  ;;  %v2867_v55 = vpack.c.bf16 %v16184_v62, %v16098_v36  ;;  %v2722_v34 = vrot.slane %v16129_v30, 2  ;;  %v2724_v32 = vrot.slane %v16132_v60, 2  ;;  %v13731_v18 = vld [vmem:[#allocation8] sm:$0xff]  }
 0x2bc   : > { %v2714_v5 = vsel %vm711_vm2, %v2711_v25, %v2713_v48  ;;  %v2716_v2 = vsel %vm711_vm2, %v2713_v48, %v2715_v20  ;;  %v2719_v26 = vsel %vm711_vm2, %v2717_v15, %v2718_v29  ;;  %v2870_v47 = vpack.c.bf16 %v16129_v30, %v16164_v27  ;;  %v14106_v25 = vld [vmem:[#allocation19] sm:$0xff] }
 0x2bd   : > { %v2865_v52 = vpack.c.bf16 %v2716_v2, %v2714_v5  ;;  %v2721_v38 = vsel %vm711_vm2, %v2718_v29, %v2720_v53  ;;  %v2723_v62 = vsel %vm711_vm2, %v2720_v53, %v2722_v34  ;;  %v2725_v49 = vsel %vm711_vm2, %v2722_v34, %v2724_v32 }
 0x2be   : > { %3172 = vmatmul.mubr.bf16.gmra.mxu1 %v2855_v4  ;;  %v2868_v60 = vpack.c.bf16 %v2721_v38, %v2719_v26  ;;  %v2871_v35 = vpack.c.bf16 %v2725_v49, %v2723_v62  ;;  %v2726_v21 = vrot.slane %v16172_v9, 2  ;;  %v2727_v36 = vrot.slane %v16208_v46, 2 }
 0x2bf   : > { %3179 = vmatprep.mubr.bf16.mxu1 %v2859_v31  ;;  %v2729_v15 = vrot.slane %v16211_v0, 2  ;;  %v2873_v30 = vpack.c.bf16 %v16208_v46, %v16172_v9  ;;  %v2731_v27 = vrot.slane %v16192_v61, 2  ;;  %v2733_v19 = vrot.slane %v16190_v54, 2  ;;  %v13718_v9 = vld [vmem:[#allocation8 + $0xb8] sm:$0xff]   ;;  %v13719_v54 = vld [vmem:[#allocation8 + $0xb0] sm:$0xff]  }
 0x2c0   : > { %13117 = vmatmul.mubr.bf16.gmra.mxu0 %v2878_v45  ;;  %v2728_v57 = vsel %vm711_vm2, %v2726_v21, %v2727_v36  ;;  %v2876_v40 = vpack.c.bf16 %v16192_v61, %v16211_v0  ;;  %v19990_v24 = vmov 0.0   ;;  %v13720_v61 = vld [vmem:[#allocation8 + $0xa8] sm:$0xff]   ;;  %v13725_v46 = vld [vmem:[#allocation8 + $0x90] sm:$0xff]   ;;  %v16277_v3 = vsub.s32 4, %v15659_v58 }
 0x2c1   : > { %v2730_v28 = vsel %vm711_vm2, %v2727_v36, %v2729_v15  ;;  %v2732_v12 = vsel %vm711_vm2, %v2729_v15, %v2731_v27  ;;  %v2734_v42 = vsel %vm711_vm2, %v2731_v27, %v2733_v19  ;;  %13120 = vmatprep.subr.bf16.mxu0 %v19990_v24  ;;  %v13727_v45 = vld [vmem:[#allocation8 + $0x88] sm:$0xff]   ;;  %13136 = vmatprep.mubr.msk.bf16.mxu0 %vm14503_vm4, %v19990_v24  ;;  %v19987_v56 = vsub.s32 5, %v15659_v58 }
 0x2c2   : > { %v2874_v23 = vpack.c.bf16 %v2730_v28, %v2728_v57  ;;  %v2877_v4 = vpack.c.bf16 %v2734_v42, %v2732_v12  ;;  %13121 = vmatpush3.bf16.msra.mxu0 %v13718_v9  ;;  %v13728_v0 = vld [vmem:[#allocation8 + $0x8] sm:$0xff]   ;;  %20229 = vst [vmem:[#allocation32_spill] sm:$0xff] %v16277_v3 }
 0x2c3   : > { %13122 = vmatprep.subr.bf16.mxu0 %v19990_v24  ;;  %12803 = vmatpush3.bf16.msra.mxu1 %v13728_v0  ;;  %v16287_v34 = vrot.slane %v14106_v25, %v19987_v56 }
 0x2c4   : > { %12804 = vmatprep.subr.bf16.mxu1 %v13729_v11 }
 0x2c6   : > { %3180 = vmatmul.mubr.bf16.gmra.mxu1 %v2858_v8  ;;  %13123 = vmatpush3.bf16.msra.mxu0 %v13719_v54  ;;  %v16271_v8 = vsub.s32 3, %v15659_v58 }
 0x2c7   : > { %3187 = vmatprep.mubr.bf16.mxu1 %v2862_v22  ;;  %13124 = vmatprep.subr.bf16.mxu0 %v19990_v24 }
 0x2c8   : > { %12805 = vmatpush3.bf16.msra.mxu1 %v13731_v18  ;;  %20228 = vst [vmem:[#allocation31_spill] sm:$0xff] %v16271_v8  ;;  %v16274_v13 = vrot.slane %v14106_v25, %v16271_v8 }
 0x2c9   : > { %13188 = vmatprep.subr.bf16.mxu1 %v19990_v24 }
 0x2ca   : > { %13125 = vmatpush3.bf16.msra.mxu0 %v13720_v61 }
 0x2cb   : > { %13126 = vmatprep.subr.bf16.mxu0 %v19990_v24 }
 0x2ce   : > { %3188 = vmatmul.mubr.bf16.gmra.mxu1 %v2861_v63  ;;  %13127 = vmatpush3.bf16.msra.mxu0 %v13723_v51 }
 0x2cf   : > { %3195 = vmatprep.mubr.bf16.mxu1 %v2865_v52  ;;  %13128 = vmatprep.subr.bf16.mxu0 %v19990_v24  ;;  %v14504_v52 = vmov 1983009808  }
 0x2d0   : > { %v3650_v38 = vunpack.c.l.s4 %v14504_v52 }
 0x2d2   : > { %13129 = vmatpush3.bf16.msra.mxu0 %v13724_v1  ;;  %v3651_v27 = vunpack.c.0.s8 %v3650_v38 }
 0x2d3   : > { %13130 = vmatprep.subr.bf16.mxu0 %v19990_v24 }
 0x2d4   : > { %v16299_v51 = vsub.s32 %v3651_v27, %v15659_v58 }
 0x2d6   : > { %3196 = vmatmul.mubr.bf16.gmra.mxu1 %v2864_v59  ;;  %13131 = vmatpush3.bf16.msra.mxu0 %v13725_v46  ;;  %v16282_v59 = vrot.slane %v14106_v25, %v16277_v3 }
 0x2d7   : > { %3203 = vmatprep.mubr.bf16.mxu1 %v2868_v60  ;;  %13132 = vmatprep.subr.bf16.mxu0 %v19990_v24 }
 0x2da   : > { %13133 = vmatpush3.bf16.msra.mxu0 %v13727_v45 }
 0x2db   : > { %13134 = vmatprep.subr.bf16.mxu0 %v19990_v24 }
 0x2de   : > { %3204 = vmatmul.mubr.bf16.gmra.mxu1 %v2867_v55  ;;  %13135 = vmatpush3.bf16.msra.mxu0 %v13730_v50 }
 0x2df   : > { %3211 = vmatprep.mubr.bf16.mxu1 %v2871_v35  ;;  %13256 = vmatprep.subr.bf16.mxu0 %v19990_v24 }
 0x2e6   : > { %3212 = vmatmul.mubr.bf16.gmra.mxu1 %v2870_v47 }
 0x2e7   : > { %3219 = vmatprep.mubr.bf16.mxu1 %v2874_v23 }
 0x2ee   : > { %3220 = vmatmul.mubr.bf16.gmra.mxu1 %v2873_v30 }
 0x2ef   : > { %3227 = vmatprep.mubr.bf16.mxu1 %v2877_v4 }
 0x2f6   : > { %3228 = vmatmul.mubr.bf16.gmra.mxu1 %v2876_v40 }
 0x337   : > { %v13090_v6 = vpop.f32.mrf.mxu0 }
 0x339   : > { %v3270_v39 = vpop.f32.mrf.mxu0 }
 0x33a   : > { %v12670_v44 = vpop.f32.mrf.mxu1 }
 0x33b   : > { %v13091_v20 = vpop.f32.mrf.mxu0 }
 0x33c   : > { %v12671_v17 = vpop.f32.mrf.mxu1 }
 0x33d   : > { %v12672_v63 = vadd.f32 %v12671_v17, %v12670_v44  ;;  %v3273_v32 = vpop.f32.mrf.mxu0 }
 0x33e   : > { %v12673_v31 = vpop.f32.mrf.mxu1 }
 0x33f   : > { %v3110_v37 = vadd.f32 %v12672_v63, %v16274_v13 }
 0x340   : > { %v12674_v22 = vpop.f32.mrf.mxu1 }
 0x341   : > { %v3271_v48 = vadd.f32 %v3270_v39, %v3110_v37  ;;  %v12675_v29 = vadd.f32 %v12674_v22, %v12673_v31 }
 0x342   : > { %v12676_v41 = vpop.f32.mrf.mxu1 }
 0x343   : > { %v3397_v53 = vmax.f32 %v3271_v48, 0.0  ;;  %v3113_v55 = vadd.f32 %v12675_v29, %v16274_v13  ;;  %v16292_v21 = vpop.f32.mrf.mxu0 }
 0x344   : > { %v12677_v5 = vpop.f32.mrf.mxu1 }
 0x345   : > { %v3433_v2 = vmul.f32 %v16282_v59, %v3397_v53  ;;  %v3274_v26 = vadd.f32 %v3273_v32, %v3113_v55  ;;  %v12678_v47 = vadd.f32 %v12677_v5, %v12676_v41  ;;  %v3286_v23 = vpop.f32.mrf.mxu0 }
 0x346   : > { %v12679_v62 = vpop.f32.mrf.mxu1 }
 0x347   : > { %v3398_v49 = vmax.f32 %v3274_v26, 0.0  ;;  %v3118_v60 = vadd.f32 %v12678_v47, %v16274_v13  ;;  %v3469_v35 = vadd.f32 %v16287_v34, %v3433_v2  ;;  %v16307_v18 = vpop.f32.mrf.mxu0 }
 0x348   : > { %v12680_v36 = vpop.f32.mrf.mxu1 }
 0x349   : > { %v3434_v15 = vmul.f32 %v16282_v59, %v3398_v49  ;;  %v3279_v30 = vadd.f32 %v13090_v6, %v3118_v60  ;;  %v12681_v19 = vadd.f32 %v12680_v36, %v12679_v62  ;;  %v3533_v12 = vrot.slane %v3469_v35, 3  ;;  %v3289_v47 = vpop.f32.mrf.mxu0 }
 0x34a   : > { %v12682_v57 = vpop.f32.mrf.mxu1  ;;  %v3590_v42 = vrot.slane %v3469_v35, 6 }
 0x34b   : > { %v3470_v40 = vadd.f32 %v16287_v34, %v3434_v15  ;;  %v3399_v28 = vmax.f32 %v3279_v30, 0.0  ;;  %v3121_v4 = vadd.f32 %v12681_v19, %v16274_v13 }
 0x34c   : > { %v12683_v9 = vpop.f32.mrf.mxu1 }
 0x34d   : > { %v3591_v54 = vrot.slane %v3470_v40, 6  ;;  %v3435_v61 = vmul.f32 %v16282_v59, %v3399_v28  ;;  %v12684_v10 = vadd.f32 %v12683_v9, %v12682_v57  ;;  %v3534_v16 = vrot.slane %v3470_v40, 3 }
 0x34e   : > { %v3282_v1 = vadd.f32 %v13091_v20, %v3121_v4  ;;  %v12685_v46 = vpop.f32.mrf.mxu1 }
 0x34f   : > { %v3592_v14 = vsel %vm3589_vm5, %v3590_v42, %v3591_v54  ;;  %v16303_v45 = vadd.f32 %v16287_v34, %v3435_v61  ;;  %v3126_v0 = vadd.f32 %v12684_v10, %v16274_v13  ;;  %v3535_v11 = vsel %vm784_vm1, %v3533_v12, %v3534_v16 }
 0x350   : > { %v3648_v50 = vcombine.high %v3592_v14, %v3592_v14  ;;  %v3400_v6 = vmax.f32 %v3282_v1, 0.0  ;;  %v12686_v44 = vpop.f32.mrf.mxu1  ;;  %v3646_v25 = vcombine.low %v3469_v35, %v3535_v11  ;;  %v3647_v39 = vcombine.high %v3469_v35, %v3535_v11 }
 0x351   : > { %v3536_v17 = vrot.slane %v16303_v45, 3  ;;  %v3593_v63 = vrot.slane %v16303_v45, 6  ;;  %v3287_v31 = vadd.f32 %v3286_v23, %v3126_v0  ;;  %v12687_v37 = vadd.f32 %v12686_v44, %v12685_v46 }
 0x352   : > { %v3436_v20 = vmul.f32 %v16282_v59, %v3400_v6  ;;  %v3655_v22 = vrot.slane %v3646_v25, %v16299_v51  ;;  %v3662_v48 = vrot.slane %v3647_v39, %v16299_v51  ;;  %v3669_v29 = vrot.slane %v3592_v14, %v16299_v51 }
 0x353   : > { %v3594_v41 = vsel %vm3589_vm5, %v3591_v54, %v3593_v63  ;;  %v3401_v53 = vmax.f32 %v3287_v31, 0.0  ;;  %v3129_v55 = vadd.f32 %v12687_v37, %v16274_v13  ;;  %v3537_v32 = vsel %vm784_vm1, %v3534_v16, %v3536_v17  ;;  %v16351_v31 = vpop.f32.mrf.mxu0 }
 0x354   : > { %v3683_v5 = vcombine.high %v3594_v41, %v3594_v41  ;;  %v3704_v2 = vrot.slane %v3594_v41, %v16299_v51  ;;  %v16324_v26 = vadd.f32 %v16287_v34, %v3436_v20  ;;  %v12688_v52 = vpop.f32.mrf.mxu1  ;;  %v3681_v38 = vcombine.low %v3470_v40, %v3537_v32 }
 0x355   : > { %v3437_v62 = vmul.f32 %v16282_v59, %v3401_v53  ;;  %v3290_v49 = vadd.f32 %v3289_v47, %v3129_v55  ;;  %v3682_v60 = vcombine.high %v3470_v40, %v3537_v32  ;;  %v4624_v35 = vrot.slane %v3655_v22, %v16299_v51 }
 0x356   : > { %v3538_v36 = vrot.slane %v16324_v26, 3  ;;  %v3595_v15 = vrot.slane %v16324_v26, 6  ;;  %v12689_v30 = vpop.f32.mrf.mxu1  ;;  %v3690_v27 = vrot.slane %v3681_v38, %v16299_v51  ;;  %v4638_v19 = vrot.slane %v3662_v48, %v16299_v51 }
 0x357   : > { %v16333_v57 = vadd.f32 %v16287_v34, %v3437_v62  ;;  %v3402_v28 = vmax.f32 %v3290_v49, 0.0  ;;  %v12690_v12 = vadd.f32 %v12689_v30, %v12688_v52  ;;  %v3697_v42 = vrot.slane %v3682_v60, %v16299_v51  ;;  %v3302_v60 = vpop.f32.mrf.mxu0 }
 0x358   : > { %v12691_v23 = vpop.f32.mrf.mxu1  ;;  %v4646_v40 = vcombine.low %v4624_v35, %v4638_v19  ;;  %v4647_v4 = vcombine.high %v4624_v35, %v4638_v19  ;;  %v4659_v9 = vrot.slane %v3690_v27, %v16299_v51  ;;  %v3676_v54 = vrot.slane %v3648_v50, %v16299_v51 }
 0x359   : > { %v3540_v61 = vrot.slane %v16333_v57, 3  ;;  %v3597_v10 = vrot.slane %v16333_v57, 6  ;;  %v3438_v16 = vmul.f32 %v16282_v59, %v3402_v28  ;;  %v3134_v1 = vadd.f32 %v12690_v12, %v16274_v13 }
 0x35a   : > { %v12692_v46 = vpop.f32.mrf.mxu1  ;;  %v4673_v14 = vrot.slane %v3697_v42, %v16299_v51  ;;  %v3711_v0 = vrot.slane %v3683_v5, %v16299_v51  ;;  %v4631_v11 = vrot.slane %v3669_v29, %v16299_v51  ;;  %v4645_v6 = vrot.slane %v3676_v54, %v16299_v51 }
 0x35b   : > { %v16347_v44 = vadd.f32 %v16287_v34, %v3438_v16  ;;  %v3295_v50 = vadd.f32 %v16292_v21, %v3134_v1  ;;  %v12693_v25 = vadd.f32 %v12692_v46, %v12691_v23  ;;  %v4666_v39 = vrot.slane %v3704_v2, %v16299_v51  ;;  %v16385_v1 = vpop.f32.mrf.mxu0 }
 0x35c   : > { %v4681_v37 = vcombine.low %v4659_v9, %v4673_v14  ;;  %v4682_v20 = vcombine.high %v4659_v9, %v4673_v14  ;;  %v4648_v22 = vcombine.low %v4631_v11, %v4645_v6  ;;  %v4680_v48 = vrot.slane %v3711_v0, %v16299_v51 }
 0x35d   : > { %v3541_v41 = vrot.slane %v16347_v44, 3  ;;  %v3598_v29 = vrot.slane %v16347_v44, 6  ;;  %v3403_v53 = vmax.f32 %v3295_v50, 0.0  ;;  %v3137_v55 = vadd.f32 %v12693_v25, %v16274_v13 }
 0x35e   : > { %v12694_v32 = vpop.f32.mrf.mxu1  ;;  %v5602_v5 = vpack.c.bf16 %v4681_v37, %v4646_v40  ;;  %v5603_v21 = vpack.c.bf16 %v4682_v20, %v4647_v4  ;;  %v4683_v47 = vcombine.low %v4666_v39, %v4680_v48  ;;  %v3539_v2 = vsel %vm784_vm1, %v3536_v17, %v3538_v36 }
 0x35f   : > { %v3439_v52 = vmul.f32 %v16282_v59, %v3403_v53  ;;  %v3298_v38 = vadd.f32 %v16307_v18, %v3137_v55  ;;  %v3542_v62 = vsel %vm784_vm1, %v3540_v61, %v3541_v41  ;;  %v3599_v49 = vsel %vm3589_vm5, %v3597_v10, %v3598_v29 }
 0x360   : > { %v12695_v35 = vpop.f32.mrf.mxu1  ;;  %5869 = vmatprep.mubr.bf16.mxu1 %v5603_v21  ;;  %v5604_v30 = vpack.c.bf16 %v4683_v47, %v4648_v22  ;;  %v3716_v27 = vcombine.low %v16303_v45, %v3539_v2  ;;  %v3717_v17 = vcombine.high %v16303_v45, %v3539_v2  ;;  %v3751_v19 = vcombine.low %v16324_v26, %v3538_v36  ;;  %v3305_v47 = vpop.f32.mrf.mxu0 }
 0x361   : > { %v16372_v18 = vadd.f32 %v16287_v34, %v3439_v52  ;;  %v3404_v28 = vmax.f32 %v3298_v38, 0.0  ;;  %v12696_v12 = vadd.f32 %v12695_v35, %v12694_v32  ;;  %5870 = vmatmul.mubr.bf16.vlgmr.msra.gmra.mxu1 %v5602_v5  ;;  %v3767_v42 = vcombine.low %v16333_v57, %v3542_v62 }
 0x362   : > { %v12697_v23 = vpop.f32.mrf.mxu1  ;;  %13137 = vmatmul.mubr.bf16.vlgmr.msra.gmra.mxu0 %v5604_v30  ;;  %v3725_v40 = vrot.slane %v3716_v27, %v16299_v51  ;;  %v3732_v4 = vrot.slane %v3717_v17, %v16299_v51  ;;  %v3758_v9 = vrot.slane %v3751_v19, %v16299_v51  ;;  %v3768_v54 = vcombine.high %v16333_v57, %v3542_v62 }
 0x363   : > { %v3543_v36 = vrot.slane %v16372_v18, 3  ;;  %v3600_v61 = vrot.slane %v16372_v18, 6  ;;  %v3440_v10 = vmul.f32 %v16282_v59, %v3404_v28  ;;  %v3142_v16 = vadd.f32 %v12696_v12, %v16274_v13  ;;  %13140 = vmatprep.mubr.msk.bf16.mxu0 %vm14503_vm4, %v19990_v24 }
 0x364   : > { %v12698_v46 = vpop.f32.mrf.mxu1  ;;  %v3769_v14 = vcombine.high %v3599_v49, %v3599_v49  ;;  %v3776_v0 = vrot.slane %v3767_v42, %v16299_v51  ;;  %v16389_v11 = vrot.slane %v3768_v54, %v16299_v51  ;;  %v3790_v57 = vrot.slane %v3599_v49, %v16299_v51 }
 0x365   : > { %v16393_v6 = vadd.f32 %v16287_v34, %v3440_v10  ;;  %v3303_v50 = vadd.f32 %v3302_v60, %v3142_v16  ;;  %v12699_v25 = vadd.f32 %v12698_v46, %v12697_v23  ;;  %v16396_v39 = vrot.slane %v3725_v40, %v16299_v51 }
 0x366   : > { %v12700_v37 = vpop.f32.mrf.mxu1  ;;  %v3799_v20 = vcombine.high %v3776_v0, %v3790_v57  ;;  %v4708_v22 = vrot.slane %v3732_v4, %v16299_v51  ;;  %v12488_v48 = vcombine.low %v3758_v9, %v3776_v0  ;;  %v3596_v53 = vsel %vm3589_vm5, %v3593_v63, %v3595_v15  ;;  %v16425_v4 = vpop.f32.mrf.mxu0 }
 0x367   : > { %v3545_v55 = vrot.slane %v16393_v6, 3  ;;  %v3602_v32 = vrot.slane %v16393_v6, 6  ;;  %v3405_v5 = vmax.f32 %v3303_v50, 0.0  ;;  %v3145_v21 = vadd.f32 %v12699_v25, %v16274_v13 }
 0x368   : > { %v12701_v2 = vpop.f32.mrf.mxu1  ;;  %v4717_v52 = vcombine.high %v16396_v39, %v4708_v22  ;;  %v12490_v38 = vcombine.low %v3799_v20, %v16389_v11  ;;  %v4729_v62 = vrot.slane %v12488_v48, %v16299_v51  ;;  %v3718_v49 = vcombine.high %v3596_v53, %v3596_v53 }
 0x369   : > { %v3441_v45 = vmul.f32 %v16282_v59, %v3405_v5  ;;  %v3306_v60 = vadd.f32 %v3305_v47, %v3145_v21  ;;  %v12702_v63 = vadd.f32 %v12701_v2, %v12700_v37  ;;  %v3739_v35 = vrot.slane %v3596_v53, %v16299_v51  ;;  %v3318_v2 = vpop.f32.mrf.mxu0 }
 0x36a   : > { %v12703_v30 = vpop.f32.mrf.mxu1  ;;  %v4743_v27 = vrot.slane %v12490_v38, %v16299_v51  ;;  %v3746_v17 = vrot.slane %v3718_v49, %v16299_v51  ;;  %v3765_v19 = vrot.slane %v3595_v15, %v16299_v51  ;;  %v16418_v28 = vrot.slane %v3769_v14, %v16299_v51 }
 0x36b   : > { %v16421_v12 = vadd.f32 %v16287_v34, %v3441_v45  ;;  %v3406_v42 = vmax.f32 %v3306_v60, 0.0  ;;  %v3150_v23 = vadd.f32 %v12702_v63, %v16274_v13  ;;  %v4701_v40 = vrot.slane %v3739_v35, %v16299_v51 }
 0x36c   : > { %v12704_v9 = vpop.f32.mrf.mxu1  ;;  %v4752_v54 = vcombine.high %v4729_v62, %v4743_v27  ;;  %v3800_v10 = vcombine.low %v16389_v11, %v16418_v28  ;;  %v4715_v26 = vrot.slane %v3746_v17, %v16299_v51  ;;  %v12489_v15 = vcombine.low %v3765_v19, %v3790_v57  ;;  %v16472_v19 = vpop.f32.mrf.mxu0 }
 0x36d   : > { %v3547_v16 = vrot.slane %v16421_v12, 3  ;;  %v3604_v46 = vrot.slane %v16421_v12, 6  ;;  %v3442_v14 = vmul.f32 %v16282_v59, %v3406_v42  ;;  %v3311_v0 = vadd.f32 %v16351_v31, %v3150_v23 }
 0x36e   : > { %v12705_v50 = vadd.f32 %v12704_v9, %v12703_v30  ;;  %v12706_v25 = vpop.f32.mrf.mxu1  ;;  %v5606_v37 = vpack.c.bf16 %v4752_v54, %v4717_v52  ;;  %v4718_v20 = vcombine.low %v4701_v40, %v4715_v26  ;;  %v12491_v48 = vcombine.high %v3790_v57, %v3800_v10 }
 0x36f   : > { %v16435_v53 = vadd.f32 %v16287_v34, %v3442_v14  ;;  %v3407_v5 = vmax.f32 %v3311_v0, 0.0  ;;  %v4736_v21 = vrot.slane %v12489_v15, %v16299_v51  ;;  %v4716_v47 = vcombine.low %v16396_v39, %v4708_v22 }
 0x370   : > { %v3153_v38 = vadd.f32 %v12705_v50, %v16274_v13  ;;  %v12707_v49 = vpop.f32.mrf.mxu1  ;;  %5877 = vmatprep.mubr.bf16.mxu1 %v5606_v37  ;;  %v4750_v31 = vrot.slane %v12491_v48, %v16299_v51  ;;  %v4751_v45 = vcombine.low %v4729_v62, %v4743_v27  ;;  %v3544_v57 = vsel %vm784_vm1, %v3541_v41, %v3543_v36  ;;  %v3321_v48 = vpop.f32.mrf.mxu0 }
 0x371   : > { %v3605_v52 = vrot.slane %v16435_v53, 6  ;;  %v3443_v60 = vmul.f32 %v16282_v59, %v3407_v5  ;;  %v12708_v63 = vadd.f32 %v12707_v49, %v12706_v25  ;;  %v3546_v39 = vsel %vm784_vm1, %v3543_v36, %v3545_v55 }
 0x372   : > { %v3314_v22 = vadd.f32 %v16385_v1, %v3153_v38  ;;  %v12709_v62 = vpop.f32.mrf.mxu1  ;;  %v4753_v35 = vcombine.low %v4736_v21, %v4750_v31  ;;  %v5605_v30 = vpack.c.bf16 %v4751_v45, %v4716_v47  ;;  %v3601_v41 = vsel %vm3589_vm5, %v3598_v29, %v3600_v61  ;;  %v16537_v56 = vpop.f32.mrf.mxu0 }
 0x373   : > { %v16460_v27 = vadd.f32 %v16287_v34, %v3443_v60  ;;  %v3158_v17 = vadd.f32 %v12708_v63, %v16274_v13  ;;  %v16468_v36 = vsel %vm3589_vm5, %v3600_v61, %v3602_v32  ;;  %v3801_v1 = vcombine.high %v16389_v11, %v16418_v28 }
 0x374   : > { %v3408_v42 = vmax.f32 %v3314_v22, 0.0  ;;  %v5607_v23 = vpack.c.bf16 %v4753_v35, %v4718_v20  ;;  %5878 = vmatmul.mubr.bf16.gmra.mxu1 %v5605_v30  ;;  %v12710_v29 = vpop.f32.mrf.mxu1  ;;  %v3802_v40 = vcombine.low %v16347_v44, %v3544_v57  ;;  %v3803_v9 = vcombine.high %v16347_v44, %v3544_v57 }
 0x375   : > { %v3550_v54 = vrot.slane %v16460_v27, 3  ;;  %v3607_v10 = vrot.slane %v16460_v27, 6  ;;  %v3319_v26 = vadd.f32 %v3318_v2, %v3158_v17  ;;  %v12711_v61 = vadd.f32 %v12710_v29, %v12709_v62 }
 0x376   : > { %v3444_v15 = vmul.f32 %v16282_v59, %v3408_v42  ;;  %13141 = vmatmul.mubr.bf16.gmra.mxu0 %v5607_v23  ;;  %v12712_v11 = vpop.f32.mrf.mxu1  ;;  %v3804_v14 = vcombine.high %v3601_v41, %v3601_v41  ;;  %v3811_v0 = vrot.slane %v3802_v40, %v16299_v51  ;;  %v3818_v50 = vrot.slane %v3803_v9, %v16299_v51 }
 0x377   : > { %v3409_v25 = vmax.f32 %v3319_v26, 0.0  ;;  %v3161_v37 = vadd.f32 %v12711_v61, %v16274_v13  ;;  %13144 = vmatprep.mubr.msk.bf16.mxu0 %vm14503_vm4, %v19990_v24  ;;  %v3825_v44 = vrot.slane %v3601_v41, %v16299_v51  ;;  %v3837_v20 = vcombine.low %v16372_v18, %v3546_v39 }
 0x378   : > { %v16487_v5 = vadd.f32 %v16287_v34, %v3444_v15  ;;  %v12713_v21 = vpop.f32.mrf.mxu1  ;;  %v3832_v47 = vrot.slane %v3804_v14, %v16299_v51  ;;  %v3838_v2 = vcombine.high %v16372_v18, %v3546_v39  ;;  %v3839_v38 = vcombine.high %v16468_v36, %v16468_v36 }
 0x379   : > { %v3445_v49 = vmul.f32 %v16282_v59, %v3409_v25  ;;  %v3322_v31 = vadd.f32 %v3321_v48, %v3161_v37  ;;  %v12714_v45 = vadd.f32 %v12713_v21, %v12712_v11  ;;  %v3834_v57 = vcombine.high %v3811_v0, %v3825_v44 }
 0x37a   : > { %v3552_v60 = vrot.slane %v16487_v5, 3  ;;  %v3609_v63 = vrot.slane %v16487_v5, 6  ;;  %v12715_v22 = vpop.f32.mrf.mxu1  ;;  %v3836_v62 = vcombine.high %v3818_v50, %v3832_v47  ;;  %v3846_v35 = vrot.slane %v3837_v20, %v16299_v51 }
 0x37b   : > { %v16498_v30 = vadd.f32 %v16287_v34, %v3445_v49  ;;  %v3410_v18 = vmax.f32 %v3322_v31, 0.0  ;;  %v3166_v39 = vadd.f32 %v12714_v45, %v16274_v13  ;;  %v16502_v41 = vrot.slane %v3838_v2, %v16299_v51 }
 0x37c   : > { %v3860_v17 = vrot.slane %v16468_v36, %v16299_v51  ;;  %v12492_v42 = vcombine.low %v3801_v1, %v3811_v0  ;;  %v12494_v23 = vcombine.low %v3834_v57, %v3818_v50  ;;  %v12496_v29 = vcombine.low %v3836_v62, %v3846_v35  ;;  %v12716_v40 = vpop.f32.mrf.mxu1 }
 0x37d   : > { %v3554_v9 = vrot.slane %v16498_v30, 3  ;;  %v3611_v26 = vrot.slane %v16498_v30, 6  ;;  %v3446_v61 = vmul.f32 %v16282_v59, %v3410_v18  ;;  %v3327_v15 = vadd.f32 %v16425_v4, %v3166_v39 }
 0x37e   : > { %v3869_v11 = vcombine.high %v3846_v35, %v3860_v17  ;;  %v4764_v14 = vrot.slane %v12492_v42, %v16299_v51  ;;  %v4778_v25 = vrot.slane %v12494_v23, %v16299_v51  ;;  %v4799_v37 = vrot.slane %v12496_v29, %v16299_v51  ;;  %v12718_v36 = vpop.f32.mrf.mxu1 }
 0x37f   : > { %v16514_v1 = vadd.f32 %v16287_v34, %v3446_v61  ;;  %v3411_v20 = vmax.f32 %v3327_v15, 0.0  ;;  %v3833_v48 = vcombine.low %v3811_v0, %v3825_v44  ;;  %v3835_v21 = vcombine.low %v3818_v50, %v3832_v47 }
 0x380   : > { %v4787_v2 = vcombine.high %v4764_v14, %v4778_v25  ;;  %v12498_v49 = vcombine.low %v3869_v11, %v16502_v41  ;;  %v16518_v31 = vrot.slane %v3839_v38, %v16299_v51  ;;  %v3868_v4 = vcombine.low %v3846_v35, %v3860_v17  ;;  %v12719_v45 = vpop.f32.mrf.mxu1 }
 0x381   : > { %v3555_v57 = vrot.slane %v16514_v1, 3  ;;  %v3612_v62 = vrot.slane %v16514_v1, 6  ;;  %v3447_v18 = vmul.f32 %v16282_v59, %v3411_v20  ;;  %v12493_v39 = vcombine.high %v16418_v28, %v3833_v48 }
 0x382   : > { %v4813_v42 = vrot.slane %v12498_v49, %v16299_v51  ;;  %v3870_v0 = vcombine.low %v16502_v41, %v16518_v31  ;;  %v12495_v50 = vcombine.high %v3825_v44, %v3835_v21  ;;  %v12497_v23 = vcombine.high %v3832_v47, %v3868_v4  ;;  %v16527_v29 = vpop.f32.mrf.mxu1 }
 0x383   : > { %v16530_v38 = vadd.f32 %v16287_v34, %v3447_v18  ;;  %v4771_v35 = vrot.slane %v12493_v39, %v16299_v51  ;;  %v4786_v61 = vcombine.low %v4764_v14, %v4778_v25  ;;  %v12717_v15 = vadd.f32 %v12716_v40, %v12715_v22 }
 0x384   : > { %v4822_v11 = vcombine.high %v4799_v37, %v4813_v42  ;;  %v4785_v20 = vrot.slane %v12495_v50, %v16299_v51  ;;  %v12499_v28 = vcombine.high %v3860_v17, %v3870_v0  ;;  %v4806_v48 = vrot.slane %v12497_v23, %v16299_v51  ;;  %v16535_v49 = vpop.f32.mrf.mxu1 }
 0x385   : > { %v19989_v47 = vrot.slane %v16530_v38, 6  ;;  %v4821_v21 = vcombine.low %v4799_v37, %v4813_v42  ;;  %v3169_v4 = vadd.f32 %v12717_v15, %v16274_v13  ;;  %v12720_v40 = vadd.f32 %v12719_v45, %v12718_v36  ;;  %v3334_v42 = vpop.f32.mrf.mxu0 }
 0x386   : > { %v5609_v18 = vpack.c.bf16 %v4822_v11, %v4787_v2  ;;  %v4788_v14 = vcombine.low %v4771_v35, %v4785_v20  ;;  %v4820_v22 = vrot.slane %v12499_v28, %v16299_v51  ;;  %v16543_v25 = vpop.f32.mrf.mxu1  ;;  %v3548_v0 = vrot.slane %v16435_v53, 3 }
 0x387   : > { %v5608_v17 = vpack.c.bf16 %v4821_v21, %v4786_v61  ;;  %v3330_v39 = vadd.f32 %v16472_v19, %v3169_v4  ;;  %v3871_v50 = vcombine.high %v16502_v41, %v16518_v31  ;;  %v3174_v37 = vadd.f32 %v12720_v40, %v16274_v13 }
 0x388   : > { %5885 = vmatprep.mubr.bf16.mxu1 %v5609_v18  ;;  %v4823_v23 = vcombine.low %v4806_v48, %v4820_v22  ;;  %v3872_v2 = vcombine.low %v16393_v6, %v3545_v55  ;;  %v3886_v36 = vrot.slane %v3602_v32, %v16299_v51  ;;  %v12725_v45 = vpop.f32.mrf.mxu1  ;;  %v3549_v41 = vsel %vm784_vm1, %v3547_v16, %v3548_v0 }
 0x389   : > { %5886 = vmatmul.mubr.bf16.gmra.mxu1 %v5608_v17  ;;  %v3412_v19 = vmax.f32 %v3330_v39, 0.0  ;;  %v16562_v35 = vsel %vm784_vm1, %v3548_v0, %v3550_v54  ;;  %v3606_v6 = vsel %vm3589_vm5, %v3604_v46, %v3605_v52  ;;  %v3335_v32 = vadd.f32 %v3334_v42, %v3174_v37 }
 0x38a   : > { %v5610_v55 = vpack.c.bf16 %v4823_v23, %v4788_v14  ;;  %v3879_v61 = vrot.slane %v3872_v2, %v16299_v51  ;;  %v3888_v15 = vcombine.low %v16421_v12, %v3549_v41  ;;  %v12727_v11 = vpop.f32.mrf.mxu1  ;;  %v3889_v20 = vcombine.high %v16421_v12, %v3549_v41 }
 0x38b   : > { %v3448_v16 = vmul.f32 %v16282_v59, %v3412_v19  ;;  %v3923_v28 = vcombine.low %v16435_v53, %v16562_v35  ;;  %v16580_v46 = vsel %vm3589_vm5, %v3605_v52, %v3607_v10  ;;  %v3413_v48 = vmax.f32 %v3335_v32, 0.0  ;;  %v13107_v19 = vpop.f32.mrf.mxu0 }
 0x38c   : > { %13145 = vmatmul.mubr.bf16.gmra.mxu0 %v5610_v55  ;;  %v3887_v21 = vcombine.low %v3879_v61, %v3886_v36  ;;  %v3897_v4 = vrot.slane %v3888_v15, %v16299_v51  ;;  %v12500_v18 = vcombine.low %v3871_v50, %v3879_v61  ;;  %v12728_v14 = vpop.f32.mrf.mxu1  ;;  %v3904_v12 = vrot.slane %v3889_v20, %v16299_v51 }
 0x38d   : > { %v16584_v22 = vadd.f32 %v16287_v34, %v3448_v16  ;;  %13148 = vmatprep.mubr.msk.bf16.mxu0 %vm14503_vm4, %v19990_v24  ;;  %v3932_v40 = vrot.slane %v3923_v28, %v16299_v51  ;;  %v3890_v17 = vcombine.high %v3606_v6, %v3606_v6  ;;  %v3449_v52 = vmul.f32 %v16282_v59, %v3413_v48  ;;  %v3337_v37 = vpop.f32.mrf.mxu0 }
 0x38e   : > { %v4834_v39 = vrot.slane %v12500_v18, %v16299_v51  ;;  %v4848_v0 = vrot.slane %v3897_v4, %v16299_v51  ;;  %v3911_v50 = vrot.slane %v3606_v6, %v16299_v51  ;;  %v12730_v23 = vpop.f32.mrf.mxu1  ;;  %v4869_v36 = vrot.slane %v3904_v12, %v16299_v51 }
 0x38f   : > { %v19988_v2 = vrot.slane %v16584_v22, 6  ;;  %v4883_v42 = vrot.slane %v3932_v40, %v16299_v51  ;;  %v16599_v41 = vadd.f32 %v16287_v34, %v3449_v52  ;;  %v3918_v32 = vrot.slane %v3890_v17, %v16299_v51 }
 0x390   : > { %v4857_v55 = vcombine.high %v4834_v39, %v4848_v0  ;;  %v3946_v61 = vrot.slane %v16580_v46, %v16299_v51  ;;  %v12731_v6 = vpop.f32.mrf.mxu1  ;;  %v12501_v20 = vcombine.high %v16518_v31, %v3887_v21  ;;  %v4855_v28 = vrot.slane %v3911_v50, %v16299_v51 }
 0x391   : > { %v16609_v15 = vsel %vm3589_vm5, %v19989_v47, %v19988_v2  ;;  %v4892_v16 = vcombine.high %v4869_v36, %v4883_v42  ;;  %v3561_v48 = vrot.slane %v16599_v41, 3  ;;  %v4876_v18 = vrot.slane %v3918_v32, %v16299_v51 }
 0x392   : > { %v4890_v12 = vrot.slane %v3946_v61, %v16299_v51  ;;  %v16617_v40 = vpop.f32.mrf.mxu1  ;;  %v4841_v52 = vrot.slane %v12501_v20, %v16299_v51  ;;  %v4856_v2 = vcombine.low %v4834_v39, %v4848_v0  ;;  %v4891_v47 = vcombine.low %v4869_v36, %v4883_v42 }
 0x393   : > { %v5612_v17 = vpack.c.bf16 %v4892_v16, %v4857_v55  ;;  %v12723_v31 = vadd.f32 %v16535_v49, %v16527_v29  ;;  %v12726_v21 = vadd.f32 %v12725_v45, %v16543_v25  ;;  %v12729_v50 = vadd.f32 %v12728_v14, %v12727_v11 }
 0x394   : > { %v4893_v44 = vcombine.low %v4876_v18, %v4890_v12  ;;  %v16623_v4 = vpop.f32.mrf.mxu1  ;;  %v4858_v32 = vcombine.low %v4841_v52, %v4855_v28  ;;  %v5611_v61 = vpack.c.bf16 %v4891_v47, %v4856_v2  ;;  %v3610_v39 = vsel %vm3589_vm5, %v3607_v10, %v3609_v63  ;;  %v16648_v2 = vpop.f32.mrf.mxu0 }
 0x395   : > { %5893 = vmatprep.mubr.bf16.mxu1 %v5612_v17  ;;  %v16635_v29 = vsel %vm3589_vm5, %v3611_v26, %v3612_v62  ;;  %v3177_v49 = vadd.f32 %v12723_v31, %v16274_v13  ;;  %v3182_v25 = vadd.f32 %v12726_v21, %v16274_v13  ;;  %v3185_v45 = vadd.f32 %v12729_v50, %v16274_v13 }
 0x396   : > { %v3925_v47 = vcombine.high %v16580_v46, %v16580_v46  ;;  %v16642_v11 = vpop.f32.mrf.mxu1  ;;  %v5613_v14 = vpack.c.bf16 %v4893_v44, %v4858_v32  ;;  %5894 = vmatmul.mubr.bf16.gmra.mxu1 %v5611_v61  ;;  %v3960_v10 = vcombine.high %v3610_v39, %v3610_v39  ;;  %v3981_v0 = vrot.slane %v3610_v39, %v16299_v51  ;;  %v3350_v21 = vpop.f32.mrf.mxu0 }
 0x397   : > { %v4007_v26 = vrot.slane %v3609_v63, %v16299_v51  ;;  %v3338_v36 = vadd.f32 %v3337_v37, %v3177_v49  ;;  %v3343_v42 = vadd.f32 %v16537_v56, %v3182_v25  ;;  %v3346_v55 = vadd.f32 %v13107_v19, %v3185_v45 }
 0x398   : > { %v3953_v16 = vrot.slane %v3925_v47, %v16299_v51  ;;  %v16652_v46 = vpop.f32.mrf.mxu1  ;;  %13149 = vmatmul.mubr.bf16.gmra.mxu0 %v5613_v14  ;;  %v3988_v44 = vrot.slane %v3960_v10, %v16299_v51  ;;  %v16657_v20 = vrot.slane %v16635_v29, %v16299_v51  ;;  %v4925_v28 = vrot.slane %v3981_v0, %v16299_v51  ;;  %v13733_v47 = vld [vmem:[#allocation10 + $0x30] sm:$0xff]  }
 0x399   : > { %v12732_v63 = vadd.f32 %v12731_v6, %v12730_v23  ;;  %v3414_v18 = vmax.f32 %v3338_v36, 0.0  ;;  %v3415_v12 = vmax.f32 %v3343_v42, 0.0  ;;  %v3416_v37 = vmax.f32 %v3346_v55, 0.0  ;;  %13152 = vmatprep.mubr.msk.bf16.mxu0 %vm14503_vm4, %v19990_v24  ;;  %v13732_v6 = vld [vmem:[#allocation10 + $0x38] sm:$0xff]  }
 0x39a   : > { %v4911_v56 = vrot.slane %v3953_v16, %v16299_v51  ;;  %v16663_v19 = vpop.f32.mrf.mxu1  ;;  %v12503_v17 = vcombine.low %v4007_v26, %v16657_v20  ;;  %v4946_v52 = vrot.slane %v3988_v44, %v16299_v51  ;;  %v3553_v23 = vsel %vm784_vm1, %v3550_v54, %v3552_v60  ;;  %13189 = vmatpush3.bf16.msra.mxu1 %v13732_v6  ;;  %v16715_v6 = vpop.f32.mrf.mxu0 }
 0x39b   : > { %v3190_v31 = vadd.f32 %v12732_v63, %v16274_v13  ;;  %v3450_v50 = vmul.f32 %v16282_v59, %v3414_v18  ;;  %v3451_v32 = vmul.f32 %v16282_v59, %v3415_v12  ;;  %v3452_v61 = vmul.f32 %v16282_v59, %v3416_v37  ;;  %13190 = vmatprep.subr.bf16.mxu1 %v19990_v24 }
 0x39c   : > { %v4928_v39 = vcombine.low %v4911_v56, %v4925_v28  ;;  %v4960_v49 = vrot.slane %v12503_v17, %v16299_v51  ;;  %v3556_v45 = vsel %vm784_vm1, %v3554_v9, %v3555_v57  ;;  %v3924_v54 = vcombine.high %v16435_v53, %v16562_v35  ;;  %v16694_v36 = vpop.f32.mrf.mxu1  ;;  %v13734_v56 = vld [vmem:[#allocation10 + $0x28] sm:$0xff]  }
 0x39d   : > { %v3351_v25 = vadd.f32 %v3350_v21, %v3190_v31  ;;  %v16685_v14 = vadd.f32 %v16287_v34, %v3450_v50  ;;  %v16688_v10 = vadd.f32 %v16287_v34, %v3451_v32  ;;  %v16691_v0 = vadd.f32 %v16287_v34, %v3452_v61 }
 0x39e   : > { %v3958_v26 = vcombine.low %v16460_v27, %v3553_v23  ;;  %v4963_v9 = vcombine.low %v4946_v52, %v4960_v49  ;;  %v3939_v53 = vrot.slane %v3924_v54, %v16299_v51  ;;  %v3959_v35 = vcombine.high %v16460_v27, %v3553_v23  ;;  %13191 = vmatpush3.bf16.msra.mxu1 %v13733_v47  ;;  %v16712_v23 = vpop.f32.mrf.mxu1 }
 0x39f   : > { %v3417_v42 = vmax.f32 %v3351_v25, 0.0  ;;  %v3619_v55 = vrot.slane %v16685_v14, 6  ;;  %v3564_v16 = vrot.slane %v16688_v10, 3  ;;  %v3621_v44 = vrot.slane %v16688_v10, 6  ;;  %13192 = vmatprep.subr.bf16.mxu1 %v19990_v24  ;;  %v13737_v25 = vld [vmem:[#allocation10 + $0x10] sm:$0xff]  }
 0x3a0   : > { %v3566_v28 = vrot.slane %v16691_v0, 3  ;;  %v3623_v63 = vrot.slane %v16691_v0, 6  ;;  %v5616_v18 = vpack.c.bf16 %v4963_v9, %v4928_v39  ;;  %v3967_v37 = vrot.slane %v3958_v26, %v16299_v51 }
 0x3a1   : > { %v3453_v12 = vmul.f32 %v16282_v59, %v3417_v42  ;;  %v3974_v17 = vrot.slane %v3959_v35, %v16299_v51  ;;  %v3993_v27 = vcombine.low %v16487_v5, %v3552_v60  ;;  %v4009_v52 = vcombine.low %v16498_v30, %v3556_v45  ;;  %v3353_v42 = vpop.f32.mrf.mxu0 }
 0x3a2   : > { %v4010_v31 = vcombine.high %v16498_v30, %v3556_v45  ;;  %13153 = vmatmul.mubr.bf16.gmra.mxu0 %v5616_v18  ;;  %v4904_v50 = vrot.slane %v3939_v53, %v16299_v51  ;;  %v4918_v32 = vrot.slane %v3967_v37, %v16299_v51  ;;  %v12735_v5 = vadd.f32 %v16623_v4, %v16617_v40  ;;  %v13735_v4 = vld [vmem:[#allocation10 + $0x20] sm:$0xff]  }
 0x3a3   : > { %v16718_v21 = vadd.f32 %v16287_v34, %v3453_v12  ;;  %v4000_v60 = vrot.slane %v3993_v27, %v16299_v51  ;;  %v4018_v30 = vrot.slane %v4009_v52, %v16299_v51  ;;  %v4939_v61 = vrot.slane %v3974_v17, %v16299_v51  ;;  %13156 = vmatprep.mubr.msk.bf16.mxu0 %vm14503_vm4, %v19990_v24 }
 0x3a4   : > { %v12738_v39 = vadd.f32 %v16652_v46, %v16642_v11  ;;  %v4927_v45 = vcombine.high %v4904_v50, %v4918_v32  ;;  %v4926_v54 = vcombine.low %v4904_v50, %v4918_v32  ;;  %13193 = vmatpush3.bf16.msra.mxu1 %v13734_v56  ;;  %v3193_v47 = vadd.f32 %v12735_v5, %v16274_v13  ;;  %v16740_v46 = vpop.f32.mrf.mxu1 }
 0x3a5   : > { %v3568_v49 = vrot.slane %v16718_v21, 3  ;;  %v12502_v40 = vcombine.low %v4000_v60, %v4018_v30  ;;  %v20230_v9 = vrot.slane %v16530_v38, 3  ;;  %13194 = vmatprep.subr.bf16.mxu1 %v19990_v24  ;;  %v20231_v53 = vrot.slane %v16584_v22, 3 }
 0x3a6   : > { %v3198_v26 = vadd.f32 %v12738_v39, %v16274_v13  ;;  %v20233_v12 = vrot.slane %v16530_v38, 6  ;;  %v4025_v56 = vrot.slane %v4010_v31, %v16299_v51  ;;  %v3354_v27 = vadd.f32 %v3353_v42, %v3193_v47 }
 0x3a7   : > { %v3558_v11 = vsel %vm784_vm1, %v3555_v57, %v20230_v9  ;;  %v20232_v35 = vmov %v20230_v9  ;;  %v4011_v57 = vcombine.high %v16635_v29, %v16635_v29  ;;  %v4953_v17 = vrot.slane %v12502_v40, %v16299_v51 }
 0x3a8   : > { %v16748_v18 = vsel %vm784_vm1, %v20232_v35, %v20231_v53  ;;  %v3615_v37 = vsel %vm3589_vm5, %v3612_v62, %v20233_v12  ;;  %v3359_v52 = vadd.f32 %v16648_v2, %v3198_v26  ;;  %v4041_v50 = vcombine.high %v4018_v30, %v16657_v20  ;;  %13195 = vmatpush3.bf16.msra.mxu1 %v13735_v4  ;;  %v13736_v62 = vld [vmem:[#allocation10 + $0x18] sm:$0xff]   ;;  %v16764_v35 = vpop.f32.mrf.mxu1 }
 0x3a9   : > { %v4039_v32 = vrot.slane %v4011_v57, %v16299_v51  ;;  %v4044_v5 = vcombine.low %v16514_v1, %v3558_v11  ;;  %v4045_v60 = vcombine.high %v16514_v1, %v3558_v11  ;;  %v4046_v39 = vcombine.high %v3615_v37, %v3615_v37  ;;  %13196 = vmatprep.subr.bf16.mxu1 %v19990_v24 }
 0x3aa   : > { %v4962_v9 = vcombine.high %v4939_v61, %v4953_v17  ;;  %v4961_v29 = vcombine.low %v4939_v61, %v4953_v17  ;;  %v3418_v53 = vmax.f32 %v3354_v27, 0.0  ;;  %v3419_v31 = vmax.f32 %v3359_v52, 0.0  ;;  %v16781_v27 = vpop.f32.mrf.mxu1 }
 0x3ab   : > { %v4043_v2 = vcombine.high %v4025_v56, %v4039_v32  ;;  %v4053_v30 = vrot.slane %v4044_v5, %v16299_v51  ;;  %v4060_v40 = vrot.slane %v4045_v60, %v16299_v51  ;;  %v4067_v47 = vrot.slane %v3615_v37, %v16299_v51 }
 0x3ac   : > { %v5615_v26 = vpack.c.bf16 %v4962_v9, %v4927_v45  ;;  %v5614_v1 = vpack.c.bf16 %v4961_v29, %v4926_v54  ;;  %v3454_v4 = vmul.f32 %v16282_v59, %v3418_v53  ;;  %v3455_v11 = vmul.f32 %v16282_v59, %v3419_v31  ;;  %13197 = vmatpush3.bf16.msra.mxu1 %v13736_v62 }
 0x3ad   : > { %v4074_v61 = vrot.slane %v4046_v39, %v16299_v51  ;;  %v4076_v42 = vcombine.high %v4053_v30, %v4067_v47  ;;  %v4079_v12 = vcombine.low %v16530_v38, %v16748_v18  ;;  %v12504_v57 = vcombine.low %v4041_v50, %v4025_v56  ;;  %13198 = vmatprep.subr.bf16.mxu1 %v19990_v24 }
 0x3ae   : > { %5901 = vmatprep.mubr.bf16.mxu1 %v5615_v26  ;;  %v16776_v17 = vadd.f32 %v16287_v34, %v3454_v4  ;;  %v16779_v37 = vadd.f32 %v16287_v34, %v3455_v11  ;;  %v12506_v45 = vcombine.low %v4043_v2, %v4053_v30  ;;  %v4042_v54 = vcombine.low %v4025_v56, %v4039_v32 }
 0x3af   : > { %5902 = vmatmul.mubr.bf16.gmra.mxu1 %v5614_v1  ;;  %v4078_v52 = vcombine.high %v4060_v40, %v4074_v61  ;;  %v4088_v5 = vrot.slane %v4079_v12, %v16299_v51  ;;  %v4974_v60 = vrot.slane %v12504_v57, %v16299_v51  ;;  %v12508_v39 = vcombine.low %v4076_v42, %v4060_v40  ;;  %v16799_v42 = vpop.f32.mrf.mxu1 }
 0x3b0   : > { %v3569_v50 = vrot.slane %v16776_v17, 3  ;;  %v4988_v56 = vrot.slane %v12506_v45, %v16299_v51  ;;  %v4075_v2 = vcombine.low %v4053_v30, %v4067_v47  ;;  %v4077_v26 = vcombine.low %v4060_v40, %v4074_v61  ;;  %13199 = vmatpush3.bf16.msra.mxu1 %v13737_v25 }
 0x3b1   : > { %v12510_v53 = vcombine.low %v4078_v52, %v4088_v5  ;;  %v5009_v31 = vrot.slane %v12508_v39, %v16299_v51  ;;  %v16794_v1 = vrot.slane %v16609_v15, %v16299_v51  ;;  %v12505_v4 = vcombine.high %v16657_v20, %v4042_v54  ;;  %13200 = vmatprep.subr.bf16.mxu1 %v19990_v24 }
 0x3b2   : > { %v12741_v11 = vadd.f32 %v16694_v36, %v16663_v19  ;;  %v4997_v12 = vcombine.high %v4974_v60, %v4988_v56  ;;  %v4996_v45 = vcombine.low %v4974_v60, %v4988_v56  ;;  %v12507_v52 = vcombine.high %v4039_v32, %v4075_v2  ;;  %v16811_v56 = vpop.f32.mrf.mxu1 }
 0x3b3   : > { %v5023_v57 = vrot.slane %v12510_v53, %v16299_v51  ;;  %v4110_v39 = vcombine.low %v4088_v5, %v16794_v1  ;;  %v4981_v30 = vrot.slane %v12505_v4, %v16299_v51  ;;  %v12509_v40 = vcombine.high %v4067_v47, %v4077_v26  ;;  %v16819_v26 = vpop.f32.mrf.mxu0 }
 0x3b4   : > { %v3201_v29 = vadd.f32 %v12741_v11, %v16274_v13  ;;  %v4995_v54 = vrot.slane %v12507_v52, %v16299_v51  ;;  %v3562_v19 = vrot.slane %v16685_v14, 3  ;;  %v4080_v32 = vcombine.high %v16530_v38, %v16748_v18 }
 0x3b5   : > { %v5032_v62 = vcombine.high %v5009_v31, %v5023_v57  ;;  %v5031_v20 = vcombine.low %v5009_v31, %v5023_v57  ;;  %v12511_v36 = vcombine.high %v4074_v61, %v4110_v39  ;;  %v5016_v9 = vrot.slane %v12509_v40, %v16299_v51  ;;  %v13738_v61 = vld [vmem:[#allocation10 + $0x8] sm:$0xff]   ;;  %v16836_v39 = vpop.f32.mrf.mxu1 }
 0x3b6   : > { %v3362_v60 = vadd.f32 %v16715_v6, %v3201_v29  ;;  %v4998_v2 = vcombine.low %v4981_v30, %v4995_v54  ;;  %v3563_v31 = vsel %vm784_vm1, %v3561_v48, %v3562_v19  ;;  %v4081_v25 = vcombine.high %v16609_v15, %v16609_v15  ;;  %13201 = vmatpush3.bf16.msra.mxu1 %v13738_v61 }
 0x3b7   : > { %v5618_v47 = vpack.c.bf16 %v5032_v62, %v4997_v12  ;;  %v5617_v53 = vpack.c.bf16 %v5031_v20, %v4996_v45  ;;  %v5030_v6 = vrot.slane %v12511_v36, %v16299_v51  ;;  %v4095_v18 = vrot.slane %v4080_v32, %v16299_v51  ;;  %v3366_v20 = vpop.f32.mrf.mxu0  ;;  %13202 = vmatprep.subr.bf16.mxu1 %v19990_v24 }
 0x3b8   : > { %v3420_v38 = vmax.f32 %v3362_v60, 0.0  ;;  %v4111_v62 = vcombine.high %v4088_v5, %v16794_v1  ;;  %v20234_v29 = vrot.slane %v16584_v22, 3  ;;  %v20235_v4 = vrot.slane %v16584_v22, 6 }
 0x3b9   : > { %5909 = vmatprep.mubr.bf16.mxu1 %v5618_v47  ;;  %v4130_v12 = vcombine.low %v16599_v41, %v3563_v31  ;;  %v5033_v57 = vcombine.low %v5016_v9, %v5030_v6  ;;  %v4109_v15 = vrot.slane %v4081_v25, %v16299_v51  ;;  %v4131_v52 = vcombine.high %v16599_v41, %v3563_v31  ;;  %v16853_v6 = vpop.f32.mrf.mxu1 }
 0x3ba   : > { %v4114_v48 = vcombine.low %v16584_v22, %v20234_v29  ;;  %v4128_v11 = vrot.slane %v20235_v4, %v16299_v51  ;;  %5910 = vmatmul.mubr.bf16.gmra.mxu1 %v5617_v53  ;;  %v3456_v45 = vmul.f32 %v16282_v59, %v3420_v38  ;;  %v12512_v40 = vcombine.low %v4111_v62, %v4095_v18  ;;  %v16862_v4 = vpop.f32.mrf.mxu0 }
 0x3bb   : > { %v4139_v30 = vrot.slane %v4130_v12, %v16299_v51  ;;  %v12744_v22 = vadd.f32 %v16740_v46, %v16712_v23  ;;  %v5619_v54 = vpack.c.bf16 %v5033_v57, %v4998_v2  ;;  %v4113_v36 = vcombine.high %v4095_v18, %v4109_v15 }
 0x3bc   : > { %v4121_v5 = vrot.slane %v4114_v48, %v16299_v51  ;;  %v16843_v9 = vadd.f32 %v16287_v34, %v3456_v45  ;;  %v4146_v60 = vrot.slane %v4131_v52, %v16299_v51  ;;  %v5044_v47 = vrot.slane %v12512_v40, %v16299_v51 }
 0x3bd   : > { %v5079_v53 = vrot.slane %v4139_v30, %v16299_v51  ;;  %v3206_v31 = vadd.f32 %v12744_v22, %v16274_v13  ;;  %13157 = vmatmul.mubr.bf16.gmra.mxu0 %v5619_v54  ;;  %v20236_v25 = vrot.slane %v16599_v41, 6  ;;  %v4112_v29 = vcombine.low %v4095_v18, %v4109_v15  ;;  %v13739_v22 = vld [vmem:[#allocation10] sm:$0xff]   ;;  %v16871_v54 = vpop.f32.mrf.mxu1 }
 0x3be   : > { %v4129_v32 = vcombine.low %v4121_v5, %v4128_v11  ;;  %v3573_v23 = vrot.slane %v16843_v9, 3  ;;  %v3630_v46 = vrot.slane %v16843_v9, 6  ;;  %v12514_v2 = vcombine.low %v4113_v36, %v4121_v5  ;;  %13160 = vmatprep.mubr.msk.bf16.mxu0 %vm14503_vm4, %v19990_v24  ;;  %13203 = vmatpush3.bf16.msra.mxu1 %v13739_v22 }
 0x3bf   : > { %v5093_v61 = vrot.slane %v4146_v60, %v16299_v51  ;;  %v3367_v38 = vadd.f32 %v3366_v20, %v3206_v31  ;;  %v3620_v62 = vsel %vm3589_vm5, %v20236_v25, %v3619_v55  ;;  %v12513_v30 = vcombine.high %v16794_v1, %v4112_v29  ;;  %13324 = vmatprep.subr.bf16.mxu1 %v19990_v24 }
 0x3c0   : > { %v12515_v48 = vcombine.high %v4109_v15, %v4129_v32  ;;  %v5058_v11 = vrot.slane %v12514_v2, %v16299_v51  ;;  %v4132_v45 = vcombine.high %v3620_v62, %v3620_v62  ;;  %v4153_v5 = vrot.slane %v3620_v62, %v16299_v51 }
 0x3c1   : > { %v5102_v12 = vcombine.high %v5079_v53, %v5093_v61  ;;  %v5101_v57 = vcombine.low %v5079_v53, %v5093_v61  ;;  %v3421_v52 = vmax.f32 %v3367_v38, 0.0  ;;  %v12747_v15 = vadd.f32 %v16781_v27, %v16764_v35 }
 0x3c2   : > { %v5065_v40 = vrot.slane %v12515_v48, %v16299_v51  ;;  %v5067_v41 = vcombine.high %v5044_v47, %v5058_v11  ;;  %v5066_v20 = vcombine.low %v5044_v47, %v5058_v11  ;;  %v4160_v18 = vrot.slane %v4132_v45, %v16299_v51  ;;  %v3369_v47 = vpop.f32.mrf.mxu0  ;;  %v12755_v11 = vpop.f32.mrf.mxu1 }
 0x3c3   : > { %v3457_v36 = vmul.f32 %v16282_v59, %v3421_v52  ;;  %v5051_v60 = vrot.slane %v12513_v30, %v16299_v51  ;;  %v5086_v32 = vrot.slane %v4153_v5, %v16299_v51  ;;  %v3565_v1 = vsel %vm784_vm1, %v3562_v19, %v3564_v16 }
 0x3c4   : > { %v5621_v53 = vpack.c.bf16 %v5102_v12, %v5067_v41  ;;  %v5620_v31 = vpack.c.bf16 %v5101_v57, %v5066_v20  ;;  %v5100_v35 = vrot.slane %v4160_v18, %v16299_v51  ;;  %v3209_v27 = vadd.f32 %v12747_v15, %v16274_v13 }
 0x3c5   : > { %v16885_v2 = vadd.f32 %v16287_v34, %v3457_v36  ;;  %v5068_v61 = vcombine.low %v5051_v60, %v5065_v40  ;;  %v3567_v19 = vsel %vm784_vm1, %v3564_v16, %v3566_v28  ;;  %v4165_v38 = vcombine.low %v16685_v14, %v3565_v1  ;;  %v16899_v16 = vpop.f32.mrf.mxu0 }
 0x3c6   : > { %5917 = vmatprep.mubr.bf16.mxu1 %v5621_v53  ;;  %v5103_v25 = vcombine.low %v5086_v32, %v5100_v35  ;;  %v3370_v62 = vadd.f32 %v3369_v47, %v3209_v27  ;;  %v4166_v29 = vcombine.high %v16685_v14, %v3565_v1  ;;  %v4200_v48 = vcombine.low %v16688_v10, %v3567_v19 }
 0x3c7   : > { %v3575_v12 = vrot.slane %v16885_v2, 3  ;;  %v3632_v57 = vrot.slane %v16885_v2, 6  ;;  %5918 = vmatmul.mubr.bf16.gmra.mxu1 %v5620_v31  ;;  %v4174_v45 = vrot.slane %v4165_v38, %v16299_v51  ;;  %v4201_v52 = vcombine.high %v16688_v10, %v3567_v19  ;;  %v3382_v53 = vpop.f32.mrf.mxu0 }
 0x3c8   : > { %v5622_v5 = vpack.c.bf16 %v5103_v25, %v5068_v61  ;;  %v3422_v30 = vmax.f32 %v3370_v62, 0.0  ;;  %v4181_v40 = vrot.slane %v4166_v29, %v16299_v51  ;;  %v4209_v22 = vrot.slane %v4200_v48, %v16299_v51 }
 0x3c9   : > { %v4216_v41 = vrot.slane %v4201_v52, %v16299_v51  ;;  %v5114_v20 = vrot.slane %v4174_v45, %v16299_v51  ;;  %v12750_v18 = vadd.f32 %v16811_v56, %v16799_v42  ;;  %v3622_v15 = vsel %vm3589_vm5, %v3619_v55, %v3621_v44  ;;  %v12757_v42 = vpop.f32.mrf.mxu1 }
 0x3ca   : > { %13161 = vmatmul.mubr.bf16.gmra.mxu0 %v5622_v5  ;;  %v3458_v36 = vmul.f32 %v16282_v59, %v3422_v30  ;;  %v5128_v60 = vrot.slane %v4181_v40, %v16299_v51  ;;  %v5149_v32 = vrot.slane %v4209_v22, %v16299_v51  ;;  %v3624_v1 = vsel %vm3589_vm5, %v3621_v44, %v3623_v63  ;;  %v16935_v22 = vpop.f32.mrf.mxu0 }
 0x3cb   : > { %v5163_v56 = vrot.slane %v4216_v41, %v16299_v51  ;;  %v3214_v14 = vadd.f32 %v12750_v18, %v16274_v13  ;;  %13164 = vmatprep.mubr.msk.bf16.mxu0 %vm14503_vm4, %v19990_v24  ;;  %v4167_v55 = vcombine.high %v3622_v15, %v3622_v15  ;;  %v4188_v47 = vrot.slane %v3622_v15, %v16299_v51  ;;  %v12758_v45 = vpop.f32.mrf.mxu1 }
 0x3cc   : > { %v16926_v31 = vadd.f32 %v16287_v34, %v3458_v36  ;;  %v5137_v35 = vcombine.high %v5114_v20, %v5128_v60  ;;  %v5136_v27 = vcombine.low %v5114_v20, %v5128_v60  ;;  %v4202_v10 = vcombine.high %v3624_v1, %v3624_v1 }
 0x3cd   : > { %v5172_v61 = vcombine.high %v5149_v32, %v5163_v56  ;;  %v3375_v44 = vadd.f32 %v16819_v26, %v3214_v14  ;;  %v5171_v19 = vcombine.low %v5149_v32, %v5163_v56  ;;  %v4195_v38 = vrot.slane %v4167_v55, %v16299_v51 }
 0x3ce   : > { %v3633_v25 = vrot.slane %v16926_v31, 6  ;;  %v4223_v62 = vrot.slane %v3624_v1, %v16299_v51  ;;  %v4230_v29 = vrot.slane %v4202_v10, %v16299_v51  ;;  %v5121_v48 = vrot.slane %v4188_v47, %v16299_v51  ;;  %v3385_v10 = vpop.f32.mrf.mxu0 }
 0x3cf   : > { %v5624_v52 = vpack.c.bf16 %v5172_v61, %v5137_v35  ;;  %v3423_v5 = vmax.f32 %v3375_v44, 0.0  ;;  %v5623_v30 = vpack.c.bf16 %v5171_v19, %v5136_v27  ;;  %v5135_v40 = vrot.slane %v4195_v38, %v16299_v51 }
 0x3d0   : > { %v5156_v26 = vrot.slane %v4223_v62, %v16299_v51  ;;  %v5170_v41 = vrot.slane %v4230_v29, %v16299_v51  ;;  %v12753_v20 = vadd.f32 %v16853_v6, %v16836_v39  ;;  %v12756_v18 = vadd.f32 %v12755_v11, %v16871_v54 }
 0x3d1   : > { %5925 = vmatprep.mubr.bf16.mxu1 %v5624_v52  ;;  %v3459_v15 = vmul.f32 %v16282_v59, %v3423_v5  ;;  %v5138_v36 = vcombine.low %v5121_v48, %v5135_v40  ;;  %v12759_v60 = vadd.f32 %v12758_v45, %v12757_v42  ;;  %v3570_v32 = vsel %vm784_vm1, %v3568_v49, %v3569_v50  ;;  %v12760_v48 = vpop.f32.mrf.mxu1 }
 0x3d2   : > { %5926 = vmatmul.mubr.bf16.gmra.mxu1 %v5623_v30  ;;  %v5173_v1 = vcombine.low %v5156_v26, %v5170_v41  ;;  %v3217_v56 = vadd.f32 %v12753_v20, %v16274_v13  ;;  %v3222_v14 = vadd.f32 %v12756_v18, %v16274_v13  ;;  %v20237_v39 = vrot.slane %v16779_v37, 3 }
 0x3d3   : > { %v16956_v54 = vadd.f32 %v16287_v34, %v3459_v15  ;;  %v3225_v11 = vadd.f32 %v12759_v60, %v16274_v13  ;;  %v20238_v42 = vrot.slane %v16776_v17, 6  ;;  %v20239_v49 = vrot.slane %v16718_v21, 6 }
 0x3d4   : > { %v3572_v6 = vsel %vm784_vm1, %v3569_v50, %v20237_v39  ;;  %v20240_v47 = vrot.slane %v16779_v37, 6  ;;  %v5625_v61 = vpack.c.bf16 %v5173_v1, %v5138_v36  ;;  %v3378_v50 = vadd.f32 %v16862_v4, %v3217_v56  ;;  %v12761_v1 = vpop.f32.mrf.mxu1 }
 0x3d5   : > { %v3627_v55 = vsel %vm3589_vm5, %v20239_v49, %v20238_v42  ;;  %v20241_v35 = vmov %v20238_v42  ;;  %v3383_v44 = vadd.f32 %v3382_v53, %v3222_v14  ;;  %v4235_v19 = vcombine.low %v16691_v0, %v3566_v28 }
 0x3d6   : > { %v3629_v27 = vsel %vm3589_vm5, %v20241_v35, %v20240_v47  ;;  %v3578_v38 = vrot.slane %v16956_v54, 3  ;;  %v3635_v62 = vrot.slane %v16956_v54, 6  ;;  %v3386_v29 = vadd.f32 %v3385_v10, %v3225_v11  ;;  %13165 = vmatmul.mubr.bf16.gmra.mxu0 %v5625_v61 }
 0x3d7   : > { %v4251_v45 = vcombine.low %v16718_v21, %v3570_v32  ;;  %v3424_v52 = vmax.f32 %v3378_v50, 0.0  ;;  %v3425_v5 = vmax.f32 %v3383_v44, 0.0  ;;  %v4242_v30 = vrot.slane %v4235_v19, %v16299_v51  ;;  %13168 = vmatprep.mubr.msk.bf16.mxu0 %vm14503_vm4, %v19990_v24 }
 0x3d8   : > { %v4252_v4 = vcombine.high %v16718_v21, %v3570_v32  ;;  %v3426_v53 = vmax.f32 %v3386_v29, 0.0  ;;  %v4253_v28 = vcombine.high %v3627_v55, %v3627_v55  ;;  %v4274_v26 = vrot.slane %v3627_v55, %v16299_v51  ;;  %v12763_v29 = vpop.f32.mrf.mxu1 }
 0x3d9   : > { %v4260_v40 = vrot.slane %v4251_v45, %v16299_v51  ;;  %v3460_v41 = vmul.f32 %v16282_v59, %v3424_v52  ;;  %v3461_v20 = vmul.f32 %v16282_v59, %v3425_v5  ;;  %v4286_v15 = vcombine.low %v16776_v17, %v3572_v6 }
 0x3da   : > { %v4267_v18 = vrot.slane %v4252_v4, %v16299_v51  ;;  %v3462_v36 = vmul.f32 %v16282_v59, %v3426_v53  ;;  %v4281_v21 = vrot.slane %v4253_v28, %v16299_v51  ;;  %v4287_v32 = vcombine.high %v16776_v17, %v3572_v6 }
 0x3db   : > { %v4283_v60 = vcombine.high %v4260_v40, %v4274_v26  ;;  %v16990_v56 = vadd.f32 %v16287_v34, %v3460_v41  ;;  %v16993_v14 = vadd.f32 %v16287_v34, %v3461_v20  ;;  %v4288_v39 = vcombine.high %v3629_v27, %v3629_v27 }
 0x3dc   : > { %v4295_v11 = vrot.slane %v4286_v15, %v16299_v51  ;;  %v16997_v42 = vadd.f32 %v16287_v34, %v3462_v36  ;;  %v4285_v49 = vcombine.high %v4267_v18, %v4281_v21  ;;  %v17000_v55 = vrot.slane %v4287_v32, %v16299_v51 }
 0x3dd   : > { %v4309_v47 = vrot.slane %v3629_v27, %v16299_v51  ;;  %v3580_v17 = vrot.slane %v16990_v56, 3  ;;  %v3637_v6 = vrot.slane %v16990_v56, 6  ;;  %v3582_v35 = vrot.slane %v16993_v14, 3 }
 0x3de   : > { %v3639_v10 = vrot.slane %v16993_v14, 6  ;;  %v3583_v61 = vrot.slane %v16997_v42, 3  ;;  %v3640_v50 = vrot.slane %v16997_v42, 6  ;;  %v12516_v19 = vcombine.low %v4242_v30, %v4260_v40 }
 0x3df   : > { %v4318_v44 = vcombine.high %v4295_v11, %v4309_v47  ;;  %v12518_v45 = vcombine.low %v4283_v60, %v4267_v18  ;;  %v12520_v52 = vcombine.low %v4285_v49, %v4295_v11  ;;  %v4249_v27 = vrot.slane %v3623_v63, %v16299_v51  ;;  %v12764_v60 = vpop.f32.mrf.mxu1 }
 0x3e0   : > { %v4284_v5 = vcombine.low %v4267_v18, %v4281_v21  ;;  %v5184_v4 = vrot.slane %v12516_v19, %v16299_v51  ;;  %v17015_v28 = vrot.slane %v4288_v39, %v16299_v51  ;;  %v4317_v41 = vcombine.low %v4295_v11, %v4309_v47 }
 0x3e1   : > { %v12522_v53 = vcombine.low %v4318_v44, %v17000_v55  ;;  %v5198_v20 = vrot.slane %v12518_v45, %v16299_v51  ;;  %v5219_v30 = vrot.slane %v12520_v52, %v16299_v51  ;;  %v12517_v40 = vcombine.low %v4249_v27, %v4274_v26 }
 0x3e2   : > { %v12519_v15 = vcombine.high %v4274_v26, %v4284_v5  ;;  %v4319_v0 = vcombine.low %v17000_v55, %v17015_v28  ;;  %v12521_v63 = vcombine.high %v4281_v21, %v4317_v41  ;;  %v12762_v18 = vadd.f32 %v12761_v1, %v12760_v48 }
 0x3e3   : > { %v5233_v36 = vrot.slane %v12522_v53, %v16299_v51  ;;  %v5207_v32 = vcombine.high %v5184_v4, %v5198_v20  ;;  %v5191_v49 = vrot.slane %v12517_v40, %v16299_v51  ;;  %v5206_v11 = vcombine.low %v5184_v4, %v5198_v20 }
 0x3e4   : > { %v5205_v39 = vrot.slane %v12519_v15, %v16299_v51  ;;  %v12523_v19 = vcombine.high %v4309_v47, %v4319_v0  ;;  %v5226_v45 = vrot.slane %v12521_v63, %v16299_v51  ;;  %v3230_v27 = vadd.f32 %v12762_v18, %v16274_v13 }
 0x3e5   : > { %v5242_v44 = vcombine.high %v5219_v30, %v5233_v36  ;;  %v5241_v52 = vcombine.low %v5219_v30, %v5233_v36  ;;  %v12765_v5 = vadd.f32 %v12764_v60, %v12763_v29  ;;  %v20242_v48 = vrot.slane %v16779_v37, 3 }
 0x3e6   : > { %v5208_v26 = vcombine.low %v5191_v49, %v5205_v39  ;;  %v5240_v53 = vrot.slane %v12523_v19, %v16299_v51  ;;  %v3576_v4 = vrot.slane %v16926_v31, 3  ;;  %v3391_v47 = vadd.f32 %v16899_v16, %v3230_v27 }
 0x3e7   : > { %v3574_v21 = vsel %vm784_vm1, %v20242_v48, %v3573_v23  ;;  %v5627_v1 = vpack.c.bf16 %v5242_v44, %v5207_v32  ;;  %v5626_v41 = vpack.c.bf16 %v5241_v52, %v5206_v11  ;;  %v3233_v20 = vadd.f32 %v12765_v5, %v16274_v13 }
 0x3e8   : > { %v20243_v29 = vrot.slane %v16779_v37, 6  ;;  %v4320_v40 = vcombine.high %v17000_v55, %v17015_v28  ;;  %v5243_v15 = vcombine.low %v5226_v45, %v5240_v53  ;;  %v17045_v36 = vsel %vm784_vm1, %v3575_v12, %v3576_v4 }
 0x3e9   : > { %5933 = vmatprep.mubr.bf16.mxu1 %v5627_v1  ;;  %v4321_v16 = vcombine.low %v16779_v37, %v3574_v21  ;;  %v4322_v13 = vcombine.high %v16779_v37, %v3574_v21  ;;  %v3427_v0 = vmax.f32 %v3391_v47, 0.0  ;;  %v3394_v63 = vadd.f32 %v16935_v22, %v3233_v20 }
 0x3ea   : > { %v3631_v30 = vsel %vm3589_vm5, %v20243_v29, %v3630_v46  ;;  %5934 = vmatmul.mubr.bf16.gmra.mxu1 %v5626_v41  ;;  %v5628_v32 = vpack.c.bf16 %v5243_v15, %v5208_v26  ;;  %v4356_v12 = vcombine.low %v16843_v9, %v3573_v23  ;;  %v4370_v22 = vrot.slane %v3630_v46, %v16299_v51 }
 0x3eb   : > { %v4323_v18 = vcombine.high %v3631_v30, %v3631_v30  ;;  %v4344_v60 = vrot.slane %v3631_v30, %v16299_v51  ;;  %v4330_v55 = vrot.slane %v4321_v16, %v16299_v51  ;;  %v4337_v49 = vrot.slane %v4322_v13, %v16299_v51 }
 0x3ec   : > { %v3463_v39 = vmul.f32 %v16282_v59, %v3427_v0  ;;  %v3428_v11 = vmax.f32 %v3394_v63, 0.0  ;;  %13169 = vmatmul.mubr.bf16.gmra.mxu0 %v5628_v32  ;;  %v4363_v19 = vrot.slane %v4356_v12, %v16299_v51  ;;  %v4372_v45 = vcombine.low %v16885_v2, %v17045_v36 }
 0x3ed   : > { %v4351_v37 = vrot.slane %v4323_v18, %v16299_v51  ;;  %v4353_v44 = vcombine.high %v4330_v55, %v4344_v60  ;;  %v12524_v52 = vcombine.low %v4320_v40, %v4330_v55  ;;  %13172 = vmatprep.mubr.msk.bf16.mxu0 %vm14503_vm4, %v19990_v24  ;;  %v3634_v9 = vsel %vm3589_vm5, %v3632_v57, %v3633_v25 }
 0x3ee   : > { %v17065_v26 = vadd.f32 %v16287_v34, %v3463_v39  ;;  %v3464_v23 = vmul.f32 %v16282_v59, %v3428_v11  ;;  %v4371_v46 = vcombine.low %v4363_v19, %v4370_v22  ;;  %v4381_v5 = vrot.slane %v4372_v45, %v16299_v51 }
 0x3ef   : > { %v4355_v27 = vcombine.high %v4337_v49, %v4351_v37  ;;  %v12526_v48 = vcombine.low %v4353_v44, %v4337_v49  ;;  %v5254_v21 = vrot.slane %v12524_v52, %v16299_v51  ;;  %v4352_v29 = vcombine.low %v4330_v55, %v4344_v60 }
 0x3f0   : > { %v3585_v1 = vrot.slane %v17065_v26, 3  ;;  %v3642_v59 = vrot.slane %v17065_v26, 6  ;;  %v17080_v53 = vadd.f32 %v16287_v34, %v3464_v23  ;;  %v5303_v20 = vrot.slane %v4381_v5, %v16299_v51 }
 0x3f1   : > { %v12528_v41 = vcombine.low %v4355_v27, %v4363_v19  ;;  %v5268_v47 = vrot.slane %v12526_v48, %v16299_v51  ;;  %v4354_v57 = vcombine.low %v4337_v49, %v4351_v37  ;;  %v4395_v16 = vrot.slane %v3634_v9, %v16299_v51 }
 0x3f2   : > { %v3587_v30 = vrot.slane %v17080_v53, 3  ;;  %v3644_v40 = vrot.slane %v17080_v53, 6  ;;  %v12525_v0 = vcombine.high %v17015_v28, %v4352_v29  ;;  %v12529_v63 = vcombine.high %v4351_v37, %v4371_v46 }
 0x3f3   : > { %v5289_v15 = vrot.slane %v12528_v41, %v16299_v51  ;;  %v5277_v13 = vcombine.high %v5254_v21, %v5268_v47  ;;  %v12527_v34 = vcombine.high %v4344_v60, %v4354_v57  ;;  %v5310_v32 = vrot.slane %v4395_v16, %v16299_v51 }
 0x3f4   : > { %v5276_v12 = vcombine.low %v5254_v21, %v5268_v47  ;;  %v5261_v55 = vrot.slane %v12525_v0, %v16299_v51  ;;  %v5296_v11 = vrot.slane %v12529_v63, %v16299_v51  ;;  %v3579_v22 = vsel %vm784_vm1, %v3576_v4, %v3578_v38 }
 0x3f5   : > { %v5312_v18 = vcombine.high %v5289_v15, %v5303_v20  ;;  %v5311_v39 = vcombine.low %v5289_v15, %v5303_v20  ;;  %v5275_v49 = vrot.slane %v12527_v34, %v16299_v51  ;;  %v3581_v28 = vsel %vm784_vm1, %v3578_v38, %v3580_v17 }
 0x3f6   : > { %v4373_v60 = vcombine.high %v16885_v2, %v17045_v36  ;;  %v5313_v45 = vcombine.low %v5296_v11, %v5310_v32  ;;  %v4407_v52 = vcombine.low %v16926_v31, %v3579_v22  ;;  %v4408_v23 = vcombine.high %v16926_v31, %v3579_v22 }
 0x3f7   : > { %v5630_v44 = vpack.c.bf16 %v5312_v18, %v5277_v13  ;;  %v5629_v19 = vpack.c.bf16 %v5311_v39, %v5276_v12  ;;  %v5278_v37 = vcombine.low %v5261_v55, %v5275_v49  ;;  %v4442_v27 = vcombine.low %v16956_v54, %v3581_v28 }
 0x3f8   : > { %v4388_v4 = vrot.slane %v4373_v60, %v16299_v51  ;;  %v3636_v38 = vsel %vm3589_vm5, %v3633_v25, %v3635_v62  ;;  %v17117_v2 = vsel %vm3589_vm5, %v3635_v62, %v3637_v6  ;;  %v4416_v46 = vrot.slane %v4407_v52, %v16299_v51 }
 0x3f9   : > { %5941 = vmatprep.mubr.bf16.mxu1 %v5630_v44  ;;  %v5631_v36 = vpack.c.bf16 %v5313_v45, %v5278_v37  ;;  %v4423_v5 = vrot.slane %v4408_v23, %v16299_v51  ;;  %v4374_v48 = vcombine.high %v3634_v9, %v3634_v9  ;;  %v4451_v21 = vrot.slane %v4442_v27, %v16299_v51 }
 0x3fa   : > { %5942 = vmatmul.mubr.bf16.gmra.mxu1 %v5629_v19  ;;  %v5324_v31 = vrot.slane %v4388_v4, %v16299_v51  ;;  %v4409_v41 = vcombine.high %v3636_v38, %v3636_v38  ;;  %v4430_v25 = vrot.slane %v3636_v38, %v16299_v51  ;;  %v5338_v47 = vrot.slane %v4416_v46, %v16299_v51 }
 0x3fb   : > { %13173 = vmatmul.mubr.bf16.gmra.mxu0 %v5631_v36  ;;  %v5359_v62 = vrot.slane %v4423_v5, %v16299_v51  ;;  %v4402_v20 = vrot.slane %v4374_v48, %v16299_v51  ;;  %v4465_v29 = vrot.slane %v17117_v2, %v16299_v51  ;;  %v5373_v9 = vrot.slane %v4451_v21, %v16299_v51 }
 0x3fc   : > { %13176 = vmatprep.mubr.msk.bf16.mxu0 %vm14503_vm4, %v19990_v24  ;;  %v4437_v57 = vrot.slane %v4409_v41, %v16299_v51  ;;  %v5345_v15 = vrot.slane %v4430_v25, %v16299_v51  ;;  %v3584_v16 = vsel %vm784_vm1, %v3582_v35, %v3583_v61  ;;  %v5347_v13 = vcombine.high %v5324_v31, %v5338_v47 }
 0x3fd   : > { %v5331_v0 = vrot.slane %v4402_v20, %v16299_v51  ;;  %v5380_v34 = vrot.slane %v4465_v29, %v16299_v51  ;;  %v5346_v63 = vcombine.low %v5324_v31, %v5338_v47  ;;  %v5382_v18 = vcombine.high %v5359_v62, %v5373_v9 }
 0x3fe   : > { %v5366_v32 = vrot.slane %v4437_v57, %v16299_v51  ;;  %v5381_v12 = vcombine.low %v5359_v62, %v5373_v9  ;;  %v3586_v39 = vsel %vm784_vm1, %v3583_v61, %v3585_v1  ;;  %v3641_v35 = vsel %vm3589_vm5, %v3639_v10, %v3640_v50 }
 0x3ff   : > { %v5348_v55 = vcombine.low %v5331_v0, %v5345_v15  ;;  %v4443_v49 = vcombine.high %v16956_v54, %v3581_v28  ;;  %v4477_v11 = vcombine.low %v16990_v56, %v3580_v17  ;;  %v5633_v22 = vpack.c.bf16 %v5382_v18, %v5347_v13 }
 0x400   : > { %v5383_v44 = vcombine.low %v5366_v32, %v5380_v34  ;;  %v5632_v19 = vpack.c.bf16 %v5381_v12, %v5346_v63  ;;  %v4493_v60 = vcombine.low %v16993_v14, %v3584_v16  ;;  %v4494_v45 = vcombine.high %v16993_v14, %v3584_v16 }
 0x401   : > { %v4458_v61 = vrot.slane %v4443_v49, %v16299_v51  ;;  %v4484_v37 = vrot.slane %v4477_v11, %v16299_v51  ;;  %v4495_v52 = vcombine.high %v3641_v35, %v3641_v35  ;;  %5949 = vmatprep.mubr.bf16.mxu1 %v5633_v22  ;;  %v4516_v28 = vrot.slane %v3641_v35, %v16299_v51 }
 0x402   : > { %v5634_v10 = vpack.c.bf16 %v5383_v44, %v5348_v55  ;;  %v4502_v54 = vrot.slane %v4493_v60, %v16299_v51  ;;  %v4528_v17 = vcombine.low %v16997_v42, %v3586_v39  ;;  %5950 = vmatmul.mubr.bf16.gmra.mxu1 %v5632_v19  ;;  %v4509_v23 = vrot.slane %v4494_v45, %v16299_v51 }
 0x403   : > { %v4523_v4 = vrot.slane %v4495_v52, %v16299_v51  ;;  %v5394_v27 = vrot.slane %v4458_v61, %v16299_v51  ;;  %v3643_v14 = vsel %vm3589_vm5, %v3640_v50, %v3642_v59  ;;  %v4444_v5 = vcombine.high %v17117_v2, %v17117_v2 }
 0x404   : > { %13177 = vmatmul.mubr.bf16.gmra.mxu0 %v5634_v10  ;;  %v4525_v38 = vcombine.high %v4502_v54, %v4516_v28  ;;  %v4537_v36 = vrot.slane %v4528_v17, %v16299_v51  ;;  %v12530_v46 = vcombine.low %v4484_v37, %v4502_v54  ;;  %v4491_v21 = vrot.slane %v3637_v6, %v16299_v51 }
 0x405   : > { %v4527_v48 = vcombine.high %v4509_v23, %v4523_v4  ;;  %13180 = vmatprep.mubr.msk.bf16.mxu0 %vm14503_vm4, %v19990_v24  ;;  %v4526_v31 = vcombine.low %v4509_v23, %v4523_v4  ;;  %v4551_v41 = vrot.slane %v3643_v14, %v16299_v51  ;;  %v4472_v47 = vrot.slane %v4444_v5, %v16299_v51 }
 0x406   : > { %v5408_v50 = vrot.slane %v12530_v46, %v16299_v51  ;;  %v12532_v25 = vcombine.low %v4525_v38, %v4509_v23  ;;  %v3588_v2 = vsel %vm784_vm1, %v3585_v1, %v3587_v30  ;;  %v12531_v29 = vcombine.low %v4491_v21, %v4516_v28 }
 0x407   : > { %v12534_v62 = vcombine.low %v4527_v48, %v4537_v36  ;;  %v4559_v20 = vcombine.low %v4537_v36, %v4551_v41  ;;  %v12533_v9 = vcombine.high %v4516_v28, %v4526_v31  ;;  %v5401_v15 = vrot.slane %v4472_v47, %v16299_v51 }
 0x408   : > { %v5417_v56 = vcombine.high %v5394_v27, %v5408_v50  ;;  %v5429_v6 = vrot.slane %v12532_v25, %v16299_v51  ;;  %v5416_v57 = vcombine.low %v5394_v27, %v5408_v50  ;;  %v5415_v13 = vrot.slane %v12531_v29, %v16299_v51 }
 0x409   : > { %v5443_v16 = vrot.slane %v12534_v62, %v16299_v51  ;;  %v12535_v0 = vcombine.high %v4523_v4, %v4559_v20  ;;  %v5436_v34 = vrot.slane %v12533_v9, %v16299_v51  ;;  %v3645_v1 = vsel %vm3589_vm5, %v3642_v59, %v3644_v40 }
 0x40a   : > { %v4529_v63 = vcombine.high %v16997_v42, %v3586_v39  ;;  %v4530_v18 = vcombine.high %v3643_v14, %v3643_v14  ;;  %v4560_v32 = vcombine.high %v4537_v36, %v4551_v41  ;;  %v5418_v35 = vcombine.low %v5401_v15, %v5415_v13 }
 0x40b   : > { %v5452_v12 = vcombine.high %v5429_v6, %v5443_v16  ;;  %v5451_v55 = vcombine.low %v5429_v6, %v5443_v16  ;;  %v5450_v49 = vrot.slane %v12535_v0, %v16299_v51  ;;  %v4563_v44 = vcombine.low %v17065_v26, %v3588_v2 }
 0x40c   : > { %v4544_v11 = vrot.slane %v4529_v63, %v16299_v51  ;;  %v4558_v22 = vrot.slane %v4530_v18, %v16299_v51  ;;  %v4564_v19 = vcombine.high %v17065_v26, %v3588_v2  ;;  %v4565_v37 = vcombine.high %v3645_v1, %v3645_v1 }
 0x40d   : > { %v5636_v60 = vpack.c.bf16 %v5452_v12, %v5417_v56  ;;  %v5635_v61 = vpack.c.bf16 %v5451_v55, %v5416_v57  ;;  %v5453_v59 = vcombine.low %v5436_v34, %v5450_v49  ;;  %v4572_v39 = vrot.slane %v4563_v44, %v16299_v51 }
 0x40e   : > { %v4562_v42 = vcombine.high %v4544_v11, %v4558_v22  ;;  %v4579_v45 = vrot.slane %v4564_v19, %v16299_v51  ;;  %v4586_v52 = vrot.slane %v3645_v1, %v16299_v51  ;;  %v4593_v54 = vrot.slane %v4565_v37, %v16299_v51 }
 0x40f   : > { %5957 = vmatprep.mubr.bf16.mxu1 %v5636_v60  ;;  %v5637_v10 = vpack.c.bf16 %v5453_v59, %v5418_v35  ;;  %v4598_v28 = vcombine.low %v17080_v53, %v3587_v30  ;;  %v4612_v26 = vrot.slane %v3644_v40, %v16299_v51  ;;  %v12536_v23 = vcombine.low %v4560_v32, %v4544_v11  ;;  %v14107_v32 = vld [vmem:[#allocation19] sm:$0xff] }
 0x410   : > { %5958 = vmatmul.mubr.bf16.gmra.mxu1 %v5635_v61  ;;  %v4595_v17 = vcombine.high %v4572_v39, %v4586_v52  ;;  %v12538_v4 = vcombine.low %v4562_v42, %v4572_v39  ;;  %v4561_v27 = vcombine.low %v4544_v11, %v4558_v22  ;;  %v4597_v14 = vcombine.high %v4579_v45, %v4593_v54 }
 0x411   : > { %13181 = vmatmul.mubr.bf16.gmra.mxu0 %v5637_v10  ;;  %v4605_v38 = vrot.slane %v4598_v28, %v16299_v51  ;;  %v4594_v36 = vcombine.low %v4572_v39, %v4586_v52  ;;  %v4596_v46 = vcombine.low %v4579_v45, %v4593_v54  ;;  %v5464_v50 = vrot.slane %v12536_v23, %v16299_v51 }
 0x412   : > { %v5478_v5 = vrot.slane %v12538_v4, %v16299_v51  ;;  %v12540_v48 = vcombine.low %v4595_v17, %v4579_v45  ;;  %13184 = vmatprep.mubr.msk.bf16.mxu0 %vm14503_vm4, %v19990_v24  ;;  %v12537_v30 = vcombine.high %v4551_v41, %v4561_v27  ;;  %v5691_v1 = vsub.s32 6, %v15659_v58 }
 0x413   : > { %v4613_v53 = vcombine.low %v4605_v38, %v4612_v26  ;;  %v12542_v40 = vcombine.low %v4597_v14, %v4605_v38  ;;  %v12539_v21 = vcombine.high %v4558_v22, %v4594_v36  ;;  %v12541_v31 = vcombine.high %v4586_v52, %v4596_v46  ;;  %v17241_v52 = vld [vmem:[#allocation19 + $0x10] sm:$0xff] }
 0x414   : > { %v5499_v25 = vrot.slane %v12540_v48, %v16299_v51  ;;  %v5471_v47 = vrot.slane %v12537_v30, %v16299_v51  ;;  %v5487_v9 = vcombine.high %v5464_v50, %v5478_v5  ;;  %v5486_v15 = vcombine.low %v5464_v50, %v5478_v5 }
 0x415   : > { %v5513_v2 = vrot.slane %v12542_v40, %v16299_v51  ;;  %v5485_v62 = vrot.slane %v12539_v21, %v16299_v51  ;;  %v12543_v20 = vcombine.high %v4593_v54, %v4613_v53  ;;  %v5506_v29 = vrot.slane %v12541_v31, %v16299_v51 }
 0x416   : > { %v17231_v12 = vrot.slane %v14107_v32, %v5691_v1  ;;  %v17235_v44 = vsub.s32 7, %v15659_v58  ;;  %v17246_v28 = vrot.slane %v17241_v52, %v15662_v43  ;;  %vm11791_vm1 = vcmask 1045509  }
 0x417   : > { %v5522_v56 = vcombine.high %v5499_v25, %v5513_v2  ;;  %v5521_v41 = vcombine.low %v5499_v25, %v5513_v2  ;;  %v5488_v6 = vcombine.low %v5471_v47, %v5485_v62  ;;  %v5520_v57 = vrot.slane %v12543_v20, %v16299_v51 }
 0x418   : > { %20244 = vst [vmem:[#allocation33_spill] sm:$0xff] %v17235_v44  ;;  %v17238_v39 = vrot.slane %v14107_v32, %v17235_v44 }
 0x419   : > { %v5639_v16 = vpack.c.bf16 %v5522_v56, %v5487_v9  ;;  %v5523_v13 = vcombine.low %v5506_v29, %v5520_v57  ;;  %v5638_v0 = vpack.c.bf16 %v5521_v41, %v5486_v15 }
 0x41b   : > { %5965 = vmatprep.mubr.bf16.mxu1 %v5639_v16  ;;  %v5640_v34 = vpack.c.bf16 %v5523_v13, %v5488_v6 }
 0x41c   : > { %5966 = vmatmul.mubr.bf16.gmra.mxu1 %v5638_v0 }
 0x41d   : > { %13185 = vmatmul.mubr.bf16.gmra.mxu0 %v5640_v34  ;;  %13204 = vmatprep.mubr.msk.bf16.mxu1 %vm14503_vm4, %v19990_v24 }
 0x41e   : > { %13272 = vmatprep.mubr.msk.bf16.mxu0 %vm14503_vm4, %v19990_v24 }
 0x421   : > { %v12806_v63 = vpop.f32.mrf.mxu1 }
 0x422   : > { %v6008_v18 = vpop.f32.mrf.mxu0 }
 0x423   : > { %v12807_v55 = vpop.f32.mrf.mxu1 }
 0x424   : > { %v13138_v35 = vpop.f32.mrf.mxu0  ;;  %v12808_v49 = vadd.f32 %v12807_v55, %v12806_v63 }
 0x425   : > { %v12809_v11 = vpop.f32.mrf.mxu1 }
 0x426   : > { %v5872_v22 = vadd.f32 %v12808_v49, %v17231_v12  ;;  %v6011_v19 = vpop.f32.mrf.mxu0 }
 0x427   : > { %v12810_v60 = vpop.f32.mrf.mxu1 }
 0x428   : > { %v6009_v61 = vadd.f32 %v6008_v18, %v5872_v22  ;;  %v13139_v59 = vpop.f32.mrf.mxu0  ;;  %v12811_v37 = vadd.f32 %v12810_v60, %v12809_v11 }
 0x42a   : > { %v6111_v42 = vmax.f32 %v6009_v61, 0.0  ;;  %v5875_v45 = vadd.f32 %v12811_v37, %v17231_v12 }
 0x42c   : > { %v6012_v10 = vadd.f32 %v6011_v19, %v5875_v45  ;;  %v6141_v54 = vmul.f32 %v17238_v39, %v6111_v42 }
 0x42e   : > { %v6112_v26 = vmax.f32 %v6012_v10, 0.0  ;;  %v6171_v23 = vadd.f32 %v17246_v28, %v6141_v54 }
 0x430   : > { %v6142_v17 = vmul.f32 %v17238_v39, %v6112_v26 }
 0x432   : > { %v6172_v4 = vadd.f32 %v17246_v28, %v6142_v17 }
 0x434   : > { %v6197_v27 = vpack.c.bf16 %v6172_v4, %v6171_v23  ;;  %v12812_v14 = vpop.f32.mrf.mxu1 }
 0x436   : > { %v6016_v38 = vpop.f32.mrf.mxu0  ;;  %v12813_v36 = vpop.f32.mrf.mxu1  ;;  %13205 = vmatmul.mubr.bf16.vlgmr.msra.gmra.mxu1 %v6197_v27 }
 0x437   : > { %v12814_v46 = vadd.f32 %v12813_v36, %v12812_v14  ;;  %13208 = vmatprep.mubr.msk.bf16.mxu1 %vm14503_vm4, %v19990_v24 }
 0x438   : > { %v13142_v5 = vpop.f32.mrf.mxu0  ;;  %v12815_v48 = vpop.f32.mrf.mxu1 }
 0x439   : > { %v5880_v30 = vadd.f32 %v12814_v46, %v17231_v12 }
 0x43a   : > { %v6019_v53 = vpop.f32.mrf.mxu0  ;;  %v12816_v40 = vpop.f32.mrf.mxu1 }
 0x43b   : > { %v6017_v21 = vadd.f32 %v6016_v38, %v5880_v30  ;;  %v12817_v31 = vadd.f32 %v12816_v40, %v12815_v48 }
 0x43c   : > { %v13143_v50 = vpop.f32.mrf.mxu0 }
 0x43d   : > { %v6113_v25 = vmax.f32 %v6017_v21, 0.0  ;;  %v5883_v47 = vadd.f32 %v12817_v31, %v17231_v12 }
 0x43f   : > { %v6020_v2 = vadd.f32 %v6019_v53, %v5883_v47  ;;  %v6143_v62 = vmul.f32 %v17238_v39, %v6113_v25 }
 0x441   : > { %v6114_v20 = vmax.f32 %v6020_v2, 0.0  ;;  %v6173_v9 = vadd.f32 %v17246_v28, %v6143_v62 }
 0x443   : > { %v6144_v29 = vmul.f32 %v17238_v39, %v6114_v20 }
 0x445   : > { %v6174_v56 = vadd.f32 %v17246_v28, %v6144_v29 }
 0x447   : > { %v6198_v41 = vpack.c.bf16 %v6174_v56, %v6173_v9  ;;  %v13740_v9 = vld [vmem:[#allocation11 + $0x38] sm:$0xff]  }
 0x448   : > { %13257 = vmatpush3.bf16.msra.mxu0 %v13740_v9 }
 0x449   : > { %v12818_v6 = vpop.f32.mrf.mxu1  ;;  %13209 = vmatmul.mubr.bf16.gmra.mxu1 %v6198_v41  ;;  %v13741_v41 = vld [vmem:[#allocation11 + $0x30] sm:$0xff]   ;;  %13258 = vmatprep.subr.bf16.mxu0 %v19990_v24 }
 0x44a   : > { %13212 = vmatprep.mubr.msk.bf16.mxu1 %vm14503_vm4, %v19990_v24 }
 0x44b   : > { %v12819_v57 = vpop.f32.mrf.mxu1 }
 0x44c   : > { %v6024_v15 = vpop.f32.mrf.mxu0  ;;  %v12820_v16 = vadd.f32 %v12819_v57, %v12818_v6  ;;  %13259 = vmatpush3.bf16.msra.mxu0 %v13741_v41 }
 0x44d   : > { %v12821_v13 = vpop.f32.mrf.mxu1  ;;  %13260 = vmatprep.subr.bf16.mxu0 %v19990_v24 }
 0x44e   : > { %v13146_v0 = vpop.f32.mrf.mxu0  ;;  %v5888_v34 = vadd.f32 %v12820_v16, %v17231_v12 }
 0x44f   : > { %v12822_v63 = vpop.f32.mrf.mxu1 }
 0x450   : > { %v6025_v18 = vadd.f32 %v6024_v15, %v5888_v34  ;;  %v6027_v32 = vpop.f32.mrf.mxu0  ;;  %v12823_v55 = vadd.f32 %v12822_v63, %v12821_v13  ;;  %v13742_v13 = vld [vmem:[#allocation11 + $0x28] sm:$0xff]  }
 0x451   : > { %13261 = vmatpush3.bf16.msra.mxu0 %v13742_v13 }
 0x452   : > { %v6115_v35 = vmax.f32 %v6025_v18, 0.0  ;;  %v13147_v49 = vpop.f32.mrf.mxu0  ;;  %v5891_v11 = vadd.f32 %v12823_v55, %v17231_v12  ;;  %13262 = vmatprep.subr.bf16.mxu0 %v19990_v24 }
 0x454   : > { %v6028_v22 = vadd.f32 %v6027_v32, %v5891_v11  ;;  %v6145_v19 = vmul.f32 %v17238_v39, %v6115_v35  ;;  %v13743_v32 = vld [vmem:[#allocation11 + $0x20] sm:$0xff]  }
 0x455   : > { %13263 = vmatpush3.bf16.msra.mxu0 %v13743_v32 }
 0x456   : > { %v6116_v60 = vmax.f32 %v6028_v22, 0.0  ;;  %v12824_v61 = vpop.f32.mrf.mxu1  ;;  %v6175_v45 = vadd.f32 %v17246_v28, %v6145_v19  ;;  %13264 = vmatprep.subr.bf16.mxu0 %v19990_v24 }
 0x458   : > { %v6146_v59 = vmul.f32 %v17238_v39, %v6116_v60  ;;  %v6032_v37 = vpop.f32.mrf.mxu0  ;;  %v12825_v42 = vpop.f32.mrf.mxu1  ;;  %v13744_v60 = vld [vmem:[#allocation11 + $0x18] sm:$0xff]  }
 0x459   : > { %v12826_v10 = vadd.f32 %v12825_v42, %v12824_v61  ;;  %13265 = vmatpush3.bf16.msra.mxu0 %v13744_v60 }
 0x45a   : > { %v6176_v54 = vadd.f32 %v17246_v28, %v6146_v59  ;;  %v13150_v26 = vpop.f32.mrf.mxu0  ;;  %v12827_v17 = vpop.f32.mrf.mxu1  ;;  %13266 = vmatprep.subr.bf16.mxu0 %v19990_v24 }
 0x45b   : > { %v5896_v23 = vadd.f32 %v12826_v10, %v17231_v12 }
 0x45c   : > { %v6199_v4 = vpack.c.bf16 %v6176_v54, %v6175_v45  ;;  %v6035_v27 = vpop.f32.mrf.mxu0  ;;  %v12828_v14 = vpop.f32.mrf.mxu1 }
 0x45d   : > { %v6033_v38 = vadd.f32 %v6032_v37, %v5896_v23  ;;  %v12829_v36 = vadd.f32 %v12828_v14, %v12827_v17 }
 0x45e   : > { %13213 = vmatmul.mubr.bf16.gmra.mxu1 %v6199_v4  ;;  %v13151_v46 = vpop.f32.mrf.mxu0  ;;  %v13745_v4 = vld [vmem:[#allocation11 + $0x10] sm:$0xff]  }
 0x45f   : > { %13216 = vmatprep.mubr.msk.bf16.mxu1 %vm14503_vm4, %v19990_v24  ;;  %v6117_v5 = vmax.f32 %v6033_v38, 0.0  ;;  %v5899_v48 = vadd.f32 %v12829_v36, %v17231_v12  ;;  %13267 = vmatpush3.bf16.msra.mxu0 %v13745_v4 }
 0x460   : > { %13268 = vmatprep.subr.bf16.mxu0 %v19990_v24 }
 0x461   : > { %v6036_v30 = vadd.f32 %v6035_v27, %v5899_v48  ;;  %v6147_v40 = vmul.f32 %v17238_v39, %v6117_v5  ;;  %v13746_v48 = vld [vmem:[#allocation11 + $0x8] sm:$0xff]  }
 0x462   : > { %v6040_v53 = vpop.f32.mrf.mxu0 }
 0x463   : > { %v6118_v21 = vmax.f32 %v6036_v30, 0.0  ;;  %v6177_v47 = vadd.f32 %v17246_v28, %v6147_v40  ;;  %13269 = vmatpush3.bf16.msra.mxu0 %v13746_v48 }
 0x464   : > { %v13154_v31 = vpop.f32.mrf.mxu0  ;;  %13270 = vmatprep.subr.bf16.mxu0 %v19990_v24 }
 0x465   : > { %v6148_v50 = vmul.f32 %v17238_v39, %v6118_v21 }
 0x466   : > { %v6043_v25 = vpop.f32.mrf.mxu0 }
 0x467   : > { %v6178_v2 = vadd.f32 %v17246_v28, %v6148_v50  ;;  %v13747_v50 = vld [vmem:[#allocation11] sm:$0xff]  }
 0x468   : > { %v13155_v62 = vpop.f32.mrf.mxu0  ;;  %13271 = vmatpush3.bf16.msra.mxu0 %v13747_v50 }
 0x469   : > { %v6200_v20 = vpack.c.bf16 %v6178_v2, %v6177_v47  ;;  %13392 = vmatprep.subr.bf16.mxu0 %v19990_v24 }
 0x46b   : > { %13217 = vmatmul.mubr.bf16.gmra.mxu1 %v6200_v20 }
 0x46c   : > { %13220 = vmatprep.mubr.msk.bf16.mxu1 %vm14503_vm4, %v19990_v24 }
 0x46f   : > { %v12830_v29 = vpop.f32.mrf.mxu1 }
 0x471   : > { %v12831_v56 = vpop.f32.mrf.mxu1 }
 0x472   : > { %v12832_v6 = vadd.f32 %v12831_v56, %v12830_v29 }
 0x473   : > { %v12833_v57 = vpop.f32.mrf.mxu1 }
 0x474   : > { %v5904_v15 = vadd.f32 %v12832_v6, %v17231_v12 }
 0x475   : > { %v12834_v16 = vpop.f32.mrf.mxu1 }
 0x476   : > { %v6041_v0 = vadd.f32 %v6040_v53, %v5904_v15  ;;  %v12835_v34 = vadd.f32 %v12834_v16, %v12833_v57 }
 0x478   : > { %v6119_v63 = vmax.f32 %v6041_v0, 0.0  ;;  %v5907_v18 = vadd.f32 %v12835_v34, %v17231_v12 }
 0x47a   : > { %v6044_v55 = vadd.f32 %v6043_v25, %v5907_v18  ;;  %v12836_v35 = vpop.f32.mrf.mxu1  ;;  %v6149_v49 = vmul.f32 %v17238_v39, %v6119_v63 }
 0x47c   : > { %v6120_v11 = vmax.f32 %v6044_v55, 0.0  ;;  %v12837_v22 = vpop.f32.mrf.mxu1  ;;  %v6179_v45 = vadd.f32 %v17246_v28, %v6149_v49 }
 0x47d   : > { %v12838_v19 = vadd.f32 %v12837_v22, %v12836_v35  ;;  %v6048_v59 = vpop.f32.mrf.mxu0 }
 0x47e   : > { %v6150_v61 = vmul.f32 %v17238_v39, %v6120_v11  ;;  %v12839_v37 = vpop.f32.mrf.mxu1 }
 0x47f   : > { %v5912_v42 = vadd.f32 %v12838_v19, %v17231_v12  ;;  %v13158_v10 = vpop.f32.mrf.mxu0 }
 0x480   : > { %v12840_v54 = vpop.f32.mrf.mxu1  ;;  %v6180_v26 = vadd.f32 %v17246_v28, %v6150_v61 }
 0x481   : > { %v6049_v17 = vadd.f32 %v6048_v59, %v5912_v42  ;;  %v12841_v23 = vadd.f32 %v12840_v54, %v12839_v37  ;;  %v6051_v27 = vpop.f32.mrf.mxu0 }
 0x482   : > { %v6201_v14 = vpack.c.bf16 %v6180_v26, %v6179_v45 }
 0x483   : > { %v6121_v38 = vmax.f32 %v6049_v17, 0.0  ;;  %v5915_v36 = vadd.f32 %v12841_v23, %v17231_v12  ;;  %v13159_v46 = vpop.f32.mrf.mxu0 }
 0x484   : > { %13221 = vmatmul.mubr.bf16.gmra.mxu1 %v6201_v14 }
 0x485   : > { %v6052_v5 = vadd.f32 %v6051_v27, %v5915_v36  ;;  %13224 = vmatprep.mubr.msk.bf16.mxu1 %vm14503_vm4, %v19990_v24  ;;  %v6151_v30 = vmul.f32 %v17238_v39, %v6121_v38 }
 0x487   : > { %v6122_v53 = vmax.f32 %v6052_v5, 0.0  ;;  %v12842_v40 = vpop.f32.mrf.mxu1  ;;  %v6181_v2 = vadd.f32 %v17246_v28, %v6151_v30 }
 0x489   : > { %v6152_v21 = vmul.f32 %v17238_v39, %v6122_v53  ;;  %v12843_v31 = vpop.f32.mrf.mxu1 }
 0x48a   : > { %v6056_v25 = vpop.f32.mrf.mxu0  ;;  %v12844_v47 = vadd.f32 %v12843_v31, %v12842_v40 }
 0x48b   : > { %v12845_v62 = vpop.f32.mrf.mxu1  ;;  %v6182_v20 = vadd.f32 %v17246_v28, %v6152_v21 }
 0x48c   : > { %v5920_v29 = vadd.f32 %v12844_v47, %v17231_v12  ;;  %v13162_v9 = vpop.f32.mrf.mxu0 }
 0x48d   : > { %v12846_v56 = vpop.f32.mrf.mxu1  ;;  %v6202_v41 = vpack.c.bf16 %v6182_v20, %v6181_v2 }
 0x48e   : > { %v6057_v6 = vadd.f32 %v6056_v25, %v5920_v29  ;;  %v6059_v57 = vpop.f32.mrf.mxu0  ;;  %v12847_v15 = vadd.f32 %v12846_v56, %v12845_v62 }
 0x48f   : > { %13225 = vmatmul.mubr.bf16.gmra.mxu1 %v6202_v41 }
 0x490   : > { %v6123_v16 = vmax.f32 %v6057_v6, 0.0  ;;  %v5923_v13 = vadd.f32 %v12847_v15, %v17231_v12  ;;  %v13163_v0 = vpop.f32.mrf.mxu0  ;;  %13228 = vmatprep.mubr.msk.bf16.mxu1 %vm14503_vm4, %v19990_v24 }
 0x492   : > { %v6060_v34 = vadd.f32 %v6059_v57, %v5923_v13  ;;  %v12848_v63 = vpop.f32.mrf.mxu1  ;;  %v6153_v18 = vmul.f32 %v17238_v39, %v6123_v16 }
 0x494   : > { %v6124_v32 = vmax.f32 %v6060_v34, 0.0  ;;  %v12849_v55 = vpop.f32.mrf.mxu1  ;;  %v6183_v60 = vadd.f32 %v17246_v28, %v6153_v18 }
 0x495   : > { %v12850_v35 = vadd.f32 %v12849_v55, %v12848_v63 }
 0x496   : > { %v6154_v49 = vmul.f32 %v17238_v39, %v6124_v32  ;;  %v6064_v11 = vpop.f32.mrf.mxu0  ;;  %v12851_v22 = vpop.f32.mrf.mxu1 }
 0x497   : > { %v5928_v19 = vadd.f32 %v12850_v35, %v17231_v12 }
 0x498   : > { %v13166_v61 = vpop.f32.mrf.mxu0  ;;  %v12852_v59 = vpop.f32.mrf.mxu1  ;;  %v6184_v37 = vadd.f32 %v17246_v28, %v6154_v49 }
 0x499   : > { %v6065_v42 = vadd.f32 %v6064_v11, %v5928_v19  ;;  %v12853_v45 = vadd.f32 %v12852_v59, %v12851_v22 }
 0x49a   : > { %v6067_v10 = vpop.f32.mrf.mxu0  ;;  %v6203_v54 = vpack.c.bf16 %v6184_v37, %v6183_v60 }
 0x49b   : > { %v6125_v26 = vmax.f32 %v6065_v42, 0.0  ;;  %v5931_v17 = vadd.f32 %v12853_v45, %v17231_v12 }
 0x49c   : > { %v13167_v23 = vpop.f32.mrf.mxu0  ;;  %13229 = vmatmul.mubr.bf16.gmra.mxu1 %v6203_v54 }
 0x49d   : > { %v6068_v4 = vadd.f32 %v6067_v10, %v5931_v17  ;;  %13232 = vmatprep.mubr.msk.bf16.mxu1 %vm14503_vm4, %v19990_v24  ;;  %v6155_v27 = vmul.f32 %v17238_v39, %v6125_v26 }
 0x49f   : > { %v6126_v14 = vmax.f32 %v6068_v4, 0.0  ;;  %v6185_v36 = vadd.f32 %v17246_v28, %v6155_v27 }
 0x4a1   : > { %v6156_v38 = vmul.f32 %v17238_v39, %v6126_v14 }
 0x4a3   : > { %v6186_v46 = vadd.f32 %v17246_v28, %v6156_v38 }
 0x4a5   : > { %v6204_v5 = vpack.c.bf16 %v6186_v46, %v6185_v36 }
 0x4a7   : > { %13233 = vmatmul.mubr.bf16.gmra.mxu1 %v6204_v5 }
 0x4a8   : > { %13236 = vmatprep.mubr.msk.bf16.mxu1 %vm14503_vm4, %v19990_v24 }
 0x4aa   : > { %v12854_v48 = vpop.f32.mrf.mxu1 }
 0x4ac   : > { %v12855_v30 = vpop.f32.mrf.mxu1  ;;  %v6072_v53 = vpop.f32.mrf.mxu0 }
 0x4ad   : > { %v12856_v40 = vadd.f32 %v12855_v30, %v12854_v48 }
 0x4ae   : > { %v12857_v21 = vpop.f32.mrf.mxu1  ;;  %v13170_v31 = vpop.f32.mrf.mxu0 }
 0x4af   : > { %v5936_v50 = vadd.f32 %v12856_v40, %v17231_v12 }
 0x4b0   : > { %v12858_v25 = vpop.f32.mrf.mxu1  ;;  %v6075_v2 = vpop.f32.mrf.mxu0 }
 0x4b1   : > { %v6073_v47 = vadd.f32 %v6072_v53, %v5936_v50  ;;  %v12859_v62 = vadd.f32 %v12858_v25, %v12857_v21 }
 0x4b2   : > { %v13171_v29 = vpop.f32.mrf.mxu0 }
 0x4b3   : > { %v6127_v20 = vmax.f32 %v6073_v47, 0.0  ;;  %v5939_v9 = vadd.f32 %v12859_v62, %v17231_v12 }
 0x4b5   : > { %v6076_v56 = vadd.f32 %v6075_v2, %v5939_v9  ;;  %v6157_v41 = vmul.f32 %v17238_v39, %v6127_v20 }
 0x4b7   : > { %v6128_v6 = vmax.f32 %v6076_v56, 0.0  ;;  %v6187_v16 = vadd.f32 %v17246_v28, %v6157_v41 }
 0x4b9   : > { %v6158_v57 = vmul.f32 %v17238_v39, %v6128_v6 }
 0x4ba   : > { %v12860_v15 = vpop.f32.mrf.mxu1 }
 0x4bb   : > { %v6080_v13 = vpop.f32.mrf.mxu0  ;;  %v6188_v34 = vadd.f32 %v17246_v28, %v6158_v57 }
 0x4bc   : > { %v12861_v0 = vpop.f32.mrf.mxu1 }
 0x4bd   : > { %v12862_v63 = vadd.f32 %v12861_v0, %v12860_v15  ;;  %v13174_v18 = vpop.f32.mrf.mxu0  ;;  %v6205_v55 = vpack.c.bf16 %v6188_v34, %v6187_v16 }
 0x4be   : > { %v12863_v32 = vpop.f32.mrf.mxu1 }
 0x4bf   : > { %v5944_v35 = vadd.f32 %v12862_v63, %v17231_v12  ;;  %v6083_v49 = vpop.f32.mrf.mxu0  ;;  %13237 = vmatmul.mubr.bf16.gmra.mxu1 %v6205_v55 }
 0x4c0   : > { %v12864_v11 = vpop.f32.mrf.mxu1  ;;  %13240 = vmatprep.mubr.msk.bf16.mxu1 %vm14503_vm4, %v19990_v24 }
 0x4c1   : > { %v6081_v22 = vadd.f32 %v6080_v13, %v5944_v35  ;;  %v12865_v19 = vadd.f32 %v12864_v11, %v12863_v32  ;;  %v13175_v60 = vpop.f32.mrf.mxu0 }
 0x4c2   : > { %v12866_v37 = vpop.f32.mrf.mxu1 }
 0x4c3   : > { %v6129_v61 = vmax.f32 %v6081_v22, 0.0  ;;  %v5947_v59 = vadd.f32 %v12865_v19, %v17231_v12 }
 0x4c4   : > { %v6088_v45 = vpop.f32.mrf.mxu0  ;;  %v12867_v10 = vpop.f32.mrf.mxu1 }
 0x4c5   : > { %v6084_v42 = vadd.f32 %v6083_v49, %v5947_v59  ;;  %v6159_v54 = vmul.f32 %v17238_v39, %v6129_v61  ;;  %v12868_v23 = vadd.f32 %v12867_v10, %v12866_v37 }
 0x4c6   : > { %v13178_v17 = vpop.f32.mrf.mxu0  ;;  %v12869_v4 = vpop.f32.mrf.mxu1 }
 0x4c7   : > { %v6130_v26 = vmax.f32 %v6084_v42, 0.0  ;;  %v5952_v14 = vadd.f32 %v12868_v23, %v17231_v12  ;;  %v6189_v46 = vadd.f32 %v17246_v28, %v6159_v54 }
 0x4c8   : > { %v6091_v38 = vpop.f32.mrf.mxu0  ;;  %v12870_v36 = vpop.f32.mrf.mxu1 }
 0x4c9   : > { %v6160_v27 = vmul.f32 %v17238_v39, %v6130_v26  ;;  %v6089_v5 = vadd.f32 %v6088_v45, %v5952_v14  ;;  %v12871_v30 = vadd.f32 %v12870_v36, %v12869_v4 }
 0x4ca   : > { %v13179_v48 = vpop.f32.mrf.mxu0 }
 0x4cb   : > { %v6190_v53 = vadd.f32 %v17246_v28, %v6160_v27  ;;  %v6131_v40 = vmax.f32 %v6089_v5, 0.0  ;;  %v5955_v21 = vadd.f32 %v12871_v30, %v17231_v12 }
 0x4cd   : > { %v6206_v31 = vpack.c.bf16 %v6190_v53, %v6189_v46  ;;  %v6092_v50 = vadd.f32 %v6091_v38, %v5955_v21  ;;  %v6161_v25 = vmul.f32 %v17238_v39, %v6131_v40 }
 0x4cf   : > { %13241 = vmatmul.mubr.bf16.gmra.mxu1 %v6206_v31  ;;  %v6132_v47 = vmax.f32 %v6092_v50, 0.0  ;;  %v6191_v41 = vadd.f32 %v17246_v28, %v6161_v25 }
 0x4d0   : > { %13244 = vmatprep.mubr.msk.bf16.mxu1 %vm14503_vm4, %v19990_v24  ;;  %v12872_v2 = vpop.f32.mrf.mxu1 }
 0x4d1   : > { %v6096_v62 = vpop.f32.mrf.mxu0  ;;  %v6162_v20 = vmul.f32 %v17238_v39, %v6132_v47 }
 0x4d2   : > { %v12873_v29 = vpop.f32.mrf.mxu1 }
 0x4d3   : > { %v12874_v9 = vadd.f32 %v12873_v29, %v12872_v2  ;;  %v13182_v56 = vpop.f32.mrf.mxu0  ;;  %v6192_v57 = vadd.f32 %v17246_v28, %v6162_v20  ;;  %v17370_v29 = vrot.slane %v17241_v52, %v16271_v8 }
 0x4d4   : > { %v12875_v6 = vpop.f32.mrf.mxu1 }
 0x4d5   : > { %v5960_v15 = vadd.f32 %v12874_v9, %v17231_v12  ;;  %v6099_v16 = vpop.f32.mrf.mxu0  ;;  %v6207_v0 = vpack.c.bf16 %v6192_v57, %v6191_v41 }
 0x4d6   : > { %v12876_v13 = vpop.f32.mrf.mxu1 }
 0x4d7   : > { %v6097_v34 = vadd.f32 %v6096_v62, %v5960_v15  ;;  %v12877_v63 = vadd.f32 %v12876_v13, %v12875_v6  ;;  %v13183_v18 = vpop.f32.mrf.mxu0  ;;  %13245 = vmatmul.mubr.bf16.gmra.mxu1 %v6207_v0 }
 0x4d8   : > { %13248 = vmatprep.mubr.msk.bf16.mxu1 %vm14503_vm4, %v19990_v24 }
 0x4d9   : > { %v6133_v32 = vmax.f32 %v6097_v34, 0.0  ;;  %v5963_v55 = vadd.f32 %v12877_v63, %v17231_v12 }
 0x4db   : > { %v6100_v35 = vadd.f32 %v6099_v16, %v5963_v55  ;;  %v6163_v11 = vmul.f32 %v17238_v39, %v6133_v32 }
 0x4dc   : > { %v12878_v49 = vpop.f32.mrf.mxu1 }
 0x4dd   : > { %v6134_v22 = vmax.f32 %v6100_v35, 0.0  ;;  %v6104_v19 = vpop.f32.mrf.mxu0  ;;  %v6193_v45 = vadd.f32 %v17246_v28, %v6163_v11 }
 0x4de   : > { %v12879_v60 = vpop.f32.mrf.mxu1 }
 0x4df   : > { %v6164_v61 = vmul.f32 %v17238_v39, %v6134_v22  ;;  %v12880_v59 = vadd.f32 %v12879_v60, %v12878_v49  ;;  %v13186_v37 = vpop.f32.mrf.mxu0 }
 0x4e0   : > { %v12881_v42 = vpop.f32.mrf.mxu1 }
 0x4e1   : > { %v5968_v10 = vadd.f32 %v12880_v59, %v17231_v12  ;;  %v6107_v54 = vpop.f32.mrf.mxu0  ;;  %v6194_v26 = vadd.f32 %v17246_v28, %v6164_v61 }
 0x4e2   : > { %v12882_v17 = vpop.f32.mrf.mxu1 }
 0x4e3   : > { %v6105_v23 = vadd.f32 %v6104_v19, %v5968_v10  ;;  %v12883_v4 = vadd.f32 %v12882_v17, %v12881_v42  ;;  %v13187_v27 = vpop.f32.mrf.mxu0  ;;  %v6208_v14 = vpack.c.bf16 %v6194_v26, %v6193_v45 }
 0x4e5   : > { %v6135_v38 = vmax.f32 %v6105_v23, 0.0  ;;  %v5971_v36 = vadd.f32 %v12883_v4, %v17231_v12  ;;  %13249 = vmatmul.mubr.bf16.gmra.mxu1 %v6208_v14  ;;  %v17359_v12 = vrot.slane %v17241_v52, %v15792_v7 }
 0x4e6   : > { %13252 = vmatprep.mubr.msk.bf16.mxu1 %vm14503_vm4, %v19990_v24 }
 0x4e7   : > { %v6108_v46 = vadd.f32 %v6107_v54, %v5971_v36  ;;  %v6165_v5 = vmul.f32 %v17238_v39, %v6135_v38 }
 0x4e9   : > { %v6136_v48 = vmax.f32 %v6108_v46, 0.0  ;;  %v6195_v53 = vadd.f32 %v17246_v28, %v6165_v5 }
 0x4eb   : > { %v6166_v30 = vmul.f32 %v17238_v39, %v6136_v48  ;;  %v17364_v39 = vrot.slane %v17241_v52, %v15797_v33 }
 0x4ed   : > { %v6196_v40 = vadd.f32 %v17246_v28, %v6166_v30 }
 0x4ef   : > { %v6209_v21 = vpack.c.bf16 %v6196_v40, %v6195_v53 }
 0x4f1   : > { %13253 = vmatmul.mubr.bf16.gmra.mxu1 %v6209_v21 }
 0x4f2   : > { %13340 = vmatprep.mubr.msk.bf16.mxu1 %vm14503_vm4, %v19990_v24 }
 0x4f6   : > { %v6312_v31 = vpop.f32.mrf.mxu1 }
 0x4f7   : > { %v6313_v50 = vadd.f32 %v6312_v31, %v17359_v12 }
 0x4f8   : > { %v13206_v25 = vpop.f32.mrf.mxu1 }
 0x4f9   : > { %v6415_v47 = vmax.f32 %v6313_v50, 0.0  ;;  %v13748_v50 = vld [vmem:[#allocation13 + $0x38] sm:$0xff]   ;;  %v13749_v25 = vld [vmem:[#allocation13 + $0x30] sm:$0xff]  }
 0x4fa   : > { %v6315_v2 = vpop.f32.mrf.mxu1  ;;  %13325 = vmatpush3.bf16.msra.mxu1 %v13748_v50 }
 0x4fb   : > { %v6316_v28 = vadd.f32 %v6315_v2, %v17359_v12  ;;  %v6445_v20 = vmul.f32 %v17364_v39, %v6415_v47  ;;  %13326 = vmatprep.subr.bf16.mxu1 %v19990_v24  ;;  %v13750_v2 = vld [vmem:[#allocation13 + $0x28] sm:$0xff]  }
 0x4fc   : > { %v13207_v62 = vpop.f32.mrf.mxu1 }
 0x4fd   : > { %v6416_v9 = vmax.f32 %v6316_v28, 0.0  ;;  %v6475_v41 = vadd.f32 %v17370_v29, %v6445_v20 }
 0x4fe   : > { %13327 = vmatpush3.bf16.msra.mxu1 %v13749_v25 }
 0x4ff   : > { %v6446_v56 = vmul.f32 %v17364_v39, %v6416_v9  ;;  %13328 = vmatprep.subr.bf16.mxu1 %v19990_v24 }
 0x501   : > { %v6476_v6 = vadd.f32 %v17370_v29, %v6446_v56  ;;  %v13751_v56 = vld [vmem:[#allocation13 + $0x20] sm:$0xff]  }
 0x502   : > { %13329 = vmatpush3.bf16.msra.mxu1 %v13750_v2 }
 0x503   : > { %v6501_v57 = vpack.c.bf16 %v6476_v6, %v6475_v41  ;;  %13330 = vmatprep.subr.bf16.mxu1 %v19990_v24 }
 0x505   : > { %13273 = vmatmul.mubr.bf16.vlgmr.msra.gmra.mxu0 %v6501_v57 }
 0x506   : > { %13276 = vmatprep.mubr.msk.bf16.mxu0 %vm14503_vm4, %v19990_v24  ;;  %13331 = vmatpush3.bf16.msra.mxu1 %v13751_v56 }
 0x507   : > { %13332 = vmatprep.subr.bf16.mxu1 %v19990_v24 }
 0x509   : > { %v6320_v15 = vpop.f32.mrf.mxu1 }
 0x50a   : > { %v6321_v16 = vadd.f32 %v6320_v15, %v17359_v12 }
 0x50b   : > { %v13210_v13 = vpop.f32.mrf.mxu1 }
 0x50c   : > { %v6417_v0 = vmax.f32 %v6321_v16, 0.0  ;;  %v13752_v16 = vld [vmem:[#allocation13 + $0x18] sm:$0xff]  }
 0x50d   : > { %v6323_v34 = vpop.f32.mrf.mxu1  ;;  %13333 = vmatpush3.bf16.msra.mxu1 %v13752_v16 }
 0x50e   : > { %v6324_v52 = vadd.f32 %v6323_v34, %v17359_v12  ;;  %v6447_v18 = vmul.f32 %v17364_v39, %v6417_v0  ;;  %13334 = vmatprep.subr.bf16.mxu1 %v19990_v24 }
 0x50f   : > { %v13211_v63 = vpop.f32.mrf.mxu1 }
 0x510   : > { %v6418_v32 = vmax.f32 %v6324_v52, 0.0  ;;  %v6477_v35 = vadd.f32 %v17370_v29, %v6447_v18  ;;  %v13753_v18 = vld [vmem:[#allocation13 + $0x10] sm:$0xff]  }
 0x511   : > { %13335 = vmatpush3.bf16.msra.mxu1 %v13753_v18 }
 0x512   : > { %v6448_v55 = vmul.f32 %v17364_v39, %v6418_v32  ;;  %13336 = vmatprep.subr.bf16.mxu1 %v19990_v24 }
 0x514   : > { %v6478_v49 = vadd.f32 %v17370_v29, %v6448_v55 }
 0x516   : > { %v6502_v11 = vpack.c.bf16 %v6478_v49, %v6477_v35 }
 0x518   : > { %13277 = vmatmul.mubr.bf16.gmra.mxu0 %v6502_v11 }
 0x519   : > { %13280 = vmatprep.mubr.msk.bf16.mxu0 %vm14503_vm4, %v19990_v24 }
 0x51e   : > { %v6328_v22 = vpop.f32.mrf.mxu1 }
 0x51f   : > { %v6329_v19 = vadd.f32 %v6328_v22, %v17359_v12  ;;  %v13754_v22 = vld [vmem:[#allocation13 + $0x8] sm:$0xff]  }
 0x520   : > { %v13214_v60 = vpop.f32.mrf.mxu1  ;;  %13337 = vmatpush3.bf16.msra.mxu1 %v13754_v22 }
 0x521   : > { %v6419_v61 = vmax.f32 %v6329_v19, 0.0  ;;  %13338 = vmatprep.subr.bf16.mxu1 %v19990_v24 }
 0x522   : > { %v6331_v59 = vpop.f32.mrf.mxu1 }
 0x523   : > { %v6332_v37 = vadd.f32 %v6331_v59, %v17359_v12  ;;  %v6449_v45 = vmul.f32 %v17364_v39, %v6419_v61 }
 0x524   : > { %v13215_v42 = vpop.f32.mrf.mxu1 }
 0x525   : > { %v6420_v10 = vmax.f32 %v6332_v37, 0.0  ;;  %v6479_v26 = vadd.f32 %v17370_v29, %v6449_v45  ;;  %v13755_v37 = vld [vmem:[#allocation13] sm:$0xff]  }
 0x526   : > { %13339 = vmatpush3.bf16.msra.mxu1 %v13755_v37 }
 0x527   : > { %v6450_v54 = vmul.f32 %v17364_v39, %v6420_v10 }
 0x529   : > { %v6480_v17 = vadd.f32 %v17370_v29, %v6450_v54 }
 0x52b   : > { %v6503_v23 = vpack.c.bf16 %v6480_v17, %v6479_v26  ;;  %v6336_v4 = vpop.f32.mrf.mxu1 }
 0x52c   : > { %v6337_v27 = vadd.f32 %v6336_v4, %v17359_v12 }
 0x52d   : > { %13281 = vmatmul.mubr.bf16.gmra.mxu0 %v6503_v23  ;;  %v13218_v14 = vpop.f32.mrf.mxu1 }
 0x52e   : > { %13284 = vmatprep.mubr.msk.bf16.mxu0 %vm14503_vm4, %v19990_v24  ;;  %v6421_v38 = vmax.f32 %v6337_v27, 0.0 }
 0x52f   : > { %v6339_v36 = vpop.f32.mrf.mxu1 }
 0x530   : > { %v6340_v46 = vadd.f32 %v6339_v36, %v17359_v12  ;;  %v6451_v48 = vmul.f32 %v17364_v39, %v6421_v38 }
 0x531   : > { %v13219_v5 = vpop.f32.mrf.mxu1 }
 0x532   : > { %v6422_v30 = vmax.f32 %v6340_v46, 0.0  ;;  %v6481_v40 = vadd.f32 %v17370_v29, %v6451_v48 }
 0x534   : > { %v6452_v53 = vmul.f32 %v17364_v39, %v6422_v30 }
 0x536   : > { %v6482_v21 = vadd.f32 %v17370_v29, %v6452_v53 }
 0x538   : > { %v6504_v31 = vpack.c.bf16 %v6482_v21, %v6481_v40 }
 0x53a   : > { %13285 = vmatmul.mubr.bf16.gmra.mxu0 %v6504_v31 }
 0x53b   : > { %13288 = vmatprep.mubr.msk.bf16.mxu0 %vm14503_vm4, %v19990_v24 }
 0x544   : > { %v6344_v47 = vpop.f32.mrf.mxu1 }
 0x545   : > { %v6345_v28 = vadd.f32 %v6344_v47, %v17359_v12 }
 0x546   : > { %v13222_v62 = vpop.f32.mrf.mxu1 }
 0x547   : > { %v6423_v20 = vmax.f32 %v6345_v28, 0.0 }
 0x548   : > { %v6347_v9 = vpop.f32.mrf.mxu1 }
 0x549   : > { %v6348_v41 = vadd.f32 %v6347_v9, %v17359_v12  ;;  %v6453_v57 = vmul.f32 %v17364_v39, %v6423_v20 }
 0x54a   : > { %v13223_v6 = vpop.f32.mrf.mxu1 }
 0x54b   : > { %v6424_v15 = vmax.f32 %v6348_v41, 0.0  ;;  %v6483_v0 = vadd.f32 %v17370_v29, %v6453_v57 }
 0x54d   : > { %v6454_v13 = vmul.f32 %v17364_v39, %v6424_v15 }
 0x54f   : > { %v6484_v34 = vadd.f32 %v17370_v29, %v6454_v13  ;;  %v6352_v52 = vpop.f32.mrf.mxu1 }
 0x550   : > { %v6353_v63 = vadd.f32 %v6352_v52, %v17359_v12 }
 0x551   : > { %v6505_v32 = vpack.c.bf16 %v6484_v34, %v6483_v0  ;;  %v13226_v55 = vpop.f32.mrf.mxu1 }
 0x552   : > { %v6425_v35 = vmax.f32 %v6353_v63, 0.0 }
 0x553   : > { %v6355_v49 = vpop.f32.mrf.mxu1  ;;  %13289 = vmatmul.mubr.bf16.gmra.mxu0 %v6505_v32 }
 0x554   : > { %v6356_v11 = vadd.f32 %v6355_v49, %v17359_v12  ;;  %13292 = vmatprep.mubr.msk.bf16.mxu0 %vm14503_vm4, %v19990_v24  ;;  %v6455_v60 = vmul.f32 %v17364_v39, %v6425_v35 }
 0x555   : > { %v13227_v19 = vpop.f32.mrf.mxu1 }
 0x556   : > { %v6426_v61 = vmax.f32 %v6356_v11, 0.0  ;;  %v6485_v42 = vadd.f32 %v17370_v29, %v6455_v60 }
 0x558   : > { %v6456_v59 = vmul.f32 %v17364_v39, %v6426_v61 }
 0x55a   : > { %v6486_v45 = vadd.f32 %v17370_v29, %v6456_v59 }
 0x55c   : > { %v6506_v10 = vpack.c.bf16 %v6486_v45, %v6485_v42  ;;  %v6360_v54 = vpop.f32.mrf.mxu1 }
 0x55d   : > { %v6361_v26 = vadd.f32 %v6360_v54, %v17359_v12 }
 0x55e   : > { %v13230_v17 = vpop.f32.mrf.mxu1  ;;  %13293 = vmatmul.mubr.bf16.gmra.mxu0 %v6506_v10 }
 0x55f   : > { %v6427_v23 = vmax.f32 %v6361_v26, 0.0  ;;  %13296 = vmatprep.mubr.msk.bf16.mxu0 %vm14503_vm4, %v19990_v24 }
 0x560   : > { %v6363_v4 = vpop.f32.mrf.mxu1 }
 0x561   : > { %v6364_v27 = vadd.f32 %v6363_v4, %v17359_v12  ;;  %v6457_v38 = vmul.f32 %v17364_v39, %v6427_v23 }
 0x562   : > { %v13231_v14 = vpop.f32.mrf.mxu1 }
 0x563   : > { %v6428_v36 = vmax.f32 %v6364_v27, 0.0  ;;  %v6487_v5 = vadd.f32 %v17370_v29, %v6457_v38 }
 0x565   : > { %v6458_v46 = vmul.f32 %v17364_v39, %v6428_v36 }
 0x567   : > { %v6488_v48 = vadd.f32 %v17370_v29, %v6458_v46  ;;  %v6368_v30 = vpop.f32.mrf.mxu1 }
 0x568   : > { %v6369_v53 = vadd.f32 %v6368_v30, %v17359_v12 }
 0x569   : > { %v6507_v40 = vpack.c.bf16 %v6488_v48, %v6487_v5  ;;  %v13234_v21 = vpop.f32.mrf.mxu1 }
 0x56a   : > { %v6429_v31 = vmax.f32 %v6369_v53, 0.0 }
 0x56b   : > { %v6371_v50 = vpop.f32.mrf.mxu1  ;;  %13297 = vmatmul.mubr.bf16.gmra.mxu0 %v6507_v40 }
 0x56c   : > { %v6372_v25 = vadd.f32 %v6371_v50, %v17359_v12  ;;  %13300 = vmatprep.mubr.msk.bf16.mxu0 %vm14503_vm4, %v19990_v24  ;;  %v6459_v2 = vmul.f32 %v17364_v39, %v6429_v31 }
 0x56d   : > { %v13235_v47 = vpop.f32.mrf.mxu1 }
 0x56e   : > { %v6430_v28 = vmax.f32 %v6372_v25, 0.0  ;;  %v6489_v20 = vadd.f32 %v17370_v29, %v6459_v2 }
 0x570   : > { %v6460_v62 = vmul.f32 %v17364_v39, %v6430_v28 }
 0x572   : > { %v6490_v9 = vadd.f32 %v17370_v29, %v6460_v62 }
 0x574   : > { %v6508_v56 = vpack.c.bf16 %v6490_v9, %v6489_v20 }
 0x576   : > { %13301 = vmatmul.mubr.bf16.gmra.mxu0 %v6508_v56 }
 0x577   : > { %13304 = vmatprep.mubr.msk.bf16.mxu0 %vm14503_vm4, %v19990_v24 }
 0x57f   : > { %v6376_v41 = vpop.f32.mrf.mxu1 }
 0x580   : > { %v6377_v6 = vadd.f32 %v6376_v41, %v17359_v12 }
 0x581   : > { %v13238_v57 = vpop.f32.mrf.mxu1 }
 0x582   : > { %v6431_v15 = vmax.f32 %v6377_v6, 0.0 }
 0x583   : > { %v6379_v16 = vpop.f32.mrf.mxu1 }
 0x584   : > { %v6380_v13 = vadd.f32 %v6379_v16, %v17359_v12  ;;  %v6461_v34 = vmul.f32 %v17364_v39, %v6431_v15 }
 0x585   : > { %v13239_v0 = vpop.f32.mrf.mxu1 }
 0x586   : > { %v6432_v52 = vmax.f32 %v6380_v13, 0.0  ;;  %v6491_v18 = vadd.f32 %v17370_v29, %v6461_v34 }
 0x588   : > { %v6462_v63 = vmul.f32 %v17364_v39, %v6432_v52 }
 0x58a   : > { %v6492_v32 = vadd.f32 %v17370_v29, %v6462_v63 }
 0x58c   : > { %v6509_v55 = vpack.c.bf16 %v6492_v32, %v6491_v18 }
 0x58e   : > { %13305 = vmatmul.mubr.bf16.gmra.mxu0 %v6509_v55 }
 0x58f   : > { %v6384_v35 = vpop.f32.mrf.mxu1  ;;  %13308 = vmatprep.mubr.msk.bf16.mxu0 %vm14503_vm4, %v19990_v24 }
 0x590   : > { %v6385_v49 = vadd.f32 %v6384_v35, %v17359_v12 }
 0x591   : > { %v13242_v11 = vpop.f32.mrf.mxu1 }
 0x592   : > { %v6433_v22 = vmax.f32 %v6385_v49, 0.0  ;;  %v17480_v49 = vld [vmem:[#allocation19 + $0x10] sm:$0xff] }
 0x593   : > { %v6387_v19 = vpop.f32.mrf.mxu1 }
 0x594   : > { %v6388_v60 = vadd.f32 %v6387_v19, %v17359_v12  ;;  %v6463_v59 = vmul.f32 %v17364_v39, %v6433_v22 }
 0x595   : > { %v13243_v61 = vpop.f32.mrf.mxu1 }
 0x596   : > { %v6434_v37 = vmax.f32 %v6388_v60, 0.0  ;;  %v6493_v10 = vadd.f32 %v17370_v29, %v6463_v59 }
 0x597   : > { %v6392_v45 = vpop.f32.mrf.mxu1 }
 0x598   : > { %v6464_v42 = vmul.f32 %v17364_v39, %v6434_v37  ;;  %v6393_v26 = vadd.f32 %v6392_v45, %v17359_v12 }
 0x599   : > { %v13246_v17 = vpop.f32.mrf.mxu1 }
 0x59a   : > { %v6494_v54 = vadd.f32 %v17370_v29, %v6464_v42  ;;  %v6435_v4 = vmax.f32 %v6393_v26, 0.0 }
 0x59b   : > { %v6395_v27 = vpop.f32.mrf.mxu1 }
 0x59c   : > { %v6510_v23 = vpack.c.bf16 %v6494_v54, %v6493_v10  ;;  %v6396_v14 = vadd.f32 %v6395_v27, %v17359_v12  ;;  %v6465_v36 = vmul.f32 %v17364_v39, %v6435_v4 }
 0x59d   : > { %v13247_v38 = vpop.f32.mrf.mxu1 }
 0x59e   : > { %13309 = vmatmul.mubr.bf16.gmra.mxu0 %v6510_v23  ;;  %v6436_v46 = vmax.f32 %v6396_v14, 0.0  ;;  %v6495_v48 = vadd.f32 %v17370_v29, %v6465_v36 }
 0x59f   : > { %13312 = vmatprep.mubr.msk.bf16.mxu0 %vm14503_vm4, %v19990_v24 }
 0x5a0   : > { %v6466_v5 = vmul.f32 %v17364_v39, %v6436_v46 }
 0x5a2   : > { %v6496_v30 = vadd.f32 %v17370_v29, %v6466_v5 }
 0x5a4   : > { %v6511_v53 = vpack.c.bf16 %v6496_v30, %v6495_v48 }
 0x5a5   : > { %v6400_v40 = vpop.f32.mrf.mxu1 }
 0x5a6   : > { %v6401_v21 = vadd.f32 %v6400_v40, %v17359_v12  ;;  %13313 = vmatmul.mubr.bf16.gmra.mxu0 %v6511_v53 }
 0x5a7   : > { %v13250_v31 = vpop.f32.mrf.mxu1  ;;  %13316 = vmatprep.mubr.msk.bf16.mxu0 %vm14503_vm4, %v19990_v24 }
 0x5a8   : > { %v6437_v50 = vmax.f32 %v6401_v21, 0.0 }
 0x5a9   : > { %v6403_v25 = vpop.f32.mrf.mxu1 }
 0x5aa   : > { %v6404_v47 = vadd.f32 %v6403_v25, %v17359_v12  ;;  %v6467_v28 = vmul.f32 %v17364_v39, %v6437_v50 }
 0x5ab   : > { %v13251_v2 = vpop.f32.mrf.mxu1 }
 0x5ac   : > { %v6438_v62 = vmax.f32 %v6404_v47, 0.0  ;;  %v6497_v9 = vadd.f32 %v17370_v29, %v6467_v28 }
 0x5ae   : > { %v6468_v20 = vmul.f32 %v17364_v39, %v6438_v62 }
 0x5b0   : > { %v6498_v56 = vadd.f32 %v17370_v29, %v6468_v20 }
 0x5b1   : > { %v6408_v41 = vpop.f32.mrf.mxu1 }
 0x5b2   : > { %v6512_v6 = vpack.c.bf16 %v6498_v56, %v6497_v9  ;;  %v6409_v57 = vadd.f32 %v6408_v41, %v17359_v12  ;;  %v13756_v9 = vld [vmem:[#allocation14 + $0x38] sm:$0xff]   ;;  %v13757_v56 = vld [vmem:[#allocation14 + $0x30] sm:$0xff]   ;;  %v13758_v41 = vld [vmem:[#allocation14 + $0x28] sm:$0xff]  }
 0x5b3   : > { %v13254_v15 = vpop.f32.mrf.mxu1  ;;  %13393 = vmatpush3.bf16.msra.mxu0 %v13756_v9 }
 0x5b4   : > { %v6439_v16 = vmax.f32 %v6409_v57, 0.0  ;;  %13317 = vmatmul.mubr.bf16.gmra.mxu0 %v6512_v6  ;;  %13394 = vmatprep.subr.bf16.mxu0 %v19990_v24  ;;  %v13759_v15 = vld [vmem:[#allocation14 + $0x20] sm:$0xff]  }
 0x5b5   : > { %v6411_v13 = vpop.f32.mrf.mxu1  ;;  %13320 = vmatprep.mubr.msk.bf16.mxu0 %vm14503_vm4, %v19990_v24 }
 0x5b6   : > { %v6412_v0 = vadd.f32 %v6411_v13, %v17359_v12  ;;  %v6469_v52 = vmul.f32 %v17364_v39, %v6439_v16  ;;  %v17484_v12 = vrot.slane %v17480_v49, %v16277_v3 }
 0x5b7   : > { %v13255_v34 = vpop.f32.mrf.mxu1  ;;  %13395 = vmatpush3.bf16.msra.mxu0 %v13757_v56 }
 0x5b8   : > { %v6440_v63 = vmax.f32 %v6412_v0, 0.0  ;;  %v6499_v32 = vadd.f32 %v17370_v29, %v6469_v52  ;;  %13396 = vmatprep.subr.bf16.mxu0 %v19990_v24  ;;  %v13760_v52 = vld [vmem:[#allocation14 + $0x18] sm:$0xff]  }
 0x5ba   : > { %v6470_v18 = vmul.f32 %v17364_v39, %v6440_v63 }
 0x5bb   : > { %13397 = vmatpush3.bf16.msra.mxu0 %v13758_v41 }
 0x5bc   : > { %v6500_v55 = vadd.f32 %v17370_v29, %v6470_v18  ;;  %13398 = vmatprep.subr.bf16.mxu0 %v19990_v24 }
 0x5be   : > { %v6513_v35 = vpack.c.bf16 %v6500_v55, %v6499_v32 }
 0x5bf   : > { %13399 = vmatpush3.bf16.msra.mxu0 %v13759_v15 }
 0x5c0   : > { %13321 = vmatmul.mubr.bf16.gmra.mxu0 %v6513_v35  ;;  %13400 = vmatprep.subr.bf16.mxu0 %v19990_v24 }
 0x5c1   : > { %13408 = vmatprep.mubr.msk.bf16.mxu0 %vm14503_vm4, %v19990_v24 }
 0x5c3   : > { %13401 = vmatpush3.bf16.msra.mxu0 %v13760_v52 }
 0x5c4   : > { %13402 = vmatprep.subr.bf16.mxu0 %v19990_v24 }
 0x5c5   : > { %v6616_v11 = vpop.f32.mrf.mxu0 }
 0x5c6   : > { %v6617_v19 = vadd.f32 %v6616_v11, %v17484_v12 }
 0x5c7   : > { %v13274_v22 = vpop.f32.mrf.mxu0 }
 0x5c8   : > { %v17488_v29 = vmax.f32 %v6617_v19, 0.0 }
 0x5c9   : > { %v6619_v39 = vpop.f32.mrf.mxu0 }
 0x5ca   : > { %v6620_v60 = vadd.f32 %v6619_v39, %v17484_v12 }
 0x5cb   : > { %v13275_v61 = vpop.f32.mrf.mxu0 }
 0x5cc   : > { %v17490_v59 = vmax.f32 %v6620_v60, 0.0 }
 0x5ce   : > { %v6745_v37 = vpack.c.bf16 %v17490_v59, %v17488_v29 }
 0x5d0   : > { %13341 = vmatmul.mubr.bf16.vlgmr.msra.gmra.mxu1 %v6745_v37  ;;  %v13761_v37 = vld [vmem:[#allocation14 + $0x10] sm:$0xff]  }
 0x5d1   : > { %13344 = vmatprep.mubr.msk.bf16.mxu1 %vm14503_vm4, %v19990_v24  ;;  %13403 = vmatpush3.bf16.msra.mxu0 %v13761_v37 }
 0x5d2   : > { %13404 = vmatprep.subr.bf16.mxu0 %v19990_v24 }
 0x5d8   : > { %v6624_v42 = vpop.f32.mrf.mxu0 }
 0x5d9   : > { %v6625_v10 = vadd.f32 %v6624_v42, %v17484_v12 }
 0x5da   : > { %v13278_v45 = vpop.f32.mrf.mxu0 }
 0x5db   : > { %v17498_v23 = vmax.f32 %v6625_v10, 0.0  ;;  %v13762_v45 = vld [vmem:[#allocation14 + $0x8] sm:$0xff]  }
 0x5dc   : > { %v6627_v54 = vpop.f32.mrf.mxu0  ;;  %13405 = vmatpush3.bf16.msra.mxu0 %v13762_v45 }
 0x5dd   : > { %v6628_v26 = vadd.f32 %v6627_v54, %v17484_v12  ;;  %v13763_v54 = vld [vmem:[#allocation14] sm:$0xff]   ;;  %13406 = vmatprep.subr.bf16.mxu0 %v19990_v24 }
 0x5de   : > { %v13279_v17 = vpop.f32.mrf.mxu0 }
 0x5df   : > { %v17500_v4 = vmax.f32 %v6628_v26, 0.0 }
 0x5e0   : > { %13407 = vmatpush3.bf16.msra.mxu0 %v13763_v54 }
 0x5e1   : > { %v6746_v27 = vpack.c.bf16 %v17500_v4, %v17498_v23  ;;  %13460 = vmatprep.subr.bf16.mxu0 %v19990_v24 }
 0x5e3   : > { %13345 = vmatmul.mubr.bf16.gmra.mxu1 %v6746_v27 }
 0x5e4   : > { %13348 = vmatprep.mubr.msk.bf16.mxu1 %vm14503_vm4, %v19990_v24 }
 0x5ed   : > { %v6632_v14 = vpop.f32.mrf.mxu0 }
 0x5ee   : > { %v6633_v36 = vadd.f32 %v6632_v14, %v17484_v12 }
 0x5ef   : > { %v13282_v38 = vpop.f32.mrf.mxu0 }
 0x5f0   : > { %v17508_v30 = vmax.f32 %v6633_v36, 0.0 }
 0x5f1   : > { %v6635_v46 = vpop.f32.mrf.mxu0 }
 0x5f2   : > { %v6636_v5 = vadd.f32 %v6635_v46, %v17484_v12 }
 0x5f3   : > { %v13283_v48 = vpop.f32.mrf.mxu0 }
 0x5f4   : > { %v17510_v53 = vmax.f32 %v6636_v5, 0.0 }
 0x5f6   : > { %v6747_v40 = vpack.c.bf16 %v17510_v53, %v17508_v30  ;;  %v17804_v3 = vrot.slane %v17510_v53, %v16299_v51 }
 0x5f8   : > { %13349 = vmatmul.mubr.bf16.gmra.mxu1 %v6747_v40  ;;  %20249 = vst [vmem:[#allocation37_spill] sm:$0xff] %v17804_v3 }
 0x5f9   : > { %13352 = vmatprep.mubr.msk.bf16.mxu1 %vm14503_vm4, %v19990_v24 }
 0x5fa   : > { %v6640_v21 = vpop.f32.mrf.mxu0 }
 0x5fb   : > { %v6641_v50 = vadd.f32 %v6640_v21, %v17484_v12 }
 0x5fc   : > { %v13286_v31 = vpop.f32.mrf.mxu0 }
 0x5fd   : > { %v17518_v28 = vmax.f32 %v6641_v50, 0.0 }
 0x5fe   : > { %v6643_v25 = vpop.f32.mrf.mxu0 }
 0x5ff   : > { %v6644_v47 = vadd.f32 %v6643_v25, %v17484_v12 }
 0x600   : > { %v13287_v2 = vpop.f32.mrf.mxu0 }
 0x601   : > { %v17520_v62 = vmax.f32 %v6644_v47, 0.0 }
 0x603   : > { %v6748_v20 = vpack.c.bf16 %v17520_v62, %v17518_v28 }
 0x605   : > { %13353 = vmatmul.mubr.bf16.gmra.mxu1 %v6748_v20 }
 0x606   : > { %13356 = vmatprep.mubr.msk.bf16.mxu1 %vm14503_vm4, %v19990_v24 }
 0x613   : > { %v6648_v6 = vpop.f32.mrf.mxu0 }
 0x614   : > { %v6649_v16 = vadd.f32 %v6648_v6, %v17484_v12 }
 0x615   : > { %v13290_v57 = vpop.f32.mrf.mxu0 }
 0x616   : > { %v17531_v63 = vmax.f32 %v6649_v16, 0.0 }
 0x617   : > { %v6651_v13 = vpop.f32.mrf.mxu0 }
 0x618   : > { %v6652_v0 = vadd.f32 %v6651_v13, %v17484_v12 }
 0x619   : > { %v13291_v34 = vpop.f32.mrf.mxu0 }
 0x61a   : > { %v17533_v18 = vmax.f32 %v6652_v0, 0.0 }
 0x61c   : > { %v6749_v32 = vpack.c.bf16 %v17533_v18, %v17531_v63 }
 0x61e   : > { %v6656_v55 = vpop.f32.mrf.mxu0  ;;  %13357 = vmatmul.mubr.bf16.gmra.mxu1 %v6749_v32 }
 0x61f   : > { %13360 = vmatprep.mubr.msk.bf16.mxu1 %vm14503_vm4, %v19990_v24  ;;  %v6657_v11 = vadd.f32 %v6656_v55, %v17484_v12 }
 0x620   : > { %v13294_v35 = vpop.f32.mrf.mxu0 }
 0x621   : > { %v17543_v60 = vmax.f32 %v6657_v11, 0.0 }
 0x622   : > { %v6659_v22 = vpop.f32.mrf.mxu0 }
 0x623   : > { %v6660_v19 = vadd.f32 %v6659_v22, %v17484_v12 }
 0x624   : > { %v13295_v39 = vpop.f32.mrf.mxu0 }
 0x625   : > { %v17545_v61 = vmax.f32 %v6660_v19, 0.0 }
 0x627   : > { %v6750_v42 = vpack.c.bf16 %v17545_v61, %v17543_v60 }
 0x629   : > { %13361 = vmatmul.mubr.bf16.gmra.mxu1 %v6750_v42 }
 0x62a   : > { %13364 = vmatprep.mubr.msk.bf16.mxu1 %vm14503_vm4, %v19990_v24 }
 0x62b   : > { %v6664_v10 = vpop.f32.mrf.mxu0 }
 0x62c   : > { %v6665_v17 = vadd.f32 %v6664_v10, %v17484_v12 }
 0x62d   : > { %v13298_v26 = vpop.f32.mrf.mxu0 }
 0x62e   : > { %v17556_v36 = vmax.f32 %v6665_v17, 0.0 }
 0x62f   : > { %v6667_v27 = vpop.f32.mrf.mxu0 }
 0x630   : > { %v6668_v14 = vadd.f32 %v6667_v27, %v17484_v12 }
 0x631   : > { %v13299_v38 = vpop.f32.mrf.mxu0 }
 0x632   : > { %v17558_v46 = vmax.f32 %v6668_v14, 0.0 }
 0x634   : > { %v6751_v5 = vpack.c.bf16 %v17558_v46, %v17556_v36 }
 0x636   : > { %v6672_v48 = vpop.f32.mrf.mxu0  ;;  %13365 = vmatmul.mubr.bf16.gmra.mxu1 %v6751_v5 }
 0x637   : > { %13368 = vmatprep.mubr.msk.bf16.mxu1 %vm14503_vm4, %v19990_v24  ;;  %v6673_v21 = vadd.f32 %v6672_v48, %v17484_v12 }
 0x638   : > { %v13302_v40 = vpop.f32.mrf.mxu0 }
 0x639   : > { %v17566_v47 = vmax.f32 %v6673_v21, 0.0 }
 0x63a   : > { %v6675_v31 = vpop.f32.mrf.mxu0 }
 0x63b   : > { %v6676_v50 = vadd.f32 %v6675_v31, %v17484_v12 }
 0x63c   : > { %v13303_v25 = vpop.f32.mrf.mxu0 }
 0x63d   : > { %v17568_v2 = vmax.f32 %v6676_v50, 0.0 }
 0x63f   : > { %v6752_v20 = vpack.c.bf16 %v17568_v2, %v17566_v47 }
 0x641   : > { %13369 = vmatmul.mubr.bf16.gmra.mxu1 %v6752_v20 }
 0x642   : > { %13372 = vmatprep.mubr.msk.bf16.mxu1 %vm14503_vm4, %v19990_v24 }
 0x64e   : > { %v6680_v9 = vpop.f32.mrf.mxu0 }
 0x64f   : > { %v6681_v41 = vadd.f32 %v6680_v9, %v17484_v12 }
 0x650   : > { %v13306_v56 = vpop.f32.mrf.mxu0 }
 0x651   : > { %v17576_v16 = vmax.f32 %v6681_v41, 0.0 }
 0x652   : > { %v6683_v6 = vpop.f32.mrf.mxu0 }
 0x653   : > { %v6684_v57 = vadd.f32 %v6683_v6, %v17484_v12 }
 0x654   : > { %v13307_v15 = vpop.f32.mrf.mxu0 }
 0x655   : > { %v17578_v13 = vmax.f32 %v6684_v57, 0.0 }
 0x657   : > { %v6753_v0 = vpack.c.bf16 %v17578_v13, %v17576_v16 }
 0x659   : > { %13373 = vmatmul.mubr.bf16.gmra.mxu1 %v6753_v0 }
 0x65a   : > { %13376 = vmatprep.mubr.msk.bf16.mxu1 %vm14503_vm4, %v19990_v24 }
 0x65e   : > { %v6688_v34 = vpop.f32.mrf.mxu0 }
 0x65f   : > { %v6689_v32 = vadd.f32 %v6688_v34, %v17484_v12 }
 0x660   : > { %v13310_v52 = vpop.f32.mrf.mxu0 }
 0x661   : > { %v17586_v22 = vmax.f32 %v6689_v32, 0.0  ;;  %v20245_v32 = vsub.s32 5, %v15659_v58  ;;  %v17694_v58 = vrot.slane %v17488_v29, %v16299_v51 }
 0x662   : > { %v6691_v55 = vpop.f32.mrf.mxu0 }
 0x663   : > { %v6692_v35 = vadd.f32 %v6691_v55, %v17484_v12  ;;  %v17625_v55 = vrot.slane %v17480_v49, %v20245_v32 }
 0x664   : > { %v13311_v11 = vpop.f32.mrf.mxu0 }
 0x665   : > { %v17588_v19 = vmax.f32 %v6692_v35, 0.0 }
 0x666   : > { %v6696_v37 = vpop.f32.mrf.mxu0 }
 0x667   : > { %v6754_v39 = vpack.c.bf16 %v17588_v19, %v17586_v22  ;;  %v6697_v45 = vadd.f32 %v6696_v37, %v17484_v12 }
 0x668   : > { %v13314_v42 = vpop.f32.mrf.mxu0 }
 0x669   : > { %13377 = vmatmul.mubr.bf16.gmra.mxu1 %v6754_v39  ;;  %v17596_v17 = vmax.f32 %v6697_v45, 0.0 }
 0x66a   : > { %13380 = vmatprep.mubr.msk.bf16.mxu1 %vm14503_vm4, %v19990_v24  ;;  %v6699_v10 = vpop.f32.mrf.mxu0 }
 0x66b   : > { %v6700_v54 = vadd.f32 %v6699_v10, %v17484_v12 }
 0x66c   : > { %v13315_v26 = vpop.f32.mrf.mxu0 }
 0x66d   : > { %v17598_v27 = vmax.f32 %v6700_v54, 0.0 }
 0x66f   : > { %v6755_v14 = vpack.c.bf16 %v17598_v27, %v17596_v17 }
 0x671   : > { %13381 = vmatmul.mubr.bf16.gmra.mxu1 %v6755_v14 }
 0x672   : > { %13384 = vmatprep.mubr.msk.bf16.mxu1 %vm14503_vm4, %v19990_v24 }
 0x674   : > { %v6704_v38 = vpop.f32.mrf.mxu0 }
 0x675   : > { %v6705_v48 = vadd.f32 %v6704_v38, %v17484_v12 }
 0x676   : > { %v13318_v5 = vpop.f32.mrf.mxu0 }
 0x677   : > { %v17606_v50 = vmax.f32 %v6705_v48, 0.0 }
 0x678   : > { %v6707_v40 = vpop.f32.mrf.mxu0 }
 0x679   : > { %v6708_v21 = vadd.f32 %v6707_v40, %v17484_v12 }
 0x67a   : > { %v13319_v31 = vpop.f32.mrf.mxu0 }
 0x67b   : > { %v17608_v25 = vmax.f32 %v6708_v21, 0.0 }
 0x67d   : > { %v6756_v20 = vpack.c.bf16 %v17608_v25, %v17606_v50 }
 0x67f   : > { %13385 = vmatmul.mubr.bf16.gmra.mxu1 %v6756_v20 }
 0x680   : > { %v6712_v9 = vpop.f32.mrf.mxu0  ;;  %13388 = vmatprep.mubr.msk.bf16.mxu1 %vm14503_vm4, %v19990_v24 }
 0x681   : > { %v6713_v41 = vadd.f32 %v6712_v9, %v17484_v12 }
 0x682   : > { %v13322_v56 = vpop.f32.mrf.mxu0 }
 0x683   : > { %v17616_v0 = vmax.f32 %v6713_v41, 0.0 }
 0x684   : > { %v6715_v6 = vpop.f32.mrf.mxu0 }
 0x685   : > { %v6716_v57 = vadd.f32 %v6715_v6, %v17484_v12 }
 0x686   : > { %v13323_v15 = vpop.f32.mrf.mxu0 }
 0x687   : > { %v17618_v34 = vmax.f32 %v6716_v57, 0.0 }
 0x689   : > { %v6757_v52 = vpack.c.bf16 %v17618_v34, %v17616_v0 }
 0x68b   : > { %13389 = vmatmul.mubr.bf16.gmra.mxu1 %v6757_v52 }
 0x690   : > { %v6860_v35 = vpop.f32.mrf.mxu1 }
 0x691   : > { %v6861_v11 = vadd.f32 %v6860_v35, %v17625_v55 }
 0x692   : > { %v13342_v39 = vpop.f32.mrf.mxu1 }
 0x693   : > { %13788 = vtanh.f32 %v6861_v11 }
 0x694   : > { %v6863_v37 = vpop.f32.mrf.mxu1 }
 0x695   : > { %v6864_v12 = vadd.f32 %v6863_v37, %v17625_v55 }
 0x696   : > { %v13343_v42 = vpop.f32.mrf.mxu1 }
 0x697   : > { %13790 = vtanh.f32 %v6864_v12 }
 0x6a0   : > { %v13789_v45 = vpop.eup %13788 }
 0x6a3   : > { %v6868_v10 = vpop.f32.mrf.mxu1 }
 0x6a4   : > { %v13791_v54 = vpop.eup %13790  ;;  %v6869_v14 = vadd.f32 %v6868_v10, %v17625_v55 }
 0x6a5   : > { %v6989_v26 = vpack.c.bf16 %v13791_v54, %v13789_v45  ;;  %v13346_v38 = vpop.f32.mrf.mxu1 }
 0x6a6   : > { %13792 = vtanh.f32 %v6869_v14 }
 0x6a7   : > { %v6871_v5 = vpop.f32.mrf.mxu1  ;;  %13409 = vmatmul.mubr.bf16.vlgmr.msra.gmra.mxu0 %v6989_v26 }
 0x6a8   : > { %v6872_v48 = vadd.f32 %v6871_v5, %v17625_v55  ;;  %13412 = vmatprep.mubr.msk.bf16.mxu0 %vm14503_vm4, %v19990_v24 }
 0x6a9   : > { %v13347_v40 = vpop.f32.mrf.mxu1 }
 0x6aa   : > { %13794 = vtanh.f32 %v6872_v48 }
 0x6b3   : > { %v13793_v21 = vpop.eup %13792 }
 0x6b7   : > { %v13795_v31 = vpop.eup %13794 }
 0x6b8   : > { %v6876_v20 = vpop.f32.mrf.mxu1  ;;  %v6990_v9 = vpack.c.bf16 %v13795_v31, %v13793_v21 }
 0x6b9   : > { %v6877_v56 = vadd.f32 %v6876_v20, %v17625_v55 }
 0x6ba   : > { %v13350_v41 = vpop.f32.mrf.mxu1  ;;  %13413 = vmatmul.mubr.bf16.gmra.mxu0 %v6990_v9 }
 0x6bb   : > { %13416 = vmatprep.mubr.msk.bf16.mxu0 %vm14503_vm4, %v19990_v24  ;;  %13796 = vtanh.f32 %v6877_v56 }
 0x6bc   : > { %v6879_v6 = vpop.f32.mrf.mxu1 }
 0x6bd   : > { %v6880_v57 = vadd.f32 %v6879_v6, %v17625_v55 }
 0x6be   : > { %v13351_v15 = vpop.f32.mrf.mxu1 }
 0x6bf   : > { %13798 = vtanh.f32 %v6880_v57 }
 0x6c5   : > { %v6884_v52 = vpop.f32.mrf.mxu1 }
 0x6c6   : > { %v6885_v32 = vadd.f32 %v6884_v52, %v17625_v55 }
 0x6c7   : > { %v13354_v35 = vpop.f32.mrf.mxu1 }
 0x6c8   : > { %v13797_v39 = vpop.eup %13796  ;;  %13800 = vtanh.f32 %v6885_v32 }
 0x6c9   : > { %v6887_v11 = vpop.f32.mrf.mxu1 }
 0x6ca   : > { %v6888_v37 = vadd.f32 %v6887_v11, %v17625_v55 }
 0x6cb   : > { %v13355_v42 = vpop.f32.mrf.mxu1 }
 0x6cc   : > { %v13799_v12 = vpop.eup %13798  ;;  %13802 = vtanh.f32 %v6888_v37 }
 0x6cd   : > { %v6991_v45 = vpack.c.bf16 %v13799_v12, %v13797_v39 }
 0x6cf   : > { %13417 = vmatmul.mubr.bf16.gmra.mxu0 %v6991_v45 }
 0x6d0   : > { %13420 = vmatprep.mubr.msk.bf16.mxu0 %vm14503_vm4, %v19990_v24 }
 0x6d5   : > { %v13801_v10 = vpop.eup %13800 }
 0x6d9   : > { %v13803_v54 = vpop.eup %13802 }
 0x6da   : > { %v6992_v26 = vpack.c.bf16 %v13803_v54, %v13801_v10 }
 0x6dc   : > { %13421 = vmatmul.mubr.bf16.gmra.mxu0 %v6992_v26 }
 0x6dd   : > { %13424 = vmatprep.mubr.msk.bf16.mxu0 %vm14503_vm4, %v19990_v24 }
 0x6de   : > { %v6892_v14 = vpop.f32.mrf.mxu1 }
 0x6df   : > { %v6893_v38 = vadd.f32 %v6892_v14, %v17625_v55 }
 0x6e0   : > { %v13358_v5 = vpop.f32.mrf.mxu1 }
 0x6e1   : > { %13804 = vtanh.f32 %v6893_v38 }
 0x6e2   : > { %v6895_v48 = vpop.f32.mrf.mxu1 }
 0x6e3   : > { %v6896_v40 = vadd.f32 %v6895_v48, %v17625_v55 }
 0x6e4   : > { %v13359_v21 = vpop.f32.mrf.mxu1 }
 0x6e5   : > { %13806 = vtanh.f32 %v6896_v40 }
 0x6e9   : > { %v6900_v31 = vpop.f32.mrf.mxu1 }
 0x6ea   : > { %v6901_v20 = vadd.f32 %v6900_v31, %v17625_v55 }
 0x6eb   : > { %v13362_v9 = vpop.f32.mrf.mxu1 }
 0x6ec   : > { %13808 = vtanh.f32 %v6901_v20 }
 0x6ed   : > { %v6903_v56 = vpop.f32.mrf.mxu1 }
 0x6ee   : > { %v6904_v41 = vadd.f32 %v6903_v56, %v17625_v55  ;;  %v13805_v57 = vpop.eup %13804 }
 0x6ef   : > { %v13363_v6 = vpop.f32.mrf.mxu1 }
 0x6f0   : > { %13810 = vtanh.f32 %v6904_v41 }
 0x6f2   : > { %v13807_v15 = vpop.eup %13806 }
 0x6f3   : > { %v6993_v52 = vpack.c.bf16 %v13807_v15, %v13805_v57 }
 0x6f5   : > { %13425 = vmatmul.mubr.bf16.gmra.mxu0 %v6993_v52 }
 0x6f6   : > { %v6908_v32 = vpop.f32.mrf.mxu1  ;;  %13428 = vmatprep.mubr.msk.bf16.mxu0 %vm14503_vm4, %v19990_v24 }
 0x6f7   : > { %v6909_v35 = vadd.f32 %v6908_v32, %v17625_v55 }
 0x6f8   : > { %v13366_v11 = vpop.f32.mrf.mxu1 }
 0x6f9   : > { %v13809_v12 = vpop.eup %13808  ;;  %13812 = vtanh.f32 %v6909_v35 }
 0x6fa   : > { %v6911_v39 = vpop.f32.mrf.mxu1 }
 0x6fb   : > { %v6912_v37 = vadd.f32 %v6911_v39, %v17625_v55 }
 0x6fc   : > { %v13367_v42 = vpop.f32.mrf.mxu1 }
 0x6fd   : > { %v13811_v45 = vpop.eup %13810  ;;  %13814 = vtanh.f32 %v6912_v37 }
 0x6fe   : > { %v6994_v10 = vpack.c.bf16 %v13811_v45, %v13809_v12 }
 0x700   : > { %13429 = vmatmul.mubr.bf16.gmra.mxu0 %v6994_v10 }
 0x701   : > { %v6916_v54 = vpop.f32.mrf.mxu1  ;;  %13432 = vmatprep.mubr.msk.bf16.mxu0 %vm14503_vm4, %v19990_v24 }
 0x702   : > { %v6917_v26 = vadd.f32 %v6916_v54, %v17625_v55 }
 0x703   : > { %v13370_v14 = vpop.f32.mrf.mxu1 }
 0x704   : > { %13816 = vtanh.f32 %v6917_v26 }
 0x705   : > { %v6919_v38 = vpop.f32.mrf.mxu1 }
 0x706   : > { %v6920_v5 = vadd.f32 %v6919_v38, %v17625_v55  ;;  %v13813_v40 = vpop.eup %13812 }
 0x707   : > { %v13371_v48 = vpop.f32.mrf.mxu1 }
 0x708   : > { %13818 = vtanh.f32 %v6920_v5 }
 0x70a   : > { %v13815_v21 = vpop.eup %13814 }
 0x70b   : > { %v6995_v31 = vpack.c.bf16 %v13815_v21, %v13813_v40 }
 0x70d   : > { %13433 = vmatmul.mubr.bf16.gmra.mxu0 %v6995_v31 }
 0x70e   : > { %13436 = vmatprep.mubr.msk.bf16.mxu0 %vm14503_vm4, %v19990_v24 }
 0x711   : > { %v13817_v20 = vpop.eup %13816 }
 0x715   : > { %v13819_v9 = vpop.eup %13818 }
 0x716   : > { %v6996_v56 = vpack.c.bf16 %v13819_v9, %v13817_v20 }
 0x718   : > { %13437 = vmatmul.mubr.bf16.gmra.mxu0 %v6996_v56 }
 0x719   : > { %v6924_v41 = vpop.f32.mrf.mxu1  ;;  %13440 = vmatprep.mubr.msk.bf16.mxu0 %vm14503_vm4, %v19990_v24 }
 0x71a   : > { %v6925_v6 = vadd.f32 %v6924_v41, %v17625_v55 }
 0x71b   : > { %v13374_v57 = vpop.f32.mrf.mxu1 }
 0x71c   : > { %13820 = vtanh.f32 %v6925_v6 }
 0x71d   : > { %v6927_v15 = vpop.f32.mrf.mxu1 }
 0x71e   : > { %v6928_v52 = vadd.f32 %v6927_v15, %v17625_v55 }
 0x71f   : > { %v13375_v32 = vpop.f32.mrf.mxu1 }
 0x720   : > { %13822 = vtanh.f32 %v6928_v52 }
 0x729   : > { %v6932_v35 = vpop.f32.mrf.mxu1  ;;  %v13821_v37 = vpop.eup %13820 }
 0x72a   : > { %v6933_v11 = vadd.f32 %v6932_v35, %v17625_v55 }
 0x72b   : > { %v13378_v39 = vpop.f32.mrf.mxu1 }
 0x72c   : > { %13824 = vtanh.f32 %v6933_v11 }
 0x72d   : > { %v6935_v12 = vpop.f32.mrf.mxu1  ;;  %v13823_v42 = vpop.eup %13822 }
 0x72e   : > { %v6936_v45 = vadd.f32 %v6935_v12, %v17625_v55  ;;  %v6997_v54 = vpack.c.bf16 %v13823_v42, %v13821_v37 }
 0x72f   : > { %v13379_v10 = vpop.f32.mrf.mxu1 }
 0x730   : > { %13826 = vtanh.f32 %v6936_v45  ;;  %13441 = vmatmul.mubr.bf16.gmra.mxu0 %v6997_v54 }
 0x731   : > { %13444 = vmatprep.mubr.msk.bf16.mxu0 %vm14503_vm4, %v19990_v24  ;;  %v6940_v26 = vpop.f32.mrf.mxu1 }
 0x732   : > { %v6941_v14 = vadd.f32 %v6940_v26, %v17625_v55 }
 0x733   : > { %v13382_v38 = vpop.f32.mrf.mxu1 }
 0x734   : > { %13828 = vtanh.f32 %v6941_v14 }
 0x735   : > { %v6943_v5 = vpop.f32.mrf.mxu1 }
 0x736   : > { %v6944_v48 = vadd.f32 %v6943_v5, %v17625_v55 }
 0x737   : > { %v13383_v40 = vpop.f32.mrf.mxu1 }
 0x738   : > { %13830 = vtanh.f32 %v6944_v48 }
 0x739   : > { %v13825_v21 = vpop.eup %13824 }
 0x73d   : > { %v13827_v31 = vpop.eup %13826 }
 0x73e   : > { %v6998_v20 = vpack.c.bf16 %v13827_v31, %v13825_v21  ;;  %v7233_v21 = vcombine.high %v17488_v29, %v17488_v29  ;;  %v7250_v31 = vcombine.high %v17490_v59, %v17490_v59 }
 0x73f   : > { %v6948_v9 = vpop.f32.mrf.mxu1 }
 0x740   : > { %13445 = vmatmul.mubr.bf16.gmra.mxu0 %v6998_v20  ;;  %v6949_v56 = vadd.f32 %v6948_v9, %v17625_v55 }
 0x741   : > { %13448 = vmatprep.mubr.msk.bf16.mxu0 %vm14503_vm4, %v19990_v24  ;;  %v13386_v41 = vpop.f32.mrf.mxu1  ;;  %v13829_v15 = vpop.eup %13828 }
 0x742   : > { %13832 = vtanh.f32 %v6949_v56 }
 0x743   : > { %v6951_v6 = vpop.f32.mrf.mxu1 }
 0x744   : > { %v6952_v57 = vadd.f32 %v6951_v6, %v17625_v55 }
 0x745   : > { %v13387_v52 = vpop.f32.mrf.mxu1  ;;  %v13831_v32 = vpop.eup %13830 }
 0x746   : > { %13834 = vtanh.f32 %v6952_v57  ;;  %v6999_v35 = vpack.c.bf16 %v13831_v32, %v13829_v15  ;;  %v17703_v57 = vrot.slane %v7233_v21, %v16299_v51  ;;  %v17707_v15 = vrot.slane %v17490_v59, %v16299_v51 }
 0x747   : > { %v17710_v52 = vrot.slane %v7250_v31, %v16299_v51  ;;  %v17725_v59 = vcombine.high %v17694_v58, %v17694_v58 }
 0x748   : > { %13449 = vmatmul.mubr.bf16.gmra.mxu0 %v6999_v35 }
 0x749   : > { %13452 = vmatprep.mubr.msk.bf16.mxu0 %vm14503_vm4, %v19990_v24 }
 0x74b   : > { %v6956_v11 = vpop.f32.mrf.mxu1 }
 0x74c   : > { %v6957_v39 = vadd.f32 %v6956_v11, %v17625_v55 }
 0x74d   : > { %v13390_v37 = vpop.f32.mrf.mxu1 }
 0x74e   : > { %13836 = vtanh.f32 %v6957_v39  ;;  %v17729_v37 = vrot.slane %v17498_v23, %v16299_v51 }
 0x74f   : > { %v6959_v12 = vpop.f32.mrf.mxu1  ;;  %v13833_v10 = vpop.eup %13832 }
 0x750   : > { %v6960_v42 = vadd.f32 %v6959_v12, %v17625_v55  ;;  %v17682_v55 = vrot.slane %v17480_v49, %v5691_v1  ;;  %v7267_v49 = vcombine.high %v17498_v23, %v17498_v23  ;;  %v7284_v12 = vcombine.high %v17500_v4, %v17500_v4 }
 0x751   : > { %v13391_v45 = vpop.f32.mrf.mxu1  ;;  %v17747_v23 = vcombine.high %v17703_v57, %v17703_v57 }
 0x752   : > { %13838 = vtanh.f32 %v6960_v42  ;;  %v17734_v42 = vrot.slane %v7267_v49, %v16299_v51  ;;  %v17776_v31 = vrot.slane %v7284_v12, %v16299_v51  ;;  %v7352_v49 = vcombine.high %v17520_v62, %v17520_v62 }
 0x753   : > { %v13835_v54 = vpop.eup %13834  ;;  %v17797_v12 = vrot.slane %v17508_v30, %v16299_v51 }
 0x754   : > { %v7000_v26 = vpack.c.bf16 %v13835_v54, %v13833_v10  ;;  %20246 = vst [vmem:[#allocation34_spill] sm:$0xff] %v17776_v31 }
 0x755   : > { %20247 = vst [vmem:[#allocation35_spill] sm:$0xff] %v17797_v12 }
 0x756   : > { %13453 = vmatmul.mubr.bf16.gmra.mxu0 %v7000_v26  ;;  %v17751_v26 = vcombine.high %v17707_v15, %v17707_v15 }
 0x757   : > { %13456 = vmatprep.mubr.msk.bf16.mxu0 %vm14503_vm4, %v19990_v24 }
 0x75b   : > { %v13837_v14 = vpop.eup %13836 }
 0x75f   : > { %v13839_v38 = vpop.eup %13838 }
 0x760   : > { %v7001_v5 = vpack.c.bf16 %v13839_v38, %v13837_v14  ;;  %v17755_v14 = vrot.slane %v17500_v4, %v16299_v51  ;;  %v7301_v38 = vcombine.high %v17508_v30, %v17508_v30  ;;  %v17773_v4 = vcombine.high %v17729_v37, %v17729_v37 }
 0x761   : > { %v17813_v30 = vcombine.high %v17776_v31, %v17776_v31 }
 0x762   : > { %13457 = vmatmul.mubr.bf16.gmra.mxu0 %v7001_v5  ;;  %v17761_v5 = vcombine.high %v17710_v52, %v17710_v52 }
 0x763   : > { %13476 = vmatprep.mubr.msk.bf16.mxu0 %vm14503_vm4, %v19990_v24  ;;  %v17800_v24 = vrot.slane %v7301_v38, %v16299_v51  ;;  %20250 = vst [vmem:[#allocation38_spill] sm:$0xff] %v17813_v30 }
 0x765   : > { %20248 = vst [vmem:[#allocation36_spill] sm:$0xff] %v17800_v24 }
 0x767   : > { %v7104_v48 = vpop.f32.mrf.mxu0 }
 0x768   : > { %v7105_v40 = vadd.f32 %v7104_v48, %v17682_v55 }
 0x769   : > { %v13410_v20 = vpop.f32.mrf.mxu0 }
 0x76a   : > { %v7805_v9 = vcombine.high %v7105_v40, %v7105_v40  ;;  %v17690_v56 = vrot.slane %v7105_v40, %v16299_v51  ;;  %v7318_v20 = vcombine.high %v17510_v53, %v17510_v53  ;;  %v17820_v53 = vrot.slane %v17518_v28, %v16299_v51 }
 0x76b   : > { %v7107_v1 = vpop.f32.mrf.mxu0 }
 0x76c   : > { %v17699_v41 = vrot.slane %v7805_v9, %v16299_v51  ;;  %v7108_v6 = vadd.f32 %v7107_v1, %v17682_v55  ;;  %v17714_v32 = vcombine.high %v17690_v56, %v17690_v56  ;;  %v7335_v9 = vcombine.high %v17518_v28, %v17518_v28  ;;  %20252 = vst [vmem:[#allocation40_spill] sm:$0xff] %v17820_v53 }
 0x76d   : > { %v13411_v29 = vpop.f32.mrf.mxu0  ;;  %v17784_v1 = vcombine.high %v17734_v42, %v17734_v42  ;;  %v17816_v38 = vrot.slane %v7318_v20, %v16299_v51  ;;  %v17834_v20 = vcombine.high %v17797_v12, %v17797_v12  ;;  %v17838_v28 = vcombine.high %v17800_v24, %v17800_v24 }
 0x76e   : > { %v17718_v35 = vcombine.high %v17699_v41, %v17699_v41  ;;  %v7822_v11 = vcombine.high %v7108_v6, %v7108_v6  ;;  %v17721_v39 = vrot.slane %v7108_v6, %v16299_v51  ;;  %v8351_v48 = vcombine.low %v17690_v56, %v17714_v32 }
 0x76f   : > { %20251 = vst [vmem:[#allocation39_spill] sm:$0xff] %v17816_v38  ;;  %v17823_v43 = vrot.slane %v7335_v9, %v16299_v51  ;;  %20256 = vst [vmem:[#allocation44_spill] sm:$0xff] %v17834_v20  ;;  %v17842_v9 = vrot.slane %v17531_v63, %v16299_v51 }
 0x770   : > { %v8352_v45 = vcombine.low %v17699_v41, %v17718_v35  ;;  %v17739_v10 = vrot.slane %v7822_v11, %v16299_v51  ;;  %v17743_v54 = vcombine.high %v17721_v39, %v17721_v39  ;;  %v17793_v11 = vcombine.high %v17755_v14, %v17755_v14  ;;  %20257 = vst [vmem:[#allocation45_spill] sm:$0xff] %v17838_v28 }
 0x771   : > { %v8359_v8 = vrot.slane %v8351_v48, %v16299_v51  ;;  %20253 = vst [vmem:[#allocation41_spill] sm:$0xff] %v17823_v43  ;;  %v17827_v48 = vrot.slane %v17520_v62, %v16299_v51  ;;  %20258 = vst [vmem:[#allocation46_spill] sm:$0xff] %v17842_v9  ;;  %v7386_v62 = vcombine.high %v17533_v18, %v17533_v18 }
 0x772   : > { %v17767_v40 = vcombine.high %v17739_v10, %v17739_v10  ;;  %v8368_v21 = vcombine.low %v17721_v39, %v17743_v54  ;;  %v8366_v6 = vrot.slane %v8352_v45, %v16299_v51  ;;  %v7369_v45 = vcombine.high %v17531_v63, %v17531_v63 }
 0x773   : > { %20254 = vst [vmem:[#allocation42_spill] sm:$0xff] %v17827_v48  ;;  %v17859_v63 = vcombine.high %v17816_v38, %v17816_v38  ;;  %v17863_v28 = vcombine.high %v17820_v53, %v17820_v53  ;;  %v7505_v38 = vcombine.high %v17576_v16, %v17576_v16 }
 0x774   : > { %v8369_v29 = vcombine.low %v17739_v10, %v17767_v40  ;;  %v8376_v33 = vrot.slane %v8368_v21, %v16299_v51  ;;  %v17830_v21 = vrot.slane %v7352_v49, %v16299_v51  ;;  %v17848_v49 = vcombine.high %v17804_v3, %v17804_v3 }
 0x775   : > { %20261 = vst [vmem:[#allocation49_spill] sm:$0xff] %v17859_v63  ;;  %20262 = vst [vmem:[#allocation50_spill] sm:$0xff] %v17863_v28  ;;  %v17872_v3 = vcombine.high %v17827_v48, %v17827_v48  ;;  %v7420_v28 = vcombine.high %v17545_v61, %v17545_v61 }
 0x776   : > { %v8383_v7 = vrot.slane %v8369_v29, %v16299_v51  ;;  %20255 = vst [vmem:[#allocation43_spill] sm:$0xff] %v17830_v21  ;;  %v8367_v29 = vcombine.low %v8359_v8, %v8366_v6  ;;  %20259 = vst [vmem:[#allocation47_spill] sm:$0xff] %v17848_v49  ;;  %v17867_v49 = vcombine.high %v17823_v43, %v17823_v43 }
 0x777   : > { %20264 = vst [vmem:[#allocation52_spill] sm:$0xff] %v17872_v3 }
 0x778   : > { %v8384_v44 = vcombine.low %v8376_v33, %v8383_v7  ;;  %v17851_v7 = vrot.slane %v7369_v45, %v16299_v51  ;;  %v7403_v33 = vcombine.high %v17543_v60, %v17543_v60  ;;  %20263 = vst [vmem:[#allocation51_spill] sm:$0xff] %v17867_v49  ;;  %v17886_v49 = vcombine.high %v17842_v9, %v17842_v9 }
 0x779   : > { %v7454_v9 = vcombine.high %v17558_v46, %v17558_v46 }
 0x77a   : > { %20260 = vst [vmem:[#allocation48_spill] sm:$0xff] %v17851_v7  ;;  %v17855_v8 = vmax.f32 %v8367_v29, %v8384_v44  ;;  %v7112_v6 = vpop.f32.mrf.mxu0  ;;  %v17876_v44 = vcombine.high %v17830_v21, %v17830_v21  ;;  %v17880_v29 = vrot.slane %v17533_v18, %v16299_v51  ;;  %20267 = vst [vmem:[#allocation55_spill] sm:$0xff] %v17886_v49 }
 0x77b   : > { %v7113_v45 = vadd.f32 %v7112_v6, %v17682_v55  ;;  %v17889_v6 = vrot.slane %v7386_v62, %v16299_v51  ;;  %v17900_v18 = vrot.slane %v17543_v60, %v16299_v51  ;;  %v7437_v49 = vcombine.high %v17556_v36, %v17556_v36 }
 0x77c   : > { %20265 = vst [vmem:[#allocation53_spill] sm:$0xff] %v17876_v44  ;;  %20266 = vst [vmem:[#allocation54_spill] sm:$0xff] %v17880_v29  ;;  %v13414_v53 = vpop.f32.mrf.mxu0  ;;  %v17896_v44 = vcombine.high %v17851_v7, %v17851_v7  ;;  %v17923_v7 = vrot.slane %v17545_v61, %v16299_v51  ;;  %v17926_v21 = vrot.slane %v7420_v28, %v16299_v51 }
 0x77d   : > { %20268 = vst [vmem:[#allocation56_spill] sm:$0xff] %v17889_v6  ;;  %v7839_v3 = vcombine.high %v7113_v45, %v7113_v45  ;;  %v17892_v48 = vrot.slane %v7113_v45, %v16299_v51  ;;  %20270 = vst [vmem:[#allocation58_spill] sm:$0xff] %v17900_v18  ;;  %v17903_v53 = vrot.slane %v7403_v33, %v16299_v51 }
 0x77e   : > { %20269 = vst [vmem:[#allocation57_spill] sm:$0xff] %v17896_v44  ;;  %v7115_v62 = vpop.f32.mrf.mxu0  ;;  %v17919_v33 = vcombine.high %v17880_v29, %v17880_v29  ;;  %20273 = vst [vmem:[#allocation61_spill] sm:$0xff] %v17923_v7  ;;  %v17934_v63 = vcombine.high %v17889_v6, %v17889_v6  ;;  %v17946_v28 = vcombine.high %v17900_v18, %v17900_v18 }
 0x77f   : > { %20271 = vst [vmem:[#allocation59_spill] sm:$0xff] %v17903_v53  ;;  %v17910_v45 = vrot.slane %v7839_v3, %v16299_v51  ;;  %v17914_v44 = vcombine.high %v17892_v48, %v17892_v48  ;;  %v7116_v60 = vadd.f32 %v7115_v62, %v17682_v55  ;;  %20274 = vst [vmem:[#allocation62_spill] sm:$0xff] %v17926_v21 }
 0x780   : > { %20272 = vst [vmem:[#allocation60_spill] sm:$0xff] %v17919_v33  ;;  %v17930_v3 = vrot.slane %v17556_v36, %v16299_v51  ;;  %v13415_v43 = vpop.f32.mrf.mxu0  ;;  %20276 = vst [vmem:[#allocation64_spill] sm:$0xff] %v17934_v63  ;;  %v7471_v62 = vcombine.high %v17566_v47, %v17566_v47  ;;  %v17953_v36 = vrot.slane %v17558_v46, %v16299_v51 }
 0x781   : > { %v17940_v33 = vcombine.high %v17910_v45, %v17910_v45  ;;  %v8385_v61 = vcombine.low %v17892_v48, %v17914_v44  ;;  %20277 = vst [vmem:[#allocation65_spill] sm:$0xff] %v17946_v28  ;;  %v17949_v43 = vrot.slane %v7437_v49, %v16299_v51  ;;  %v17956_v63 = vrot.slane %v7116_v60, %v16299_v51 }
 0x782   : > { %20275 = vst [vmem:[#allocation63_spill] sm:$0xff] %v17930_v3  ;;  %20279 = vst [vmem:[#allocation67_spill] sm:$0xff] %v17953_v36  ;;  %v17960_v6 = vcombine.high %v17903_v53, %v17903_v53  ;;  %v17963_v29 = vrot.slane %v7454_v9, %v16299_v51  ;;  %v7488_v28 = vcombine.high %v17568_v2, %v17568_v2 }
 0x783   : > { %20278 = vst [vmem:[#allocation66_spill] sm:$0xff] %v17949_v43  ;;  %v8386_v49 = vcombine.low %v17910_v45, %v17940_v33  ;;  %v17971_v46 = vcombine.high %v17923_v7, %v17923_v7  ;;  %v17975_v18 = vcombine.high %v17926_v21, %v17926_v21  ;;  %v17983_v9 = vrot.slane %v17566_v47, %v16299_v51 }
 0x784   : > { %20280 = vst [vmem:[#allocation68_spill] sm:$0xff] %v17960_v6  ;;  %20281 = vst [vmem:[#allocation69_spill] sm:$0xff] %v17963_v29  ;;  %v17979_v6 = vcombine.high %v17930_v3, %v17930_v3  ;;  %v17986_v53 = vrot.slane %v7471_v62, %v16299_v51  ;;  %v7522_v47 = vcombine.high %v17578_v13, %v17578_v13 }
 0x785   : > { %20282 = vst [vmem:[#allocation70_spill] sm:$0xff] %v17971_v46  ;;  %20283 = vst [vmem:[#allocation71_spill] sm:$0xff] %v17975_v18  ;;  %v8393_v46 = vrot.slane %v8385_v61, %v16299_v51  ;;  %v8400_v7 = vrot.slane %v8386_v49, %v16299_v51  ;;  %v17994_v18 = vcombine.high %v17949_v43, %v17949_v43 }
 0x786   : > { %20284 = vst [vmem:[#allocation72_spill] sm:$0xff] %v17979_v6  ;;  %20285 = vst [vmem:[#allocation73_spill] sm:$0xff] %v17983_v9  ;;  %v17998_v6 = vcombine.high %v17953_v36, %v17953_v36  ;;  %v8408_v62 = vrot.slane %v17956_v63, %v16299_v51  ;;  %v18006_v3 = vcombine.high %v17963_v29, %v17963_v29 }
 0x787   : > { %20286 = vst [vmem:[#allocation74_spill] sm:$0xff] %v17986_v53  ;;  %20287 = vst [vmem:[#allocation75_spill] sm:$0xff] %v17994_v18  ;;  %v18010_v61 = vrot.slane %v17568_v2, %v16299_v51  ;;  %v18013_v49 = vrot.slane %v7488_v28, %v16299_v51  ;;  %v8401_v18 = vcombine.low %v8393_v46, %v8400_v7 }
 0x788   : > { %20288 = vst [vmem:[#allocation76_spill] sm:$0xff] %v17998_v6  ;;  %20289 = vst [vmem:[#allocation77_spill] sm:$0xff] %v18006_v3  ;;  %v18017_v6 = vcombine.high %v17983_v9, %v17983_v9  ;;  %v18021_v36 = vrot.slane %v17576_v16, %v16299_v51  ;;  %v7539_v29 = vcombine.high %v17586_v22, %v17586_v22 }
 0x789   : > { %20290 = vst [vmem:[#allocation78_spill] sm:$0xff] %v18010_v61  ;;  %20291 = vst [vmem:[#allocation79_spill] sm:$0xff] %v18013_v49  ;;  %v7856_v3 = vcombine.high %v7116_v60, %v7116_v60  ;;  %v18027_v2 = vcombine.high %v17986_v53, %v17986_v53  ;;  %v18030_v28 = vrot.slane %v7505_v38, %v16299_v51 }
 0x78a   : > { %20292 = vst [vmem:[#allocation80_spill] sm:$0xff] %v18017_v6  ;;  %20293 = vst [vmem:[#allocation81_spill] sm:$0xff] %v18021_v36  ;;  %v7556_v7 = vcombine.high %v17588_v19, %v17588_v19  ;;  %v8848_v46 = vmax.f32 %v17855_v8, %v8401_v18  ;;  %v18037_v16 = vrot.slane %v17578_v13, %v16299_v51 }
 0x78b   : > { %20294 = vst [vmem:[#allocation82_spill] sm:$0xff] %v18027_v2  ;;  %20295 = vst [vmem:[#allocation83_spill] sm:$0xff] %v18030_v28  ;;  %v18040_v6 = vrot.slane %v7522_v47, %v16299_v51  ;;  %v7573_v60 = vcombine.high %v17596_v17, %v17596_v17  ;;  %v8849_v2 = vsel %vm3589_vm5, %v8408_v62, -inf  ;;  %v18047_v38 = vcombine.high %v18010_v61, %v18010_v61 }
 0x78c   : > { %20296 = vst [vmem:[#allocation84_spill] sm:$0xff] %v18037_v16  ;;  %v18051_v53 = vcombine.high %v18013_v49, %v18013_v49  ;;  %v18055_v13 = vrot.slane %v17586_v22, %v16299_v51  ;;  %v8850_v8 = vmax.f32 %v8848_v46, %v8849_v2  ;;  %v18059_v18 = vcombine.high %v18021_v36, %v18021_v36 }
 0x78d   : > { %20297 = vst [vmem:[#allocation85_spill] sm:$0xff] %v18040_v6  ;;  %20298 = vst [vmem:[#allocation86_spill] sm:$0xff] %v18047_v38  ;;  %v18062_v47 = vrot.slane %v7539_v29, %v16299_v51  ;;  %v18066_v62 = vrot.slane %v17588_v19, %v16299_v51  ;;  %v18069_v38 = vrot.slane %v7856_v3, %v16299_v51 }
 0x78e   : > { %20299 = vst [vmem:[#allocation87_spill] sm:$0xff] %v18051_v53  ;;  %20300 = vst [vmem:[#allocation88_spill] sm:$0xff] %v18055_v13  ;;  %v18072_v53 = vrot.slane %v7556_v7, %v16299_v51  ;;  %v18076_v22 = vrot.slane %v17596_v17, %v16299_v51  ;;  %v18080_v2 = vcombine.high %v17956_v63, %v17956_v63  ;;  %v8851_v29 = vrot.slane %v8850_v8, 4 }
 0x78f   : > { %20301 = vst [vmem:[#allocation89_spill] sm:$0xff] %v18059_v18  ;;  %20302 = vst [vmem:[#allocation90_spill] sm:$0xff] %v18062_v47  ;;  %v18084_v46 = vcombine.high %v18030_v28, %v18030_v28  ;;  %v18088_v19 = vcombine.high %v18037_v16, %v18037_v16  ;;  %v18092_v3 = vcombine.high %v18040_v6, %v18040_v6  ;;  %v7120_v16 = vpop.f32.mrf.mxu0 }
 0x790   : > { %20303 = vst [vmem:[#allocation91_spill] sm:$0xff] %v18066_v62  ;;  %20304 = vst [vmem:[#allocation92_spill] sm:$0xff] %v18072_v53  ;;  %v18095_v17 = vrot.slane %v7573_v60, %v16299_v51  ;;  %v18099_v7 = vcombine.high %v18055_v13, %v18055_v13  ;;  %v7590_v18 = vcombine.high %v17598_v27, %v17598_v27 }
 0x791   : > { %20305 = vst [vmem:[#allocation93_spill] sm:$0xff] %v18076_v22  ;;  %20306 = vst [vmem:[#allocation94_spill] sm:$0xff] %v18084_v46  ;;  %v7607_v46 = vcombine.high %v17606_v50, %v17606_v50  ;;  %v8852_v28 = vmax.f32 %v8850_v8, %v8851_v29  ;;  %v18111_v60 = vcombine.high %v18066_v62, %v18066_v62  ;;  %v13418_v62 = vpop.f32.mrf.mxu0 }
 0x792   : > { %20307 = vst [vmem:[#allocation95_spill] sm:$0xff] %v18088_v19  ;;  %20308 = vst [vmem:[#allocation96_spill] sm:$0xff] %v18092_v3  ;;  %v18107_v19 = vcombine.high %v18062_v47, %v18062_v47  ;;  %v7121_v3 = vadd.f32 %v7120_v16, %v17682_v55  ;;  %v18120_v13 = vcombine.high %v18072_v53, %v18072_v53 }
 0x793   : > { %20309 = vst [vmem:[#allocation97_spill] sm:$0xff] %v18095_v17  ;;  %20310 = vst [vmem:[#allocation98_spill] sm:$0xff] %v18099_v7  ;;  %v18116_v7 = vcombine.high %v18069_v38, %v18069_v38  ;;  %v18124_v8 = vcombine.high %v18076_v22, %v18076_v22  ;;  %v8409_v29 = vcombine.low %v18080_v2, %v18069_v38 }
 0x794   : > { %20311 = vst [vmem:[#allocation99_spill] sm:$0xff] %v18107_v19  ;;  %20312 = vst [vmem:[#allocation100_spill] sm:$0xff] %v18111_v60  ;;  %v8853_v19 = vrot.slane %v8852_v28, 2  ;;  %v18130_v16 = vcombine.high %v18095_v17, %v18095_v17  ;;  %v18134_v60 = vrot.slane %v17598_v27, %v16299_v51  ;;  %v7873_v47 = vcombine.high %v7121_v3, %v7121_v3 }
 0x795   : > { %20313 = vst [vmem:[#allocation101_spill] sm:$0xff] %v18120_v13  ;;  %20314 = vst [vmem:[#allocation102_spill] sm:$0xff] %v18124_v8  ;;  %v18137_v13 = vrot.slane %v7121_v3, %v16299_v51  ;;  %v18140_v22 = vrot.slane %v7590_v18, %v16299_v51  ;;  %v18144_v8 = vrot.slane %v17606_v50, %v16299_v51 }
 0x796   : > { %20315 = vst [vmem:[#allocation103_spill] sm:$0xff] %v18130_v16  ;;  %20316 = vst [vmem:[#allocation104_spill] sm:$0xff] %v18134_v60  ;;  %v18147_v62 = vrot.slane %v7607_v46, %v16299_v51  ;;  %v8854_v17 = vmax.f32 %v8852_v28, %v8853_v19  ;;  %v7123_v16 = vpop.f32.mrf.mxu0  ;;  %v7624_v27 = vcombine.high %v17608_v25, %v17608_v25 }
 0x797   : > { %20317 = vst [vmem:[#allocation105_spill] sm:$0xff] %v18140_v22  ;;  %20318 = vst [vmem:[#allocation106_spill] sm:$0xff] %v18144_v8  ;;  %v18152_v53 = vrot.slane %v7873_v47, %v16299_v51  ;;  %v8410_v3 = vcombine.low %v18116_v7, %v18137_v13  ;;  %v7124_v18 = vadd.f32 %v7123_v16, %v17682_v55 }
 0x798   : > { %20319 = vst [vmem:[#allocation107_spill] sm:$0xff] %v18147_v62  ;;  %v18159_v50 = vrot.slane %v17608_v25, %v16299_v51  ;;  %v7641_v46 = vcombine.high %v17616_v0, %v17616_v0  ;;  %v18164_v28 = vrot.slane %v8409_v29, %v16299_v51  ;;  %v8855_v19 = vrot.slane %v8854_v17, 1  ;;  %v13419_v6 = vpop.f32.mrf.mxu0 }
 0x799   : > { %v18168_v47 = vcombine.high %v18137_v13, %v18137_v13  ;;  %v18171_v36 = vrot.slane %v8410_v3, %v16299_v51  ;;  %v18175_v16 = vcombine.high %v18152_v53, %v18152_v53  ;;  %v7890_v25 = vcombine.high %v7124_v18, %v7124_v18 }
 0x79a   : > { %20320 = vst [vmem:[#allocation108_spill] sm:$0xff] %v18159_v50  ;;  %v18179_v49 = vcombine.high %v18134_v60, %v18134_v60  ;;  %v18183_v29 = vcombine.high %v18140_v22, %v18140_v22  ;;  %v8856_v6 = vmax.f32 %v8854_v17, %v8855_v19  ;;  %v18186_v61 = vrot.slane %v7124_v18, %v16299_v51 }
 0x79b   : > { %v18190_v3 = vcombine.high %v18144_v8, %v18144_v8  ;;  %v18194_v9 = vcombine.high %v18147_v62, %v18147_v62  ;;  %v18197_v43 = vrot.slane %v7624_v27, %v16299_v51  ;;  %v18203_v17 = vcombine.high %v18159_v50, %v18159_v50 }
 0x79c   : > { %20321 = vst [vmem:[#allocation109_spill] sm:$0xff] %v18179_v49  ;;  %20322 = vst [vmem:[#allocation110_spill] sm:$0xff] %v18183_v29  ;;  %v8425_v49 = vcombine.low %v18164_v28, %v18171_v36  ;;  %v8935_v18 = vcombine.high %v8856_v6, %v8856_v6  ;;  %v8942_v19 = vrot.slane %v8856_v6, %v16299_v51 }
 0x79d   : > { %20323 = vst [vmem:[#allocation111_spill] sm:$0xff] %v18190_v3  ;;  %20324 = vst [vmem:[#allocation112_spill] sm:$0xff] %v18194_v9  ;;  %v8427_v3 = vcombine.low %v18175_v16, %v18186_v61  ;;  %v18210_v62 = vrot.slane %v17616_v0, %v16299_v51  ;;  %v18213_v27 = vrot.slane %v7641_v46, %v16299_v51 }
 0x79e   : > { %20325 = vst [vmem:[#allocation113_spill] sm:$0xff] %v18197_v43  ;;  %20326 = vst [vmem:[#allocation114_spill] sm:$0xff] %v18203_v17  ;;  %v8426_v36 = vcombine.low %v18168_v47, %v18152_v53  ;;  %v18218_v28 = vrot.slane %v7890_v25, %v16299_v51  ;;  %v8949_v17 = vrot.slane %v8935_v18, %v16299_v51 }
 0x79f   : > { %20327 = vst [vmem:[#allocation115_spill] sm:$0xff] %v18210_v62  ;;  %20328 = vst [vmem:[#allocation116_spill] sm:$0xff] %v18213_v27  ;;  %v8950_v50 = vcombine.high %v8942_v19, %v8942_v19  ;;  %v9103_v6 = vsub.f32 %v17690_v56, %v8942_v19  ;;  %v9107_v9 = vsub.f32 %v17721_v39, %v8942_v19  ;;  %v7128_v56 = vpop.f32.mrf.mxu0 }
 0x7a0   : > { %v9111_v8 = vsub.f32 %v17892_v48, %v8942_v19  ;;  %v9115_v0 = vsub.f32 %v17956_v63, %v8942_v19  ;;  %v18227_v46 = vcombine.high %v18186_v61, %v18186_v61  ;;  %v8441_v29 = vrot.slane %v8427_v3, %v16299_v51 }
 0x7a1   : > { %v8951_v22 = vcombine.high %v8949_v17, %v8949_v17  ;;  %v9104_v25 = vsub.f32 %v17714_v32, %v8950_v50  ;;  %v9105_v18 = vsub.f32 %v17699_v41, %v8949_v17  ;;  %v9108_v60 = vsub.f32 %v17743_v54, %v8950_v50  ;;  %v13422_v32 = vpop.f32.mrf.mxu0 }
 0x7a2   : > { %v9109_v39 = vsub.f32 %v17739_v10, %v8949_v17  ;;  %v9112_v48 = vsub.f32 %v17914_v44, %v8950_v50  ;;  %v9113_v63 = vsub.f32 %v17910_v45, %v8949_v17  ;;  %v9207_v19 = vmul.f32 1.442695, %v9103_v6 }
 0x7a3   : > { %v9106_v21 = vsub.f32 %v17718_v35, %v8951_v22  ;;  %v9110_v24 = vsub.f32 %v17767_v40, %v8951_v22  ;;  %v9114_v3 = vsub.f32 %v17940_v33, %v8951_v22  ;;  %v9209_v20 = vmul.f32 1.442695, %v9104_v25  ;;  %v7131_v50 = vpop.f32.mrf.mxu0 }
 0x7a4   : > { %v7658_v41 = vcombine.high %v17618_v34, %v17618_v34  ;;  %13840 = vpow2.f32 %v9207_v19  ;;  %v9211_v54 = vmul.f32 1.442695, %v9105_v18  ;;  %v9215_v12 = vmul.f32 1.442695, %v9107_v9 }
 0x7a5   : > { %13842 = vpow2.f32 %v9209_v20  ;;  %v9213_v10 = vmul.f32 1.442695, %v9106_v21  ;;  %v9217_v44 = vmul.f32 1.442695, %v9108_v60  ;;  %v8434_v45 = vrot.slane %v8426_v36, %v16299_v51  ;;  %v13423_v20 = vpop.f32.mrf.mxu0 }
 0x7a6   : > { %v18244_v35 = vrot.slane %v17618_v34, %v16299_v51  ;;  %13844 = vpow2.f32 %v9211_v54  ;;  %v9219_v40 = vmul.f32 1.442695, %v9109_v39  ;;  %v18248_v33 = vcombine.high %v18218_v28, %v18218_v28 }
 0x7a7   : > { %13846 = vpow2.f32 %v9213_v10  ;;  %v9221_v22 = vmul.f32 1.442695, %v9110_v24  ;;  %v8442_v17 = vcombine.low %v8434_v45, %v8441_v29  ;;  %v8443_v21 = vcombine.low %v18227_v46, %v18218_v28 }
 0x7a8   : > { %20329 = vst [vmem:[#allocation117_spill] sm:$0xff] %v18244_v35  ;;  %13848 = vpow2.f32 %v9215_v12  ;;  %v9223_v9 = vmul.f32 1.442695, %v9111_v8  ;;  %v7129_v60 = vadd.f32 %v7128_v56, %v17682_v55  ;;  %v7132_v34 = vadd.f32 %v7131_v50, %v17682_v55 }
 0x7a9   : > { %13850 = vpow2.f32 %v9217_v44  ;;  %v9225_v36 = vmul.f32 1.442695, %v9112_v48  ;;  %v9227_v6 = vmul.f32 1.442695, %v9113_v63  ;;  %v8857_v25 = vmax.f32 %v8425_v49, %v8442_v17 }
 0x7aa   : > { %13852 = vpow2.f32 %v9219_v40  ;;  %v7907_v18 = vcombine.high %v7129_v60, %v7129_v60  ;;  %v18255_v39 = vrot.slane %v7129_v60, %v16299_v51  ;;  %v7924_v24 = vcombine.high %v7132_v34, %v7132_v34 }
 0x7ab   : > { %13854 = vpow2.f32 %v9221_v22  ;;  %v9229_v29 = vmul.f32 1.442695, %v9114_v3  ;;  %v9231_v19 = vmul.f32 1.442695, %v9115_v0  ;;  %v18258_v12 = vrot.slane %v7132_v34, %v16299_v51 }
 0x7ac   : > { %13856 = vpow2.f32 %v9223_v9  ;;  %v18261_v8 = vrot.slane %v7907_v18, %v16299_v51  ;;  %v18265_v56 = vcombine.high %v18255_v39, %v18255_v39  ;;  %v8444_v49 = vcombine.low %v18248_v33, %v18255_v39 }
 0x7ad   : > { %20330 = vst [vmem:[#allocation118_spill] sm:$0xff] %v18258_v12  ;;  %v18270_v48 = vrot.slane %v7658_v41, %v16299_v51  ;;  %13858 = vpow2.f32 %v9225_v36  ;;  %v18273_v0 = vrot.slane %v7924_v24, %v16299_v51  ;;  %v18277_v63 = vcombine.high %v18258_v12, %v18258_v12 }
 0x7ae   : > { %20331 = vst [vmem:[#allocation119_spill] sm:$0xff] %v18261_v8  ;;  %13860 = vpow2.f32 %v9227_v6  ;;  %v8451_v3 = vrot.slane %v8443_v21, %v16299_v51  ;;  %v18282_v32 = vcombine.high %v18261_v8, %v18261_v8  ;;  %v8458_v54 = vrot.slane %v8444_v49, %v16299_v51 }
 0x7af   : > { %20332 = vst [vmem:[#allocation120_spill] sm:$0xff] %v18270_v48  ;;  %20333 = vst [vmem:[#allocation121_spill] sm:$0xff] %v18277_v63  ;;  %13862 = vpow2.f32 %v9229_v29  ;;  %v8466_v41 = vrot.slane %v18265_v56, %v16299_v51  ;;  %v18289_v10 = vcombine.high %v18273_v0, %v18273_v0  ;;  %v8468_v44 = vcombine.low %v18258_v12, %v18277_v63 }
 0x7b0   : > { %20334 = vst [vmem:[#allocation122_spill] sm:$0xff] %v18282_v32  ;;  %v18295_v45 = vcombine.high %v18197_v43, %v18197_v43  ;;  %13864 = vpow2.f32 %v9231_v19  ;;  %v8459_v50 = vcombine.low %v8451_v3, %v8458_v54  ;;  %v8467_v40 = vcombine.low %v18261_v8, %v18282_v32 }
 0x7b1   : > { %v13841_v22 = vpop.eup %13840  ;;  %v18301_v17 = vcombine.high %v18210_v62, %v18210_v62  ;;  %v18305_v21 = vcombine.high %v18213_v27, %v18213_v27  ;;  %v18309_v20 = vcombine.high %v18244_v35, %v18244_v35  ;;  %v18312_v9 = vrot.slane %v8468_v44, %v16299_v51 }
 0x7b2   : > { %20335 = vst [vmem:[#allocation123_spill] sm:$0xff] %v18295_v45  ;;  %v13843_v60 = vpop.eup %13842  ;;  %v18316_v34 = vcombine.high %v18270_v48, %v18270_v48  ;;  %v10095_v36 = vmul.f32 %v13841_v22, %v17694_v58  ;;  %v18320_v6 = vrot.slane %v8467_v40, %v16299_v51  ;;  %v8858_v18 = vmax.f32 %v8857_v25, %v8459_v50 }
 0x7b3   : > { %20336 = vst [vmem:[#allocation124_spill] sm:$0xff] %v18301_v17  ;;  %20337 = vst [vmem:[#allocation125_spill] sm:$0xff] %v18305_v21  ;;  %v13845_v24 = vpop.eup %13844  ;;  %v9519_v29 = vcombine.low %v13841_v22, %v13843_v60  ;;  %v10096_v19 = vmul.f32 %v13843_v60, %v17725_v59  ;;  %v8859_v49 = vsel %vm3589_vm5, %v8466_v41, -inf }
 0x7b4   : > { %20338 = vst [vmem:[#allocation126_spill] sm:$0xff] %v18309_v20  ;;  %20339 = vst [vmem:[#allocation127_spill] sm:$0xff] %v18316_v34  ;;  %v13847_v54 = vpop.eup %13846  ;;  %v10097_v44 = vmul.f32 %v13845_v24, %v17703_v57  ;;  %v18328_v34 = vmul.f32 %v10095_v36, %v17694_v58  ;;  %v18330_v48 = vmax.f32 %v8858_v18, %v8859_v49 }
 0x7b5   : > { %v13849_v50 = vpop.eup %13848  ;;  %v9520_v40 = vcombine.low %v13845_v24, %v13847_v54  ;;  %v9527_v22 = vrot.slane %v9519_v29, %v16299_v51  ;;  %v10098_v41 = vmul.f32 %v13847_v54, %v17747_v23  ;;  %v10303_v60 = vcombine.low %v10095_v36, %v10096_v19 }
 0x7b6   : > { %v13851_v20 = vpop.eup %13850  ;;  %v10099_v3 = vmul.f32 %v13849_v50, %v17707_v15  ;;  %v18338_v35 = vmul.f32 %v10096_v19, %v17725_v59  ;;  %v18341_v58 = vmul.f32 %v10097_v44, %v17703_v57 }
 0x7b7   : > { %v13853_v49 = vpop.eup %13852  ;;  %v9534_v25 = vrot.slane %v9520_v40, %v16299_v51  ;;  %v9536_v24 = vcombine.low %v13849_v50, %v13851_v20  ;;  %v10100_v29 = vmul.f32 %v13851_v20, %v17751_v26  ;;  %v10304_v21 = vcombine.low %v10097_v44, %v10098_v41  ;;  %v18356_v20 = vpop.f32.mrf.mxu0 }
 0x7b8   : > { %v13855_v54 = vpop.eup %13854  ;;  %v10101_v36 = vmul.f32 %v13853_v49, %v17710_v52  ;;  %v10311_v27 = vrot.slane %v10303_v60, %v16299_v51  ;;  %v18349_v59 = vmul.f32 %v10098_v41, %v17747_v23  ;;  %v18352_v57 = vmul.f32 %v10099_v3, %v17707_v15 }
 0x7b9   : > { %v13857_v19 = vpop.eup %13856  ;;  %v9535_v18 = vcombine.low %v9527_v22, %v9534_v25  ;;  %v9537_v17 = vcombine.low %v13853_v49, %v13855_v54  ;;  %v9544_v40 = vrot.slane %v9536_v24, %v16299_v51  ;;  %v10102_v50 = vmul.f32 %v13855_v54, %v17761_v5  ;;  %v13426_v49 = vpop.f32.mrf.mxu0 }
 0x7ba   : > { %v13859_v44 = vpop.eup %13858  ;;  %v10103_v62 = vmul.f32 %v13857_v19, %v17729_v37  ;;  %v10318_v60 = vrot.slane %v10304_v21, %v16299_v51  ;;  %v10320_v45 = vcombine.low %v10099_v3, %v10100_v29  ;;  %v10884_v23 = vmul.f32 %v10100_v29, %v17751_v26 }
 0x7bb   : > { %v13861_v41 = vpop.eup %13860  ;;  %v9551_v15 = vrot.slane %v9537_v17, %v16299_v51  ;;  %v9553_v43 = vcombine.low %v13857_v19, %v13859_v44  ;;  %v10104_v25 = vmul.f32 %v13859_v44, %v17773_v4  ;;  %v10321_v22 = vcombine.low %v10101_v36, %v10102_v50  ;;  %v7139_v29 = vpop.f32.mrf.mxu0 }
 0x7bc   : > { %v13863_v24 = vpop.eup %13862  ;;  %v10105_v54 = vmul.f32 %v13861_v41, %v17734_v42  ;;  %v10319_v63 = vcombine.low %v10311_v27, %v10318_v60  ;;  %v10328_v32 = vrot.slane %v10320_v45, %v16299_v51  ;;  %v10885_v12 = vmul.f32 %v10101_v36, %v17710_v52 }
 0x7bd   : > { %v13865_v21 = vpop.eup %13864  ;;  %v9552_v3 = vcombine.low %v9544_v40, %v9551_v15  ;;  %v9554_v8 = vcombine.low %v13861_v41, %v13863_v24  ;;  %v9561_v26 = vrot.slane %v9553_v43, %v16299_v51  ;;  %v10106_v17 = vmul.f32 %v13863_v24, %v17784_v1  ;;  %v13427_v36 = vpop.f32.mrf.mxu0 }
 0x7be   : > { %v9576_v19 = vrot.slane %v13865_v21, %v16299_v51  ;;  %v10107_v44 = vmul.f32 %v13865_v21, %v17755_v14  ;;  %v10335_v49 = vrot.slane %v10321_v22, %v16299_v51  ;;  %v10337_v30 = vcombine.low %v10103_v62, %v10104_v25 }
 0x7bf   : > { %v9568_v27 = vrot.slane %v9554_v8, %v16299_v51  ;;  %v10015_v45 = vadd.f32 %v9552_v3, %v9535_v18  ;;  %v10338_v60 = vcombine.low %v10105_v54, %v10106_v17  ;;  %v10886_v52 = vmul.f32 %v10102_v50, %v17761_v5 }
 0x7c0   : > { %v10017_v40 = vsel %vm3589_vm5, %v9576_v19, 0.0  ;;  %v10336_v43 = vcombine.low %v10328_v32, %v10335_v49  ;;  %v10345_v41 = vrot.slane %v10337_v30, %v16299_v51  ;;  %v10360_v15 = vrot.slane %v10107_v44, %v16299_v51 }
 0x7c1   : > { %v9569_v24 = vcombine.low %v9561_v26, %v9568_v27  ;;  %v10352_v21 = vrot.slane %v10338_v60, %v16299_v51  ;;  %v10887_v22 = vmul.f32 %v10103_v62, %v17729_v37  ;;  %v10888_v31 = vmul.f32 %v10104_v25, %v17773_v4 }
 0x7c2   : > { %v10799_v8 = vadd.f32 %v10336_v43, %v10319_v63  ;;  %v10801_v18 = vsel %vm3589_vm5, %v10360_v15, 0.0  ;;  %v10889_v5 = vmul.f32 %v10105_v54, %v17734_v42  ;;  %v10890_v50 = vmul.f32 %v10106_v17, %v17784_v1  ;;  %v7144_v63 = vpop.f32.mrf.mxu0 }
 0x7c3   : > { %v10016_v3 = vadd.f32 %v10015_v45, %v9569_v24  ;;  %v10353_v32 = vcombine.low %v10345_v41, %v10352_v21  ;;  %v10891_v30 = vmul.f32 %v10107_v44, %v17755_v14  ;;  %v11087_v26 = vcombine.low %v18328_v34, %v18338_v35 }
 0x7c4   : > { %v11088_v19 = vcombine.low %v18341_v58, %v18349_v59  ;;  %v11104_v37 = vcombine.low %v18352_v57, %v10884_v23  ;;  %v11105_v4 = vcombine.low %v10885_v12, %v10886_v52  ;;  %v11121_v62 = vcombine.low %v10887_v22, %v10888_v31  ;;  %v13430_v34 = vpop.f32.mrf.mxu0 }
 0x7c5   : > { %v10018_v25 = vadd.f32 %v10017_v40, %v10016_v3  ;;  %v10800_v49 = vadd.f32 %v10799_v8, %v10353_v32  ;;  %v11095_v42 = vrot.slane %v11087_v26, %v16299_v51  ;;  %v11122_v1 = vcombine.low %v10889_v5, %v10890_v50 }
 0x7c6   : > { %v11102_v54 = vrot.slane %v11088_v19, %v16299_v51  ;;  %v11112_v14 = vrot.slane %v11104_v37, %v16299_v51  ;;  %v11119_v17 = vrot.slane %v11105_v4, %v16299_v51  ;;  %v11129_v35 = vrot.slane %v11121_v62, %v16299_v51  ;;  %v18400_v60 = vpop.f32.mrf.mxu0 }
 0x7c7   : > { %v10019_v58 = vrot.slane %v10018_v25, 4  ;;  %v10802_v59 = vadd.f32 %v10801_v18, %v10800_v49  ;;  %v11136_v12 = vrot.slane %v11122_v1, %v16299_v51  ;;  %v11144_v31 = vrot.slane %v10891_v30, %v16299_v51 }
 0x7c8   : > { %v11103_v57 = vcombine.low %v11095_v42, %v11102_v54  ;;  %v11120_v23 = vcombine.low %v11112_v14, %v11119_v17  ;;  %v20340_v44 = vrot.slane %v18330_v48, 4  ;;  %v7137_v45 = vadd.f32 %v18356_v20, %v17682_v55 }
 0x7c9   : > { %v10020_v52 = vadd.f32 %v10019_v58, %v10018_v25  ;;  %v10803_v36 = vrot.slane %v10802_v59, 4  ;;  %v11137_v40 = vcombine.low %v11129_v35, %v11136_v12  ;;  %v20341_v43 = vcombine.low %v18273_v0, %v18289_v10 }
 0x7ca   : > { %v8862_v27 = vmax.f32 %v18330_v48, %v20340_v44  ;;  %v11583_v15 = vadd.f32 %v11120_v23, %v11103_v57  ;;  %v7941_v21 = vcombine.high %v7137_v45, %v7137_v45  ;;  %v18407_v22 = vrot.slane %v7137_v45, %v16299_v51  ;;  %v13431_v48 = vpop.f32.mrf.mxu0 }
 0x7cb   : > { %v8492_v41 = vrot.slane %v20341_v43, %v16299_v51  ;;  %v10021_v8 = vrot.slane %v10020_v52, 2  ;;  %v10804_v18 = vadd.f32 %v10803_v36, %v10802_v59  ;;  %v11585_v20 = vsel %vm3589_vm5, %v11144_v31, 0.0 }
 0x7cc   : > { %v8863_v24 = vrot.slane %v8862_v27, 2  ;;  %v7140_v5 = vadd.f32 %v7139_v29, %v17682_v55  ;;  %v11584_v50 = vadd.f32 %v11583_v15, %v11137_v40  ;;  %v18412_v32 = vrot.slane %v7941_v21, %v16299_v51 }
 0x7cd   : > { %v18416_v30 = vcombine.high %v18407_v22, %v18407_v22  ;;  %v10022_v26 = vadd.f32 %v10021_v8, %v10020_v52  ;;  %v10805_v19 = vrot.slane %v10804_v18, 2  ;;  %v18444_v57 = vadd.f32 %v7144_v63, %v17682_v55  ;;  %v7152_v23 = vpop.f32.mrf.mxu0 }
 0x7ce   : > { %v8864_v3 = vmax.f32 %v8862_v27, %v8863_v24  ;;  %v7958_v37 = vcombine.high %v7140_v5, %v7140_v5  ;;  %v18419_v4 = vrot.slane %v7140_v5, %v16299_v51  ;;  %v11586_v62 = vadd.f32 %v11585_v20, %v11584_v50 }
 0x7cf   : > { %v18423_v29 = vcombine.high %v18412_v32, %v18412_v32  ;;  %v8485_v49 = vcombine.low %v18407_v22, %v18416_v30  ;;  %v10023_v42 = vrot.slane %v10022_v26, 1  ;;  %v18427_v1 = vadd.f32 %v10805_v19, %v10804_v18  ;;  %v13434_v24 = vpop.f32.mrf.mxu0 }
 0x7d0   : > { %v8865_v25 = vrot.slane %v8864_v3, 1  ;;  %v18430_v54 = vrot.slane %v7958_v37, %v16299_v51  ;;  %v18434_v14 = vcombine.high %v18419_v4, %v18419_v4  ;;  %v11587_v17 = vrot.slane %v11586_v62, 4 }
 0x7d1   : > { %20342 = vst [vmem:[#allocation128_spill] sm:$0xff] %v18427_v1  ;;  %v8499_v34 = vrot.slane %v8485_v49, %v16299_v51  ;;  %v8501_v58 = vcombine.low %v18412_v32, %v18423_v29  ;;  %v10024_v59 = vadd.f32 %v10023_v42, %v10022_v26  ;;  %v20343_v5 = vcombine.low %v18320_v6, %v18312_v9 }
 0x7d2   : > { %v8866_v35 = vmax.f32 %v8864_v3, %v8865_v25  ;;  %v8502_v12 = vcombine.low %v18419_v4, %v18434_v14  ;;  %v8524_v31 = vrot.slane %v18430_v54, %v16299_v51  ;;  %v11588_v44 = vadd.f32 %v11587_v17, %v11586_v62  ;;  %v7155_v3 = vpop.f32.mrf.mxu0 }
 0x7d3   : > { %v8500_v52 = vcombine.low %v8492_v41, %v8499_v34  ;;  %v8509_v40 = vrot.slane %v8501_v58, %v16299_v51  ;;  %13866 = vrcp.f32 %v10024_v59  ;;  %v7975_v59 = vcombine.high %v18444_v57, %v18444_v57 }
 0x7d4   : > { %v8952_v27 = vcombine.high %v8866_v35, %v8866_v35  ;;  %v8959_v45 = vrot.slane %v8866_v35, %v16299_v51  ;;  %v8516_v43 = vrot.slane %v8502_v12, %v16299_v51  ;;  %v8869_v15 = vsel %vm3589_vm5, %v8524_v31, -inf  ;;  %v13435_v25 = vpop.f32.mrf.mxu0 }
 0x7d5   : > { %v11589_v21 = vrot.slane %v11588_v44, 2  ;;  %v8867_v50 = vmax.f32 %v20343_v5, %v8500_v52  ;;  %v7148_v52 = vadd.f32 %v18400_v60, %v17682_v55  ;;  %v7153_v24 = vadd.f32 %v7152_v23, %v17682_v55 }
 0x7d6   : > { %v8966_v48 = vrot.slane %v8952_v27, %v16299_v51  ;;  %v8967_v63 = vcombine.high %v8959_v45, %v8959_v45  ;;  %v9116_v8 = vsub.f32 %v18080_v2, %v8959_v45  ;;  %v9120_v18 = vsub.f32 %v18168_v47, %v8959_v45 }
 0x7d7   : > { %v9124_v20 = vsub.f32 %v18227_v46, %v8959_v45  ;;  %v9128_v41 = vsub.f32 %v18265_v56, %v8959_v45  ;;  %v18459_v26 = vadd.f32 %v11589_v21, %v11588_v44  ;;  %v8517_v35 = vcombine.low %v8509_v40, %v8516_v43 }
 0x7d8   : > { %v8968_v19 = vcombine.high %v8966_v48, %v8966_v48  ;;  %v9117_v37 = vsub.f32 %v18069_v38, %v8967_v63  ;;  %v9118_v62 = vsub.f32 %v18116_v7, %v8966_v48  ;;  %v9121_v2 = vsub.f32 %v18152_v53, %v8967_v63  ;;  %v18471_v44 = vpop.f32.mrf.mxu0 }
 0x7d9   : > { %v9122_v47 = vsub.f32 %v18175_v16, %v8966_v48  ;;  %v9125_v46 = vsub.f32 %v18218_v28, %v8967_v63  ;;  %v9126_v56 = vsub.f32 %v18248_v33, %v8966_v48  ;;  %v11591_v9 = vrot.slane %v18459_v26, 1 }
 0x7da   : > { %v9119_v6 = vsub.f32 %v18137_v13, %v8968_v19  ;;  %v9123_v49 = vsub.f32 %v18186_v61, %v8968_v19  ;;  %v9127_v42 = vsub.f32 %v18255_v39, %v8968_v19  ;;  %v9233_v38 = vmul.f32 1.442695, %v9116_v8  ;;  %v13438_v40 = vpop.f32.mrf.mxu0 }
 0x7db   : > { %v9235_v17 = vmul.f32 1.442695, %v9117_v37  ;;  %v9237_v7 = vmul.f32 1.442695, %v9118_v62  ;;  %v9241_v16 = vmul.f32 1.442695, %v9120_v18  ;;  %v8868_v39 = vmax.f32 %v8867_v50, %v8517_v35 }
 0x7dc   : > { %v9239_v53 = vmul.f32 1.442695, %v9119_v6  ;;  %v9243_v34 = vmul.f32 1.442695, %v9121_v2  ;;  %13868 = vpow2.f32 %v9233_v38  ;;  %v9245_v28 = vmul.f32 1.442695, %v9122_v47  ;;  %v18498_v60 = vpop.f32.mrf.mxu0 }
 0x7dd   : > { %v9247_v33 = vmul.f32 1.442695, %v9123_v49  ;;  %v9249_v58 = vmul.f32 1.442695, %v9124_v20  ;;  %13870 = vpow2.f32 %v9235_v17  ;;  %v9251_v12 = vmul.f32 1.442695, %v9125_v46 }
 0x7de   : > { %v9253_v31 = vmul.f32 1.442695, %v9126_v56  ;;  %v9255_v13 = vmul.f32 1.442695, %v9127_v42  ;;  %13872 = vpow2.f32 %v9237_v7  ;;  %v9257_v61 = vmul.f32 1.442695, %v9128_v41  ;;  %v13439_v5 = vpop.f32.mrf.mxu0 }
 0x7df   : > { %v18475_v27 = vcombine.high %v18430_v54, %v18430_v54  ;;  %13874 = vpow2.f32 %v9239_v53  ;;  %v18481_v45 = vrot.slane %v18444_v57, %v16299_v51  ;;  %v8870_v43 = vmax.f32 %v8868_v39, %v8869_v15 }
 0x7e0   : > { %13876 = vpow2.f32 %v9241_v16  ;;  %v18487_v21 = vadd.f32 %v7155_v3, %v17682_v55  ;;  %v18490_v48 = vrot.slane %v7975_v59, %v16299_v51  ;;  %v7992_v8 = vcombine.high %v7148_v52, %v7148_v52  ;;  %v18530_v42 = vpop.eup %13866 }
 0x7e1   : > { %20344 = vst [vmem:[#allocation129_spill] sm:$0xff] %v18475_v27  ;;  %20345 = vst [vmem:[#allocation130_spill] sm:$0xff] %v18481_v45  ;;  %13878 = vpow2.f32 %v9243_v34  ;;  %v18494_v63 = vcombine.high %v18481_v45, %v18481_v45  ;;  %v8525_v57 = vcombine.low %v18475_v27, %v18481_v45  ;;  %v8871_v15 = vrot.slane %v8870_v43, 4 }
 0x7e2   : > { %20346 = vst [vmem:[#allocation131_spill] sm:$0xff] %v18490_v48  ;;  %13880 = vpow2.f32 %v9245_v28  ;;  %v18501_v23 = vrot.slane %v7148_v52, %v16299_v51  ;;  %v18508_v41 = vcombine.high %v18490_v48, %v18490_v48  ;;  %v18511_v3 = vrot.slane %v7992_v8, %v16299_v51  ;;  %20352 = vst [vmem:[#allocation137_spill] sm:$0xff] %v18530_v42  ;;  %v20363_v42 = vld [vmem:[#allocation39_spill] sm:$0xff] }
 0x7e3   : > { %20347 = vst [vmem:[#allocation132_spill] sm:$0xff] %v18494_v63  ;;  %13882 = vpow2.f32 %v9247_v33  ;;  %v8526_v18 = vcombine.low %v18494_v63, %v18490_v48  ;;  %v8533_v20 = vrot.slane %v8525_v57, %v16299_v51  ;;  %v8872_v50 = vmax.f32 %v8870_v43, %v8871_v15  ;;  %v20356_v43 = vld [vmem:[#allocation38_spill] sm:$0xff] }
 0x7e4   : > { %20348 = vst [vmem:[#allocation133_spill] sm:$0xff] %v18501_v23  ;;  %20349 = vst [vmem:[#allocation134_spill] sm:$0xff] %v18508_v41  ;;  %13884 = vpow2.f32 %v9249_v58  ;;  %v18515_v19 = vcombine.high %v18501_v23, %v18501_v23  ;;  %v8542_v62 = vcombine.low %v18508_v41, %v18501_v23  ;;  %v8009_v2 = vcombine.high %v7153_v24, %v7153_v24  ;;  %v20366_v63 = vld [vmem:[#allocation50_spill] sm:$0xff] }
 0x7e5   : > { %20350 = vst [vmem:[#allocation135_spill] sm:$0xff] %v18511_v3  ;;  %13886 = vpow2.f32 %v9251_v12  ;;  %v8540_v37 = vrot.slane %v8526_v18, %v16299_v51  ;;  %v8873_v47 = vrot.slane %v8872_v50, 2  ;;  %v18524_v56 = vcombine.high %v18511_v3, %v18511_v3 }
 0x7e6   : > { %20351 = vst [vmem:[#allocation136_spill] sm:$0xff] %v18515_v19  ;;  %13888 = vpow2.f32 %v9253_v31  ;;  %v8543_v46 = vcombine.low %v18515_v19, %v18511_v3  ;;  %v8550_v6 = vrot.slane %v8542_v62, %v16299_v51  ;;  %v18528_v49 = vrot.slane %v7153_v24, %v16299_v51 }
 0x7e7   : > { %13890 = vpow2.f32 %v9255_v13  ;;  %v8541_v25 = vcombine.low %v8533_v20, %v8540_v37  ;;  %v8874_v38 = vmax.f32 %v8872_v50, %v8873_v47  ;;  %v18534_v7 = vrot.slane %v8009_v2, %v16299_v51  ;;  %v20357_v50 = vld [vmem:[#allocation35_spill] sm:$0xff]  ;;  %v20358_v47 = vld [vmem:[#allocation44_spill] sm:$0xff] }
 0x7e8   : > { %13892 = vpow2.f32 %v9257_v61  ;;  %v8557_v17 = vrot.slane %v8543_v46, %v16299_v51  ;;  %v18539_v53 = vadd.f32 %v11591_v9, %v18459_v26  ;;  %v18543_v16 = vcombine.high %v18528_v49, %v18528_v49  ;;  %v20355_v61 = vld [vmem:[#allocation34_spill] sm:$0xff] }
 0x7e9   : > { %v13869_v35 = vpop.eup %13868  ;;  %v8875_v12 = vrot.slane %v8874_v38, 1  ;;  %v18552_v13 = vrot.slane %v18487_v21, %v16299_v51  ;;  %v18557_v59 = vcombine.high %v18534_v7, %v18534_v7 }
 0x7ea   : > { %20353 = vst [vmem:[#allocation138_spill] sm:$0xff] %v18539_v53  ;;  %v13871_v33 = vpop.eup %13870  ;;  %v10108_v58 = vmul.f32 %v13869_v35, %v17793_v11  ;;  %v8558_v31 = vcombine.low %v8550_v6, %v8557_v17 }
 0x7eb   : > { %20354 = vst [vmem:[#allocation139_spill] sm:$0xff] %v18552_v13  ;;  %v13873_v26 = vpop.eup %13872  ;;  %v9577_v9 = vcombine.low %v13869_v35, %v13871_v33  ;;  %v10109_v39 = vmul.f32 %v13871_v33, %v20355_v61  ;;  %v18565_v15 = vmax.f32 %v8874_v38, %v8875_v12  ;;  %v20359_v33 = vld [vmem:[#allocation36_spill] sm:$0xff] }
 0x7ec   : > { %v13875_v40 = vpop.eup %13874  ;;  %v10110_v24 = vmul.f32 %v13873_v26, %v20356_v43  ;;  %v18563_v57 = vmul.f32 %v10108_v58, %v17793_v11  ;;  %v18567_v8 = vmax.f32 %v8541_v25, %v8558_v31 }
 0x7ed   : > { %v13877_v18 = vpop.eup %13876  ;;  %v9578_v20 = vcombine.low %v13873_v26, %v13875_v40  ;;  %v9585_v5 = vrot.slane %v9577_v9, %v16299_v51  ;;  %v10111_v37 = vmul.f32 %v13875_v40, %v20357_v50  ;;  %v10361_v62 = vcombine.low %v10108_v58, %v10109_v39  ;;  %v20360_v26 = vld [vmem:[#allocation45_spill] sm:$0xff] }
 0x7ee   : > { %v13879_v2 = vpop.eup %13878  ;;  %v10112_v46 = vmul.f32 %v13877_v18, %v20358_v47  ;;  %v18573_v6 = vmul.f32 %v10109_v39, %v20355_v61  ;;  %v18576_v11 = vmul.f32 %v10110_v24, %v20356_v43 }
 0x7ef   : > { %v13881_v38 = vpop.eup %13880  ;;  %v9592_v17 = vrot.slane %v9578_v20, %v16299_v51  ;;  %v9594_v35 = vcombine.low %v13877_v18, %v13879_v2  ;;  %v10113_v12 = vmul.f32 %v13879_v2, %v20359_v33  ;;  %v10362_v31 = vcombine.low %v10110_v24, %v10111_v37  ;;  %v20361_v18 = vld [vmem:[#allocation37_spill] sm:$0xff]  ;;  %v20362_v24 = vld [vmem:[#allocation47_spill] sm:$0xff] }
 0x7f0   : > { %v13883_v58 = vpop.eup %13882  ;;  %v10114_v9 = vmul.f32 %v13881_v38, %v20360_v26  ;;  %v10369_v40 = vrot.slane %v10361_v62, %v16299_v51  ;;  %v18585_v61 = vmul.f32 %v10111_v37, %v20357_v50  ;;  %v18588_v39 = vmul.f32 %v10112_v46, %v20358_v47 }
 0x7f1   : > { %v13885_v43 = vpop.eup %13884  ;;  %v9593_v36 = vcombine.low %v9585_v5, %v9592_v17  ;;  %v9595_v28 = vcombine.low %v13881_v38, %v13883_v58  ;;  %v9602_v20 = vrot.slane %v9594_v35, %v16299_v51  ;;  %v10115_v52 = vmul.f32 %v13883_v58, %v20361_v18  ;;  %v18597_v38 = vpop.f32.mrf.mxu0  ;;  %v20364_v35 = vld [vmem:[#allocation49_spill] sm:$0xff] }
 0x7f2   : > { %v13887_v2 = vpop.eup %13886  ;;  %v10116_v34 = vmul.f32 %v13885_v43, %v20362_v24  ;;  %v10376_v25 = vrot.slane %v10362_v31, %v16299_v51  ;;  %v10378_v53 = vcombine.low %v10112_v46, %v10113_v12  ;;  %v10897_v62 = vmul.f32 %v10113_v12, %v20359_v33 }
 0x7f3   : > { %v13889_v50 = vpop.eup %13888  ;;  %v9609_v37 = vrot.slane %v9595_v28, %v16299_v51  ;;  %v9611_v47 = vcombine.low %v13885_v43, %v13887_v2  ;;  %v10117_v1 = vmul.f32 %v13887_v2, %v20363_v42  ;;  %v10379_v5 = vcombine.low %v10114_v9, %v10115_v52  ;;  %v20365_v28 = vld [vmem:[#allocation40_spill] sm:$0xff]  ;;  %v13442_v23 = vpop.f32.mrf.mxu0 }
 0x7f4   : > { %v13891_v17 = vpop.eup %13890  ;;  %v10118_v58 = vmul.f32 %v13889_v50, %v20364_v35  ;;  %v10377_v3 = vcombine.low %v10369_v40, %v10376_v25  ;;  %v10386_v48 = vrot.slane %v10378_v53, %v16299_v51  ;;  %v10898_v31 = vmul.f32 %v10114_v9, %v20360_v26 }
 0x7f5   : > { %v13893_v46 = vpop.eup %13892  ;;  %v9610_v19 = vcombine.low %v9602_v20, %v9609_v37  ;;  %v9612_v33 = vcombine.low %v13889_v50, %v13891_v17  ;;  %v9619_v12 = vrot.slane %v9611_v47, %v16299_v51  ;;  %v10119_v43 = vmul.f32 %v13891_v17, %v20365_v28  ;;  %v18609_v9 = vpop.f32.mrf.mxu0 }
 0x7f6   : > { %v9634_v2 = vrot.slane %v13893_v46, %v16299_v51  ;;  %v10120_v45 = vmul.f32 %v13893_v46, %v20366_v63  ;;  %v10393_v41 = vrot.slane %v10379_v5, %v16299_v51  ;;  %v10395_v27 = vcombine.low %v10116_v34, %v10117_v1 }
 0x7f7   : > { %v9626_v25 = vrot.slane %v9612_v33, %v16299_v51  ;;  %v10025_v53 = vadd.f32 %v9610_v19, %v9593_v36  ;;  %v10396_v40 = vcombine.low %v10118_v58, %v10119_v43  ;;  %v10899_v26 = vmul.f32 %v10115_v52, %v20361_v18  ;;  %v13443_v36 = vpop.f32.mrf.mxu0 }
 0x7f8   : > { %v10027_v20 = vsel %vm3589_vm5, %v9634_v2, 0.0  ;;  %v10394_v50 = vcombine.low %v10386_v48, %v10393_v41  ;;  %v10403_v23 = vrot.slane %v10395_v27, %v16299_v51  ;;  %v10418_v37 = vrot.slane %v10120_v45, %v16299_v51 }
 0x7f9   : > { %v9627_v47 = vcombine.low %v9619_v12, %v9626_v25  ;;  %v10410_v17 = vrot.slane %v10396_v40, %v16299_v51  ;;  %v10900_v5 = vmul.f32 %v10116_v34, %v20362_v24  ;;  %v10901_v46 = vmul.f32 %v10117_v1, %v20363_v42 }
 0x7fa   : > { %v10809_v19 = vadd.f32 %v10394_v50, %v10377_v3  ;;  %v10811_v52 = vsel %vm3589_vm5, %v10418_v37, 0.0  ;;  %v10902_v18 = vmul.f32 %v10118_v58, %v20364_v35  ;;  %v10903_v33 = vmul.f32 %v10119_v43, %v20365_v28 }
 0x7fb   : > { %v10026_v48 = vadd.f32 %v10025_v53, %v9627_v47  ;;  %v10411_v41 = vcombine.low %v10403_v23, %v10410_v17  ;;  %v10904_v27 = vmul.f32 %v10120_v45, %v20366_v63  ;;  %v11145_v12 = vcombine.low %v18563_v57, %v18573_v6  ;;  %v20368_v17 = vld [vmem:[#allocation119_spill] sm:$0xff] }
 0x7fc   : > { %v11146_v34 = vcombine.low %v18576_v11, %v18585_v61  ;;  %v11162_v1 = vcombine.low %v18588_v39, %v10897_v62  ;;  %v11163_v42 = vcombine.low %v10898_v31, %v10899_v26  ;;  %v11179_v3 = vcombine.low %v10900_v5, %v10901_v46 }
 0x7fd   : > { %v10028_v24 = vadd.f32 %v10027_v20, %v10026_v48  ;;  %v10810_v2 = vadd.f32 %v10809_v19, %v10411_v41  ;;  %v11153_v35 = vrot.slane %v11145_v12, %v16299_v51  ;;  %v11180_v58 = vcombine.low %v10902_v18, %v10903_v33  ;;  %v20370_v48 = vld [vmem:[#allocation122_spill] sm:$0xff] }
 0x7fe   : > { %v11160_v28 = vrot.slane %v11146_v34, %v16299_v51  ;;  %v11170_v43 = vrot.slane %v11162_v1, %v16299_v51  ;;  %v11177_v45 = vrot.slane %v11163_v42, %v16299_v51  ;;  %v11187_v63 = vrot.slane %v11179_v3, %v16299_v51 }
 0x7ff   : > { %v10029_v57 = vrot.slane %v10028_v24, 4  ;;  %v10812_v6 = vadd.f32 %v10811_v52, %v10810_v2  ;;  %v11194_v11 = vrot.slane %v11180_v58, %v16299_v51  ;;  %v11202_v61 = vrot.slane %v10904_v27, %v16299_v51  ;;  %v20369_v52 = vld [vmem:[#allocation118_spill] sm:$0xff]  ;;  %v20371_v27 = vld [vmem:[#allocation121_spill] sm:$0xff] }
 0x800   : > { %v11161_v39 = vcombine.low %v11153_v35, %v11160_v28  ;;  %v11178_v62 = vcombine.low %v11170_v43, %v11177_v45  ;;  %v18635_v31 = vrot.slane %v18565_v15, %v16299_v51  ;;  %v20367_v25 = vcombine.high %v18565_v15, %v18565_v15  ;;  %v18646_v46 = vpop.f32.mrf.mxu0 }
 0x801   : > { %v10030_v40 = vadd.f32 %v10029_v57, %v10028_v24  ;;  %v10813_v26 = vrot.slane %v10812_v6, 4  ;;  %v11195_v20 = vcombine.low %v11187_v63, %v11194_v11  ;;  %v11595_v50 = vsel %vm3589_vm5, %v11202_v61, 0.0 }
 0x802   : > { %v8983_v53 = vrot.slane %v20367_v25, %v16299_v51  ;;  %v11593_v23 = vadd.f32 %v11178_v62, %v11161_v39  ;;  %v8984_v37 = vcombine.high %v18635_v31, %v18635_v31  ;;  %v9129_v5 = vsub.f32 %v20368_v17, %v18635_v31  ;;  %v13446_v1 = vpop.f32.mrf.mxu0 }
 0x803   : > { %v10031_v36 = vrot.slane %v10030_v40, 2  ;;  %v10814_v19 = vadd.f32 %v10813_v26, %v10812_v6  ;;  %v9133_v18 = vsub.f32 %v18273_v0, %v18635_v31  ;;  %v9137_v58 = vsub.f32 %v18412_v32, %v18635_v31 }
 0x804   : > { %v8985_v47 = vcombine.high %v8983_v53, %v8983_v53  ;;  %v9131_v15 = vsub.f32 %v20369_v52, %v8983_v53  ;;  %v11594_v33 = vadd.f32 %v11593_v23, %v11195_v20  ;;  %v9130_v41 = vsub.f32 %v20370_v48, %v8984_v37  ;;  %v18660_v43 = vpop.f32.mrf.mxu0 }
 0x805   : > { %v9134_v34 = vsub.f32 %v18289_v10, %v8984_v37  ;;  %v10032_v42 = vadd.f32 %v10031_v36, %v10030_v40  ;;  %v10815_v3 = vrot.slane %v10814_v19, 2  ;;  %v9135_v24 = vsub.f32 %v18407_v22, %v8983_v53 }
 0x806   : > { %v9132_v12 = vsub.f32 %v20371_v27, %v8985_v47  ;;  %v9136_v2 = vsub.f32 %v18416_v30, %v8985_v47  ;;  %v11596_v35 = vadd.f32 %v11595_v50, %v11594_v33  ;;  %v9138_v0 = vsub.f32 %v18423_v29, %v8984_v37  ;;  %v13447_v11 = vpop.f32.mrf.mxu0 }
 0x807   : > { %v9139_v28 = vsub.f32 %v18419_v4, %v8983_v53  ;;  %v10033_v45 = vrot.slane %v10032_v42, 1  ;;  %v9140_v10 = vsub.f32 %v18434_v14, %v8985_v47  ;;  %v9141_v63 = vsub.f32 %v18430_v54, %v18635_v31 }
 0x808   : > { %v20372_v22 = vcombine.low %v18524_v56, %v18528_v49  ;;  %v18669_v57 = vadd.f32 %v10815_v3, %v10814_v19  ;;  %v11597_v32 = vrot.slane %v11596_v35, 4  ;;  %v9259_v6 = vmul.f32 1.442695, %v9129_v5  ;;  %v18690_v48 = vpop.f32.mrf.mxu0 }
 0x809   : > { %v9261_v29 = vmul.f32 1.442695, %v9130_v41  ;;  %v10034_v4 = vadd.f32 %v10033_v45, %v10032_v42  ;;  %v9263_v61 = vmul.f32 1.442695, %v9131_v15  ;;  %v9265_v39 = vmul.f32 1.442695, %v9132_v12 }
 0x80a   : > { %v8567_v30 = vrot.slane %v20372_v22, %v16299_v51  ;;  %20373 = vst [vmem:[#allocation34_spill] sm:$0xff] %v18669_v57  ;;  %v20374_v14 = vcombine.low %v18543_v16, %v18534_v7  ;;  %v11598_v54 = vadd.f32 %v11597_v32, %v11596_v35  ;;  %13894 = vpow2.f32 %v9259_v6  ;;  %v13450_v1 = vpop.f32.mrf.mxu0 }
 0x80b   : > { %v9267_v31 = vmul.f32 1.442695, %v9133_v18  ;;  %v9269_v25 = vmul.f32 1.442695, %v9134_v34  ;;  %13896 = vrcp.f32 %v10034_v4  ;;  %v9271_v53 = vmul.f32 1.442695, %v9135_v24 }
 0x80c   : > { %v8574_v62 = vrot.slane %v20374_v14, %v16299_v51  ;;  %v9273_v40 = vmul.f32 1.442695, %v9136_v2  ;;  %v9275_v26 = vmul.f32 1.442695, %v9137_v58  ;;  %v11599_v20 = vrot.slane %v11598_v54, 2  ;;  %v18714_v58 = vpop.f32.mrf.mxu0 }
 0x80d   : > { %13898 = vpow2.f32 %v9261_v29  ;;  %v9277_v50 = vmul.f32 1.442695, %v9138_v0  ;;  %v9279_v23 = vmul.f32 1.442695, %v9139_v28  ;;  %v9281_v37 = vmul.f32 1.442695, %v9140_v10 }
 0x80e   : > { %13900 = vpow2.f32 %v9263_v61  ;;  %v8575_v47 = vcombine.low %v8567_v30, %v8574_v62  ;;  %v8582_v17 = vrot.slane %v18557_v59, %v16299_v51  ;;  %v11600_v5 = vadd.f32 %v11599_v20, %v11598_v54  ;;  %v13451_v30 = vpop.f32.mrf.mxu0 }
 0x80f   : > { %13902 = vpow2.f32 %v9265_v39  ;;  %v20375_v36 = vcombine.high %v18487_v21, %v18487_v21  ;;  %v18685_v52 = vcombine.high %v18552_v13, %v18552_v13  ;;  %v9283_v15 = vmul.f32 1.442695, %v9141_v63  ;;  %v20385_v39 = vld [vmem:[#allocation41_spill] sm:$0xff] }
 0x810   : > { %13904 = vpow2.f32 %v9267_v31  ;;  %v8878_v18 = vmax.f32 %v18567_v8, %v8575_v47  ;;  %v7161_v33 = vadd.f32 %v18471_v44, %v17682_v55  ;;  %v8879_v41 = vsel %vm3589_vm5, %v8582_v17, -inf }
 0x811   : > { %v18681_v19 = vrot.slane %v20375_v36, %v16299_v51  ;;  %20377 = vst [vmem:[#allocation35_spill] sm:$0xff] %v18685_v52  ;;  %13906 = vpow2.f32 %v9269_v25  ;;  %v8583_v27 = vcombine.low %v18552_v13, %v18685_v52  ;;  %v11601_v44 = vrot.slane %v11600_v5, 1 }
 0x812   : > { %13908 = vpow2.f32 %v9271_v53  ;;  %v8880_v12 = vmax.f32 %v8878_v18, %v8879_v41  ;;  %v8043_v34 = vcombine.high %v7161_v33, %v7161_v33  ;;  %v18700_v8 = vrot.slane %v7161_v33, %v16299_v51 }
 0x813   : > { %20376 = vst [vmem:[#allocation38_spill] sm:$0xff] %v18681_v19  ;;  %v18695_v21 = vcombine.high %v18681_v19, %v18681_v19  ;;  %13910 = vpow2.f32 %v9273_v40  ;;  %v18705_v3 = vrot.slane %v8583_v27, %v16299_v51  ;;  %v7164_v28 = vadd.f32 %v18498_v60, %v17682_v55 }
 0x814   : > { %20379 = vst [vmem:[#allocation36_spill] sm:$0xff] %v18700_v8  ;;  %13912 = vpow2.f32 %v9275_v26  ;;  %v8881_v24 = vrot.slane %v8880_v12, 4  ;;  %v18708_v2 = vrot.slane %v8043_v34, %v16299_v51  ;;  %v18712_v35 = vcombine.high %v18700_v8, %v18700_v8 }
 0x815   : > { %20378 = vst [vmem:[#allocation44_spill] sm:$0xff] %v18695_v21  ;;  %v8584_v42 = vcombine.low %v18681_v19, %v18695_v21  ;;  %13914 = vpow2.f32 %v9277_v50  ;;  %v18723_v45 = vadd.f32 %v18597_v38, %v17682_v55  ;;  %v18731_v32 = vadd.f32 %v11601_v44, %v11600_v5  ;;  %v20388_v44 = vld [vmem:[#allocation52_spill] sm:$0xff] }
 0x816   : > { %20380 = vst [vmem:[#allocation45_spill] sm:$0xff] %v18708_v2  ;;  %20381 = vst [vmem:[#allocation37_spill] sm:$0xff] %v18712_v35  ;;  %13916 = vpow2.f32 %v9279_v23  ;;  %v8882_v10 = vmax.f32 %v8880_v12, %v8881_v24  ;;  %v18727_v63 = vcombine.high %v18708_v2, %v18708_v2  ;;  %v8600_v22 = vcombine.low %v18700_v8, %v18712_v35 }
 0x817   : > { %v18717_v0 = vrot.slane %v8584_v42, %v16299_v51  ;;  %20383 = vst [vmem:[#allocation39_spill] sm:$0xff] %v18731_v32  ;;  %13918 = vpow2.f32 %v9281_v37  ;;  %v8060_v6 = vcombine.high %v7164_v28, %v7164_v28  ;;  %v18734_v60 = vrot.slane %v7164_v28, %v16299_v51  ;;  %v13895_v29 = vpop.eup %13894  ;;  %v20386_v37 = vld [vmem:[#allocation51_spill] sm:$0xff] }
 0x818   : > { %20382 = vst [vmem:[#allocation47_spill] sm:$0xff] %v18727_v63  ;;  %13920 = vpow2.f32 %v9283_v15  ;;  %v8883_v38 = vrot.slane %v8882_v10, 2  ;;  %v8601_v4 = vcombine.low %v18708_v2, %v18727_v63  ;;  %v18740_v61 = vpop.eup %13896  ;;  %v10121_v14 = vmul.f32 %v13895_v29, %v20385_v39  ;;  %v20387_v15 = vld [vmem:[#allocation42_spill] sm:$0xff]  ;;  %v20389_v28 = vld [vmem:[#allocation43_spill] sm:$0xff] }
 0x819   : > { %20384 = vst [vmem:[#allocation49_spill] sm:$0xff] %v18740_v61  ;;  %v18744_v62 = vrot.slane %v8600_v22, %v16299_v51  ;;  %v18747_v54 = vrot.slane %v8060_v6, %v16299_v51  ;;  %v18751_v31 = vcombine.high %v18734_v60, %v18734_v60  ;;  %v18760_v20 = vrot.slane %v18723_v45, %v16299_v51 }
 0x81a   : > { %v13899_v25 = vpop.eup %13898  ;;  %v8884_v53 = vmax.f32 %v8882_v10, %v8883_v38  ;;  %v18754_v40 = vrot.slane %v8601_v4, %v16299_v51  ;;  %v18764_v17 = vmul.f32 %v10121_v14, %v20385_v39  ;;  %v18768_v5 = vadd.f32 %v18609_v9, %v17682_v55 }
 0x81b   : > { %v13901_v50 = vpop.eup %13900  ;;  %v9635_v23 = vcombine.low %v13895_v29, %v13899_v25  ;;  %v10122_v47 = vmul.f32 %v13899_v25, %v20386_v37  ;;  %v18775_v27 = vcombine.high %v18747_v54, %v18747_v54  ;;  %v18788_v29 = vpop.f32.mrf.mxu0  ;;  %v20391_v25 = vld [vmem:[#allocation53_spill] sm:$0xff] }
 0x81c   : > { %v13903_v36 = vpop.eup %13902  ;;  %v10123_v18 = vmul.f32 %v13901_v50, %v20387_v15  ;;  %v8885_v33 = vrot.slane %v8884_v53, 1  ;;  %20390 = vst [vmem:[#allocation40_spill] sm:$0xff] %v18788_v29 }
 0x81d   : > { %v13905_v12 = vpop.eup %13904  ;;  %v9636_v34 = vcombine.low %v13901_v50, %v13903_v36  ;;  %v9643_v1 = vrot.slane %v9635_v23, %v16299_v51  ;;  %v10124_v42 = vmul.f32 %v13903_v36, %v20388_v44  ;;  %v10419_v24 = vcombine.low %v10121_v14, %v10122_v47  ;;  %v20392_v36 = vld [vmem:[#allocation46_spill] sm:$0xff] }
 0x81e   : > { %v13907_v9 = vpop.eup %13906  ;;  %v10125_v10 = vmul.f32 %v13905_v12, %v20389_v28  ;;  %v18781_v22 = vmul.f32 %v10122_v47, %v20386_v37  ;;  %v18784_v30 = vmul.f32 %v10123_v18, %v20387_v15  ;;  %v18786_v6 = vmax.f32 %v8884_v53, %v8885_v33  ;;  %v13454_v53 = vpop.f32.mrf.mxu0 }
 0x81f   : > { %v13909_v38 = vpop.eup %13908  ;;  %v9650_v4 = vrot.slane %v9636_v34, %v16299_v51  ;;  %v9652_v39 = vcombine.low %v13905_v12, %v13907_v9  ;;  %v10126_v50 = vmul.f32 %v13907_v9, %v20391_v25  ;;  %v10420_v14 = vcombine.low %v10123_v18, %v10124_v42  ;;  %v20393_v34 = vld [vmem:[#allocation55_spill] sm:$0xff]  ;;  %v20394_v9 = vld [vmem:[#allocation48_spill] sm:$0xff] }
 0x820   : > { %v13911_v23 = vpop.eup %13910  ;;  %v10127_v26 = vmul.f32 %v13909_v38, %v20392_v36  ;;  %v10427_v37 = vrot.slane %v10419_v24, %v16299_v51  ;;  %v10908_v47 = vmul.f32 %v10124_v42, %v20388_v44  ;;  %v10909_v15 = vmul.f32 %v10125_v10, %v20389_v28  ;;  %v20395_v28 = vld [vmem:[#allocation57_spill] sm:$0xff] }
 0x821   : > { %v13913_v33 = vpop.eup %13912  ;;  %v9651_v11 = vcombine.low %v9643_v1, %v9650_v4  ;;  %v9653_v41 = vcombine.low %v13909_v38, %v13911_v23  ;;  %v9660_v32 = vrot.slane %v9652_v39, %v16299_v51  ;;  %v10128_v12 = vmul.f32 %v13911_v23, %v20393_v34  ;;  %v20396_v4 = vld [vmem:[#allocation54_spill] sm:$0xff] }
 0x822   : > { %v13915_v61 = vpop.eup %13914  ;;  %v10129_v18 = vmul.f32 %v13913_v33, %v20394_v9  ;;  %v10434_v57 = vrot.slane %v10420_v14, %v16299_v51  ;;  %v10436_v29 = vcombine.low %v10125_v10, %v10126_v50  ;;  %v10910_v24 = vmul.f32 %v10126_v50, %v20391_v25  ;;  %v20397_v50 = vld [vmem:[#allocation60_spill] sm:$0xff] }
 0x823   : > { %v13917_v63 = vpop.eup %13916  ;;  %v9667_v44 = vrot.slane %v9653_v41, %v16299_v51  ;;  %v9669_v42 = vcombine.low %v13913_v33, %v13915_v61  ;;  %v10130_v53 = vmul.f32 %v13915_v61, %v20395_v28  ;;  %v10437_v1 = vcombine.low %v10127_v26, %v10128_v12  ;;  %v20398_v33 = vld [vmem:[#allocation56_spill] sm:$0xff] }
 0x824   : > { %v13919_v38 = vpop.eup %13918  ;;  %v10131_v39 = vmul.f32 %v13917_v63, %v20396_v4  ;;  %v10435_v21 = vcombine.low %v10427_v37, %v10434_v57  ;;  %v10444_v23 = vrot.slane %v10436_v29, %v16299_v51  ;;  %v10911_v2 = vmul.f32 %v10127_v26, %v20392_v36 }
 0x825   : > { %v13921_v35 = vpop.eup %13920  ;;  %v9668_v14 = vcombine.low %v9660_v32, %v9667_v44  ;;  %v9670_v10 = vcombine.low %v13917_v63, %v13919_v38  ;;  %v9677_v25 = vrot.slane %v9669_v42, %v16299_v51  ;;  %v10132_v19 = vmul.f32 %v13919_v38, %v20397_v50 }
 0x826   : > { %v9692_v41 = vrot.slane %v13921_v35, %v16299_v51  ;;  %v10133_v61 = vmul.f32 %v13921_v35, %v20398_v33  ;;  %v10451_v52 = vrot.slane %v10437_v1, %v16299_v51  ;;  %v10453_v8 = vcombine.low %v10129_v18, %v10130_v53 }
 0x827   : > { %v9684_v57 = vrot.slane %v9670_v10, %v16299_v51  ;;  %v10035_v37 = vadd.f32 %v9668_v14, %v9651_v11  ;;  %v10454_v29 = vcombine.low %v10131_v39, %v10132_v19  ;;  %v10912_v26 = vmul.f32 %v10128_v12, %v20393_v34 }
 0x828   : > { %v10037_v32 = vsel %vm3589_vm5, %v9692_v41, 0.0  ;;  %v10452_v63 = vcombine.low %v10444_v23, %v10451_v52  ;;  %v10461_v36 = vrot.slane %v10453_v8, %v16299_v51  ;;  %v10476_v44 = vrot.slane %v10133_v61, %v16299_v51 }
 0x829   : > { %v9685_v42 = vcombine.low %v9677_v25, %v9684_v57  ;;  %v10468_v38 = vrot.slane %v10454_v29, %v16299_v51  ;;  %v10913_v35 = vmul.f32 %v10129_v18, %v20394_v9  ;;  %v10914_v1 = vmul.f32 %v10130_v53, %v20395_v28 }
 0x82a   : > { %v10819_v13 = vadd.f32 %v10452_v63, %v10435_v21  ;;  %v10821_v11 = vsel %vm3589_vm5, %v10476_v44, 0.0  ;;  %v10915_v14 = vmul.f32 %v10131_v39, %v20396_v4  ;;  %v10916_v34 = vmul.f32 %v10132_v19, %v20397_v50  ;;  %v20399_v63 = vld [vmem:[#allocation129_spill] sm:$0xff] }
 0x82b   : > { %v10036_v12 = vadd.f32 %v10035_v37, %v9685_v42  ;;  %v10469_v52 = vcombine.low %v10461_v36, %v10468_v38  ;;  %v10917_v8 = vmul.f32 %v10133_v61, %v20398_v33  ;;  %v11203_v23 = vcombine.low %v18764_v17, %v18781_v22  ;;  %v20400_v38 = vld [vmem:[#allocation134_spill] sm:$0xff] }
 0x82c   : > { %v11204_v10 = vcombine.low %v18784_v30, %v10908_v47  ;;  %v11220_v25 = vcombine.low %v10909_v15, %v10910_v24  ;;  %v11221_v9 = vcombine.low %v10911_v2, %v10912_v26  ;;  %v11237_v18 = vcombine.low %v10913_v35, %v10914_v1 }
 0x82d   : > { %v10038_v28 = vadd.f32 %v10037_v32, %v10036_v12  ;;  %v10820_v21 = vadd.f32 %v10819_v13, %v10469_v52  ;;  %v11211_v53 = vrot.slane %v11203_v23, %v16299_v51  ;;  %v11238_v41 = vcombine.low %v10915_v14, %v10916_v34  ;;  %v20401_v14 = vld [vmem:[#allocation130_spill] sm:$0xff]  ;;  %v20402_v12 = vld [vmem:[#allocation132_spill] sm:$0xff] }
 0x82e   : > { %v11218_v4 = vrot.slane %v11204_v10, %v16299_v51  ;;  %v11228_v19 = vrot.slane %v11220_v25, %v16299_v51  ;;  %v11235_v39 = vrot.slane %v11221_v9, %v16299_v51  ;;  %v11245_v50 = vrot.slane %v11237_v18, %v16299_v51  ;;  %v20404_v10 = vld [vmem:[#allocation133_spill] sm:$0xff]  ;;  %v20405_v9 = vld [vmem:[#allocation136_spill] sm:$0xff] }
 0x82f   : > { %v10039_v33 = vrot.slane %v10038_v28, 4  ;;  %v10822_v17 = vadd.f32 %v10821_v11, %v10820_v21  ;;  %v11252_v22 = vrot.slane %v11238_v41, %v16299_v51  ;;  %v11260_v2 = vrot.slane %v10917_v8, %v16299_v51  ;;  %v20406_v21 = vld [vmem:[#allocation131_spill] sm:$0xff] }
 0x830   : > { %v11219_v30 = vcombine.low %v11211_v53, %v11218_v4  ;;  %v11236_v47 = vcombine.low %v11228_v19, %v11235_v39  ;;  %v8986_v13 = vcombine.high %v18786_v6, %v18786_v6  ;;  %v8993_v15 = vrot.slane %v18786_v6, %v16299_v51  ;;  %v20407_v41 = vld [vmem:[#allocation135_spill] sm:$0xff]  ;;  %v18853_v19 = vpop.f32.mrf.mxu0 }
 0x831   : > { %v10040_v24 = vadd.f32 %v10039_v33, %v10038_v28  ;;  %v10823_v61 = vrot.slane %v10822_v17, 4  ;;  %v11253_v57 = vcombine.low %v11245_v50, %v11252_v22  ;;  %v8617_v37 = vcombine.low %v18734_v60, %v18751_v31 }
 0x832   : > { %v11603_v29 = vadd.f32 %v11236_v47, %v11219_v30  ;;  %v9000_v26 = vrot.slane %v8986_v13, %v16299_v51  ;;  %v9001_v32 = vcombine.high %v8993_v15, %v8993_v15  ;;  %v9142_v36 = vsub.f32 %v20399_v63, %v8993_v15 }
 0x833   : > { %v10041_v44 = vrot.slane %v10040_v24, 2  ;;  %v11605_v42 = vsel %vm3589_vm5, %v11260_v2, 0.0  ;;  %v9146_v35 = vsub.f32 %v20400_v38, %v8993_v15  ;;  %v9150_v1 = vsub.f32 %v18524_v56, %v8993_v15 }
 0x834   : > { %v11604_v6 = vadd.f32 %v11603_v29, %v11253_v57  ;;  %v9002_v11 = vcombine.high %v9000_v26, %v9000_v26  ;;  %v9143_v34 = vsub.f32 %v20401_v14, %v9001_v32  ;;  %v9144_v52 = vsub.f32 %v20402_v12, %v9000_v26 }
 0x835   : > { %v10042_v8 = vadd.f32 %v10041_v44, %v10040_v24  ;;  %v18846_v23 = vadd.f32 %v10823_v61, %v10822_v17  ;;  %v9147_v25 = vsub.f32 %v20404_v10, %v9001_v32  ;;  %v9148_v18 = vsub.f32 %v20405_v9, %v9000_v26 }
 0x836   : > { %v11606_v28 = vadd.f32 %v11605_v42, %v11604_v6  ;;  %v9145_v53 = vsub.f32 %v20406_v21, %v9002_v11  ;;  %v9149_v4 = vsub.f32 %v20407_v41, %v9002_v11  ;;  %v9151_v56 = vsub.f32 %v18528_v49, %v9001_v32  ;;  %v13455_v49 = vpop.f32.mrf.mxu0 }
 0x837   : > { %20403 = vst [vmem:[#allocation50_spill] sm:$0xff] %v18846_v23  ;;  %v10043_v39 = vrot.slane %v10042_v8, 1  ;;  %v9152_v50 = vsub.f32 %v18543_v16, %v9000_v26  ;;  %v9153_v33 = vsub.f32 %v18534_v7, %v9002_v11  ;;  %v9154_v17 = vsub.f32 %v18557_v59, %v8993_v15  ;;  %v20427_v49 = vld [vmem:[#allocation71_spill] sm:$0xff] }
 0x838   : > { %v11607_v22 = vrot.slane %v11606_v28, 4  ;;  %v9285_v2 = vmul.f32 1.442695, %v9142_v36  ;;  %v9287_v30 = vmul.f32 1.442695, %v9143_v34  ;;  %v20408_v47 = vcombine.low %v18744_v62, %v18754_v40  ;;  %v18865_v15 = vpop.f32.mrf.mxu0 }
 0x839   : > { %v20409_v13 = vcombine.low %v18705_v3, %v18717_v0  ;;  %v10044_v61 = vadd.f32 %v10043_v39, %v10042_v8  ;;  %v9289_v29 = vmul.f32 1.442695, %v9144_v52  ;;  %v9291_v16 = vmul.f32 1.442695, %v9145_v53  ;;  %20410 = vst [vmem:[#allocation119_spill] sm:$0xff] %v18865_v15 }
 0x83a   : > { %v11608_v26 = vadd.f32 %v11607_v22, %v11606_v28  ;;  %13922 = vpow2.f32 %v9285_v2  ;;  %v9293_v7 = vmul.f32 1.442695, %v9146_v35  ;;  %v9295_v59 = vmul.f32 1.442695, %v9147_v25  ;;  %v13458_v36 = vpop.f32.mrf.mxu0 }
 0x83b   : > { %v8887_v24 = vmax.f32 %v20409_v13, %v20408_v47  ;;  %13924 = vrcp.f32 %v10044_v61  ;;  %v9297_v32 = vmul.f32 1.442695, %v9148_v18  ;;  %v9299_v63 = vmul.f32 1.442695, %v9149_v4 }
 0x83c   : > { %v9301_v62 = vmul.f32 1.442695, %v9150_v1  ;;  %v11609_v40 = vrot.slane %v11608_v26, 2  ;;  %13926 = vpow2.f32 %v9287_v30  ;;  %v9303_v3 = vmul.f32 1.442695, %v9151_v56  ;;  %v18880_v14 = vpop.f32.mrf.mxu0 }
 0x83d   : > { %v9305_v0 = vmul.f32 1.442695, %v9152_v50  ;;  %13928 = vpow2.f32 %v9289_v29  ;;  %v9307_v44 = vmul.f32 1.442695, %v9153_v33  ;;  %v9309_v42 = vmul.f32 1.442695, %v9154_v17 }
 0x83e   : > { %v8618_v38 = vcombine.low %v18747_v54, %v18775_v27  ;;  %13930 = vpow2.f32 %v9291_v16  ;;  %v8625_v35 = vrot.slane %v8617_v37, %v16299_v51  ;;  %v20411_v6 = vcombine.high %v18723_v45, %v18723_v45  ;;  %20412 = vst [vmem:[#allocation118_spill] sm:$0xff] %v18880_v14  ;;  %v13459_v10 = vpop.f32.mrf.mxu0  ;;  %v20419_v29 = vld [vmem:[#allocation64_spill] sm:$0xff] }
 0x83f   : > { %v18878_v1 = vcombine.high %v18760_v20, %v18760_v20  ;;  %13932 = vpow2.f32 %v9293_v7  ;;  %v8640_v12 = vrot.slane %v18760_v20, %v16299_v51  ;;  %v8094_v37 = vcombine.high %v18768_v5, %v18768_v5 }
 0x840   : > { %v18874_v11 = vrot.slane %v20411_v6, %v16299_v51  ;;  %v8632_v34 = vrot.slane %v8618_v38, %v16299_v51  ;;  %v18887_v52 = vadd.f32 %v11609_v40, %v11608_v26  ;;  %13934 = vpow2.f32 %v9295_v59  ;;  %v20421_v6 = vld [vmem:[#allocation65_spill] sm:$0xff] }
 0x841   : > { %13936 = vpow2.f32 %v9297_v32  ;;  %v8889_v9 = vsel %vm3589_vm5, %v8640_v12, -inf  ;;  %v18898_v18 = vrot.slane %v18768_v5, %v16299_v51  ;;  %v18904_v21 = vrot.slane %v8094_v37, %v16299_v51 }
 0x842   : > { %20413 = vst [vmem:[#allocation122_spill] sm:$0xff] %v18887_v52  ;;  %v8641_v45 = vcombine.low %v18878_v1, %v18874_v11  ;;  %v18893_v8 = vcombine.high %v18874_v11, %v18874_v11  ;;  %v8633_v25 = vcombine.low %v8625_v35, %v8632_v34  ;;  %13938 = vpow2.f32 %v9299_v63 }
 0x843   : > { %20414 = vst [vmem:[#allocation121_spill] sm:$0xff] %v18898_v18  ;;  %20415 = vst [vmem:[#allocation41_spill] sm:$0xff] %v18904_v21  ;;  %v7177_v53 = vadd.f32 %v18646_v46, %v17682_v55  ;;  %13940 = vpow2.f32 %v9301_v62  ;;  %v18910_v4 = vcombine.high %v18898_v18, %v18898_v18  ;;  %v18916_v56 = vcombine.high %v18904_v21, %v18904_v21  ;;  %v20426_v62 = vld [vmem:[#allocation62_spill] sm:$0xff] }
 0x844   : > { %v18901_v28 = vrot.slane %v8641_v45, %v16299_v51  ;;  %v8888_v41 = vmax.f32 %v8887_v24, %v8633_v25  ;;  %v8642_v5 = vcombine.low %v18893_v8, %v18898_v18  ;;  %13942 = vpow2.f32 %v9303_v3 }
 0x845   : > { %20416 = vst [vmem:[#allocation51_spill] sm:$0xff] %v18916_v56  ;;  %v8111_v39 = vcombine.high %v7177_v53, %v7177_v53  ;;  %v18919_v50 = vrot.slane %v7177_v53, %v16299_v51  ;;  %13944 = vpow2.f32 %v9305_v0  ;;  %v8658_v17 = vcombine.low %v18910_v4, %v18904_v21 }
 0x846   : > { %v8890_v46 = vmax.f32 %v8888_v41, %v8889_v9  ;;  %v18922_v33 = vrot.slane %v8642_v5, %v16299_v51  ;;  %13946 = vpow2.f32 %v9307_v44  ;;  %v18949_v59 = vadd.f32 %v18660_v43, %v17682_v55  ;;  %v20420_v44 = vld [vmem:[#allocation58_spill] sm:$0xff]  ;;  %v20422_v9 = vld [vmem:[#allocation59_spill] sm:$0xff] }
 0x847   : > { %20417 = vst [vmem:[#allocation42_spill] sm:$0xff] %v18919_v50  ;;  %v18927_v22 = vrot.slane %v8111_v39, %v16299_v51  ;;  %v18931_v2 = vcombine.high %v18919_v50, %v18919_v50  ;;  %v8659_v30 = vcombine.low %v18916_v56, %v18919_v50  ;;  %v13923_v47 = vpop.eup %13922  ;;  %13948 = vpow2.f32 %v9309_v42  ;;  %v20423_v39 = vld [vmem:[#allocation68_spill] sm:$0xff] }
 0x848   : > { %v8891_v24 = vrot.slane %v8890_v46, 4  ;;  %v18938_v61 = vpop.eup %13924  ;;  %v10134_v16 = vmul.f32 %v13923_v47, %v20419_v29  ;;  %v18942_v26 = vrot.slane %v8658_v17, %v16299_v51  ;;  %v18959_v3 = vadd.f32 %v18690_v48, %v17682_v55 }
 0x849   : > { %20418 = vst [vmem:[#allocation52_spill] sm:$0xff] %v18938_v61  ;;  %v18945_v7 = vrot.slane %v8659_v30, %v16299_v51  ;;  %v13927_v32 = vpop.eup %13926  ;;  %v18955_v40 = vcombine.high %v18927_v22, %v18927_v22  ;;  %v18972_v48 = vadd.f32 %v18714_v58, %v17682_v55 }
 0x84a   : > { %v8892_v63 = vmax.f32 %v8890_v46, %v8891_v24  ;;  %v13929_v0 = vpop.eup %13928  ;;  %v9693_v36 = vcombine.low %v13923_v47, %v13927_v32  ;;  %v10135_v42 = vmul.f32 %v13927_v32, %v20420_v44  ;;  %v18963_v43 = vmul.f32 %v10134_v16, %v20419_v29  ;;  %v20424_v32 = vld [vmem:[#allocation61_spill] sm:$0xff] }
 0x84b   : > { %v13931_v35 = vpop.eup %13930  ;;  %v10136_v34 = vmul.f32 %v13929_v0, %v20421_v6 }
 0x84c   : > { %v8893_v12 = vrot.slane %v8892_v63, 2  ;;  %v13933_v45 = vpop.eup %13932  ;;  %v9694_v10 = vcombine.low %v13929_v0, %v13931_v35  ;;  %v9701_v25 = vrot.slane %v9693_v36, %v16299_v51  ;;  %v10137_v53 = vmul.f32 %v13931_v35, %v20422_v9 }
 0x84d   : > { %v10477_v41 = vcombine.low %v10134_v16, %v10135_v42  ;;  %v13935_v5 = vpop.eup %13934  ;;  %v10138_v46 = vmul.f32 %v13933_v45, %v20423_v39  ;;  %v18978_v17 = vmul.f32 %v10135_v42, %v20420_v44  ;;  %v18981_v30 = vmul.f32 %v10136_v34, %v20421_v6  ;;  %v20425_v16 = vld [vmem:[#allocation70_spill] sm:$0xff] }
 0x84e   : > { %v18983_v47 = vmax.f32 %v8892_v63, %v8893_v12  ;;  %v13937_v58 = vpop.eup %13936  ;;  %v9708_v24 = vrot.slane %v9694_v10, %v16299_v51  ;;  %v9710_v29 = vcombine.low %v13933_v45, %v13935_v5  ;;  %v10139_v0 = vmul.f32 %v13935_v5, %v20424_v32 }
 0x84f   : > { %v10478_v36 = vcombine.low %v10136_v34, %v10137_v53  ;;  %v13939_v35 = vpop.eup %13938  ;;  %v10140_v13 = vmul.f32 %v13937_v58, %v20425_v16  ;;  %v10485_v57 = vrot.slane %v10477_v41, %v16299_v51  ;;  %v10921_v44 = vmul.f32 %v10137_v53, %v20422_v9 }
 0x850   : > { %v10922_v42 = vmul.f32 %v10138_v46, %v20423_v39  ;;  %v13941_v6 = vpop.eup %13940  ;;  %v9709_v37 = vcombine.low %v9701_v25, %v9708_v24  ;;  %v9711_v63 = vcombine.low %v13937_v58, %v13939_v35  ;;  %v9718_v12 = vrot.slane %v9710_v29, %v16299_v51  ;;  %v20428_v39 = vld [vmem:[#allocation63_spill] sm:$0xff]  ;;  %v20429_v24 = vld [vmem:[#allocation72_spill] sm:$0xff] }
 0x851   : > { %v10141_v10 = vmul.f32 %v13939_v35, %v20426_v62  ;;  %v13943_v45 = vpop.eup %13942  ;;  %v10142_v5 = vmul.f32 %v13941_v6, %v20427_v49  ;;  %v10492_v34 = vrot.slane %v10478_v36, %v16299_v51  ;;  %v10494_v38 = vcombine.low %v10138_v46, %v10139_v0 }
 0x852   : > { %v10923_v61 = vmul.f32 %v10139_v0, %v20424_v32  ;;  %v13945_v41 = vpop.eup %13944  ;;  %v9725_v9 = vrot.slane %v9711_v63, %v16299_v51  ;;  %v9727_v53 = vcombine.low %v13941_v6, %v13943_v45  ;;  %v10143_v52 = vmul.f32 %v13943_v45, %v20428_v39  ;;  %v20430_v0 = vld [vmem:[#allocation66_spill] sm:$0xff]  ;;  %v20431_v63 = vld [vmem:[#allocation75_spill] sm:$0xff] }
 0x853   : > { %v10495_v25 = vcombine.low %v10140_v13, %v10141_v10  ;;  %v13947_v58 = vpop.eup %13946  ;;  %v10144_v29 = vmul.f32 %v13945_v41, %v20429_v24  ;;  %v10493_v23 = vcombine.low %v10485_v57, %v10492_v34  ;;  %v10502_v35 = vrot.slane %v10494_v38, %v16299_v51 }
 0x854   : > { %v10924_v14 = vmul.f32 %v10140_v13, %v20425_v16  ;;  %v13949_v15 = vpop.eup %13948  ;;  %v9726_v36 = vcombine.low %v9718_v12, %v9725_v9  ;;  %v9728_v46 = vcombine.low %v13945_v41, %v13947_v58  ;;  %v9735_v32 = vrot.slane %v9727_v53, %v16299_v51 }
 0x855   : > { %v10145_v50 = vmul.f32 %v13947_v58, %v20430_v0  ;;  %v9750_v6 = vrot.slane %v13949_v15, %v16299_v51  ;;  %v10146_v45 = vmul.f32 %v13949_v15, %v20431_v63  ;;  %v10509_v18 = vrot.slane %v10495_v25, %v16299_v51 }
 0x856   : > { %v10511_v56 = vcombine.low %v10142_v5, %v10143_v52  ;;  %v9742_v57 = vrot.slane %v9728_v46, %v16299_v51  ;;  %v10045_v34 = vadd.f32 %v9726_v36, %v9709_v37  ;;  %v10925_v13 = vmul.f32 %v10141_v10, %v20426_v62 }
 0x857   : > { %v10512_v38 = vcombine.low %v10144_v29, %v10145_v50  ;;  %v10047_v16 = vsel %vm3589_vm5, %v9750_v6, 0.0  ;;  %v10510_v12 = vcombine.low %v10502_v35, %v10509_v18  ;;  %v10534_v9 = vrot.slane %v10146_v45, %v16299_v51 }
 0x858   : > { %v10519_v41 = vrot.slane %v10511_v56, %v16299_v51  ;;  %v9743_v53 = vcombine.low %v9735_v32, %v9742_v57  ;;  %v10926_v15 = vmul.f32 %v10142_v5, %v20427_v49  ;;  %v10927_v25 = vmul.f32 %v10143_v52, %v20428_v39 }
 0x859   : > { %v10526_v58 = vrot.slane %v10512_v38, %v16299_v51  ;;  %v10829_v21 = vadd.f32 %v10510_v12, %v10493_v23  ;;  %v10831_v37 = vsel %vm3589_vm5, %v10534_v9, 0.0  ;;  %v10928_v36 = vmul.f32 %v10144_v29, %v20429_v24 }
 0x85a   : > { %v10929_v62 = vmul.f32 %v10145_v50, %v20430_v0  ;;  %v10046_v10 = vadd.f32 %v10045_v34, %v9743_v53  ;;  %v10930_v56 = vmul.f32 %v10146_v45, %v20431_v63  ;;  %v11261_v35 = vcombine.low %v18963_v43, %v18978_v17 }
 0x85b   : > { %v10527_v18 = vcombine.low %v10519_v41, %v10526_v58  ;;  %v11262_v46 = vcombine.low %v18981_v30, %v10921_v44  ;;  %v11278_v32 = vcombine.low %v10922_v42, %v10923_v61  ;;  %v11279_v49 = vcombine.low %v10924_v14, %v10925_v13 }
 0x85c   : > { %v11295_v5 = vcombine.low %v10926_v15, %v10927_v25  ;;  %v10048_v52 = vadd.f32 %v10047_v16, %v10046_v10  ;;  %v11269_v39 = vrot.slane %v11261_v35, %v16299_v51  ;;  %v11296_v6 = vcombine.low %v10928_v36, %v10929_v62  ;;  %v20437_v35 = vld [vmem:[#allocation139_spill] sm:$0xff] }
 0x85d   : > { %v10830_v23 = vadd.f32 %v10829_v21, %v10527_v18  ;;  %v11276_v24 = vrot.slane %v11262_v46, %v16299_v51  ;;  %v11286_v50 = vrot.slane %v11278_v32, %v16299_v51  ;;  %v11293_v29 = vrot.slane %v11279_v49, %v16299_v51  ;;  %v20438_v49 = vld [vmem:[#allocation36_spill] sm:$0xff] }
 0x85e   : > { %v11303_v0 = vrot.slane %v11295_v5, %v16299_v51  ;;  %v10049_v63 = vrot.slane %v10048_v52, 4  ;;  %v11310_v61 = vrot.slane %v11296_v6, %v16299_v51  ;;  %v11318_v14 = vrot.slane %v10930_v56, %v16299_v51 }
 0x85f   : > { %v19026_v43 = vadd.f32 %v10831_v37, %v10830_v23  ;;  %v11277_v17 = vcombine.low %v11269_v39, %v11276_v24  ;;  %v11294_v21 = vcombine.low %v11286_v50, %v11293_v29  ;;  %v8895_v30 = vrot.slane %v18983_v47, 1  ;;  %v20439_v24 = vld [vmem:[#allocation35_spill] sm:$0xff]  ;;  %v20440_v29 = vld [vmem:[#allocation38_spill] sm:$0xff] }
 0x860   : > { %v20433_v44 = vcombine.low %v18942_v26, %v18945_v7  ;;  %v20434_v42 = vcombine.low %v18901_v28, %v18922_v33  ;;  %v10050_v57 = vadd.f32 %v10049_v63, %v10048_v52  ;;  %v11311_v38 = vcombine.low %v11303_v0, %v11310_v61  ;;  %v20441_v61 = vld [vmem:[#allocation37_spill] sm:$0xff] }
 0x861   : > { %20432 = vst [vmem:[#allocation43_spill] sm:$0xff] %v19026_v43  ;;  %v20435_v13 = vcombine.low %v18931_v2, %v18927_v22  ;;  %v11613_v12 = vadd.f32 %v11294_v21, %v11277_v17  ;;  %v8896_v41 = vmax.f32 %v18983_v47, %v8895_v30  ;;  %v19049_v26 = vrot.slane %v18949_v59, %v16299_v51  ;;  %v20442_v17 = vld [vmem:[#allocation45_spill] sm:$0xff] }
 0x862   : > { %v19037_v45 = vmax.f32 %v20434_v42, %v20433_v44  ;;  %v20436_v28 = vcombine.high %v18949_v59, %v18949_v59  ;;  %v10051_v7 = vrot.slane %v10050_v57, 2  ;;  %v11615_v9 = vsel %vm3589_vm5, %v11318_v14, 0.0  ;;  %v20443_v44 = vld [vmem:[#allocation44_spill] sm:$0xff] }
 0x863   : > { %v19044_v16 = vrot.slane %v20435_v13, %v16299_v51  ;;  %v8145_v53 = vcombine.high %v18959_v3, %v18959_v3  ;;  %v19062_v58 = vrot.slane %v18959_v3, %v16299_v51  ;;  %v11614_v47 = vadd.f32 %v11613_v12, %v11311_v38 }
 0x864   : > { %v19055_v33 = vrot.slane %v20436_v28, %v16299_v51  ;;  %v9003_v15 = vcombine.high %v8896_v41, %v8896_v41  ;;  %v9010_v25 = vrot.slane %v8896_v41, %v16299_v51  ;;  %v8162_v37 = vcombine.high %v18972_v48, %v18972_v48 }
 0x865   : > { %v10052_v59 = vadd.f32 %v10051_v7, %v10050_v57  ;;  %v19069_v36 = vcombine.high %v19049_v26, %v19049_v26  ;;  %v8676_v3 = vcombine.low %v18955_v40, %v19049_v26  ;;  %v11616_v10 = vadd.f32 %v11615_v9, %v11614_v47  ;;  %v20444_v57 = vld [vmem:[#allocation47_spill] sm:$0xff] }
 0x866   : > { %v19073_v62 = vcombine.high %v19055_v33, %v19055_v33  ;;  %v9017_v18 = vrot.slane %v9003_v15, %v16299_v51  ;;  %v9018_v56 = vcombine.high %v9010_v25, %v9010_v25  ;;  %v9155_v46 = vsub.f32 %v20437_v35, %v9010_v25 }
 0x867   : > { %v10053_v32 = vrot.slane %v10052_v59, 1  ;;  %v9159_v5 = vsub.f32 %v20438_v49, %v9010_v25  ;;  %v9163_v52 = vsub.f32 %v18734_v60, %v9010_v25  ;;  %v9167_v23 = vsub.f32 %v18760_v20, %v9010_v25 }
 0x868   : > { %v11617_v39 = vrot.slane %v11616_v10, 4  ;;  %v9019_v6 = vcombine.high %v9017_v18, %v9017_v18  ;;  %v9156_v50 = vsub.f32 %v20439_v24, %v9018_v56  ;;  %v9157_v0 = vsub.f32 %v20440_v29, %v9017_v18 }
 0x869   : > { %v10054_v63 = vadd.f32 %v10053_v32, %v10052_v59  ;;  %v9160_v14 = vsub.f32 %v20441_v61, %v9018_v56  ;;  %v9161_v21 = vsub.f32 %v20442_v17, %v9017_v18  ;;  %v9164_v30 = vsub.f32 %v18751_v31, %v9018_v56 }
 0x86a   : > { %v9158_v42 = vsub.f32 %v20443_v44, %v9019_v6  ;;  %v9162_v38 = vsub.f32 %v20444_v57, %v9019_v6  ;;  %v9165_v60 = vsub.f32 %v18747_v54, %v9017_v18  ;;  %v19091_v20 = vrot.slane %v8145_v53, %v16299_v51 }
 0x86b   : > { %v19093_v13 = vadd.f32 %v11617_v39, %v11616_v10  ;;  %v9166_v12 = vsub.f32 %v18775_v27, %v9019_v6  ;;  %v9311_v41 = vmul.f32 1.442695, %v9155_v46  ;;  %v9313_v28 = vmul.f32 1.442695, %v9156_v50 }
 0x86c   : > { %20445 = vst [vmem:[#allocation53_spill] sm:$0xff] %v19091_v20  ;;  %13950 = vrcp.f32 %v10054_v63  ;;  %v9315_v7 = vmul.f32 1.442695, %v9157_v0  ;;  %v9317_v9 = vmul.f32 1.442695, %v9158_v42  ;;  %v8690_v31 = vrot.slane %v8676_v3, %v16299_v51 }
 0x86d   : > { %20446 = vst [vmem:[#allocation46_spill] sm:$0xff] %v19093_v13  ;;  %13952 = vpow2.f32 %v9311_v41  ;;  %v9319_v47 = vmul.f32 1.442695, %v9159_v5  ;;  %v9321_v15 = vmul.f32 1.442695, %v9160_v14  ;;  %v8698_v35 = vrot.slane %v19069_v36, %v16299_v51 }
 0x86e   : > { %v9323_v25 = vmul.f32 1.442695, %v9161_v21  ;;  %13954 = vpow2.f32 %v9313_v28  ;;  %v9325_v54 = vmul.f32 1.442695, %v9162_v38  ;;  %v9327_v59 = vmul.f32 1.442695, %v9163_v52 }
 0x86f   : > { %v9329_v53 = vmul.f32 1.442695, %v9164_v30  ;;  %13956 = vpow2.f32 %v9315_v7  ;;  %v9331_v10 = vmul.f32 1.442695, %v9165_v60  ;;  %v9333_v18 = vmul.f32 1.442695, %v9166_v12 }
 0x870   : > { %v9335_v56 = vmul.f32 1.442695, %v9167_v23  ;;  %13958 = vpow2.f32 %v9317_v9  ;;  %v8691_v27 = vcombine.low %v19044_v16, %v8690_v31  ;;  %v8699_v3 = vcombine.low %v19055_v33, %v19073_v62 }
 0x871   : > { %13960 = vpow2.f32 %v9319_v47  ;;  %v19104_v46 = vcombine.high %v19062_v58, %v19062_v58  ;;  %v19108_v32 = vcombine.high %v19091_v20, %v19091_v20  ;;  %v19112_v49 = vrot.slane %v18972_v48, %v16299_v51 }
 0x872   : > { %13962 = vpow2.f32 %v9321_v15  ;;  %v8707_v16 = vrot.slane %v8699_v3, %v16299_v51  ;;  %v8898_v5 = vmax.f32 %v19037_v45, %v8691_v27  ;;  %v8899_v52 = vsel %vm3589_vm5, %v8698_v35, -inf  ;;  %v20451_v45 = vld [vmem:[#allocation40_spill] sm:$0xff] }
 0x873   : > { %20447 = vst [vmem:[#allocation55_spill] sm:$0xff] %v19108_v32  ;;  %20448 = vst [vmem:[#allocation48_spill] sm:$0xff] %v19112_v49  ;;  %13964 = vpow2.f32 %v9323_v25  ;;  %v8700_v23 = vcombine.low %v19062_v58, %v19104_v46  ;;  %v8716_v39 = vcombine.low %v19091_v20, %v19108_v32  ;;  %v19122_v6 = vrot.slane %v8162_v37, %v16299_v51  ;;  %v20456_v25 = vld [vmem:[#allocation67_spill] sm:$0xff] }
 0x874   : > { %13966 = vpow2.f32 %v9325_v54  ;;  %v8900_v48 = vmax.f32 %v8898_v5, %v8899_v52  ;;  %v19126_v24 = vcombine.high %v19112_v49, %v19112_v49  ;;  %v7193_v50 = vadd.f32 %v20451_v45, %v17682_v55  ;;  %v20458_v5 = vld [vmem:[#allocation69_spill] sm:$0xff] }
 0x875   : > { %20449 = vst [vmem:[#allocation57_spill] sm:$0xff] %v19122_v6  ;;  %13968 = vpow2.f32 %v9327_v59  ;;  %v8714_v29 = vrot.slane %v8700_v23, %v16299_v51  ;;  %v8724_v0 = vrot.slane %v8716_v39, %v16299_v51  ;;  %v19134_v63 = vcombine.high %v19122_v6, %v19122_v6 }
 0x876   : > { %20450 = vst [vmem:[#allocation54_spill] sm:$0xff] %v19126_v24  ;;  %13970 = vpow2.f32 %v9329_v53  ;;  %v8901_v37 = vrot.slane %v8900_v48, 4  ;;  %v8717_v61 = vcombine.low %v19112_v49, %v19126_v24  ;;  %v8179_v14 = vcombine.high %v7193_v50, %v7193_v50 }
 0x877   : > { %20452 = vst [vmem:[#allocation60_spill] sm:$0xff] %v19134_v63  ;;  %13972 = vpow2.f32 %v9331_v10  ;;  %v8715_v17 = vcombine.low %v8707_v16, %v8714_v29  ;;  %v8733_v21 = vcombine.low %v19122_v6, %v19134_v63  ;;  %v19141_v30 = vrot.slane %v7193_v50, %v16299_v51 }
 0x878   : > { %13974 = vpow2.f32 %v9333_v18  ;;  %v8902_v44 = vmax.f32 %v8900_v48, %v8901_v37  ;;  %v8731_v42 = vrot.slane %v8717_v61, %v16299_v51  ;;  %v19145_v57 = vrot.slane %v8179_v14, %v16299_v51 }
 0x879   : > { %20453 = vst [vmem:[#allocation56_spill] sm:$0xff] %v19141_v30  ;;  %v19147_v38 = vpop.eup %13950  ;;  %13976 = vpow2.f32 %v9335_v56  ;;  %v19152_v12 = vcombine.high %v19141_v30, %v19141_v30  ;;  %v19156_v41 = vadd.f32 %v18853_v19, %v17682_v55  ;;  %v19159_v31 = vrot.slane %v8733_v21, %v16299_v51  ;;  %v20457_v56 = vld [vmem:[#allocation76_spill] sm:$0xff] }
 0x87a   : > { %20454 = vst [vmem:[#allocation129_spill] sm:$0xff] %v19147_v38  ;;  %v13953_v28 = vpop.eup %13952  ;;  %v8903_v7 = vrot.slane %v8902_v44, 2  ;;  %v8732_v9 = vcombine.low %v8724_v0, %v8731_v42  ;;  %v19168_v53 = vcombine.high %v19145_v57, %v19145_v57  ;;  %v20459_v0 = vld [vmem:[#allocation77_spill] sm:$0xff]  ;;  %v20464_v38 = vld [vmem:[#allocation78_spill] sm:$0xff] }
 0x87b   : > { %20455 = vst [vmem:[#allocation134_spill] sm:$0xff] %v19152_v12  ;;  %v13955_v15 = vpop.eup %13954  ;;  %v10147_v54 = vmul.f32 %v13953_v28, %v20456_v25  ;;  %v8734_v59 = vcombine.low %v19141_v30, %v19152_v12  ;;  %v19186_v48 = vrot.slane %v19156_v41, %v16299_v51 }
 0x87c   : > { %v13957_v10 = vpop.eup %13956  ;;  %v9751_v18 = vcombine.low %v13953_v28, %v13955_v15  ;;  %v10148_v27 = vmul.f32 %v13955_v15, %v20457_v56  ;;  %v19173_v35 = vmax.f32 %v8902_v44, %v8903_v7  ;;  %v19175_v3 = vmax.f32 %v8715_v17, %v8732_v9  ;;  %v20460_v17 = vld [vmem:[#allocation73_spill] sm:$0xff]  ;;  %v20463_v28 = vld [vmem:[#allocation82_spill] sm:$0xff] }
 0x87d   : > { %v13959_v16 = vpop.eup %13958  ;;  %v10149_v52 = vmul.f32 %v13957_v10, %v20458_v5  ;;  %v19179_v23 = vmul.f32 %v10147_v54, %v20456_v25  ;;  %v19182_v39 = vrot.slane %v8734_v59, %v16299_v51  ;;  %v20461_v25 = vld [vmem:[#allocation80_spill] sm:$0xff] }
 0x87e   : > { %v13961_v45 = vpop.eup %13960  ;;  %v9752_v50 = vcombine.low %v13957_v10, %v13959_v16  ;;  %v9759_v29 = vrot.slane %v9751_v18, %v16299_v51  ;;  %v10150_v37 = vmul.f32 %v13959_v16, %v20459_v0  ;;  %v10535_v61 = vcombine.low %v10147_v54, %v10148_v27  ;;  %v20462_v54 = vld [vmem:[#allocation74_spill] sm:$0xff] }
 0x87f   : > { %v13963_v14 = vpop.eup %13962  ;;  %v10151_v21 = vmul.f32 %v13961_v45, %v20460_v17  ;;  %v19192_v44 = vmul.f32 %v10148_v27, %v20457_v56  ;;  %v19195_v42 = vmul.f32 %v10149_v52, %v20458_v5 }
 0x880   : > { %v13965_v7 = vpop.eup %13964  ;;  %v9766_v9 = vrot.slane %v9752_v50, %v16299_v51  ;;  %v9768_v15 = vcombine.low %v13961_v45, %v13963_v14  ;;  %v10152_v59 = vmul.f32 %v13963_v14, %v20461_v25  ;;  %v10536_v10 = vcombine.low %v10149_v52, %v10150_v37 }
 0x881   : > { %v13967_v18 = vpop.eup %13966  ;;  %v10153_v16 = vmul.f32 %v13965_v7, %v20462_v54  ;;  %v10543_v60 = vrot.slane %v10535_v61, %v16299_v51  ;;  %v10934_v56 = vmul.f32 %v10150_v37, %v20459_v0  ;;  %v10935_v27 = vmul.f32 %v10151_v21, %v20460_v17  ;;  %v20465_v17 = vld [vmem:[#allocation86_spill] sm:$0xff] }
 0x882   : > { %v13969_v5 = vpop.eup %13968  ;;  %v9767_v34 = vcombine.low %v9759_v29, %v9766_v9  ;;  %v9769_v19 = vcombine.low %v13965_v7, %v13967_v18  ;;  %v9776_v47 = vrot.slane %v9768_v15, %v16299_v51  ;;  %v10154_v50 = vmul.f32 %v13967_v18, %v20463_v28  ;;  %v20466_v9 = vld [vmem:[#allocation79_spill] sm:$0xff] }
 0x883   : > { %v13971_v45 = vpop.eup %13970  ;;  %v10155_v14 = vmul.f32 %v13969_v5, %v20464_v38  ;;  %v10550_v52 = vrot.slane %v10536_v10, %v16299_v51  ;;  %v10552_v13 = vcombine.low %v10151_v21, %v10152_v59  ;;  %v10936_v43 = vmul.f32 %v10152_v59, %v20461_v25  ;;  %v20467_v59 = vld [vmem:[#allocation87_spill] sm:$0xff] }
 0x884   : > { %v13973_v61 = vpop.eup %13972  ;;  %v9783_v0 = vrot.slane %v9769_v19, %v16299_v51  ;;  %v9785_v37 = vcombine.low %v13969_v5, %v13971_v45  ;;  %v10156_v12 = vmul.f32 %v13971_v45, %v20465_v17  ;;  %v10553_v29 = vcombine.low %v10153_v16, %v10154_v50  ;;  %v20468_v5 = vld [vmem:[#allocation81_spill] sm:$0xff] }
 0x885   : > { %v13975_v7 = vpop.eup %13974  ;;  %v10157_v15 = vmul.f32 %v13973_v61, %v20466_v9  ;;  %v10551_v30 = vcombine.low %v10543_v60, %v10550_v52  ;;  %v10560_v18 = vrot.slane %v10552_v13, %v16299_v51  ;;  %v10937_v63 = vmul.f32 %v10153_v16, %v20462_v54 }
 0x886   : > { %v13977_v6 = vpop.eup %13976  ;;  %v9784_v10 = vcombine.low %v9776_v47, %v9783_v0  ;;  %v9786_v21 = vcombine.low %v13973_v61, %v13975_v7  ;;  %v9793_v25 = vrot.slane %v9785_v37, %v16299_v51  ;;  %v10158_v24 = vmul.f32 %v13975_v7, %v20467_v59 }
 0x887   : > { %v9808_v19 = vrot.slane %v13977_v6, %v16299_v51  ;;  %v10159_v45 = vmul.f32 %v13977_v6, %v20468_v5  ;;  %v10567_v49 = vrot.slane %v10553_v29, %v16299_v51  ;;  %v10569_v32 = vcombine.low %v10155_v14, %v10156_v12 }
 0x888   : > { %v9800_v60 = vrot.slane %v9786_v21, %v16299_v51  ;;  %v10055_v52 = vadd.f32 %v9784_v10, %v9767_v34  ;;  %v10570_v13 = vcombine.low %v10157_v15, %v10158_v24  ;;  %v10938_v54 = vmul.f32 %v10154_v50, %v20463_v28 }
 0x889   : > { %v10057_v47 = vsel %vm3589_vm5, %v9808_v19, 0.0  ;;  %v10568_v16 = vcombine.low %v10560_v18, %v10567_v49  ;;  %v10577_v61 = vrot.slane %v10569_v32, %v16299_v51  ;;  %v10592_v0 = vrot.slane %v10159_v45, %v16299_v51 }
 0x88a   : > { %v9801_v37 = vcombine.low %v9793_v25, %v9800_v60  ;;  %v10584_v7 = vrot.slane %v10570_v13, %v16299_v51  ;;  %v10939_v6 = vmul.f32 %v10155_v14, %v20464_v38  ;;  %v10940_v29 = vmul.f32 %v10156_v12, %v20465_v17 }
 0x88b   : > { %v10839_v20 = vadd.f32 %v10568_v16, %v10551_v30  ;;  %v10841_v34 = vsel %vm3589_vm5, %v10592_v0, 0.0  ;;  %v10941_v10 = vmul.f32 %v10157_v15, %v20466_v9  ;;  %v10942_v28 = vmul.f32 %v10158_v24, %v20467_v59 }
 0x88c   : > { %v10056_v50 = vadd.f32 %v10055_v52, %v9801_v37  ;;  %v10585_v49 = vcombine.low %v10577_v61, %v10584_v7  ;;  %v10943_v32 = vmul.f32 %v10159_v45, %v20468_v5  ;;  %v11319_v18 = vcombine.low %v19179_v23, %v19192_v44 }
 0x88d   : > { %v11320_v21 = vcombine.low %v19195_v42, %v10934_v56  ;;  %v11336_v25 = vcombine.low %v10935_v27, %v10936_v43  ;;  %v11337_v38 = vcombine.low %v10937_v63, %v10938_v54  ;;  %v11353_v14 = vcombine.low %v10939_v6, %v10940_v29 }
 0x88e   : > { %v10058_v12 = vadd.f32 %v10057_v47, %v10056_v50  ;;  %v10840_v30 = vadd.f32 %v10839_v20, %v10585_v49  ;;  %v11327_v17 = vrot.slane %v11319_v18, %v16299_v51  ;;  %v11354_v19 = vcombine.low %v10941_v10, %v10942_v28 }
 0x88f   : > { %v11334_v9 = vrot.slane %v11320_v21, %v16299_v51  ;;  %v11344_v24 = vrot.slane %v11336_v25, %v16299_v51  ;;  %v11351_v15 = vrot.slane %v11337_v38, %v16299_v51  ;;  %v11361_v59 = vrot.slane %v11353_v14, %v16299_v51  ;;  %v20472_v38 = vld [vmem:[#allocation41_spill] sm:$0xff] }
 0x890   : > { %v10059_v5 = vrot.slane %v10058_v12, 4  ;;  %v10842_v23 = vadd.f32 %v10841_v34, %v10840_v30  ;;  %v11368_v44 = vrot.slane %v11354_v19, %v16299_v51  ;;  %v11376_v43 = vrot.slane %v10943_v32, %v16299_v51  ;;  %v13765_v19 = vld [vmem:[#allocation16 + $0x38] sm:$0xff]  }
 0x891   : > { %v11335_v63 = vcombine.low %v11327_v17, %v11334_v9  ;;  %v11352_v42 = vcombine.low %v11344_v24, %v11351_v15  ;;  %v20469_v20 = vrot.slane %v19173_v35, 1  ;;  %v8749_v27 = vcombine.low %v19159_v31, %v19182_v39  ;;  %v13764_v17 = vld [vmem:[#allocation16 + $0x78] sm:$0xff]  }
 0x892   : > { %v10060_v45 = vadd.f32 %v10059_v5, %v10058_v12  ;;  %v10843_v60 = vrot.slane %v10842_v23, 4  ;;  %v11369_v52 = vcombine.low %v11361_v59, %v11368_v44  ;;  %v20470_v13 = vrot.slane %v19145_v57, %v16299_v51  ;;  %v20473_v12 = vld [vmem:[#allocation51_spill] sm:$0xff]  ;;  %12989 = vmatprep.subr.bf16.mxu1 %v13764_v17 }
 0x893   : > { %v8906_v56 = vmax.f32 %v19173_v35, %v20469_v20  ;;  %v11623_v47 = vadd.f32 %v11352_v42, %v11335_v63  ;;  %v8908_v0 = vmax.f32 %v19175_v3, %v8749_v27  ;;  %v11625_v35 = vsel %vm3589_vm5, %v11376_v43, 0.0  ;;  %12990 = vmatpush3.bf16.msra.mxu1 %v13765_v19  ;;  %v13767_v42 = vld [vmem:[#allocation16 + $0x30] sm:$0xff]   ;;  %v13768_v20 = vld [vmem:[#allocation16 + $0x68] sm:$0xff]  }
 0x894   : > { %v8909_v54 = vsel %vm3589_vm5, %v20470_v13, -inf  ;;  %v10061_v37 = vrot.slane %v10060_v45, 2  ;;  %v19252_v7 = vadd.f32 %v10843_v60, %v10842_v23  ;;  %v20471_v31 = vcombine.high %v19156_v41, %v19156_v41 }
 0x895   : > { %v9020_v16 = vcombine.high %v8906_v56, %v8906_v56  ;;  %v9027_v61 = vrot.slane %v8906_v56, %v16299_v51  ;;  %v11624_v6 = vadd.f32 %v11623_v47, %v11369_v52 }
 0x896   : > { %v19259_v39 = vrot.slane %v20471_v31, %v16299_v51  ;;  %v10062_v28 = vadd.f32 %v10061_v37, %v10060_v45  ;;  %v8757_v37 = vcombine.low %v19168_v53, %v19186_v48 }
 0x897   : > { %v9034_v29 = vrot.slane %v9020_v16, %v16299_v51  ;;  %v9035_v34 = vcombine.high %v9027_v61, %v9027_v61  ;;  %v9168_v10 = vsub.f32 %v18878_v1, %v9027_v61  ;;  %v9172_v3 = vsub.f32 %v18910_v4, %v9027_v61  ;;  %v13766_v4 = vld [vmem:[#allocation16 + $0x70] sm:$0xff]  }
 0x898   : > { %v9176_v50 = vsub.f32 %v18931_v2, %v9027_v61  ;;  %v9180_v49 = vsub.f32 %v19069_v36, %v9027_v61  ;;  %v11626_v32 = vadd.f32 %v11625_v35, %v11624_v6  ;;  %v10063_v25 = vrot.slane %v10062_v28, 1  ;;  %v20474_v2 = vld [vmem:[#allocation121_spill] sm:$0xff]  ;;  %v20475_v36 = vld [vmem:[#allocation42_spill] sm:$0xff]  ;;  %12991 = vmatprep.subr.bf16.mxu1 %v13766_v4 }
 0x899   : > { %v9036_v18 = vcombine.high %v9034_v29, %v9034_v29  ;;  %v9169_v21 = vsub.f32 %v18874_v11, %v9035_v34  ;;  %v9170_v41 = vsub.f32 %v18893_v8, %v9034_v29  ;;  %v9173_v14 = vsub.f32 %v20472_v38, %v9035_v34  ;;  %12992 = vmatpush3.bf16.msra.mxu1 %v13767_v42  ;;  %v13769_v35 = vld [vmem:[#allocation16 + $0x28] sm:$0xff]  }
 0x89a   : > { %v9174_v30 = vsub.f32 %v20473_v12, %v9034_v29  ;;  %v9177_v1 = vsub.f32 %v18927_v22, %v9035_v34  ;;  %v11627_v9 = vrot.slane %v11626_v32, 4  ;;  %v9178_v59 = vsub.f32 %v18955_v40, %v9034_v29  ;;  %v20476_v29 = vld [vmem:[#allocation119_spill] sm:$0xff]  ;;  %12993 = vmatprep.subr.bf16.mxu1 %v13768_v20 }
 0x89b   : > { %v9171_v24 = vsub.f32 %v20474_v2, %v9036_v18  ;;  %v9175_v15 = vsub.f32 %v20475_v36, %v9036_v18  ;;  %v10064_v11 = vadd.f32 %v10063_v25, %v10062_v28  ;;  %v9179_v8 = vsub.f32 %v19049_v26, %v9036_v18  ;;  %v13771_v25 = vld [vmem:[#allocation16 + $0x20] sm:$0xff]   ;;  %v13772_v12 = vld [vmem:[#allocation16 + $0x58] sm:$0xff]  }
 0x89c   : > { %v9337_v5 = vmul.f32 1.442695, %v9168_v10  ;;  %v9339_v23 = vmul.f32 1.442695, %v9169_v21  ;;  %v11628_v44 = vadd.f32 %v11627_v9, %v11626_v32  ;;  %v9341_v43 = vmul.f32 1.442695, %v9170_v41 }
 0x89d   : > { %v9343_v63 = vmul.f32 1.442695, %v9171_v24  ;;  %v19277_v22 = vcombine.high %v19186_v48, %v19186_v48  ;;  %13978 = vrcp.f32 %v10064_v11  ;;  %v9345_v56 = vmul.f32 1.442695, %v9172_v3  ;;  %v13770_v10 = vld [vmem:[#allocation16 + $0x60] sm:$0xff]   ;;  %12994 = vmatpush3.bf16.msra.mxu1 %v13769_v35  ;;  %v20499_v35 = vld [vmem:[#allocation98_spill] sm:$0xff] }
 0x89e   : > { %v9347_v27 = vmul.f32 1.442695, %v9173_v14  ;;  %v9349_v40 = vmul.f32 1.442695, %v9174_v30  ;;  %v11629_v45 = vrot.slane %v11628_v44, 2  ;;  %13980 = vpow2.f32 %v9337_v5  ;;  %12995 = vmatprep.subr.bf16.mxu1 %v13770_v10  ;;  %v13774_v5 = vld [vmem:[#allocation16 + $0x50] sm:$0xff]  }
 0x89f   : > { %v9351_v26 = vmul.f32 1.442695, %v9175_v15  ;;  %v9353_v60 = vmul.f32 1.442695, %v9176_v50  ;;  %13982 = vpow2.f32 %v9339_v23  ;;  %v9355_v52 = vmul.f32 1.442695, %v9177_v1 }
 0x8a0   : > { %v9357_v13 = vmul.f32 1.442695, %v9178_v59  ;;  %v9359_v47 = vmul.f32 1.442695, %v9179_v8  ;;  %13984 = vpow2.f32 %v9341_v43  ;;  %v9361_v16 = vmul.f32 1.442695, %v9180_v49 }
 0x8a1   : > { %v8910_v61 = vmax.f32 %v8908_v0, %v8909_v54  ;;  %v19281_v31 = vadd.f32 %v11629_v45, %v11628_v44  ;;  %13986 = vpow2.f32 %v9343_v63  ;;  %v8758_v6 = vcombine.low %v19277_v22, %v19259_v39  ;;  %v20477_v0 = vld [vmem:[#allocation118_spill] sm:$0xff]  ;;  %12996 = vmatpush3.bf16.msra.mxu1 %v13771_v25  ;;  %v13773_v15 = vld [vmem:[#allocation16 + $0x18] sm:$0xff]  }
 0x8a2   : > { %v7201_v34 = vadd.f32 %v20476_v29, %v17682_v55  ;;  %13988 = vpow2.f32 %v9345_v56  ;;  %v19289_v54 = vcombine.high %v19259_v39, %v19259_v39  ;;  %v7204_v3 = vadd.f32 %v20477_v0, %v17682_v55  ;;  %12997 = vmatprep.subr.bf16.mxu1 %v13772_v12  ;;  %v13776_v0 = vld [vmem:[#allocation16 + $0x48] sm:$0xff]  }
 0x8a3   : > { %v8911_v28 = vrot.slane %v8910_v61, 4  ;;  %13990 = vpow2.f32 %v9347_v27  ;;  %v8765_v50 = vrot.slane %v8757_v37, %v16299_v51  ;;  %v8772_v38 = vrot.slane %v8758_v6, %v16299_v51  ;;  %v20489_v37 = vld [vmem:[#allocation34_spill] sm:$0xff] }
 0x8a4   : > { %v8213_v49 = vcombine.high %v7201_v34, %v7201_v34  ;;  %v19295_v32 = vrot.slane %v7201_v34, %v16299_v51  ;;  %13992 = vpow2.f32 %v9349_v40  ;;  %v8230_v21 = vcombine.high %v7204_v3, %v7204_v3  ;;  %v20486_v40 = vld [vmem:[#allocation128_spill] sm:$0xff]  ;;  %v20490_v34 = vld [vmem:[#allocation83_spill] sm:$0xff] }
 0x8a5   : > { %v8912_v18 = vmax.f32 %v8910_v61, %v8911_v28  ;;  %v19298_v41 = vrot.slane %v7204_v3, %v16299_v51  ;;  %13994 = vpow2.f32 %v9351_v26  ;;  %v8773_v43 = vcombine.low %v8765_v50, %v8772_v38  ;;  %12998 = vmatpush3.bf16.msra.mxu1 %v13773_v15  ;;  %v13775_v61 = vld [vmem:[#allocation16 + $0x10] sm:$0xff]  }
 0x8a6   : > { %v19302_v55 = vrot.slane %v8213_v49, %v16299_v51  ;;  %v19306_v14 = vcombine.high %v19295_v32, %v19295_v32  ;;  %13996 = vpow2.f32 %v9353_v60  ;;  %v8774_v1 = vcombine.low %v19289_v54, %v19295_v32  ;;  %12999 = vmatprep.subr.bf16.mxu1 %v13774_v5  ;;  %v20491_v3 = vld [vmem:[#allocation50_spill] sm:$0xff]  ;;  %v20495_v5 = vld [vmem:[#allocation95_spill] sm:$0xff] }
 0x8a7   : > { %20478 = vst [vmem:[#allocation130_spill] sm:$0xff] %v19298_v41  ;;  %v8913_v30 = vrot.slane %v8912_v18, 2  ;;  %v19311_v17 = vrot.slane %v8230_v21, %v16299_v51  ;;  %13998 = vpow2.f32 %v9355_v52  ;;  %v19321_v9 = vcombine.high %v19298_v41, %v19298_v41  ;;  %v20488_v52 = vld [vmem:[#allocation89_spill] sm:$0xff]  ;;  %v20493_v21 = vld [vmem:[#allocation94_spill] sm:$0xff] }
 0x8a8   : > { %20479 = vst [vmem:[#allocation132_spill] sm:$0xff] %v19302_v55  ;;  %20480 = vst [vmem:[#allocation133_spill] sm:$0xff] %v19306_v14  ;;  %v8775_v19 = vcombine.low %v19306_v14, %v19302_v55  ;;  %v19317_v4 = vcombine.high %v19302_v55, %v19302_v55  ;;  %14000 = vpow2.f32 %v9357_v13  ;;  %v8782_v24 = vrot.slane %v8774_v1, %v16299_v51 }
 0x8a9   : > { %20481 = vst [vmem:[#allocation136_spill] sm:$0xff] %v19311_v17  ;;  %20483 = vst [vmem:[#allocation135_spill] sm:$0xff] %v19321_v9  ;;  %v8914_v2 = vmax.f32 %v8912_v18, %v8913_v30  ;;  %v19326_v36 = vcombine.high %v19311_v17, %v19311_v17  ;;  %14002 = vpow2.f32 %v9359_v47  ;;  %v8792_v8 = vcombine.low %v19321_v9, %v19311_v17 }
 0x8aa   : > { %20482 = vst [vmem:[#allocation131_spill] sm:$0xff] %v19317_v4  ;;  %v8789_v59 = vrot.slane %v8775_v19, %v16299_v51  ;;  %v8791_v11 = vcombine.low %v19317_v4, %v19298_v41  ;;  %v19333_v23 = vpop.eup %13978  ;;  %14004 = vpow2.f32 %v9361_v16  ;;  %v20487_v45 = vrot.slane %v20486_v40, 1  ;;  %13000 = vmatpush3.bf16.msra.mxu1 %v13775_v61  ;;  %v20502_v4 = vld [vmem:[#allocation91_spill] sm:$0xff] }
 0x8ab   : > { %20484 = vst [vmem:[#allocation64_spill] sm:$0xff] %v19326_v36  ;;  %20485 = vst [vmem:[#allocation58_spill] sm:$0xff] %v19333_v23  ;;  %v8915_v44 = vrot.slane %v8914_v2, 1  ;;  %v8814_v63 = vrot.slane %v19326_v36, %v16299_v51  ;;  %v13981_v42 = vpop.eup %13980  ;;  %v19341_v27 = vrot.slane %v8792_v8, %v16299_v51  ;;  %v20492_v50 = vrot.slane %v20491_v3, 2  ;;  %13001 = vmatprep.subr.bf16.mxu1 %v13776_v0 }
 0x8ac   : > { %v8790_v20 = vcombine.low %v8782_v24, %v8789_v59  ;;  %v19338_v56 = vrot.slane %v8791_v11, %v16299_v51  ;;  %v19346_v26 = vadd.f32 %v20487_v45, %v20486_v40  ;;  %v13983_v60 = vpop.eup %13982  ;;  %v10160_v13 = vmul.f32 %v13981_v42, %v20488_v52 }
 0x8ad   : > { %v19349_v47 = vmax.f32 %v8914_v2, %v8915_v44  ;;  %v19352_v16 = vsel %vm3589_vm5, %v8814_v63, -inf  ;;  %v13985_v6 = vpop.eup %13984  ;;  %v9809_v29 = vcombine.low %v13981_v42, %v13983_v60  ;;  %v10161_v10 = vmul.f32 %v13983_v60, %v20490_v34  ;;  %v20494_v2 = vld [vmem:[#allocation84_spill] sm:$0xff]  ;;  %v13777_v42 = vld [vmem:[#allocation16 + $0x8] sm:$0xff]  }
 0x8ae   : > { %v19356_v28 = vmax.f32 %v8773_v43, %v8790_v20  ;;  %v19361_v49 = vadd.f32 %v20492_v50, %v20491_v3  ;;  %v13987_v18 = vpop.eup %13986  ;;  %v10162_v25 = vmul.f32 %v13985_v6, %v20493_v21  ;;  %v19365_v38 = vmul.f32 %v10160_v13, %v20488_v52  ;;  %v20496_v60 = vld [vmem:[#allocation85_spill] sm:$0xff]  ;;  %v20497_v3 = vld [vmem:[#allocation96_spill] sm:$0xff]  ;;  %13002 = vmatpush3.bf16.msra.mxu1 %v13777_v42 }
 0x8af   : > { %v13989_v1 = vpop.eup %13988  ;;  %v9810_v19 = vcombine.low %v13985_v6, %v13987_v18  ;;  %v10163_v24 = vmul.f32 %v13987_v18, %v20494_v2  ;;  %v10593_v15 = vcombine.low %v10160_v13, %v10161_v10  ;;  %v19374_v59 = vrot.slane %v19349_v47, %v16299_v51  ;;  %v13778_v6 = vld [vmem:[#allocation16 + $0x40] sm:$0xff]  }
 0x8b0   : > { %v13991_v11 = vpop.eup %13990  ;;  %v9817_v8 = vrot.slane %v9809_v29, %v16299_v51  ;;  %v10164_v44 = vmul.f32 %v13989_v1, %v20495_v5  ;;  %v19379_v43 = vmul.f32 %v10161_v10, %v20490_v34  ;;  %v19382_v63 = vmul.f32 %v10162_v25, %v20493_v21  ;;  %13003 = vmatprep.subr.bf16.mxu1 %v13778_v6 }
 0x8b1   : > { %v13993_v20 = vpop.eup %13992  ;;  %v9824_v40 = vrot.slane %v9810_v19, %v16299_v51  ;;  %v9826_v45 = vcombine.low %v13989_v1, %v13991_v11  ;;  %v10165_v52 = vmul.f32 %v13991_v11, %v20496_v60  ;;  %v10594_v13 = vcombine.low %v10162_v25, %v10163_v24  ;;  %v20498_v11 = vld [vmem:[#allocation88_spill] sm:$0xff] }
 0x8b2   : > { %v13995_v29 = vpop.eup %13994  ;;  %v10166_v50 = vmul.f32 %v13993_v20, %v20497_v3  ;;  %v10601_v34 = vrot.slane %v10593_v15, %v16299_v51  ;;  %v19389_v10 = vmul.f32 %v10163_v24, %v20494_v2  ;;  %v19392_v61 = vmul.f32 %v10164_v44, %v20495_v5  ;;  %v13779_v2 = vld [vmem:[#allocation16] sm:$0xff]  }
 0x8b3   : > { %v13997_v18 = vpop.eup %13996  ;;  %v9825_v21 = vcombine.low %v9817_v8, %v9824_v40  ;;  %v9827_v19 = vcombine.low %v13993_v20, %v13995_v29  ;;  %v9834_v1 = vrot.slane %v9826_v45, %v16299_v51  ;;  %v10167_v25 = vmul.f32 %v13995_v29, %v20498_v11  ;;  %v20500_v8 = vld [vmem:[#allocation90_spill] sm:$0xff]  ;;  %v20501_v29 = vld [vmem:[#allocation99_spill] sm:$0xff]  ;;  %13004 = vmatpush3.bf16.msra.mxu1 %v13779_v2 }
 0x8b4   : > { %v13999_v0 = vpop.eup %13998  ;;  %v10168_v30 = vmul.f32 %v13997_v18, %v20499_v35  ;;  %v10608_v12 = vrot.slane %v10594_v13, %v16299_v51  ;;  %v10610_v23 = vcombine.low %v10164_v44, %v10165_v52  ;;  %v10949_v15 = vmul.f32 %v10165_v52, %v20496_v60 }
 0x8b5   : > { %v14001_v24 = vpop.eup %14000  ;;  %v9841_v5 = vrot.slane %v9827_v19, %v16299_v51  ;;  %v9843_v36 = vcombine.low %v13997_v18, %v13999_v0  ;;  %v10169_v20 = vmul.f32 %v13999_v0, %v20500_v8  ;;  %v10611_v40 = vcombine.low %v10166_v50, %v10167_v25  ;;  %v20503_v0 = vld [vmem:[#allocation100_spill] sm:$0xff] }
 0x8b6   : > { %v14003_v45 = vpop.eup %14002  ;;  %v10170_v17 = vmul.f32 %v14001_v24, %v20501_v29  ;;  %v10609_v9 = vcombine.low %v10601_v34, %v10608_v12  ;;  %v10618_v41 = vrot.slane %v10610_v23, %v16299_v51  ;;  %v10950_v44 = vmul.f32 %v10166_v50, %v20497_v3 }
 0x8b7   : > { %v14005_v13 = vpop.eup %14004  ;;  %v9842_v60 = vcombine.low %v9834_v1, %v9841_v5  ;;  %v9844_v42 = vcombine.low %v14001_v24, %v14003_v45  ;;  %v9851_v52 = vrot.slane %v9843_v36, %v16299_v51  ;;  %v10171_v19 = vmul.f32 %v14003_v45, %v20502_v4 }
 0x8b8   : > { %v9866_v18 = vrot.slane %v14005_v13, %v16299_v51  ;;  %v10172_v55 = vmul.f32 %v14005_v13, %v20503_v0  ;;  %v10625_v6 = vrot.slane %v10611_v40, %v16299_v51  ;;  %v10627_v14 = vcombine.low %v10168_v30, %v10169_v20 }
 0x8b9   : > { %v9858_v12 = vrot.slane %v9844_v42, %v16299_v51  ;;  %v10065_v23 = vadd.f32 %v9842_v60, %v9825_v21  ;;  %v10628_v34 = vcombine.low %v10170_v17, %v10171_v19  ;;  %v10951_v3 = vmul.f32 %v10167_v25, %v20498_v11 }
 0x8ba   : > { %v10067_v50 = vsel %vm3589_vm5, %v9866_v18, 0.0  ;;  %v10626_v1 = vcombine.low %v10618_v41, %v10625_v6  ;;  %v10635_v36 = vrot.slane %v10627_v14, %v16299_v51  ;;  %v20504_v24 = vcombine.high %v19349_v47, %v19349_v47 }
 0x8bb   : > { %v9859_v40 = vcombine.low %v9851_v52, %v9858_v12  ;;  %v10642_v2 = vrot.slane %v10628_v34, %v16299_v51  ;;  %v10952_v45 = vmul.f32 %v10168_v30, %v20499_v35  ;;  %v10953_v21 = vmul.f32 %v10169_v20, %v20500_v8 }
 0x8bc   : > { %v19417_v5 = vrot.slane %v20504_v24, %v16299_v51  ;;  %v10650_v11 = vrot.slane %v10172_v55, %v16299_v51  ;;  %v10849_v25 = vadd.f32 %v10626_v1, %v10609_v9  ;;  %v10954_v41 = vmul.f32 %v10170_v17, %v20501_v29 }
 0x8bd   : > { %v10955_v14 = vmul.f32 %v10171_v19, %v20502_v4  ;;  %v10066_v13 = vadd.f32 %v10065_v23, %v9859_v40  ;;  %v10643_v60 = vcombine.low %v10635_v36, %v10642_v2  ;;  %v10956_v47 = vmul.f32 %v10172_v55, %v20503_v0  ;;  %v20505_v36 = vld [vmem:[#allocation53_spill] sm:$0xff]  ;;  %v20506_v2 = vld [vmem:[#allocation55_spill] sm:$0xff] }
 0x8be   : > { %v11377_v42 = vcombine.low %v19365_v38, %v19379_v43  ;;  %v11378_v52 = vcombine.low %v19382_v63, %v19389_v10  ;;  %v11394_v35 = vcombine.low %v19392_v61, %v10949_v15  ;;  %v11395_v30 = vcombine.low %v10950_v44, %v10951_v3 }
 0x8bf   : > { %v11411_v8 = vcombine.low %v10952_v45, %v10953_v21  ;;  %v10068_v20 = vadd.f32 %v10067_v50, %v10066_v13  ;;  %v10850_v9 = vadd.f32 %v10849_v25, %v10643_v60  ;;  %v11412_v29 = vcombine.low %v10954_v41, %v10955_v14  ;;  %v20508_v25 = vld [vmem:[#allocation54_spill] sm:$0xff]  ;;  %v20509_v14 = vld [vmem:[#allocation57_spill] sm:$0xff] }
 0x8c0   : > { %v11385_v17 = vrot.slane %v11377_v42, %v16299_v51  ;;  %v11392_v4 = vrot.slane %v11378_v52, %v16299_v51  ;;  %v11402_v19 = vrot.slane %v11394_v35, %v16299_v51  ;;  %v11409_v55 = vrot.slane %v11395_v30, %v16299_v51  ;;  %v20512_v52 = vld [vmem:[#allocation134_spill] sm:$0xff] }
 0x8c1   : > { %v11419_v38 = vrot.slane %v11411_v8, %v16299_v51  ;;  %v10069_v43 = vrot.slane %v10068_v20, 4  ;;  %v11426_v63 = vrot.slane %v11412_v29, %v16299_v51  ;;  %v11434_v10 = vrot.slane %v10956_v47, %v16299_v51  ;;  %v20511_v47 = vld [vmem:[#allocation56_spill] sm:$0xff] }
 0x8c2   : > { %v9052_v61 = vcombine.high %v19374_v59, %v19374_v59  ;;  %v11393_v15 = vcombine.low %v11385_v17, %v11392_v4  ;;  %v11410_v44 = vcombine.low %v11402_v19, %v11409_v55  ;;  %v9053_v18 = vcombine.high %v19417_v5, %v19417_v5 }
 0x8c3   : > { %v9181_v0 = vsub.f32 %v19055_v33, %v19374_v59  ;;  %v10070_v6 = vadd.f32 %v10069_v43, %v10068_v20  ;;  %v10851_v12 = vsel %vm3589_vm5, %v10650_v11, 0.0  ;;  %v11427_v23 = vcombine.low %v11419_v38, %v11426_v63  ;;  %v20507_v33 = vld [vmem:[#allocation48_spill] sm:$0xff] }
 0x8c4   : > { %v9182_v34 = vsub.f32 %v19073_v62, %v9052_v61  ;;  %v11633_v3 = vadd.f32 %v11410_v44, %v11393_v15  ;;  %v9183_v50 = vsub.f32 %v19062_v58, %v19417_v5  ;;  %v9184_v1 = vsub.f32 %v19104_v46, %v9053_v18  ;;  %v20510_v58 = vld [vmem:[#allocation60_spill] sm:$0xff] }
 0x8c5   : > { %v9185_v24 = vsub.f32 %v20505_v36, %v19374_v59  ;;  %v10071_v40 = vrot.slane %v10070_v6, 2  ;;  %v9186_v45 = vsub.f32 %v20506_v2, %v9052_v61  ;;  %v9187_v21 = vsub.f32 %v20507_v33, %v19417_v5  ;;  %v20517_v33 = vld [vmem:[#allocation46_spill] sm:$0xff] }
 0x8c6   : > { %v9188_v11 = vsub.f32 %v20508_v25, %v9053_v18  ;;  %v11634_v41 = vadd.f32 %v11633_v3, %v11427_v23  ;;  %v11635_v62 = vsel %vm3589_vm5, %v11434_v10, 0.0  ;;  %v9189_v13 = vsub.f32 %v20509_v14, %v19374_v59  ;;  %v20514_v23 = vld [vmem:[#allocation43_spill] sm:$0xff] }
 0x8c7   : > { %v9190_v60 = vsub.f32 %v20510_v58, %v9052_v61  ;;  %v10072_v46 = vadd.f32 %v10071_v40, %v10070_v6  ;;  %v9191_v42 = vsub.f32 %v20511_v47, %v19417_v5  ;;  %v9192_v35 = vsub.f32 %v20512_v52, %v9053_v18 }
 0x8c8   : > { %v9363_v30 = vmul.f32 1.442695, %v9181_v0  ;;  %v11636_v8 = vadd.f32 %v11635_v62, %v11634_v41  ;;  %v9365_v20 = vmul.f32 1.442695, %v9182_v34  ;;  %v9367_v17 = vmul.f32 1.442695, %v9183_v50 }
 0x8c9   : > { %v9369_v29 = vmul.f32 1.442695, %v9184_v1  ;;  %v10073_v4 = vrot.slane %v10072_v46, 1  ;;  %v9193_v19 = vsub.f32 %v19145_v57, %v19374_v59  ;;  %v9371_v55 = vmul.f32 1.442695, %v9185_v24  ;;  %v20519_v41 = vld [vmem:[#allocation122_spill] sm:$0xff] }
 0x8ca   : > { %14006 = vpow2.f32 %v9363_v30  ;;  %v11637_v38 = vrot.slane %v11636_v8, 4  ;;  %v9373_v43 = vmul.f32 1.442695, %v9186_v45  ;;  %v9375_v63 = vmul.f32 1.442695, %v9187_v21 }
 0x8cb   : > { %14008 = vpow2.f32 %v9365_v20  ;;  %v10074_v10 = vadd.f32 %v10073_v4, %v10072_v46  ;;  %v9377_v5 = vmul.f32 1.442695, %v9188_v11  ;;  %v9379_v61 = vmul.f32 1.442695, %v9189_v13  ;;  %v13781_v13 = vld [vmem:[#allocation17 + $0x30] sm:$0xff]  }
 0x8cc   : > { %14010 = vpow2.f32 %v9367_v17  ;;  %v9381_v15 = vmul.f32 1.442695, %v9190_v60  ;;  %v9383_v44 = vmul.f32 1.442695, %v9191_v42  ;;  %v9385_v18 = vmul.f32 1.442695, %v9192_v35 }
 0x8cd   : > { %14012 = vpow2.f32 %v9369_v29  ;;  %v9387_v0 = vmul.f32 1.442695, %v9193_v19  ;;  %v20513_v6 = vcombine.low %v19338_v56, %v19341_v27  ;;  %v10827_v59 = vrot.slane %v19361_v49, 1  ;;  %v20522_v29 = vld [vmem:[#allocation137_spill] sm:$0xff] }
 0x8ce   : > { %14014 = vrcp.f32 %v10074_v10  ;;  %v20515_v34 = vrot.slane %v20514_v23, 4  ;;  %v10845_v50 = vrot.slane %v19252_v7, 2  ;;  %v10852_v1 = vadd.f32 %v10851_v12, %v10850_v9  ;;  %v20524_v10 = vld [vmem:[#allocation49_spill] sm:$0xff] }
 0x8cf   : > { %v8918_v57 = vmax.f32 %v19356_v28, %v20513_v6  ;;  %14016 = vpow2.f32 %v9371_v55  ;;  %v20516_v24 = vrot.slane %v20489_v37, 1  ;;  %v10828_v56 = vadd.f32 %v10827_v59, %v19361_v49  ;;  %v20523_v55 = vld [vmem:[#allocation92_spill] sm:$0xff] }
 0x8d0   : > { %v10834_v3 = vadd.f32 %v20515_v34, %v20514_v23  ;;  %14018 = vpow2.f32 %v9373_v43  ;;  %v10846_v28 = vadd.f32 %v10845_v50, %v19252_v7  ;;  %v10853_v2 = vrot.slane %v10852_v1, 4 }
 0x8d1   : > { %v8920_v36 = vmax.f32 %v8918_v57, %v19352_v16  ;;  %v10818_v40 = vadd.f32 %v20516_v24, %v20489_v37  ;;  %14020 = vpow2.f32 %v9375_v63  ;;  %v20518_v21 = vrot.slane %v20517_v33, 2  ;;  %v13780_v16 = vld [vmem:[#allocation17 + $0x38] sm:$0xff]   ;;  %v20527_v57 = vld [vmem:[#allocation93_spill] sm:$0xff] }
 0x8d2   : > { %v10835_v27 = vrot.slane %v10834_v3, 2  ;;  %14022 = vpow2.f32 %v9377_v5  ;;  %v11631_v12 = vrot.slane %v19281_v31, 1  ;;  %v10847_v11 = vrot.slane %v10846_v28, 1  ;;  %13461 = vmatpush3.bf16.msra.mxu0 %v13780_v16  ;;  %v20529_v16 = vld [vmem:[#allocation97_spill] sm:$0xff] }
 0x8d3   : > { %v8921_v45 = vrot.slane %v8920_v36, 4  ;;  %v11620_v9 = vadd.f32 %v20518_v21, %v20517_v33  ;;  %14024 = vpow2.f32 %v9379_v61  ;;  %v10854_v37 = vadd.f32 %v10853_v2, %v10852_v1  ;;  %v13783_v21 = vld [vmem:[#allocation17 + $0x20] sm:$0xff]  }
 0x8d4   : > { %v10836_v25 = vadd.f32 %v10835_v27, %v10834_v3  ;;  %14026 = vpow2.f32 %v9381_v15  ;;  %v20520_v62 = vrot.slane %v20519_v41, 1  ;;  %v19489_v46 = vadd.f32 %v11631_v12, %v19281_v31  ;;  %v20525_v15 = vld [vmem:[#allocation101_spill] sm:$0xff] }
 0x8d5   : > { %v8922_v49 = vmax.f32 %v8920_v36, %v8921_v45  ;;  %v11621_v14 = vrot.slane %v11620_v9, 1  ;;  %14028 = vpow2.f32 %v9383_v44  ;;  %v10855_v60 = vrot.slane %v10854_v37, 2  ;;  %v20528_v36 = vld [vmem:[#allocation102_spill] sm:$0xff] }
 0x8d6   : > { %v19486_v7 = vadd.f32 %v20520_v62, %v20519_v41  ;;  %v10837_v58 = vrot.slane %v10836_v25, 1  ;;  %v20521_v47 = vmov 0.0   ;;  %14030 = vpow2.f32 %v9385_v18  ;;  %v20530_v62 = vld [vmem:[#allocation103_spill] sm:$0xff] }
 0x8d7   : > { %13462 = vmatprep.subr.bf16.mxu0 %v20521_v47  ;;  %v8923_v42 = vrot.slane %v8922_v49, 2  ;;  %v19492_v52 = vadd.f32 %v10847_v11, %v10846_v28  ;;  %v11638_v35 = vadd.f32 %v11637_v38, %v11636_v8  ;;  %v14007_v30 = vpop.eup %14006  ;;  %14032 = vpow2.f32 %v9387_v0  ;;  %v13782_v8 = vld [vmem:[#allocation17 + $0x28] sm:$0xff]  }
 0x8d8   : > { %v10856_v20 = vadd.f32 %v10855_v60, %v10854_v37  ;;  %v19494_v17 = vadd.f32 %v11621_v14, %v11620_v9  ;;  %v19498_v4 = vmul.f32 %v20522_v29, %v19346_v26  ;;  %v14009_v19 = vpop.eup %14008  ;;  %v19501_v31 = vmul.f32 %v14007_v30, %v20523_v55  ;;  %13463 = vmatpush3.bf16.msra.mxu0 %v13781_v13  ;;  %v20526_v26 = vld [vmem:[#allocation52_spill] sm:$0xff] }
 0x8d9   : > { %v8924_v43 = vmax.f32 %v8922_v49, %v8923_v42  ;;  %v11639_v63 = vrot.slane %v11638_v35, 2  ;;  %v19504_v5 = vmul.f32 %v20524_v10, %v10818_v40  ;;  %v14011_v38 = vpop.eup %14010  ;;  %v9867_v61 = vcombine.low %v14007_v30, %v14009_v19  ;;  %13464 = vmatprep.subr.bf16.mxu0 %v20521_v47 }
 0x8da   : > { %v19507_v44 = vmul.f32 %v14009_v19, %v20525_v15  ;;  %v19509_v18 = vadd.f32 %v10837_v58, %v10836_v25  ;;  %v19512_v0 = vmul.f32 %v20526_v26, %v10828_v56  ;;  %v14013_v6 = vpop.eup %14012  ;;  %v19516_v59 = vmul.f32 %v14011_v38, %v20527_v57 }
 0x8db   : > { %v10957_v23 = vmul.f32 %v19501_v31, %v20523_v55  ;;  %v8925_v34 = vrot.slane %v8924_v43, 1  ;;  %v10857_v3 = vrot.slane %v10856_v20, 1  ;;  %v19520_v50 = vpop.eup %14014  ;;  %v9868_v1 = vcombine.low %v14011_v38, %v14013_v6  ;;  %v20532_v38 = vld [vmem:[#allocation109_spill] sm:$0xff] }
 0x8dc   : > { %v19523_v24 = vmul.f32 %v14013_v6, %v20528_v36  ;;  %v10958_v40 = vmul.f32 %v19507_v44, %v20525_v15  ;;  %v19527_v56 = vadd.f32 %v11639_v63, %v11638_v35  ;;  %v14017_v27 = vpop.eup %14016  ;;  %v9875_v28 = vrot.slane %v9867_v61, %v16299_v51  ;;  %13465 = vmatpush3.bf16.msra.mxu0 %v13782_v8  ;;  %v20531_v35 = vld [vmem:[#allocation104_spill] sm:$0xff]  ;;  %v13784_v15 = vld [vmem:[#allocation17 + $0x18] sm:$0xff]  }
 0x8dd   : > { %v10959_v2 = vmul.f32 %v19516_v59, %v20527_v57  ;;  %v19532_v45 = vmax.f32 %v8924_v43, %v8925_v34  ;;  %v10651_v33 = vcombine.low %v19501_v31, %v19507_v44  ;;  %v14019_v9 = vpop.eup %14018  ;;  %v9882_v12 = vrot.slane %v9868_v1, %v16299_v51  ;;  %13466 = vmatprep.subr.bf16.mxu0 %v20521_v47  ;;  %v20533_v57 = vld [vmem:[#allocation105_spill] sm:$0xff] }
 0x8de   : > { %v19538_v25 = vmul.f32 %v14017_v27, %v20529_v16  ;;  %v10960_v37 = vmul.f32 %v19523_v24, %v20528_v36  ;;  %v14021_v49 = vpop.eup %14020  ;;  %v9884_v41 = vcombine.low %v14017_v27, %v14019_v9  ;;  %v19546_v14 = vmul.f32 %v14019_v9, %v20530_v62 }
 0x8df   : > { %v11435_v13 = vcombine.low %v10957_v23, %v10958_v40  ;;  %v19548_v58 = vadd.f32 %v10857_v3, %v10856_v20  ;;  %v14023_v60 = vpop.eup %14022  ;;  %v9883_v42 = vcombine.low %v9875_v28, %v9882_v12  ;;  %v19551_v30 = vmul.f32 %v14021_v49, %v20531_v35  ;;  %v20534_v28 = vld [vmem:[#allocation110_spill] sm:$0xff] }
 0x8e0   : > { %v10961_v19 = vmul.f32 %v19538_v25, %v20529_v16  ;;  %v11436_v55 = vcombine.low %v10959_v2, %v10960_v37  ;;  %v14025_v43 = vpop.eup %14024  ;;  %v9885_v63 = vcombine.low %v14021_v49, %v14023_v60  ;;  %v9892_v8 = vrot.slane %v9884_v41, %v16299_v51  ;;  %13467 = vmatpush3.bf16.msra.mxu0 %v13783_v21  ;;  %v20535_v12 = vld [vmem:[#allocation106_spill] sm:$0xff]  ;;  %v20537_v21 = vld [vmem:[#allocation107_spill] sm:$0xff] }
 0x8e1   : > { %v19557_v61 = vmul.f32 %v14023_v60, %v20532_v38  ;;  %v10962_v20 = vmul.f32 %v19546_v14, %v20530_v62  ;;  %v14027_v6 = vpop.eup %14026  ;;  %v10181_v23 = vmul.f32 %v14025_v43, %v20533_v57  ;;  %v10963_v34 = vmul.f32 %v19551_v30, %v20531_v35  ;;  %13468 = vmatprep.subr.bf16.mxu0 %v20521_v47 }
 0x8e2   : > { %v19565_v3 = vrot.slane %v11435_v13, %v16299_v51  ;;  %v19568_v1 = vrot.slane %v11436_v55, %v16299_v51  ;;  %v14029_v36 = vpop.eup %14028  ;;  %v9899_v40 = vrot.slane %v9885_v63, %v16299_v51  ;;  %v9901_v27 = vcombine.low %v14025_v43, %v14027_v6  ;;  %v20536_v55 = vld [vmem:[#allocation111_spill] sm:$0xff]  ;;  %v13785_v63 = vld [vmem:[#allocation17 + $0x10] sm:$0xff]  }
 0x8e3   : > { %v10182_v2 = vmul.f32 %v14027_v6, %v20534_v28  ;;  %v14031_v9 = vpop.eup %14030  ;;  %v10183_v16 = vmul.f32 %v14029_v36, %v20535_v12  ;;  %v10964_v37 = vmul.f32 %v19557_v61, %v20532_v38  ;;  %v10965_v49 = vmul.f32 %v10181_v23, %v20533_v57 }
 0x8e4   : > { %v11451_v41 = vcombine.low %v19565_v3, %v19568_v1  ;;  %v14033_v62 = vpop.eup %14032  ;;  %v9900_v13 = vcombine.low %v9892_v8, %v9899_v40  ;;  %v9902_v60 = vcombine.low %v14029_v36, %v14031_v9  ;;  %v9909_v35 = vrot.slane %v9901_v27, %v16299_v51  ;;  %13469 = vmatpush3.bf16.msra.mxu0 %v13784_v15 }
 0x8e5   : > { %v10184_v43 = vmul.f32 %v14031_v9, %v20536_v55  ;;  %v9924_v6 = vrot.slane %v14033_v62, %v16299_v51  ;;  %v19585_v11 = vmul.f32 %v14033_v62, %v20537_v21  ;;  %v10685_v38 = vcombine.low %v10181_v23, %v10182_v2  ;;  %13470 = vmatprep.subr.bf16.mxu0 %v20521_v47 }
 0x8e6   : > { %v10966_v57 = vmul.f32 %v10182_v2, %v20534_v28  ;;  %v9916_v3 = vrot.slane %v9902_v60, %v16299_v51  ;;  %v10075_v8 = vadd.f32 %v9900_v13, %v9883_v42  ;;  %v10967_v36 = vmul.f32 %v10183_v16, %v20535_v12  ;;  %v13786_v12 = vld [vmem:[#allocation17 + $0x8] sm:$0xff]  }
 0x8e7   : > { %v10686_v1 = vcombine.low %v10183_v16, %v10184_v43  ;;  %v10077_v40 = vsel %vm3589_vm5, %v9924_v6, 0.0  ;;  %v19593_v15 = vrot.slane %v10685_v38, %v16299_v51  ;;  %v10968_v27 = vmul.f32 %v10184_v43, %v20536_v55 }
 0x8e8   : > { %v9054_v23 = vcombine.high %v19532_v45, %v19532_v45  ;;  %v9917_v9 = vcombine.low %v9909_v35, %v9916_v3  ;;  %v10969_v42 = vmul.f32 %v19585_v11, %v20537_v21  ;;  %v11452_v2 = vcombine.low %v10961_v19, %v10962_v20  ;;  %13471 = vmatpush3.bf16.msra.mxu0 %v13785_v63 }
 0x8e9   : > { %v19599_v28 = vrot.slane %v10686_v1, %v16299_v51  ;;  %v11453_v16 = vcombine.low %v10963_v34, %v10964_v37  ;;  %v11469_v62 = vcombine.low %v10965_v49, %v10966_v57  ;;  %v11470_v13 = vcombine.low %v10967_v36, %v10968_v27  ;;  %13472 = vmatprep.subr.bf16.mxu0 %v20521_v47 }
 0x8ea   : > { %v9061_v60 = vrot.slane %v19532_v45, %v16299_v51  ;;  %v10076_v55 = vadd.f32 %v10075_v8, %v9917_v9  ;;  %v11460_v43 = vrot.slane %v11452_v2, %v16299_v51  ;;  %v11492_v6 = vrot.slane %v10969_v42, %v16299_v51  ;;  %v20538_v2 = vld [vmem:[#allocation133_spill] sm:$0xff] }
 0x8eb   : > { %v10701_v35 = vcombine.low %v19593_v15, %v19599_v28  ;;  %v11467_v19 = vrot.slane %v11453_v16, %v16299_v51  ;;  %v11477_v20 = vrot.slane %v11469_v62, %v16299_v51  ;;  %v11484_v34 = vrot.slane %v11470_v13, %v16299_v51  ;;  %v20539_v62 = vld [vmem:[#allocation132_spill] sm:$0xff] }
 0x8ec   : > { %v9068_v21 = vrot.slane %v9054_v23, %v16299_v51  ;;  %v10078_v37 = vadd.f32 %v10077_v40, %v10076_v55  ;;  %v11645_v49 = vsel %vm3589_vm5, %v11492_v6, 0.0  ;;  %v9069_v63 = vcombine.high %v9061_v60, %v9061_v60  ;;  %13473 = vmatpush3.bf16.msra.mxu0 %v13786_v12 }
 0x8ed   : > { %v11468_v38 = vcombine.low %v11460_v43, %v11467_v19  ;;  %v11485_v57 = vcombine.low %v11477_v20, %v11484_v34  ;;  %v9194_v8 = vsub.f32 %v19168_v53, %v9061_v60  ;;  %13474 = vmatprep.subr.bf16.mxu0 %v20521_v47  ;;  %v9198_v40 = vsub.f32 %v19289_v54, %v9061_v60  ;;  %v20540_v53 = vld [vmem:[#allocation131_spill] sm:$0xff]  ;;  %v20541_v47 = vld [vmem:[#allocation130_spill] sm:$0xff]  ;;  %v20544_v34 = vld [vmem:[#allocation64_spill] sm:$0xff] }
 0x8ee   : > { %v9070_v3 = vcombine.high %v9068_v21, %v9068_v21  ;;  %v10079_v1 = vrot.slane %v10078_v37, 4  ;;  %v9195_v36 = vsub.f32 %v19186_v48, %v9069_v63  ;;  %v9196_v27 = vsub.f32 %v19277_v22, %v9068_v21  ;;  %v20542_v48 = vld [vmem:[#allocation135_spill] sm:$0xff]  ;;  %v20543_v22 = vld [vmem:[#allocation136_spill] sm:$0xff] }
 0x8ef   : > { %v11643_v23 = vadd.f32 %v11468_v38, %v11451_v41  ;;  %v9199_v42 = vsub.f32 %v19295_v32, %v9069_v63  ;;  %v9200_v12 = vsub.f32 %v20538_v2, %v9068_v21  ;;  %v9202_v55 = vsub.f32 %v20540_v53, %v9061_v60 }
 0x8f0   : > { %v9197_v9 = vsub.f32 %v19259_v39, %v9070_v3  ;;  %v10080_v16 = vadd.f32 %v10079_v1, %v10078_v37  ;;  %v9201_v13 = vsub.f32 %v20539_v62, %v9070_v3  ;;  %v9203_v43 = vsub.f32 %v20541_v47, %v9069_v63  ;;  %v20549_v47 = vld [vmem:[#allocation138_spill] sm:$0xff] }
 0x8f1   : > { %v11644_v6 = vadd.f32 %v11643_v23, %v11485_v57  ;;  %v9204_v19 = vsub.f32 %v20542_v48, %v9068_v21  ;;  %v9205_v20 = vsub.f32 %v20543_v22, %v9070_v3  ;;  %v9389_v54 = vmul.f32 1.442695, %v9194_v8 }
 0x8f2   : > { %v10081_v41 = vrot.slane %v10080_v16, 2  ;;  %v9206_v39 = vsub.f32 %v20544_v34, %v9061_v60  ;;  %v9391_v38 = vmul.f32 1.442695, %v9195_v36  ;;  %v9393_v32 = vmul.f32 1.442695, %v9196_v27 }
 0x8f3   : > { %v11646_v45 = vadd.f32 %v11645_v49, %v11644_v6  ;;  %14034 = vpow2.f32 %v9389_v54  ;;  %v9395_v37 = vmul.f32 1.442695, %v9197_v9  ;;  %v9397_v1 = vmul.f32 1.442695, %v9198_v40 }
 0x8f4   : > { %v10082_v2 = vadd.f32 %v10081_v41, %v10080_v16  ;;  %14036 = vpow2.f32 %v9391_v38  ;;  %v9399_v62 = vmul.f32 1.442695, %v9199_v42  ;;  %v10659_v21 = vrot.slane %v10651_v33, %v16299_v51 }
 0x8f5   : > { %14038 = vpow2.f32 %v9393_v32  ;;  %v9401_v63 = vmul.f32 1.442695, %v9200_v12  ;;  %v9403_v57 = vmul.f32 1.442695, %v9201_v13  ;;  %v9405_v3 = vmul.f32 1.442695, %v9202_v55 }
 0x8f6   : > { %v10083_v8 = vrot.slane %v10082_v2, 1  ;;  %14040 = vpow2.f32 %v9395_v37  ;;  %v9407_v60 = vmul.f32 1.442695, %v9203_v43  ;;  %v9409_v36 = vmul.f32 1.442695, %v9204_v19 }
 0x8f7   : > { %14042 = vpow2.f32 %v9397_v1  ;;  %v9411_v49 = vmul.f32 1.442695, %v9205_v20  ;;  %v20545_v27 = vcombine.low %v19516_v59, %v19523_v24  ;;  %v10668_v23 = vcombine.low %v19538_v25, %v19546_v14  ;;  %v20547_v24 = vld [vmem:[#allocation129_spill] sm:$0xff]  ;;  %v20548_v25 = vld [vmem:[#allocation58_spill] sm:$0xff] }
 0x8f8   : > { %v10084_v31 = vadd.f32 %v10083_v8, %v10082_v2  ;;  %14044 = vpow2.f32 %v9399_v62  ;;  %v9413_v44 = vmul.f32 1.442695, %v9206_v39  ;;  %v20546_v33 = vcombine.low %v19551_v30, %v19557_v61  ;;  %v20553_v39 = vld [vmem:[#allocation108_spill] sm:$0xff]  ;;  %v20554_v2 = vld [vmem:[#allocation114_spill] sm:$0xff] }
 0x8f9   : > { %v10666_v40 = vrot.slane %v20545_v27, %v16299_v51  ;;  %14046 = vpow2.f32 %v9401_v63  ;;  %v10676_v12 = vrot.slane %v10668_v23, %v16299_v51  ;;  %v11641_v16 = vrot.slane %v19527_v56, 1 }
 0x8fa   : > { %v10683_v9 = vrot.slane %v20546_v33, %v16299_v51  ;;  %14048 = vpow2.f32 %v9403_v57  ;;  %v11647_v59 = vrot.slane %v11646_v45, 4  ;;  %v19649_v13 = vmul.f32 %v20547_v24, %v19509_v18  ;;  %v20550_v18 = vld [vmem:[#allocation39_spill] sm:$0xff] }
 0x8fb   : > { %v10667_v42 = vcombine.low %v10659_v21, %v10666_v40  ;;  %v19653_v14 = vmul.f32 %v20548_v25, %v19492_v52  ;;  %14050 = vpow2.f32 %v9405_v3  ;;  %v11642_v30 = vadd.f32 %v11641_v16, %v19527_v56 }
 0x8fc   : > { %v10684_v53 = vcombine.low %v10676_v12, %v10683_v9  ;;  %v19658_v61 = vmul.f32 %v19520_v50, %v19548_v58  ;;  %14052 = vpow2.f32 %v9407_v60  ;;  %v11648_v55 = vadd.f32 %v11647_v59, %v11646_v45  ;;  %v20555_v60 = vld [vmem:[#allocation113_spill] sm:$0xff]  ;;  %v20557_v59 = vld [vmem:[#allocation115_spill] sm:$0xff] }
 0x8fd   : > { %v19662_v43 = vmul.f32 %v20522_v29, %v20549_v47  ;;  %v19666_v6 = vmul.f32 %v20524_v10, %v20550_v18  ;;  %14054 = vpow2.f32 %v9409_v36  ;;  %v19670_v48 = vmul.f32 %v20526_v26, %v19486_v7 }
 0x8fe   : > { %v10859_v52 = vadd.f32 %v10684_v53, %v10667_v42  ;;  %v19674_v56 = vmul.f32 %v20547_v24, %v19494_v17  ;;  %14056 = vpow2.f32 %v9411_v49  ;;  %v11649_v58 = vrot.slane %v11648_v55, 2 }
 0x8ff   : > { %v19678_v29 = vmul.f32 %v20548_v25, %v19489_v46  ;;  %v19681_v45 = vmul.f32 %v19520_v50, %v11642_v30  ;;  %14058 = vpow2.f32 %v9413_v44  ;;  %v19688_v7 = vmul.f32 %v19498_v4, %v19498_v4  ;;  %v20558_v30 = vld [vmem:[#allocation124_spill] sm:$0xff] }
 0x900   : > { %v10860_v10 = vadd.f32 %v10859_v52, %v10701_v35  ;;  %v19692_v17 = vmul.f32 %v19504_v5, %v19504_v5  ;;  %v14035_v26 = vpop.eup %14034  ;;  %v20551_v46 = vrot.slane %v19585_v11, %v16299_v51  ;;  %v19698_v19 = vadd.f32 %v11649_v58, %v11648_v55  ;;  %v20552_v35 = vld [vmem:[#allocation112_spill] sm:$0xff] }
 0x901   : > { %14060 = vrcp.f32 %v10084_v31  ;;  %v19702_v15 = vmul.f32 %v19512_v0, %v19512_v0  ;;  %v14037_v28 = vpop.eup %14036  ;;  %v19705_v22 = vmul.f32 %v14035_v26, %v20552_v35  ;;  %v19709_v54 = vmul.f32 %v19649_v13, %v19649_v13  ;;  %v20556_v31 = vld [vmem:[#allocation123_spill] sm:$0xff] }
 0x902   : > { %v10861_v50 = vsel %vm3589_vm5, %v20551_v46, 0.0  ;;  %v19713_v11 = vmul.f32 %v19653_v14, %v19653_v14  ;;  %v14039_v41 = vpop.eup %14038  ;;  %v9925_v34 = vcombine.low %v14035_v26, %v14037_v28  ;;  %v19716_v38 = vmul.f32 %v14037_v28, %v20553_v39 }
 0x903   : > { %v10862_v20 = vadd.f32 %v10861_v50, %v10860_v10  ;;  %v19720_v32 = vmul.f32 %v19658_v61, %v19658_v61  ;;  %v14041_v1 = vpop.eup %14040  ;;  %v19725_v62 = vmul.f32 %v14039_v41, %v20554_v2  ;;  %v10970_v21 = vmul.f32 %v19705_v22, %v20552_v35  ;;  %v20559_v50 = vld [vmem:[#allocation116_spill] sm:$0xff] }
 0x904   : > { %v11651_v63 = vrot.slane %v19698_v19, 1  ;;  %v14043_v3 = vpop.eup %14042  ;;  %v9926_v8 = vcombine.low %v14039_v41, %v14041_v1  ;;  %v19733_v36 = vmul.f32 %v14041_v1, %v20555_v60  ;;  %v10709_v49 = vcombine.low %v19705_v22, %v19716_v38  ;;  %v20560_v41 = vld [vmem:[#allocation125_spill] sm:$0xff] }
 0x905   : > { %v10863_v27 = vrot.slane %v10862_v20, 4  ;;  %v14045_v40 = vpop.eup %14044  ;;  %v9933_v23 = vrot.slane %v9925_v34, %v16299_v51  ;;  %v19739_v44 = vmul.f32 %v14043_v3, %v20556_v31  ;;  %v10971_v33 = vmul.f32 %v19716_v38, %v20553_v39 }
 0x906   : > { %v10972_v9 = vmul.f32 %v19725_v62, %v20554_v2  ;;  %v14047_v42 = vpop.eup %14046  ;;  %v9940_v12 = vrot.slane %v9926_v8, %v16299_v51  ;;  %v9942_v16 = vcombine.low %v14043_v3, %v14045_v40  ;;  %v19747_v24 = vmul.f32 %v14045_v40, %v20557_v59  ;;  %v20561_v8 = vld [vmem:[#allocation117_spill] sm:$0xff] }
 0x907   : > { %v10973_v25 = vmul.f32 %v19733_v36, %v20555_v60  ;;  %v14049_v53 = vpop.eup %14048  ;;  %v19752_v55 = vmul.f32 %v14047_v42, %v20558_v30  ;;  %v10974_v47 = vmul.f32 %v19739_v44, %v20556_v31  ;;  %v11493_v18 = vcombine.low %v10970_v21, %v10971_v33 }
 0x908   : > { %v10710_v52 = vcombine.low %v19725_v62, %v19733_v36  ;;  %v14051_v58 = vpop.eup %14050  ;;  %v9941_v10 = vcombine.low %v9933_v23, %v9940_v12  ;;  %v9943_v26 = vcombine.low %v14047_v42, %v14049_v53  ;;  %v9950_v46 = vrot.slane %v9942_v16, %v16299_v51  ;;  %v20562_v23 = vld [vmem:[#allocation126_spill] sm:$0xff] }
 0x909   : > { %v10193_v28 = vmul.f32 %v14049_v53, %v20559_v50  ;;  %v14053_v35 = vpop.eup %14052  ;;  %v10194_v34 = vmul.f32 %v14051_v58, %v20560_v41  ;;  %v10726_v39 = vcombine.low %v19739_v44, %v19747_v24  ;;  %v10975_v1 = vmul.f32 %v19747_v24, %v20557_v59  ;;  %v20563_v53 = vld [vmem:[#allocation120_spill] sm:$0xff] }
 0x90a   : > { %v10976_v2 = vmul.f32 %v19752_v55, %v20558_v30  ;;  %v14055_v62 = vpop.eup %14054  ;;  %v9957_v21 = vrot.slane %v9943_v26, %v16299_v51  ;;  %v9959_v3 = vcombine.low %v14051_v58, %v14053_v35  ;;  %v10195_v60 = vmul.f32 %v14053_v35, %v20561_v8  ;;  %v20564_v35 = vld [vmem:[#allocation127_spill] sm:$0xff] }
 0x90b   : > { %v10977_v36 = vmul.f32 %v10193_v28, %v20559_v50  ;;  %v14057_v40 = vpop.eup %14056  ;;  %v10196_v31 = vmul.f32 %v14055_v62, %v20562_v23  ;;  %v10978_v33 = vmul.f32 %v10194_v34, %v20560_v41  ;;  %v11494_v44 = vcombine.low %v10972_v9, %v10973_v25 }
 0x90c   : > { %v10864_v42 = vadd.f32 %v10863_v27, %v10862_v20  ;;  %v14059_v12 = vpop.eup %14058  ;;  %v9958_v16 = vcombine.low %v9950_v46, %v9957_v21  ;;  %v9960_v59 = vcombine.low %v14055_v62, %v14057_v40  ;;  %v9967_v24 = vrot.slane %v9959_v3, %v16299_v51 }
 0x90d   : > { %v10197_v30 = vmul.f32 %v14057_v40, %v20563_v53  ;;  %v9982_v58 = vrot.slane %v14059_v12, %v16299_v51  ;;  %v10198_v50 = vmul.f32 %v14059_v12, %v20564_v35  ;;  %v10743_v57 = vcombine.low %v10194_v34, %v10195_v60 }
 0x90e   : > { %v19774_v26 = vpop.eup %14060  ;;  %v10979_v37 = vmul.f32 %v10195_v60, %v20561_v8  ;;  %v9974_v41 = vrot.slane %v9960_v59, %v16299_v51  ;;  %v10085_v9 = vadd.f32 %v9958_v16, %v9941_v10  ;;  %v10980_v27 = vmul.f32 %v10196_v31, %v20562_v23 }
 0x90f   : > { %v10744_v20 = vcombine.low %v10196_v31, %v10197_v30  ;;  %v10751_v25 = vrot.slane %v10743_v57, %v16299_v51  ;;  %v10981_v46 = vmul.f32 %v10197_v30, %v20563_v53  ;;  %v10982_v62 = vmul.f32 %v10198_v50, %v20564_v35 }
 0x910   : > { %v11501_v21 = vrot.slane %v11493_v18, %v16299_v51  ;;  %v9975_v3 = vcombine.low %v9967_v24, %v9974_v41  ;;  %v11508_v34 = vrot.slane %v11494_v44, %v16299_v51  ;;  %v11510_v8 = vcombine.low %v10974_v47, %v10975_v1 }
 0x911   : > { %v10758_v40 = vrot.slane %v10744_v20, %v16299_v51  ;;  %v10087_v60 = vsel %vm3589_vm5, %v9982_v58, 0.0  ;;  %v11511_v10 = vcombine.low %v10976_v2, %v10977_v36  ;;  %v11527_v12 = vcombine.low %v10978_v33, %v10979_v37 }
 0x912   : > { %v11528_v16 = vcombine.low %v10980_v27, %v10981_v46  ;;  %v10086_v23 = vadd.f32 %v10085_v9, %v9975_v3  ;;  %v11509_v57 = vcombine.low %v11501_v21, %v11508_v34  ;;  %v11550_v59 = vrot.slane %v10982_v62, %v16299_v51 }
 0x913   : > { %v10759_v31 = vcombine.low %v10751_v25, %v10758_v40  ;;  %v11518_v53 = vrot.slane %v11510_v8, %v16299_v51  ;;  %v11525_v18 = vrot.slane %v11511_v10, %v16299_v51  ;;  %v11535_v24 = vrot.slane %v11527_v12, %v16299_v51 }
 0x914   : > { %v11542_v30 = vrot.slane %v11528_v16, %v16299_v51  ;;  %v10088_v44 = vadd.f32 %v10087_v60, %v10086_v23  ;;  %v10717_v37 = vrot.slane %v10709_v49, %v16299_v51  ;;  %v10724_v47 = vrot.slane %v10710_v52, %v16299_v51 }
 0x915   : > { %v10727_v1 = vcombine.low %v19752_v55, %v10193_v28  ;;  %v11526_v2 = vcombine.low %v11518_v53, %v11525_v18  ;;  %v10734_v33 = vrot.slane %v10726_v39, %v16299_v51  ;;  %v10865_v58 = vrot.slane %v10864_v42, 2 }
 0x916   : > { %v11543_v36 = vcombine.low %v11535_v24, %v11542_v30  ;;  %v10089_v35 = vrot.slane %v10088_v44, 4  ;;  %v10725_v41 = vcombine.low %v10717_v37, %v10724_v47  ;;  %v11652_v20 = vadd.f32 %v11651_v63, %v19698_v19 }
 0x917   : > { %v10741_v9 = vrot.slane %v10727_v1, %v16299_v51  ;;  %v11653_v27 = vadd.f32 %v11526_v2, %v11509_v57  ;;  %v10766_v22 = vrot.slane %v10198_v50, %v16299_v51  ;;  %v10866_v38 = vadd.f32 %v10865_v58, %v10864_v42 }
 0x918   : > { %v11655_v49 = vsel %vm3589_vm5, %v11550_v59, 0.0  ;;  %v10090_v55 = vadd.f32 %v10089_v35, %v10088_v44  ;;  %v11693_v28 = vmul.f32 %v19774_v26, %v11652_v20  ;;  %v11705_v39 = vsub.f32 %v19670_v48, %v19702_v15 }
 0x919   : > { %v10742_v52 = vcombine.low %v10734_v33, %v10741_v9  ;;  %v11654_v25 = vadd.f32 %v11653_v27, %v11543_v36  ;;  %v10867_v46 = vrot.slane %v10866_v38, 1  ;;  %v11706_v62 = vsub.f32 %v19674_v56, %v19709_v54 }
 0x91a   : > { %v11707_v19 = vsub.f32 %v19678_v29, %v19713_v11  ;;  %v10091_v63 = vrot.slane %v10090_v55, 2  ;;  %v11708_v42 = vsub.f32 %v19681_v45, %v19720_v32  ;;  %v20565_v50 = vsub.f32 %v19662_v43, %v19688_v7 }
 0x91b   : > { %v10869_v51 = vadd.f32 %v10742_v52, %v10725_v41  ;;  %v10868_v3 = vadd.f32 %v10867_v46, %v10866_v38  ;;  %v11656_v48 = vadd.f32 %v11655_v49, %v11654_v25  ;;  %v20566_v15 = vsub.f32 %v19666_v6, %v19692_v17 }
 0x91c   : > { %v19818_v21 = vmax.f32 %v20565_v50, 1e-09  ;;  %v10092_v56 = vadd.f32 %v10091_v63, %v10090_v55  ;;  %v10871_v29 = vsel %vm3589_vm5, %v10766_v22, 0.0  ;;  %v19829_v45 = vmax.f32 %v11705_v39, 1e-09 }
 0x91d   : > { %v19823_v40 = vmax.f32 %v20566_v15, 1e-09  ;;  %v10870_v54 = vadd.f32 %v10869_v51, %v10759_v31  ;;  %v11657_v11 = vrot.slane %v11656_v48, 4  ;;  %v19827_v34 = vmul.f32 %v19774_v26, %v10868_v3 }
 0x91e   : > { %14062 = vrsqrt.f32 %v19818_v21  ;;  %v10093_v43 = vrot.slane %v10092_v56, 1  ;;  %v19834_v17 = vmax.f32 %v11706_v62, 1e-09  ;;  %v19837_v12 = vmax.f32 %v11707_v19, 1e-09 }
 0x91f   : > { %v10872_v7 = vadd.f32 %v10871_v29, %v10870_v54  ;;  %v11658_v32 = vadd.f32 %v11657_v11, %v11656_v48  ;;  %v11701_v6 = vmul.f32 %v19827_v34, %v19827_v34  ;;  %14064 = vrsqrt.f32 %v19823_v40 }
 0x920   : > { %v10094_v8 = vadd.f32 %v10093_v43, %v10092_v56  ;;  %14066 = vrsqrt.f32 %v19829_v45  ;;  %v19840_v23 = vmax.f32 %v11708_v42, 1e-09  ;;  %vm11721_vm6 = vcmp.eq.f32.partialorder %v19818_v21, inf }
 0x921   : > { %v10873_v60 = vrot.slane %v10872_v7, 4  ;;  %v11709_v10 = vsub.f32 %v11693_v28, %v11701_v6  ;;  %v11659_v16 = vrot.slane %v11658_v32, 2  ;;  %vm11723_vm7 = vcmp.eq.f32.partialorder %v19818_v21, 0.0 }
 0x922   : > { %14068 = vrcp.f32 %v10094_v8  ;;  %v11724_v18 = vand.u32 2147483648, %v19818_v21  ;;  %vm11728_vm8 = vcmp.eq.f32.partialorder %v19823_v40, inf  ;;  %vm11730_vm9 = vcmp.eq.f32.partialorder %v19823_v40, 0.0 }
 0x923   : > { %v10874_v26 = vadd.f32 %v10873_v60, %v10872_v7  ;;  %v19842_v31 = vmax.f32 %v11709_v10, 1e-09  ;;  %14070 = vrsqrt.f32 %v19834_v17  ;;  %v11660_v53 = vadd.f32 %v11659_v16, %v11658_v32  ;;  %v555_v16 = vld [vmem:[#allocation19 + $0x18] sm:$0xff] }
 0x924   : > { %14072 = vrsqrt.f32 %v19837_v12  ;;  %v11731_v24 = vand.u32 2147483648, %v19823_v40  ;;  %vm11735_vm10 = vcmp.eq.f32.partialorder %v19829_v45, inf  ;;  %vm11737_vm11 = vcmp.eq.f32.partialorder %v19829_v45, 0.0 }
 0x925   : > { %v10875_v57 = vrot.slane %v10874_v26, 2  ;;  %14074 = vrsqrt.f32 %v19840_v23  ;;  %v11738_v30 = vand.u32 2147483648, %v19829_v45  ;;  %v11661_v47 = vrot.slane %v11660_v53, 1 }
 0x926   : > { %14076 = vrsqrt.f32 %v19842_v31  ;;  %v11784_v1 = vsel %vm11783_vm12, %v19504_v5, %v19498_v4  ;;  %vm11742_vm0 = vcmp.eq.f32.partialorder %v19834_v17, inf  ;;  %vm11744_vm2 = vcmp.eq.f32.partialorder %v19834_v17, 0.0 }
 0x927   : > { %v10876_v59 = vadd.f32 %v10875_v57, %v10874_v26  ;;  %v11786_v36 = vsel %vm11785_vm13, %v19512_v0, %v11784_v1  ;;  %v11745_v58 = vand.u32 2147483648, %v19834_v17  ;;  %vm11749_vm4 = vcmp.eq.f32.partialorder %v19837_v12, inf  ;;  %v14109_v57 = vld [vmem:[#allocation19 + $0x10] sm:$0xff]  ;;  %v20568_v1 = vld [vmem:[#allocation28_spill] sm:$0xff] }
 0x928   : > { %v11788_v35 = vsel %vm11787_vm14, %v19649_v13, %v11786_v36  ;;  %v11662_v20 = vadd.f32 %v11661_v47, %v11660_v53  ;;  %vm11751_vm5 = vcmp.eq.f32.partialorder %v19837_v12, 0.0  ;;  %v11752_v46 = vand.u32 2147483648, %v19837_v12 }
 0x929   : > { %v10877_v37 = vrot.slane %v10876_v59, 1  ;;  %v11790_v0 = vsel %vm11789_vm15, %v19653_v14, %v11788_v35  ;;  %v11759_v29 = vand.u32 2147483648, %v19840_v23  ;;  %v11766_v6 = vand.u32 2147483648, %v19842_v31 }
 0x92a   : > { %v11792_v13 = vsel %vm11791_vm1, %v19658_v61, %v11790_v0 }
 0x92b   : > { %v14063_v44 = vpop.eup %14062  ;;  %v10878_v9 = vadd.f32 %v10877_v37, %v10876_v59  ;;  %v11794_v49 = vsel %vm11793_vm3, %v19827_v34, %v11792_v13  ;;  %v20567_v59 = vld [vmem:[#allocation33_spill] sm:$0xff] }
 0x92c   : > { %v11720_v2 = vmul.f32 %v14063_v44, %v19818_v21  ;;  %v14065_v33 = vpop.eup %14064  ;;  %v11817_v53 = vrot.slane %v14109_v57, %v20567_v59  ;;  %v20569_v13 = vld [vmem:[#allocation29_spill] sm:$0xff] }
 0x92d   : > { %v11727_v5 = vmul.f32 %v14065_v33, %v19823_v40  ;;  %v14067_v41 = vpop.eup %14066 }
 0x92e   : > { %v11722_v4 = vsel %vm11721_vm6, %v19818_v21, %v11720_v2  ;;  %v11734_v38 = vmul.f32 %v14067_v41, %v19829_v45  ;;  %vm11795_vm6 = vcmask 1047559  }
 0x92f   : > { %v14069_v27 = vpop.eup %14068  ;;  %v11729_v22 = vsel %vm11728_vm8, %v19823_v40, %v11727_v5  ;;  %v11725_v28 = vsel %vm11723_vm7, %v11724_v18, %v11722_v4  ;;  %vm11756_vm7 = vcmp.eq.f32.partialorder %v19840_v23, inf  ;;  %vm11758_vm8 = vcmp.eq.f32.partialorder %v19840_v23, 0.0  ;;  %v556_v18 = vld [vmem:[#allocation19 + $0x20] sm:$0xff] }
 0x930   : > { %v14071_v14 = vpop.eup %14070  ;;  %v11686_v55 = vmul.f32 %v14069_v27, %v10878_v9  ;;  %v11694_v52 = vmul.f32 %v14069_v27, %v11662_v20  ;;  %v11732_v61 = vsel %vm11730_vm9, %v11731_v24, %v11729_v22  ;;  %v11736_v39 = vsel %vm11735_vm10, %v19829_v45, %v11734_v38  ;;  %v557_v24 = vld [vmem:[#allocation19 + $0x28] sm:$0xff]  ;;  %v13787_v9 = vld [vmem:[#allocation17] sm:$0xff]  }
 0x931   : > { %v11741_v25 = vmul.f32 %v14071_v14, %v19834_v17  ;;  %v11806_v62 = vsel %vm11783_vm12, %v11732_v61, %v11725_v28  ;;  %v14073_v19 = vpop.eup %14072  ;;  %v11739_v51 = vsel %vm11737_vm11, %v11738_v30, %v11736_v39  ;;  %vm11763_vm9 = vcmp.eq.f32.partialorder %v19842_v31, inf  ;;  %13475 = vmatpush3.bf16.msra.mxu0 %v13787_v9  ;;  %v20571_v28 = vld [vmem:[#allocation31_spill] sm:$0xff] }
 0x932   : > { %v11702_v63 = vmul.f32 %v11686_v55, %v11686_v55  ;;  %v11796_v42 = vsel %vm11795_vm6, %v11686_v55, %v11794_v49  ;;  %v14075_v50 = vpop.eup %14074  ;;  %v11748_v3 = vmul.f32 %v14073_v19, %v19837_v12  ;;  %v11807_v48 = vsel %vm11785_vm13, %v11739_v51, %v11806_v62  ;;  %v20570_v49 = vld [vmem:[#allocation30_spill] sm:$0xff]  ;;  %v20572_v19 = vld [vmem:[#allocation32_spill] sm:$0xff] }
 0x933   : > { %v11743_v21 = vsel %vm11742_vm0, %v19834_v17, %v11741_v25  ;;  %v14077_v15 = vpop.eup %14076  ;;  %v11755_v54 = vmul.f32 %v14075_v50, %v19840_v23  ;;  %vm11765_vm10 = vcmp.eq.f32.partialorder %v19842_v31, 0.0  ;;  %v11822_v47 = vmul.f32 %v11817_v53, %v11796_v42 }
 0x934   : > { %v11710_v40 = vsub.f32 %v11694_v52, %v11702_v63  ;;  %v11746_v56 = vsel %vm11744_vm2, %v11745_v58, %v11743_v21  ;;  %v11750_v11 = vsel %vm11749_vm4, %v19837_v12, %v11748_v3  ;;  %v11762_v34 = vmul.f32 %v14077_v15, %v19842_v31 }
 0x935   : > { %v11808_v45 = vsel %vm11787_vm14, %v11746_v56, %v11807_v48  ;;  %v11753_v7 = vsel %vm11751_vm5, %v11752_v46, %v11750_v11  ;;  %v11757_v32 = vsel %vm11756_vm7, %v19840_v23, %v11755_v54  ;;  %v11827_v2 = vrot.slane %v556_v18, %v20568_v1 }
 0x936   : > { %v11718_v43 = vmax.f32 %v11710_v40, 1e-09  ;;  %v11760_v17 = vsel %vm11758_vm8, %v11759_v29, %v11757_v32  ;;  %v11764_v8 = vsel %vm11763_vm9, %v19842_v31, %v11762_v34  ;;  %v11809_v60 = vsel %vm11789_vm15, %v11753_v7, %v11808_v45 }
 0x937   : > { %v11767_v10 = vsel %vm11765_vm10, %v11766_v6, %v11764_v8  ;;  %v11810_v26 = vsel %vm11791_vm1, %v11760_v17, %v11809_v60  ;;  %v11821_v31 = vrot.slane %v555_v16, %v20567_v59  ;;  %v11831_v33 = vrot.slane %v557_v24, %v20568_v1 }
 0x938   : > { %14078 = vrsqrt.f32 %v11718_v43  ;;  %v11811_v12 = vsel %vm11793_vm3, %v11767_v10, %v11810_v26  ;;  %vm11770_vm11 = vcmp.eq.f32.partialorder %v11718_v43, inf  ;;  %v11773_v44 = vand.u32 2147483648, %v11718_v43 }
 0x939   : > { %vm11772_vm12 = vcmp.eq.f32.partialorder %v11718_v43, 0.0  ;;  %v11832_v4 = vadd.f32 %v11827_v2, %v11822_v47  ;;  %v11871_v27 = vrot.slane %v556_v18, %v20569_v13  ;;  %v12011_v14 = vrot.slane %v556_v18, %v20570_v49 }
 0x93a   : > { %v12016_v61 = vrot.slane %v556_v18, %v20571_v28  ;;  %v12038_v63 = vrot.slane %v556_v18, %v20572_v19 }
 0x93b   : > { %v11834_v41 = vpack.c.bf16 %v11832_v4, %v11832_v4 }
 0x945   : > { %v14079_v23 = vpop.eup %14078 }
 0x946   : > { %v11769_v30 = vmul.f32 %v14079_v23, %v11718_v43 }
 0x948   : > { %v11771_v37 = vsel %vm11770_vm11, %v11718_v43, %v11769_v30 }
 0x949   : > { %v11774_v36 = vsel %vm11772_vm12, %v11773_v44, %v11771_v37 }
 0x94a   : > { %v11812_v58 = vsel %vm11795_vm6, %v11774_v36, %v11811_v12 }
 0x94b   : > { %v11823_v35 = vmul.f32 %v11821_v31, %v11812_v58 }
 0x94d   : > { %v11833_v5 = vadd.f32 %v11831_v33, %v11823_v35 }
 0x94f   : > { %v11835_v0 = vpack.c.bf16 %v11833_v5, %v11833_v5 }
 0x951   : > { %12000 = vmatprep.mubr.bf16.mxu1 %v11835_v0 }
 0x952   : > { %12001 = vmatmul.mubr.bf16.vlgmr.msra.gmra.mxu1 %v11834_v41 }
 0xa12   : > { %v13005_v20 = vpop.f32.mrf.mxu1 }
 0xa14   : > { %v13006_v22 = vpop.f32.mrf.mxu1 }
 0xa15   : > { %v13007_v38 = vadd.f32 %v13006_v22, %v13005_v20 }
 0xa16   : > { %v13008_v55 = vpop.f32.mrf.mxu1 }
 0xa17   : > { %v12003_v52 = vadd.f32 %v13007_v38, %v11871_v27 }
 0xa18   : > { %v13009_v39 = vpop.f32.mrf.mxu1 }
 0xa19   : > { %v12012_v25 = vmul.f32 %v12011_v14, %v12003_v52 }
 0xa1b   : > { %v12017_v46 = vadd.f32 %v12016_v61, %v12012_v25 }
 0xa1d   : > { %v12018_v62 = vpack.c.bf16 %v12017_v46, %v12017_v46 }
 0xa1f   : > { %13477 = vmatmul.mubr.bf16.vlgmr.msra.gmra.mxu0 %v12018_v62 }
 0xadf   : > { %v12121_v51 = vpop.f32.mrf.mxu0 }
 0xae0   : > { %v12122_v42 = vadd.f32 %v12121_v51, %v12038_v63 }
 0xae1   : > { %v13478_v50 = vpop.f32.mrf.mxu0 }
 0xae2   : > { %12127 = vmax.xlane.f32.xlu0 %v12122_v42 }
 0xae3   : > { %v12124_v21 = vpop.f32.mrf.mxu0 }
 0xae5   : > { %v13479_v3 = vpop.f32.mrf.mxu0 }
 0xb6b   : > { %v12128_v48 = vpop.xlane.xlu0 %12127 }
 0xb6c   : > { %v12129_v15 = vsub.f32 %v12122_v42, %v12128_v48 }
 0xb6e   : > { %v12130_v40 = vmul.f32 1.442695, %v12129_v15 }
 0xb70   : > { %14080 = vpow2.f32 %v12130_v40 }
 0xb7d   : > { %v14081_v56 = vpop.eup %14080 }
 0xb7e   : > { %12132 = vadd.xlane.f32.xlu0 %v14081_v56 }
 0xc07   : > { %v12133_v54 = vpop.xlane.xlu0 %12132 }
 0xc08   : > { %14082 = vrcp.f32 %v12133_v54 }
 0xc15   : > { %v14083_v29 = vpop.eup %14082 }
 0xc16   : > { %v12135_v11 = vmul.f32 %v14083_v29, %v14081_v56 }
 0xc18   : > { %12136 = vst [vmem:[%s550_s24] sm:$0xff] %v12135_v11 }
 0xc19   : > { %14411 = shalt.err (!%p14408_p2)
}
 0xc1a   : > { %s14412_s30 = scalar_lea.hbm %s12149_s29, 128  ;;  %s14416_s28 = scalar_lea.hbm %s19981_s11, 256 }
 0xc1b   : > { %p14413_p7 = scmp.ne.s32.totalorder %s12149_s29, %s14412_s30  ;;  %p14417_p6 = scmp.lt.s32.totalorder %s12149_s29, %s19981_s11 }
 0xc1c   : > { %p14418_p11 = scmp.lt.s32.totalorder %s14416_s28, %s14412_s30 }
 0xc1d   : > { %p14414_p5 = pnand %p14413_p7, %p20573_p8 }
 0xc1e   : > { %p14419_p12 = por %p14418_p11, %p14417_p6 }
 0xc1f   : > { %p14415_p10 = pneg %p14414_p5 }
 0xc21   : > { %p14420_p13 = pnand %p14419_p12, %p14415_p10 }
 0xc23   : > { %14423 = shalt.err (!%p14420_p13)
}
 0xc24   : > { %13525 = dma.vmem_to_hbm [thread:$0]  (%p20573_p8), %s12152_s27, 128, %s12149_s29, %s12138_s16  }
 0xc25 PF: > { %s12163_s24 = sand.u32 1, %s14470_s17   ;;  %p20574_p1 = scmp.ne.s32.totalorder %s20205_s12, 0 }
 0xc26   : > { %p20575_p3 = scmp.ge.s32.totalorder %s14482_s20, 2  ;;  %s12164_s13 = scalar_lea.sflag [#allocation4], %s12163_s24 }
 0xc28   : > { %p13563_p4 = pnand %p20575_p3, %p20574_p1 }
 0xc2a   : > { %p13564_p9 = pneg %p13563_p4 }
 0xc2c   : > { %14465 = dma.done.wait (%p13564_p9), %s12164_s13, 128  }
 0xc2d   : > { %14467 = vsyncadd (%p13564_p9), %s12164_s13, 4294967168  ;;  %p29_p0 = scmp.ge.s32.totalorder %s14724_s15, 4   ;;  %s20576_s17 = smov %s14474_s18 }
 0xc2e   : > { %s20577_s18 = smov %s14478_s19  ;;  %s20578_s19 = smov %s14735_s21 }
 0xc2f   : > { %s20579_s20 = smov %s14724_s15  ;;  %31 = sbr.rel (!%p29_p0) target bundleno = 16 (0x10), region = 149 }
 0xc34   :  { %12169 = vsyncpa [#allocation3], 1 }
 0xc35   :  { %12171 = vsyncpa [#allocation3 + $0x1], 1 }
 0xc36   :  { %12172 = vsyncpa [#allocation6], 1 }
 0xc37   :  { %12173 = vsyncpa [#allocation9], 1 }
 0xc38   :  { %12174 = vsyncpa [#allocation12], 1 }
 0xc39   :  { %12175 = vsyncpa [#allocation15], 1 }
 0xc3a   :  { %12176 = vsyncpa [#allocation18], 1 }
 0xc3b   :  { %12177 = vsyncpa [#allocation4], 1 }
 0xc3c   :  { %12179 = vsyncpa [#allocation4 + $0x1], 1 }

</bundles_post_ra>
